<compile_context>
chip_gen: v7x
topology: tpu7x:2x2x1
jax: 0.10.0
libtpu: 0.0.40
codegen_flags: <defaults>
</compile_context>

<pallas_src>
import jax
import jax.numpy as jnp
from jax import lax
from jax.experimental import pallas as pl
from jax.experimental.pallas import tpu as pltpu

CPAD = 128  # lane-dense channel padding


# ----------------------------- Pallas kernels -----------------------------

def _stem_kernel(c_ref, w_ref, s_ref, b_ref, o_ref):
    # im2col-matmul of the 7x7/s2 conv fused with folded BN + ReLU.
    y = jnp.dot(c_ref[...], w_ref[...], preferred_element_type=jnp.float32)
    o_ref[...] = jnp.maximum(y * s_ref[...] + b_ref[...], 0.0)


def _dense_layer_kernel(x_ref, s1_ref, b1_ref, w1_ref, s2_ref, b2_ref,
                        w2_ref, t_ref, o_ref):
    x = x_ref[...]                                               # (M, 128) f32
    a1 = jnp.maximum(x * s1_ref[...] + b1_ref[...], 0.0)         # BN1 + ReLU (f32 VPU)
    h = jnp.dot(a1.astype(jnp.bfloat16), w1_ref[...],
                preferred_element_type=jnp.float32)              # 1x1 conv (bf16 MXU)
    a2 = jnp.maximum(h * s2_ref[...] + b2_ref[...], 0.0)         # BN2 + ReLU
    # 3x3 conv, tap-batched: one wide matmul gives all 9 per-tap partial products.
    y = jnp.dot(a2.astype(jnp.bfloat16), w2_ref[...],
                preferred_element_type=jnp.float32)              # (M, 9*128)
    # Channel-concat by column positioning: conv columns live at [cin, cin+g),
    # input slab is zero there, so a plain add implements torch.cat([x, y], 1).
    acc = x
    for k in range(9):
        yk = y[:, k * CPAD:(k + 1) * CPAD].astype(jnp.bfloat16)
        acc = acc + jnp.dot(t_ref[k], yk, preferred_element_type=jnp.float32)
    o_ref[...] = acc


def _transition_kernel(x_ref, s_ref, b_ref, w_ref, p_ref, o_ref):
    # BN + ReLU + 1x1 conv + AvgPool2x2 (pool as precomputed averaging matmul).
    a = jnp.maximum(x_ref[...] * s_ref[...] + b_ref[...], 0.0)
    y = jnp.dot(a.astype(jnp.bfloat16), w_ref[...], preferred_element_type=jnp.float32)
    o_ref[...] = jnp.dot(p_ref[...], y.astype(jnp.bfloat16),
                         preferred_element_type=jnp.float32)


def _head_kernel(x_ref, s_ref, b_ref, a_ref, w_ref, bias_ref, o_ref):
    # final BN + ReLU + global average pool + FC + bias, all fused.
    z = jnp.maximum(x_ref[...] * s_ref[...] + b_ref[...], 0.0)
    pooled = jnp.dot(a_ref[...], z.astype(jnp.bfloat16),
                     preferred_element_type=jnp.float32)
    o_ref[...] = jnp.dot(pooled.astype(jnp.bfloat16), w_ref[...],
                         preferred_element_type=jnp.float32) + bias_ref[...]


# --------------------------- pallas_call wrappers ---------------------------

def _cparams(sem):
    return pltpu.CompilerParams(dimension_semantics=sem,
                                vmem_limit_bytes=32 * 1024 * 1024)


def stem_conv_bn_relu(cols, w, scale, shift, row_tile=256):
    M, K = cols.shape
    tm = row_tile if (M % row_tile == 0) else M
    return pl.pallas_call(
        _stem_kernel,
        grid=(M // tm,),
        in_specs=[
            pl.BlockSpec((tm, K), lambda i: (i, 0)),
            pl.BlockSpec((K, CPAD), lambda i: (0, 0)),
            pl.BlockSpec((1, CPAD), lambda i: (0, 0)),
            pl.BlockSpec((1, CPAD), lambda i: (0, 0)),
        ],
        out_specs=pl.BlockSpec((tm, CPAD), lambda i: (i, 0)),
        out_shape=jax.ShapeDtypeStruct((M, CPAD), jnp.float32),
        compiler_params=_cparams(("parallel",)),
    )(cols, w, scale, shift)


def dense_layer(x, s1, b1, w1, s2, b2, w2wide, tmats):
    M, C = x.shape
    return pl.pallas_call(
        _dense_layer_kernel,
        grid=(1,),
        in_specs=[
            pl.BlockSpec((M, C), lambda i: (0, 0)),
            pl.BlockSpec((1, C), lambda i: (0, 0)),
            pl.BlockSpec((1, C), lambda i: (0, 0)),
            pl.BlockSpec((C, C), lambda i: (0, 0)),
            pl.BlockSpec((1, C), lambda i: (0, 0)),
            pl.BlockSpec((1, C), lambda i: (0, 0)),
            pl.BlockSpec((C, 9 * C), lambda i: (0, 0)),
            pl.BlockSpec((9, M, M), lambda i: (0, 0, 0)),
        ],
        out_specs=pl.BlockSpec((M, C), lambda i: (0, 0)),
        out_shape=jax.ShapeDtypeStruct((M, C), jnp.float32),
        compiler_params=_cparams(("arbitrary",)),
    )(x, s1, b1, w1, s2, b2, w2wide, tmats)


def transition(x, s, b, w, pmat):
    M, C = x.shape
    Mo = pmat.shape[0]
    return pl.pallas_call(
        _transition_kernel,
        grid=(1,),
        in_specs=[
            pl.BlockSpec((M, C), lambda i: (0, 0)),
            pl.BlockSpec((1, C), lambda i: (0, 0)),
            pl.BlockSpec((1, C), lambda i: (0, 0)),
            pl.BlockSpec((C, C), lambda i: (0, 0)),
            pl.BlockSpec((Mo, M), lambda i: (0, 0)),
        ],
        out_specs=pl.BlockSpec((Mo, C), lambda i: (0, 0)),
        out_shape=jax.ShapeDtypeStruct((Mo, C), jnp.float32),
        compiler_params=_cparams(("arbitrary",)),
    )(x, s, b, w, pmat)


def head(x, s, b, amat, fcw, fcb):
    M, C = x.shape
    N = amat.shape[0]
    return pl.pallas_call(
        _head_kernel,
        grid=(1,),
        in_specs=[
            pl.BlockSpec((M, C), lambda i: (0, 0)),
            pl.BlockSpec((1, C), lambda i: (0, 0)),
            pl.BlockSpec((1, C), lambda i: (0, 0)),
            pl.BlockSpec((N, M), lambda i: (0, 0)),
            pl.BlockSpec((C, C), lambda i: (0, 0)),
            pl.BlockSpec((1, C), lambda i: (0, 0)),
        ],
        out_specs=pl.BlockSpec((N, C), lambda i: (0, 0)),
        out_shape=jax.ShapeDtypeStruct((N, C), jnp.float32),
        compiler_params=_cparams(("arbitrary",)),
    )(x, s, b, amat, fcw, fcb)


# ------------------------------- XLA glue -------------------------------

def im2col(x, k, stride, pad):
    """x: NHWC -> (N*Ho*Wo, k*k*C) columns (kernel positions row-major). Stem only."""
    N, H, W, C = x.shape
    xp = jnp.pad(x, ((0, 0), (pad, pad), (pad, pad), (0, 0)))
    Ho = (H + 2 * pad - k) // stride + 1
    Wo = (W + 2 * pad - k) // stride + 1
    cols = []
    for di in range(k):
        for dj in range(k):
            cols.append(
                xp[:, di:di + (Ho - 1) * stride + 1:stride,
                       dj:dj + (Wo - 1) * stride + 1:stride, :])
    cols = jnp.concatenate(cols, axis=-1)
    return cols.reshape(N * Ho * Wo, k * k * C), (N, Ho, Wo)


# ------------------ structural (shift / pool / avg) matrices ------------------
# Pixel rows are ordered (n, i, j) row-major in every (M, 128) feature slab.

def make_shift_mats(N, H, W):
    """T_k[p, q] = 1 iff pixel q = pixel p shifted by 3x3 tap k (zero padding)."""
    M = N * H * W
    p = jnp.arange(M)
    n = p // (H * W)
    rem = p % (H * W)
    i = rem // W
    j = rem % W
    mats = []
    for di in (-1, 0, 1):
        for dj in (-1, 0, 1):
            ii = i + di
            jj = j + dj
            valid = (ii >= 0) & (ii < H) & (jj >= 0) & (jj < W)
            q = jnp.where(valid, n * (H * W) + ii * W + jj, 0)
            t = jax.nn.one_hot(q, M, dtype=jnp.float32) * valid[:, None].astype(jnp.float32)
            mats.append(t)
    return jnp.stack(mats).astype(jnp.bfloat16)           # (9, M, M)


def make_pool_mat(N, H, W):
    """2x2/s2 average-pool as a (N*Ho*Wo, N*H*W) matrix (entries 0.25, exact in bf16)."""
    Ho, Wo = H // 2, W // 2
    Mo, Mi = N * Ho * Wo, N * H * W
    po = jnp.arange(Mo)
    n = po // (Ho * Wo)
    rem = po % (Ho * Wo)
    io = rem // Wo
    jo = rem % Wo
    pm = jnp.zeros((Mo, Mi), jnp.float32)
    for a in (0, 1):
        for b in (0, 1):
            q = n * (H * W) + (2 * io + a) * W + (2 * jo + b)
            pm = pm + jax.nn.one_hot(q, Mi, dtype=jnp.float32) * 0.25
    return pm.astype(jnp.bfloat16)


def make_avg_mat(N, H, W):
    """Global average pool as an (N, N*H*W) matrix (entries 1/(H*W), exact in bf16)."""
    M = N * H * W
    owner = jnp.arange(M) // (H * W)
    amat = (owner[None, :] == jnp.arange(N)[:, None]).astype(jnp.float32) / float(H * W)
    return amat.astype(jnp.bfloat16)


# ----------------------------- parameter init -----------------------------

class KeyGen:
    def __init__(self, key):
        self.key = key

    def __call__(self):
        self.key, sub = jax.random.split(self.key)
        return sub


def fold_bn(kg, c, eps=1e-5):
    gamma = jax.random.uniform(kg(), (c,), jnp.float32, 0.5, 1.5)
    beta = jax.random.normal(kg(), (c,), jnp.float32) * 0.1
    mean = jax.random.normal(kg(), (c,), jnp.float32) * 0.1
    var = jax.random.uniform(kg(), (c,), jnp.float32, 0.5, 1.5)
    scale = gamma / jnp.sqrt(var + eps)
    shift = beta - mean * scale
    # pad to 128; scale=shift=0 on pad columns keeps them exactly 0 through BN+ReLU
    s = jnp.zeros((1, CPAD), jnp.float32).at[0, :c].set(scale)
    b = jnp.zeros((1, CPAD), jnp.float32).at[0, :c].set(shift)
    return s, b


def conv_weight(kg, fan_in, cout):
    return jax.random.normal(kg(), (fan_in, cout), jnp.float32) / jnp.sqrt(
        jnp.float32(fan_in))


def pad_mat(w, rows, cols, row_off=0, col_off=0):
    out = jnp.zeros((rows, cols), jnp.float32)
    return out.at[row_off:row_off + w.shape[0], col_off:col_off + w.shape[1]].set(w)


def build_model(key, *, num_classes, init_channels, growth_rate, blocks, bn_size,
                batch, in_hw):
    kg = KeyGen(key)
    g = growth_rate
    c2 = bn_size * growth_rate
    mdl = {"num_classes": num_classes}

    # stem: 7x7 s2 conv (as im2col matmul) + BN + ReLU
    kdim = 7 * 7 * 3
    kpad = ((kdim + CPAD - 1) // CPAD) * CPAD
    mdl["stem_kdim"], mdl["stem_kpad"] = kdim, kpad
    mdl["stem_w"] = pad_mat(conv_weight(kg, kdim, init_channels), kpad, CPAD).astype(
        jnp.bfloat16)
    mdl["stem_scale"], mdl["stem_shift"] = fold_bn(kg, init_channels)

    # spatial size after stem conv (k7 s2 p3) and maxpool (k3 s2 p1)
    h = (in_hw + 2 * 3 - 7) // 2 + 1
    h = (h + 2 * 1 - 3) // 2 + 1

    nf = init_channels
    mdl["blocks"] = []
    mdl["transitions"] = []
    for bi, nl in enumerate(blocks):
        tmats = make_shift_mats(batch, h, h)   # shared by all layers in this block
        layers = []
        for li in range(nl):
            cin = nf + li * g
            s1, b1 = fold_bn(kg, cin)
            w1 = pad_mat(conv_weight(kg, cin, c2), CPAD, CPAD).astype(jnp.bfloat16)
            s2, b2 = fold_bn(kg, c2)
            # 3x3 conv weight, one (c2, g) block per tap; output columns are placed
            # at [cin, cin+g) so the kernel's residual add realizes the channel concat.
            w2raw = conv_weight(kg, 9 * c2, g)
            w2wide = jnp.zeros((CPAD, 9 * CPAD), jnp.float32)
            for k in range(9):
                blk = w2raw[k * c2:(k + 1) * c2]
                w2wide = w2wide.at[:c2, k * CPAD + cin:k * CPAD + cin + g].set(blk)
            layers.append((s1, b1, w1, s2, b2, w2wide.astype(jnp.bfloat16), tmats))
        mdl["blocks"].append(layers)
        nf += nl * g
        if bi < len(blocks) - 1:
            s, b = fold_bn(kg, nf)
            wt = pad_mat(conv_weight(kg, nf, nf // 2), CPAD, CPAD).astype(jnp.bfloat16)
            pmat = make_pool_mat(batch, h, h)
            mdl["transitions"].append((s, b, wt, pmat))
            nf //= 2
            h //= 2

    mdl["final_scale"], mdl["final_shift"] = fold_bn(kg, nf)
    mdl["avg_mat"] = make_avg_mat(batch, h, h)
    mdl["fc_w"] = pad_mat(conv_weight(kg, nf, num_classes), CPAD, CPAD).astype(
        jnp.bfloat16)
    fcb = jax.random.normal(kg(), (num_classes,), jnp.float32) * 0.01
    mdl["fc_b"] = jnp.zeros((1, CPAD), jnp.float32).at[0, :num_classes].set(fcb)
    return mdl


# ------------------------------- forward pass -------------------------------

def densenet_forward(x_nchw, mdl):
    x = jnp.transpose(x_nchw, (0, 2, 3, 1)).astype(jnp.float32)   # NCHW -> NHWC
    # stem: im2col (XLA, one-time 3-channel input) + fused conv/BN/ReLU kernel
    cols, (n, ho, wo) = im2col(x, 7, 2, 3)
    cols = jnp.pad(cols, ((0, 0), (0, mdl["stem_kpad"] - mdl["stem_kdim"])))
    y = stem_conv_bn_relu(cols.astype(jnp.bfloat16), mdl["stem_w"],
                          mdl["stem_scale"], mdl["stem_shift"])
    y = y.reshape(n, ho, wo, CPAD)
    # MaxPool2d(3, s2, p1); -inf padding matches PyTorch.  (kept in XLA)
    y = lax.reduce_window(y, -jnp.inf, lax.max,
                          (1, 3, 3, 1), (1, 2, 2, 1),
                          ((0, 0), (1, 1), (1, 1), (0, 0)))
    n, h, w, _ = y.shape
    x2d = y.reshape(n * h * w, CPAD)

    for bi, layers in enumerate(mdl["blocks"]):
        for (s1, b1, w1, s2, b2, w2wide, tmats) in layers:
            # TODO(synk): Dropout(p=0.2) is identity in eval mode; training dropout not implemented.
            x2d = dense_layer(x2d, s1, b1, w1, s2, b2, w2wide, tmats)
        if bi < len(mdl["blocks"]) - 1:
            s, b, wt, pmat = mdl["transitions"][bi]
            x2d = transition(x2d, s, b, wt, pmat)

    logits = head(x2d, mdl["final_scale"], mdl["final_shift"], mdl["avg_mat"],
                  mdl["fc_w"], mdl["fc_b"])
    return logits[:, :mdl["num_classes"]]


# ---------------------------------- main ----------------------------------

if __name__ == "__main__":
    key = jax.random.PRNGKey(0)
    k_in, k_p = jax.random.split(key)

    # Small config consistent with the module's __init__ signature.
    num_classes = 10
    init_channels = 16
    growth_rate = 8
    blocks = [2, 2, 2, 2]
    bn_size = 4
    batch, in_hw = 2, 32

    mdl = build_model(k_p, num_classes=num_classes, init_channels=init_channels,
                      growth_rate=growth_rate, blocks=blocks, bn_size=bn_size,
                      batch=batch, in_hw=in_hw)

    # Input in PyTorch NCHW convention (CIFAR-like 32x32 RGB, batch=2).
    x = jax.random.normal(k_in, (batch, 3, in_hw, in_hw), jnp.float32)

    fwd = jax.jit(lambda inp: densenet_forward(inp, mdl))
    out = jax.block_until_ready(fwd(x))

    assert out.shape == (batch, num_classes), out.shape
    assert bool(jnp.all(jnp.isfinite(out)))
    print("KERNEL_OK")
</pallas_src>

<mosaic_0001>
module attributes {stable_mosaic.version = 11 : i64} {
  func.func @_stem_kernel(%arg0: i32, %arg1: memref<256x256xbf16, #tpu.memory_space<vmem>>, %arg2: memref<256x128xbf16, #tpu.memory_space<vmem>>, %arg3: memref<1x128xf32, #tpu.memory_space<vmem>>, %arg4: memref<1x128xf32, #tpu.memory_space<vmem>>, %arg5: memref<256x128xf32, #tpu.memory_space<vmem>>) attributes {dimension_semantics = [#tpu.dimension_semantics<parallel>], iteration_bounds = array<i64: 2>, scalar_prefetch = 0 : i64, scratch_operands = 0 : i64, tpu.core_type = #tpu.core_type<tc>, window_params = [{transform_indices = @transform_0, window_bounds = array<i64: 256, 256>}, {pipeline_mode = #tpu.pipeline_mode<synchronous>, transform_indices = @transform_1, window_bounds = array<i64: 256, 128>}, {pipeline_mode = #tpu.pipeline_mode<synchronous>, transform_indices = @transform_2, window_bounds = array<i64: 1, 128>}, {pipeline_mode = #tpu.pipeline_mode<synchronous>, transform_indices = @transform_3, window_bounds = array<i64: 1, 128>}, {transform_indices = @transform_4, window_bounds = array<i64: 256, 128>}]} {
    %c0 = arith.constant 0 : index
    %c0_0 = arith.constant 0 : index
    %0 = vector.load %arg1[%c0, %c0_0] : memref<256x256xbf16, #tpu.memory_space<vmem>>, vector<256x256xbf16>
    %c0_1 = arith.constant 0 : index
    %c0_2 = arith.constant 0 : index
    %1 = vector.load %arg2[%c0_1, %c0_2] : memref<256x128xbf16, #tpu.memory_space<vmem>>, vector<256x128xbf16>
    %cst = arith.constant dense<0.000000e+00> : vector<256x128xf32>
    %2 = tpu.matmul %0, %1, %cst {dimension_numbers = #tpu.dot_dimension_numbers<[1], [0], [0], [1], [0, 0, 1, 1], [], []>} : vector<256x256xbf16>, vector<256x128xbf16>, vector<256x128xf32> -> vector<256x128xf32>
    %c0_3 = arith.constant 0 : index
    %c0_4 = arith.constant 0 : index
    %3 = vector.load %arg3[%c0_3, %c0_4] : memref<1x128xf32, #tpu.memory_space<vmem>>, vector<1x128xf32>
    %4 = vector.broadcast %3 : vector<1x128xf32> to vector<256x128xf32>
    %5 = arith.mulf %2, %4 : vector<256x128xf32>
    %c0_5 = arith.constant 0 : index
    %c0_6 = arith.constant 0 : index
    %6 = vector.load %arg4[%c0_5, %c0_6] : memref<1x128xf32, #tpu.memory_space<vmem>>, vector<1x128xf32>
    %7 = vector.broadcast %6 : vector<1x128xf32> to vector<256x128xf32>
    %8 = arith.addf %5, %7 : vector<256x128xf32>
    %cst_7 = arith.constant 0.000000e+00 : f32
    %9 = vector.broadcast %cst_7 : f32 to vector<256x128xf32>
    %10 = arith.maximumf %8, %9 : vector<256x128xf32>
    %c0_8 = arith.constant 0 : index
    %c0_9 = arith.constant 0 : index
    %11 = vector.load %arg5[%c0_8, %c0_9] : memref<256x128xf32, #tpu.memory_space<vmem>>, vector<256x128xf32>
    tpu.vector_store %arg5[%c0_8, %c0_9], %10 {strides = array<i32>} : memref<256x128xf32, #tpu.memory_space<vmem>>, vector<256x128xf32>,
    return
  }
  func.func @transform_0(%arg0: i32) -> (i32, i32) {
    %c0_i32 = arith.constant 0 : i32
    %c0_i32_0 = arith.constant 0 : i32
    return %arg0, %c0_i32 : i32, i32
  }
  func.func @transform_1(%arg0: i32) -> (i32, i32) {
    %c0_i32 = arith.constant 0 : i32
    %c0_i32_0 = arith.constant 0 : i32
    %c0_i32_1 = arith.constant 0 : i32
    return %c0_i32, %c0_i32_0 : i32, i32
  }
  func.func @transform_2(%arg0: i32) -> (i32, i32) {
    %c0_i32 = arith.constant 0 : i32
    %c0_i32_0 = arith.constant 0 : i32
    %c0_i32_1 = arith.constant 0 : i32
    return %c0_i32, %c0_i32_0 : i32, i32
  }
  func.func @transform_3(%arg0: i32) -> (i32, i32) {
    %c0_i32 = arith.constant 0 : i32
    %c0_i32_0 = arith.constant 0 : i32
    %c0_i32_1 = arith.constant 0 : i32
    return %c0_i32, %c0_i32_0 : i32, i32
  }
  func.func @transform_4(%arg0: i32) -> (i32, i32) {
    %c0_i32 = arith.constant 0 : i32
    %c0_i32_0 = arith.constant 0 : i32
    return %arg0, %c0_i32 : i32, i32
  }
}

module attributes {stable_mosaic.version = 11 : i64} {
  func.func @_transition_kernel(%arg0: i32, %arg1: memref<128x128xf32, #tpu.memory_space<vmem>>, %arg2: memref<1x128xf32, #tpu.memory_space<vmem>>, %arg3: memref<1x128xf32, #tpu.memory_space<vmem>>, %arg4: memref<128x128xbf16, #tpu.memory_space<vmem>>, %arg5: memref<32x128xbf16, #tpu.memory_space<vmem>>, %arg6: memref<32x128xf32, #tpu.memory_space<vmem>>) attributes {dimension_semantics = [#tpu.dimension_semantics<arbitrary>], iteration_bounds = array<i64: 1>, scalar_prefetch = 0 : i64, scratch_operands = 0 : i64, tpu.core_type = #tpu.core_type<tc>, window_params = [{pipeline_mode = #tpu.pipeline_mode<synchronous>, transform_indices = @transform_0, window_bounds = array<i64: 128, 128>}, {pipeline_mode = #tpu.pipeline_mode<synchronous>, transform_indices = @transform_1, window_bounds = array<i64: 1, 128>}, {pipeline_mode = #tpu.pipeline_mode<synchronous>, transform_indices = @transform_2, window_bounds = array<i64: 1, 128>}, {pipeline_mode = #tpu.pipeline_mode<synchronous>, transform_indices = @transform_3, window_bounds = array<i64: 128, 128>}, {pipeline_mode = #tpu.pipeline_mode<synchronous>, transform_indices = @transform_4, window_bounds = array<i64: 32, 128>}, {pipeline_mode = #tpu.pipeline_mode<synchronous>, transform_indices = @transform_5, window_bounds = array<i64: 32, 128>}]} {
    %c0 = arith.constant 0 : index
    %c0_0 = arith.constant 0 : index
    %0 = vector.load %arg1[%c0, %c0_0] : memref<128x128xf32, #tpu.memory_space<vmem>>, vector<128x128xf32>
    %c0_1 = arith.constant 0 : index
    %c0_2 = arith.constant 0 : index
    %1 = vector.load %arg2[%c0_1, %c0_2] : memref<1x128xf32, #tpu.memory_space<vmem>>, vector<1x128xf32>
    %2 = vector.broadcast %1 : vector<1x128xf32> to vector<128x128xf32>
    %3 = arith.mulf %0, %2 : vector<128x128xf32>
    %c0_3 = arith.constant 0 : index
    %c0_4 = arith.constant 0 : index
    %4 = vector.load %arg3[%c0_3, %c0_4] : memref<1x128xf32, #tpu.memory_space<vmem>>, vector<1x128xf32>
    %5 = vector.broadcast %4 : vector<1x128xf32> to vector<128x128xf32>
    %6 = arith.addf %3, %5 : vector<128x128xf32>
    %cst = arith.constant 0.000000e+00 : f32
    %7 = vector.broadcast %cst : f32 to vector<128x128xf32>
    %8 = arith.maximumf %6, %7 : vector<128x128xf32>
    %9 = arith.truncf %8 : vector<128x128xf32> to vector<128x128xbf16>
    %c0_5 = arith.constant 0 : index
    %c0_6 = arith.constant 0 : index
    %10 = vector.load %arg4[%c0_5, %c0_6] : memref<128x128xbf16, #tpu.memory_space<vmem>>, vector<128x128xbf16>
    %cst_7 = arith.constant dense<0.000000e+00> : vector<128x128xf32>
    %11 = tpu.matmul %9, %10, %cst_7 {dimension_numbers = #tpu.dot_dimension_numbers<[1], [0], [0], [1], [0, 0, 1, 1], [], []>} : vector<128x128xbf16>, vector<128x128xbf16>, vector<128x128xf32> -> vector<128x128xf32>
    %c0_8 = arith.constant 0 : index
    %c0_9 = arith.constant 0 : index
    %12 = vector.load %arg5[%c0_8, %c0_9] : memref<32x128xbf16, #tpu.memory_space<vmem>>, vector<32x128xbf16>
    %13 = arith.truncf %11 : vector<128x128xf32> to vector<128x128xbf16>
    %cst_10 = arith.constant dense<0.000000e+00> : vector<32x128xf32>
    %14 = tpu.matmul %12, %13, %cst_10 {dimension_numbers = #tpu.dot_dimension_numbers<[1], [0], [0], [1], [0, 0, 1, 1], [], []>} : vector<32x128xbf16>, vector<128x128xbf16>, vector<32x128xf32> -> vector<32x128xf32>
    %c0_11 = arith.constant 0 : index
    %c0_12 = arith.constant 0 : index
    %15 = vector.load %arg6[%c0_11, %c0_12] : memref<32x128xf32, #tpu.memory_space<vmem>>, vector<32x128xf32>
    tpu.vector_store %arg6[%c0_11, %c0_12], %14 {strides = array<i32>} : memref<32x128xf32, #tpu.memory_space<vmem>>, vector<32x128xf32>,
    return
  }
  func.func @transform_0(%arg0: i32) -> (i32, i32) {
    %c0_i32 = arith.constant 0 : i32
    %c0_i32_0 = arith.constant 0 : i32
    %c0_i32_1 = arith.constant 0 : i32
    return %c0_i32, %c0_i32_0 : i32, i32
  }
  func.func @transform_1(%arg0: i32) -> (i32, i32) {
    %c0_i32 = arith.constant 0 : i32
    %c0_i32_0 = arith.constant 0 : i32
    %c0_i32_1 = arith.constant 0 : i32
    return %c0_i32, %c0_i32_0 : i32, i32
  }
  func.func @transform_2(%arg0: i32) -> (i32, i32) {
    %c0_i32 = arith.constant 0 : i32
    %c0_i32_0 = arith.constant 0 : i32
    %c0_i32_1 = arith.constant 0 : i32
    return %c0_i32, %c0_i32_0 : i32, i32
  }
  func.func @transform_3(%arg0: i32) -> (i32, i32) {
    %c0_i32 = arith.constant 0 : i32
    %c0_i32_0 = arith.constant 0 : i32
    %c0_i32_1 = arith.constant 0 : i32
    return %c0_i32, %c0_i32_0 : i32, i32
  }
  func.func @transform_4(%arg0: i32) -> (i32, i32) {
    %c0_i32 = arith.constant 0 : i32
    %c0_i32_0 = arith.constant 0 : i32
    %c0_i32_1 = arith.constant 0 : i32
    return %c0_i32, %c0_i32_0 : i32, i32
  }
  func.func @transform_5(%arg0: i32) -> (i32, i32) {
    %c0_i32 = arith.constant 0 : i32
    %c0_i32_0 = arith.constant 0 : i32
    %c0_i32_1 = arith.constant 0 : i32
    return %c0_i32, %c0_i32_0 : i32, i32
  }
}

module attributes {stable_mosaic.version = 11 : i64} {
  func.func @_dense_layer_kernel(%arg0: i32, %arg1: memref<128x128xf32, #tpu.memory_space<vmem>>, %arg2: memref<1x128xf32, #tpu.memory_space<vmem>>, %arg3: memref<1x128xf32, #tpu.memory_space<vmem>>, %arg4: memref<128x128xbf16, #tpu.memory_space<vmem>>, %arg5: memref<1x128xf32, #tpu.memory_space<vmem>>, %arg6: memref<1x128xf32, #tpu.memory_space<vmem>>, %arg7: memref<128x1152xbf16, #tpu.memory_space<vmem>>, %arg8: memref<9x128x128xbf16, #tpu.memory_space<vmem>>, %arg9: memref<128x128xf32, #tpu.memory_space<vmem>>) attributes {dimension_semantics = [#tpu.dimension_semantics<arbitrary>], iteration_bounds = array<i64: 1>, scalar_prefetch = 0 : i64, scratch_operands = 0 : i64, tpu.core_type = #tpu.core_type<tc>, window_params = [{pipeline_mode = #tpu.pipeline_mode<synchronous>, transform_indices = @transform_0, window_bounds = array<i64: 128, 128>}, {pipeline_mode = #tpu.pipeline_mode<synchronous>, transform_indices = @transform_1, window_bounds = array<i64: 1, 128>}, {pipeline_mode = #tpu.pipeline_mode<synchronous>, transform_indices = @transform_2, window_bounds = array<i64: 1, 128>}, {pipeline_mode = #tpu.pipeline_mode<synchronous>, transform_indices = @transform_3, window_bounds = array<i64: 128, 128>}, {pipeline_mode = #tpu.pipeline_mode<synchronous>, transform_indices = @transform_4, window_bounds = array<i64: 1, 128>}, {pipeline_mode = #tpu.pipeline_mode<synchronous>, transform_indices = @transform_5, window_bounds = array<i64: 1, 128>}, {pipeline_mode = #tpu.pipeline_mode<synchronous>, transform_indices = @transform_6, window_bounds = array<i64: 128, 1152>}, {pipeline_mode = #tpu.pipeline_mode<synchronous>, transform_indices = @transform_7, window_bounds = array<i64: 9, 128, 128>}, {pipeline_mode = #tpu.pipeline_mode<synchronous>, transform_indices = @transform_8, window_bounds = array<i64: 128, 128>}]} {
    %c0 = arith.constant 0 : index
    %c0_0 = arith.constant 0 : index
    %0 = vector.load %arg1[%c0, %c0_0] : memref<128x128xf32, #tpu.memory_space<vmem>>, vector<128x128xf32>
    %c0_1 = arith.constant 0 : index
    %c0_2 = arith.constant 0 : index
    %1 = vector.load %arg2[%c0_1, %c0_2] : memref<1x128xf32, #tpu.memory_space<vmem>>, vector<1x128xf32>
    %2 = vector.broadcast %1 : vector<1x128xf32> to vector<128x128xf32>
    %3 = arith.mulf %0, %2 : vector<128x128xf32>
    %c0_3 = arith.constant 0 : index
    %c0_4 = arith.constant 0 : index
    %4 = vector.load %arg3[%c0_3, %c0_4] : memref<1x128xf32, #tpu.memory_space<vmem>>, vector<1x128xf32>
    %5 = vector.broadcast %4 : vector<1x128xf32> to vector<128x128xf32>
    %6 = arith.addf %3, %5 : vector<128x128xf32>
    %cst = arith.constant 0.000000e+00 : f32
    %7 = vector.broadcast %cst : f32 to vector<128x128xf32>
    %8 = arith.maximumf %6, %7 : vector<128x128xf32>
    %9 = arith.truncf %8 : vector<128x128xf32> to vector<128x128xbf16>
    %c0_5 = arith.constant 0 : index
    %c0_6 = arith.constant 0 : index
    %10 = vector.load %arg4[%c0_5, %c0_6] : memref<128x128xbf16, #tpu.memory_space<vmem>>, vector<128x128xbf16>
    %cst_7 = arith.constant dense<0.000000e+00> : vector<128x128xf32>
    %11 = tpu.matmul %9, %10, %cst_7 {dimension_numbers = #tpu.dot_dimension_numbers<[1], [0], [0], [1], [0, 0, 1, 1], [], []>} : vector<128x128xbf16>, vector<128x128xbf16>, vector<128x128xf32> -> vector<128x128xf32>
    %c0_8 = arith.constant 0 : index
    %c0_9 = arith.constant 0 : index
    %12 = vector.load %arg5[%c0_8, %c0_9] : memref<1x128xf32, #tpu.memory_space<vmem>>, vector<1x128xf32>
    %13 = vector.broadcast %12 : vector<1x128xf32> to vector<128x128xf32>
    %14 = arith.mulf %11, %13 : vector<128x128xf32>
    %c0_10 = arith.constant 0 : index
    %c0_11 = arith.constant 0 : index
    %15 = vector.load %arg6[%c0_10, %c0_11] : memref<1x128xf32, #tpu.memory_space<vmem>>, vector<1x128xf32>
    %16 = vector.broadcast %15 : vector<1x128xf32> to vector<128x128xf32>
    %17 = arith.addf %14, %16 : vector<128x128xf32>
    %cst_12 = arith.constant 0.000000e+00 : f32
    %18 = vector.broadcast %cst_12 : f32 to vector<128x128xf32>
    %19 = arith.maximumf %17, %18 : vector<128x128xf32>
    %20 = arith.truncf %19 : vector<128x128xf32> to vector<128x128xbf16>
    %c0_13 = arith.constant 0 : index
    %c0_14 = arith.constant 0 : index
    %21 = vector.load %arg7[%c0_13, %c0_14] : memref<128x1152xbf16, #tpu.memory_space<vmem>>, vector<128x1152xbf16>
    %cst_15 = arith.constant dense<0.000000e+00> : vector<128x1152xf32>
    %22 = tpu.matmul %20, %21, %cst_15 {dimension_numbers = #tpu.dot_dimension_numbers<[1], [0], [0], [1], [0, 0, 1, 1], [], []>} : vector<128x128xbf16>, vector<128x1152xbf16>, vector<128x1152xf32> -> vector<128x1152xf32>
    %23 = vector.extract_strided_slice %22 {offsets = [0, 0], sizes = [128, 128], strides = [1, 1]} : vector<128x1152xf32> to vector<128x128xf32>
    %24 = arith.truncf %23 : vector<128x128xf32> to vector<128x128xbf16>
    %c0_16 = arith.constant 0 : index
    %c0_17 = arith.constant 0 : index
    %c0_18 = arith.constant 0 : index
    %25 = vector.load %arg8[%c0_16, %c0_17, %c0_18] : memref<9x128x128xbf16, #tpu.memory_space<vmem>>, vector<1x128x128xbf16>
    %26 = vector.shape_cast %25 : vector<1x128x128xbf16> to vector<128x128xbf16>
    %cst_19 = arith.constant dense<0.000000e+00> : vector<128x128xf32>
    %27 = tpu.matmul %26, %24, %cst_19 {dimension_numbers = #tpu.dot_dimension_numbers<[1], [0], [0], [1], [0, 0, 1, 1], [], []>} : vector<128x128xbf16>, vector<128x128xbf16>, vector<128x128xf32> -> vector<128x128xf32>
    %28 = arith.addf %0, %27 : vector<128x128xf32>
    %29 = vector.extract_strided_slice %22 {offsets = [0, 128], sizes = [128, 128], strides = [1, 1]} : vector<128x1152xf32> to vector<128x128xf32>
    %30 = arith.truncf %29 : vector<128x128xf32> to vector<128x128xbf16>
    %c1 = arith.constant 1 : index
    %c0_20 = arith.constant 0 : index
    %c0_21 = arith.constant 0 : index
    %31 = vector.load %arg8[%c1, %c0_20, %c0_21] : memref<9x128x128xbf16, #tpu.memory_space<vmem>>, vector<1x128x128xbf16>
    %32 = vector.shape_cast %31 : vector<1x128x128xbf16> to vector<128x128xbf16>
    %cst_22 = arith.constant dense<0.000000e+00> : vector<128x128xf32>
    %33 = tpu.matmul %32, %30, %cst_22 {dimension_numbers = #tpu.dot_dimension_numbers<[1], [0], [0], [1], [0, 0, 1, 1], [], []>} : vector<128x128xbf16>, vector<128x128xbf16>, vector<128x128xf32> -> vector<128x128xf32>
    %34 = arith.addf %28, %33 : vector<128x128xf32>
    %35 = vector.extract_strided_slice %22 {offsets = [0, 256], sizes = [128, 128], strides = [1, 1]} : vector<128x1152xf32> to vector<128x128xf32>
    %36 = arith.truncf %35 : vector<128x128xf32> to vector<128x128xbf16>
    %c2 = arith.constant 2 : index
    %c0_23 = arith.constant 0 : index
    %c0_24 = arith.constant 0 : index
    %37 = vector.load %arg8[%c2, %c0_23, %c0_24] : memref<9x128x128xbf16, #tpu.memory_space<vmem>>, vector<1x128x128xbf16>
    %38 = vector.shape_cast %37 : vector<1x128x128xbf16> to vector<128x128xbf16>
    %cst_25 = arith.constant dense<0.000000e+00> : vector<128x128xf32>
    %39 = tpu.matmul %38, %36, %cst_25 {dimension_numbers = #tpu.dot_dimension_numbers<[1], [0], [0], [1], [0, 0, 1, 1], [], []>} : vector<128x128xbf16>, vector<128x128xbf16>, vector<128x128xf32> -> vector<128x128xf32>
    %40 = arith.addf %34, %39 : vector<128x128xf32>
    %41 = vector.extract_strided_slice %22 {offsets = [0, 384], sizes = [128, 128], strides = [1, 1]} : vector<128x1152xf32> to vector<128x128xf32>
    %42 = arith.truncf %41 : vector<128x128xf32> to vector<128x128xbf16>
    %c3 = arith.constant 3 : index
    %c0_26 = arith.constant 0 : index
    %c0_27 = arith.constant 0 : index
    %43 = vector.load %arg8[%c3, %c0_26, %c0_27] : memref<9x128x128xbf16, #tpu.memory_space<vmem>>, vector<1x128x128xbf16>
    %44 = vector.shape_cast %43 : vector<1x128x128xbf16> to vector<128x128xbf16>
    %cst_28 = arith.constant dense<0.000000e+00> : vector<128x128xf32>
    %45 = tpu.matmul %44, %42, %cst_28 {dimension_numbers = #tpu.dot_dimension_numbers<[1], [0], [0], [1], [0, 0, 1, 1], [], []>} : vector<128x128xbf16>, vector<128x128xbf16>, vector<128x128xf32> -> vector<128x128xf32>
    %46 = arith.addf %40, %45 : vector<128x128xf32>
    %47 = vector.extract_strided_slice %22 {offsets = [0, 512], sizes = [128, 128], strides = [1, 1]} : vector<128x1152xf32> to vector<128x128xf32>
    %48 = arith.truncf %47 : vector<128x128xf32> to vector<128x128xbf16>
    %c4 = arith.constant 4 : index
    %c0_29 = arith.constant 0 : index
    %c0_30 = arith.constant 0 : index
    %49 = vector.load %arg8[%c4, %c0_29, %c0_30] : memref<9x128x128xbf16, #tpu.memory_space<vmem>>, vector<1x128x128xbf16>
    %50 = vector.shape_cast %49 : vector<1x128x128xbf16> to vector<128x128xbf16>
    %cst_31 = arith.constant dense<0.000000e+00> : vector<128x128xf32>
    %51 = tpu.matmul %50, %48, %cst_31 {dimension_numbers = #tpu.dot_dimension_numbers<[1], [0], [0], [1], [0, 0, 1, 1], [], []>} : vector<128x128xbf16>, vector<128x128xbf16>, vector<128x128xf32> -> vector<128x128xf32>
    %52 = arith.addf %46, %51 : vector<128x128xf32>
    %53 = vector.extract_strided_slice %22 {offsets = [0, 640], sizes = [128, 128], strides = [1, 1]} : vector<128x1152xf32> to vector<128x128xf32>
    %54 = arith.truncf %53 : vector<128x128xf32> to vector<128x128xbf16>
    %c5 = arith.constant 5 : index
    %c0_32 = arith.constant 0 : index
    %c0_33 = arith.constant 0 : index
    %55 = vector.load %arg8[%c5, %c0_32, %c0_33] : memref<9x128x128xbf16, #tpu.memory_space<vmem>>, vector<1x128x128xbf16>
    %56 = vector.shape_cast %55 : vector<1x128x128xbf16> to vector<128x128xbf16>
    %cst_34 = arith.constant dense<0.000000e+00> : vector<128x128xf32>
    %57 = tpu.matmul %56, %54, %cst_34 {dimension_numbers = #tpu.dot_dimension_numbers<[1], [0], [0], [1], [0, 0, 1, 1], [], []>} : vector<128x128xbf16>, vector<128x128xbf16>, vector<128x128xf32> -> vector<128x128xf32>
    %58 = arith.addf %52, %57 : vector<128x128xf32>
    %59 = vector.extract_strided_slice %22 {offsets = [0, 768], sizes = [128, 128], strides = [1, 1]} : vector<128x1152xf32> to vector<128x128xf32>
    %60 = arith.truncf %59 : vector<128x128xf32> to vector<128x128xbf16>
    %c6 = arith.constant 6 : index
    %c0_35 = arith.constant 0 : index
    %c0_36 = arith.constant 0 : index
    %61 = vector.load %arg8[%c6, %c0_35, %c0_36] : memref<9x128x128xbf16, #tpu.memory_space<vmem>>, vector<1x128x128xbf16>
    %62 = vector.shape_cast %61 : vector<1x128x128xbf16> to vector<128x128xbf16>
    %cst_37 = arith.constant dense<0.000000e+00> : vector<128x128xf32>
    %63 = tpu.matmul %62, %60, %cst_37 {dimension_numbers = #tpu.dot_dimension_numbers<[1], [0], [0], [1], [0, 0, 1, 1], [], []>} : vector<128x128xbf16>, vector<128x128xbf16>, vector<128x128xf32> -> vector<128x128xf32>
    %64 = arith.addf %58, %63 : vector<128x128xf32>
    %65 = vector.extract_strided_slice %22 {offsets = [0, 896], sizes = [128, 128], strides = [1, 1]} : vector<128x1152xf32> to vector<128x128xf32>
    %66 = arith.truncf %65 : vector<128x128xf32> to vector<128x128xbf16>
    %c7 = arith.constant 7 : index
    %c0_38 = arith.constant 0 : index
    %c0_39 = arith.constant 0 : index
    %67 = vector.load %arg8[%c7, %c0_38, %c0_39] : memref<9x128x128xbf16, #tpu.memory_space<vmem>>, vector<1x128x128xbf16>
    %68 = vector.shape_cast %67 : vector<1x128x128xbf16> to vector<128x128xbf16>
    %cst_40 = arith.constant dense<0.000000e+00> : vector<128x128xf32>
    %69 = tpu.matmul %68, %66, %cst_40 {dimension_numbers = #tpu.dot_dimension_numbers<[1], [0], [0], [1], [0, 0, 1, 1], [], []>} : vector<128x128xbf16>, vector<128x128xbf16>, vector<128x128xf32> -> vector<128x128xf32>
    %70 = arith.addf %64, %69 : vector<128x128xf32>
    %71 = vector.extract_strided_slice %22 {offsets = [0, 1024], sizes = [128, 128], strides = [1, 1]} : vector<128x1152xf32> to vector<128x128xf32>
    %72 = arith.truncf %71 : vector<128x128xf32> to vector<128x128xbf16>
    %c8 = arith.constant 8 : index
    %c0_41 = arith.constant 0 : index
    %c0_42 = arith.constant 0 : index
    %73 = vector.load %arg8[%c8, %c0_41, %c0_42] : memref<9x128x128xbf16, #tpu.memory_space<vmem>>, vector<1x128x128xbf16>
    %74 = vector.shape_cast %73 : vector<1x128x128xbf16> to vector<128x128xbf16>
    %cst_43 = arith.constant dense<0.000000e+00> : vector<128x128xf32>
    %75 = tpu.matmul %74, %72, %cst_43 {dimension_numbers = #tpu.dot_dimension_numbers<[1], [0], [0], [1], [0, 0, 1, 1], [], []>} : vector<128x128xbf16>, vector<128x128xbf16>, vector<128x128xf32> -> vector<128x128xf32>
    %76 = arith.addf %70, %75 : vector<128x128xf32>
    %c0_44 = arith.constant 0 : index
    %c0_45 = arith.constant 0 : index
    %77 = vector.load %arg9[%c0_44, %c0_45] : memref<128x128xf32, #tpu.memory_space<vmem>>, vector<128x128xf32>
    tpu.vector_store %arg9[%c0_44, %c0_45], %76 {strides = array<i32>} : memref<128x128xf32, #tpu.memory_space<vmem>>, vector<128x128xf32>,
    return
  }
  func.func @transform_0(%arg0: i32) -> (i32, i32) {
    %c0_i32 = arith.constant 0 : i32
    %c0_i32_0 = arith.constant 0 : i32
    %c0_i32_1 = arith.constant 0 : i32
    return %c0_i32, %c0_i32_0 : i32, i32
  }
  func.func @transform_1(%arg0: i32) -> (i32, i32) {
    %c0_i32 = arith.constant 0 : i32
    %c0_i32_0 = arith.constant 0 : i32
    %c0_i32_1 = arith.constant 0 : i32
    return %c0_i32, %c0_i32_0 : i32, i32
  }
  func.func @transform_2(%arg0: i32) -> (i32, i32) {
    %c0_i32 = arith.constant 0 : i32
    %c0_i32_0 = arith.constant 0 : i32
    %c0_i32_1 = arith.constant 0 : i32
    return %c0_i32, %c0_i32_0 : i32, i32
  }
  func.func @transform_3(%arg0: i32) -> (i32, i32) {
    %c0_i32 = arith.constant 0 : i32
    %c0_i32_0 = arith.constant 0 : i32
    %c0_i32_1 = arith.constant 0 : i32
    return %c0_i32, %c0_i32_0 : i32, i32
  }
  func.func @transform_4(%arg0: i32) -> (i32, i32) {
    %c0_i32 = arith.constant 0 : i32
    %c0_i32_0 = arith.constant 0 : i32
    %c0_i32_1 = arith.constant 0 : i32
    return %c0_i32, %c0_i32_0 : i32, i32
  }
  func.func @transform_5(%arg0: i32) -> (i32, i32) {
    %c0_i32 = arith.constant 0 : i32
    %c0_i32_0 = arith.constant 0 : i32
    %c0_i32_1 = arith.constant 0 : i32
    return %c0_i32, %c0_i32_0 : i32, i32
  }
  func.func @transform_6(%arg0: i32) -> (i32, i32) {
    %c0_i32 = arith.constant 0 : i32
    %c0_i32_0 = arith.constant 0 : i32
    %c0_i32_1 = arith.constant 0 : i32
    return %c0_i32, %c0_i32_0 : i32, i32
  }
  func.func @transform_7(%arg0: i32) -> (i32, i32, i32) {
    %c0_i32 = arith.constant 0 : i32
    %c0_i32_0 = arith.constant 0 : i32
    %c0_i32_1 = arith.constant 0 : i32
    %c0_i32_2 = arith.constant 0 : i32
    return %c0_i32, %c0_i32_0, %c0_i32_1 : i32, i32, i32
  }
  func.func @transform_8(%arg0: i32) -> (i32, i32) {
    %c0_i32 = arith.constant 0 : i32
    %c0_i32_0 = arith.constant 0 : i32
    %c0_i32_1 = arith.constant 0 : i32
    return %c0_i32, %c0_i32_0 : i32, i32
  }
}

module attributes {stable_mosaic.version = 11 : i64} {
  func.func @_dense_layer_kernel(%arg0: i32, %arg1: memref<32x128xf32, #tpu.memory_space<vmem>>, %arg2: memref<1x128xf32, #tpu.memory_space<vmem>>, %arg3: memref<1x128xf32, #tpu.memory_space<vmem>>, %arg4: memref<128x128xbf16, #tpu.memory_space<vmem>>, %arg5: memref<1x128xf32, #tpu.memory_space<vmem>>, %arg6: memref<1x128xf32, #tpu.memory_space<vmem>>, %arg7: memref<128x1152xbf16, #tpu.memory_space<vmem>>, %arg8: memref<9x32x32xbf16, #tpu.memory_space<vmem>>, %arg9: memref<32x128xf32, #tpu.memory_space<vmem>>) attributes {dimension_semantics = [#tpu.dimension_semantics<arbitrary>], iteration_bounds = array<i64: 1>, scalar_prefetch = 0 : i64, scratch_operands = 0 : i64, tpu.core_type = #tpu.core_type<tc>, window_params = [{pipeline_mode = #tpu.pipeline_mode<synchronous>, transform_indices = @transform_0, window_bounds = array<i64: 32, 128>}, {pipeline_mode = #tpu.pipeline_mode<synchronous>, transform_indices = @transform_1, window_bounds = array<i64: 1, 128>}, {pipeline_mode = #tpu.pipeline_mode<synchronous>, transform_indices = @transform_2, window_bounds = array<i64: 1, 128>}, {pipeline_mode = #tpu.pipeline_mode<synchronous>, transform_indices = @transform_3, window_bounds = array<i64: 128, 128>}, {pipeline_mode = #tpu.pipeline_mode<synchronous>, transform_indices = @transform_4, window_bounds = array<i64: 1, 128>}, {pipeline_mode = #tpu.pipeline_mode<synchronous>, transform_indices = @transform_5, window_bounds = array<i64: 1, 128>}, {pipeline_mode = #tpu.pipeline_mode<synchronous>, transform_indices = @transform_6, window_bounds = array<i64: 128, 1152>}, {pipeline_mode = #tpu.pipeline_mode<synchronous>, transform_indices = @transform_7, window_bounds = array<i64: 9, 32, 32>}, {pipeline_mode = #tpu.pipeline_mode<synchronous>, transform_indices = @transform_8, window_bounds = array<i64: 32, 128>}]} {
    %c0 = arith.constant 0 : index
    %c0_0 = arith.constant 0 : index
    %0 = vector.load %arg1[%c0, %c0_0] : memref<32x128xf32, #tpu.memory_space<vmem>>, vector<32x128xf32>
    %c0_1 = arith.constant 0 : index
    %c0_2 = arith.constant 0 : index
    %1 = vector.load %arg2[%c0_1, %c0_2] : memref<1x128xf32, #tpu.memory_space<vmem>>, vector<1x128xf32>
    %2 = vector.broadcast %1 : vector<1x128xf32> to vector<32x128xf32>
    %3 = arith.mulf %0, %2 : vector<32x128xf32>
    %c0_3 = arith.constant 0 : index
    %c0_4 = arith.constant 0 : index
    %4 = vector.load %arg3[%c0_3, %c0_4] : memref<1x128xf32, #tpu.memory_space<vmem>>, vector<1x128xf32>
    %5 = vector.broadcast %4 : vector<1x128xf32> to vector<32x128xf32>
    %6 = arith.addf %3, %5 : vector<32x128xf32>
    %cst = arith.constant 0.000000e+00 : f32
    %7 = vector.broadcast %cst : f32 to vector<32x128xf32>
    %8 = arith.maximumf %6, %7 : vector<32x128xf32>
    %9 = arith.truncf %8 : vector<32x128xf32> to vector<32x128xbf16>
    %c0_5 = arith.constant 0 : index
    %c0_6 = arith.constant 0 : index
    %10 = vector.load %arg4[%c0_5, %c0_6] : memref<128x128xbf16, #tpu.memory_space<vmem>>, vector<128x128xbf16>
    %cst_7 = arith.constant dense<0.000000e+00> : vector<32x128xf32>
    %11 = tpu.matmul %9, %10, %cst_7 {dimension_numbers = #tpu.dot_dimension_numbers<[1], [0], [0], [1], [0, 0, 1, 1], [], []>} : vector<32x128xbf16>, vector<128x128xbf16>, vector<32x128xf32> -> vector<32x128xf32>
    %c0_8 = arith.constant 0 : index
    %c0_9 = arith.constant 0 : index
    %12 = vector.load %arg5[%c0_8, %c0_9] : memref<1x128xf32, #tpu.memory_space<vmem>>, vector<1x128xf32>
    %13 = vector.broadcast %12 : vector<1x128xf32> to vector<32x128xf32>
    %14 = arith.mulf %11, %13 : vector<32x128xf32>
    %c0_10 = arith.constant 0 : index
    %c0_11 = arith.constant 0 : index
    %15 = vector.load %arg6[%c0_10, %c0_11] : memref<1x128xf32, #tpu.memory_space<vmem>>, vector<1x128xf32>
    %16 = vector.broadcast %15 : vector<1x128xf32> to vector<32x128xf32>
    %17 = arith.addf %14, %16 : vector<32x128xf32>
    %cst_12 = arith.constant 0.000000e+00 : f32
    %18 = vector.broadcast %cst_12 : f32 to vector<32x128xf32>
    %19 = arith.maximumf %17, %18 : vector<32x128xf32>
    %20 = arith.truncf %19 : vector<32x128xf32> to vector<32x128xbf16>
    %c0_13 = arith.constant 0 : index
    %c0_14 = arith.constant 0 : index
    %21 = vector.load %arg7[%c0_13, %c0_14] : memref<128x1152xbf16, #tpu.memory_space<vmem>>, vector<128x1152xbf16>
    %cst_15 = arith.constant dense<0.000000e+00> : vector<32x1152xf32>
    %22 = tpu.matmul %20, %21, %cst_15 {dimension_numbers = #tpu.dot_dimension_numbers<[1], [0], [0], [1], [0, 0, 1, 1], [], []>} : vector<32x128xbf16>, vector<128x1152xbf16>, vector<32x1152xf32> -> vector<32x1152xf32>
    %23 = vector.extract_strided_slice %22 {offsets = [0, 0], sizes = [32, 128], strides = [1, 1]} : vector<32x1152xf32> to vector<32x128xf32>
    %24 = arith.truncf %23 : vector<32x128xf32> to vector<32x128xbf16>
    %c0_16 = arith.constant 0 : index
    %c0_17 = arith.constant 0 : index
    %c0_18 = arith.constant 0 : index
    %25 = vector.load %arg8[%c0_16, %c0_17, %c0_18] : memref<9x32x32xbf16, #tpu.memory_space<vmem>>, vector<1x32x32xbf16>
    %26 = vector.shape_cast %25 : vector<1x32x32xbf16> to vector<32x32xbf16>
    %cst_19 = arith.constant dense<0.000000e+00> : vector<32x128xf32>
    %27 = tpu.matmul %26, %24, %cst_19 {dimension_numbers = #tpu.dot_dimension_numbers<[1], [0], [0], [1], [0, 0, 1, 1], [], []>} : vector<32x32xbf16>, vector<32x128xbf16>, vector<32x128xf32> -> vector<32x128xf32>
    %28 = arith.addf %0, %27 : vector<32x128xf32>
    %29 = vector.extract_strided_slice %22 {offsets = [0, 128], sizes = [32, 128], strides = [1, 1]} : vector<32x1152xf32> to vector<32x128xf32>
    %30 = arith.truncf %29 : vector<32x128xf32> to vector<32x128xbf16>
    %c1 = arith.constant 1 : index
    %c0_20 = arith.constant 0 : index
    %c0_21 = arith.constant 0 : index
    %31 = vector.load %arg8[%c1, %c0_20, %c0_21] : memref<9x32x32xbf16, #tpu.memory_space<vmem>>, vector<1x32x32xbf16>
    %32 = vector.shape_cast %31 : vector<1x32x32xbf16> to vector<32x32xbf16>
    %cst_22 = arith.constant dense<0.000000e+00> : vector<32x128xf32>
    %33 = tpu.matmul %32, %30, %cst_22 {dimension_numbers = #tpu.dot_dimension_numbers<[1], [0], [0], [1], [0, 0, 1, 1], [], []>} : vector<32x32xbf16>, vector<32x128xbf16>, vector<32x128xf32> -> vector<32x128xf32>
    %34 = arith.addf %28, %33 : vector<32x128xf32>
    %35 = vector.extract_strided_slice %22 {offsets = [0, 256], sizes = [32, 128], strides = [1, 1]} : vector<32x1152xf32> to vector<32x128xf32>
    %36 = arith.truncf %35 : vector<32x128xf32> to vector<32x128xbf16>
    %c2 = arith.constant 2 : index
    %c0_23 = arith.constant 0 : index
    %c0_24 = arith.constant 0 : index
    %37 = vector.load %arg8[%c2, %c0_23, %c0_24] : memref<9x32x32xbf16, #tpu.memory_space<vmem>>, vector<1x32x32xbf16>
    %38 = vector.shape_cast %37 : vector<1x32x32xbf16> to vector<32x32xbf16>
    %cst_25 = arith.constant dense<0.000000e+00> : vector<32x128xf32>
    %39 = tpu.matmul %38, %36, %cst_25 {dimension_numbers = #tpu.dot_dimension_numbers<[1], [0], [0], [1], [0, 0, 1, 1], [], []>} : vector<32x32xbf16>, vector<32x128xbf16>, vector<32x128xf32> -> vector<32x128xf32>
    %40 = arith.addf %34, %39 : vector<32x128xf32>
    %41 = vector.extract_strided_slice %22 {offsets = [0, 384], sizes = [32, 128], strides = [1, 1]} : vector<32x1152xf32> to vector<32x128xf32>
    %42 = arith.truncf %41 : vector<32x128xf32> to vector<32x128xbf16>
    %c3 = arith.constant 3 : index
    %c0_26 = arith.constant 0 : index
    %c0_27 = arith.constant 0 : index
    %43 = vector.load %arg8[%c3, %c0_26, %c0_27] : memref<9x32x32xbf16, #tpu.memory_space<vmem>>, vector<1x32x32xbf16>
    %44 = vector.shape_cast %43 : vector<1x32x32xbf16> to vector<32x32xbf16>
    %cst_28 = arith.constant dense<0.000000e+00> : vector<32x128xf32>
    %45 = tpu.matmul %44, %42, %cst_28 {dimension_numbers = #tpu.dot_dimension_numbers<[1], [0], [0], [1], [0, 0, 1, 1], [], []>} : vector<32x32xbf16>, vector<32x128xbf16>, vector<32x128xf32> -> vector<32x128xf32>
    %46 = arith.addf %40, %45 : vector<32x128xf32>
    %47 = vector.extract_strided_slice %22 {offsets = [0, 512], sizes = [32, 128], strides = [1, 1]} : vector<32x1152xf32> to vector<32x128xf32>
    %48 = arith.truncf %47 : vector<32x128xf32> to vector<32x128xbf16>
    %c4 = arith.constant 4 : index
    %c0_29 = arith.constant 0 : index
    %c0_30 = arith.constant 0 : index
    %49 = vector.load %arg8[%c4, %c0_29, %c0_30] : memref<9x32x32xbf16, #tpu.memory_space<vmem>>, vector<1x32x32xbf16>
    %50 = vector.shape_cast %49 : vector<1x32x32xbf16> to vector<32x32xbf16>
    %cst_31 = arith.constant dense<0.000000e+00> : vector<32x128xf32>
    %51 = tpu.matmul %50, %48, %cst_31 {dimension_numbers = #tpu.dot_dimension_numbers<[1], [0], [0], [1], [0, 0, 1, 1], [], []>} : vector<32x32xbf16>, vector<32x128xbf16>, vector<32x128xf32> -> vector<32x128xf32>
    %52 = arith.addf %46, %51 : vector<32x128xf32>
    %53 = vector.extract_strided_slice %22 {offsets = [0, 640], sizes = [32, 128], strides = [1, 1]} : vector<32x1152xf32> to vector<32x128xf32>
    %54 = arith.truncf %53 : vector<32x128xf32> to vector<32x128xbf16>
    %c5 = arith.constant 5 : index
    %c0_32 = arith.constant 0 : index
    %c0_33 = arith.constant 0 : index
    %55 = vector.load %arg8[%c5, %c0_32, %c0_33] : memref<9x32x32xbf16, #tpu.memory_space<vmem>>, vector<1x32x32xbf16>
    %56 = vector.shape_cast %55 : vector<1x32x32xbf16> to vector<32x32xbf16>
    %cst_34 = arith.constant dense<0.000000e+00> : vector<32x128xf32>
    %57 = tpu.matmul %56, %54, %cst_34 {dimension_numbers = #tpu.dot_dimension_numbers<[1], [0], [0], [1], [0, 0, 1, 1], [], []>} : vector<32x32xbf16>, vector<32x128xbf16>, vector<32x128xf32> -> vector<32x128xf32>
    %58 = arith.addf %52, %57 : vector<32x128xf32>
    %59 = vector.extract_strided_slice %22 {offsets = [0, 768], sizes = [32, 128], strides = [1, 1]} : vector<32x1152xf32> to vector<32x128xf32>
    %60 = arith.truncf %59 : vector<32x128xf32> to vector<32x128xbf16>
    %c6 = arith.constant 6 : index
    %c0_35 = arith.constant 0 : index
    %c0_36 = arith.constant 0 : index
    %61 = vector.load %arg8[%c6, %c0_35, %c0_36] : memref<9x32x32xbf16, #tpu.memory_space<vmem>>, vector<1x32x32xbf16>
    %62 = vector.shape_cast %61 : vector<1x32x32xbf16> to vector<32x32xbf16>
    %cst_37 = arith.constant dense<0.000000e+00> : vector<32x128xf32>
    %63 = tpu.matmul %62, %60, %cst_37 {dimension_numbers = #tpu.dot_dimension_numbers<[1], [0], [0], [1], [0, 0, 1, 1], [], []>} : vector<32x32xbf16>, vector<32x128xbf16>, vector<32x128xf32> -> vector<32x128xf32>
    %64 = arith.addf %58, %63 : vector<32x128xf32>
    %65 = vector.extract_strided_slice %22 {offsets = [0, 896], sizes = [32, 128], strides = [1, 1]} : vector<32x1152xf32> to vector<32x128xf32>
    %66 = arith.truncf %65 : vector<32x128xf32> to vector<32x128xbf16>
    %c7 = arith.constant 7 : index
    %c0_38 = arith.constant 0 : index
    %c0_39 = arith.constant 0 : index
    %67 = vector.load %arg8[%c7, %c0_38, %c0_39] : memref<9x32x32xbf16, #tpu.memory_space<vmem>>, vector<1x32x32xbf16>
    %68 = vector.shape_cast %67 : vector<1x32x32xbf16> to vector<32x32xbf16>
    %cst_40 = arith.constant dense<0.000000e+00> : vector<32x128xf32>
    %69 = tpu.matmul %68, %66, %cst_40 {dimension_numbers = #tpu.dot_dimension_numbers<[1], [0], [0], [1], [0, 0, 1, 1], [], []>} : vector<32x32xbf16>, vector<32x128xbf16>, vector<32x128xf32> -> vector<32x128xf32>
    %70 = arith.addf %64, %69 : vector<32x128xf32>
    %71 = vector.extract_strided_slice %22 {offsets = [0, 1024], sizes = [32, 128], strides = [1, 1]} : vector<32x1152xf32> to vector<32x128xf32>
    %72 = arith.truncf %71 : vector<32x128xf32> to vector<32x128xbf16>
    %c8 = arith.constant 8 : index
    %c0_41 = arith.constant 0 : index
    %c0_42 = arith.constant 0 : index
    %73 = vector.load %arg8[%c8, %c0_41, %c0_42] : memref<9x32x32xbf16, #tpu.memory_space<vmem>>, vector<1x32x32xbf16>
    %74 = vector.shape_cast %73 : vector<1x32x32xbf16> to vector<32x32xbf16>
    %cst_43 = arith.constant dense<0.000000e+00> : vector<32x128xf32>
    %75 = tpu.matmul %74, %72, %cst_43 {dimension_numbers = #tpu.dot_dimension_numbers<[1], [0], [0], [1], [0, 0, 1, 1], [], []>} : vector<32x32xbf16>, vector<32x128xbf16>, vector<32x128xf32> -> vector<32x128xf32>
    %76 = arith.addf %70, %75 : vector<32x128xf32>
    %c0_44 = arith.constant 0 : index
    %c0_45 = arith.constant 0 : index
    %77 = vector.load %arg9[%c0_44, %c0_45] : memref<32x128xf32, #tpu.memory_space<vmem>>, vector<32x128xf32>
    tpu.vector_store %arg9[%c0_44, %c0_45], %76 {strides = array<i32>} : memref<32x128xf32, #tpu.memory_space<vmem>>, vector<32x128xf32>,
    return
  }
  func.func @transform_0(%arg0: i32) -> (i32, i32) {
    %c0_i32 = arith.constant 0 : i32
    %c0_i32_0 = arith.constant 0 : i32
    %c0_i32_1 = arith.constant 0 : i32
    return %c0_i32, %c0_i32_0 : i32, i32
  }
  func.func @transform_1(%arg0: i32) -> (i32, i32) {
    %c0_i32 = arith.constant 0 : i32
    %c0_i32_0 = arith.constant 0 : i32
    %c0_i32_1 = arith.constant 0 : i32
    return %c0_i32, %c0_i32_0 : i32, i32
  }
  func.func @transform_2(%arg0: i32) -> (i32, i32) {
    %c0_i32 = arith.constant 0 : i32
    %c0_i32_0 = arith.constant 0 : i32
    %c0_i32_1 = arith.constant 0 : i32
    return %c0_i32, %c0_i32_0 : i32, i32
  }
  func.func @transform_3(%arg0: i32) -> (i32, i32) {
    %c0_i32 = arith.constant 0 : i32
    %c0_i32_0 = arith.constant 0 : i32
    %c0_i32_1 = arith.constant 0 : i32
    return %c0_i32, %c0_i32_0 : i32, i32
  }
  func.func @transform_4(%arg0: i32) -> (i32, i32) {
    %c0_i32 = arith.constant 0 : i32
    %c0_i32_0 = arith.constant 0 : i32
    %c0_i32_1 = arith.constant 0 : i32
    return %c0_i32, %c0_i32_0 : i32, i32
  }
  func.func @transform_5(%arg0: i32) -> (i32, i32) {
    %c0_i32 = arith.constant 0 : i32
    %c0_i32_0 = arith.constant 0 : i32
    %c0_i32_1 = arith.constant 0 : i32
    return %c0_i32, %c0_i32_0 : i32, i32
  }
  func.func @transform_6(%arg0: i32) -> (i32, i32) {
    %c0_i32 = arith.constant 0 : i32
    %c0_i32_0 = arith.constant 0 : i32
    %c0_i32_1 = arith.constant 0 : i32
    return %c0_i32, %c0_i32_0 : i32, i32
  }
  func.func @transform_7(%arg0: i32) -> (i32, i32, i32) {
    %c0_i32 = arith.constant 0 : i32
    %c0_i32_0 = arith.constant 0 : i32
    %c0_i32_1 = arith.constant 0 : i32
    %c0_i32_2 = arith.constant 0 : i32
    return %c0_i32, %c0_i32_0, %c0_i32_1 : i32, i32, i32
  }
  func.func @transform_8(%arg0: i32) -> (i32, i32) {
    %c0_i32 = arith.constant 0 : i32
    %c0_i32_0 = arith.constant 0 : i32
    %c0_i32_1 = arith.constant 0 : i32
    return %c0_i32, %c0_i32_0 : i32, i32
  }
}

module attributes {stable_mosaic.version = 11 : i64} {
  func.func @_transition_kernel(%arg0: i32, %arg1: memref<32x128xf32, #tpu.memory_space<vmem>>, %arg2: memref<1x128xf32, #tpu.memory_space<vmem>>, %arg3: memref<1x128xf32, #tpu.memory_space<vmem>>, %arg4: memref<128x128xbf16, #tpu.memory_space<vmem>>, %arg5: memref<8x32xbf16, #tpu.memory_space<vmem>>, %arg6: memref<8x128xf32, #tpu.memory_space<vmem>>) attributes {dimension_semantics = [#tpu.dimension_semantics<arbitrary>], iteration_bounds = array<i64: 1>, scalar_prefetch = 0 : i64, scratch_operands = 0 : i64, tpu.core_type = #tpu.core_type<tc>, window_params = [{pipeline_mode = #tpu.pipeline_mode<synchronous>, transform_indices = @transform_0, window_bounds = array<i64: 32, 128>}, {pipeline_mode = #tpu.pipeline_mode<synchronous>, transform_indices = @transform_1, window_bounds = array<i64: 1, 128>}, {pipeline_mode = #tpu.pipeline_mode<synchronous>, transform_indices = @transform_2, window_bounds = array<i64: 1, 128>}, {pipeline_mode = #tpu.pipeline_mode<synchronous>, transform_indices = @transform_3, window_bounds = array<i64: 128, 128>}, {pipeline_mode = #tpu.pipeline_mode<synchronous>, transform_indices = @transform_4, window_bounds = array<i64: 8, 32>}, {pipeline_mode = #tpu.pipeline_mode<synchronous>, transform_indices = @transform_5, window_bounds = array<i64: 8, 128>}]} {
    %c0 = arith.constant 0 : index
    %c0_0 = arith.constant 0 : index
    %0 = vector.load %arg1[%c0, %c0_0] : memref<32x128xf32, #tpu.memory_space<vmem>>, vector<32x128xf32>
    %c0_1 = arith.constant 0 : index
    %c0_2 = arith.constant 0 : index
    %1 = vector.load %arg2[%c0_1, %c0_2] : memref<1x128xf32, #tpu.memory_space<vmem>>, vector<1x128xf32>
    %2 = vector.broadcast %1 : vector<1x128xf32> to vector<32x128xf32>
    %3 = arith.mulf %0, %2 : vector<32x128xf32>
    %c0_3 = arith.constant 0 : index
    %c0_4 = arith.constant 0 : index
    %4 = vector.load %arg3[%c0_3, %c0_4] : memref<1x128xf32, #tpu.memory_space<vmem>>, vector<1x128xf32>
    %5 = vector.broadcast %4 : vector<1x128xf32> to vector<32x128xf32>
    %6 = arith.addf %3, %5 : vector<32x128xf32>
    %cst = arith.constant 0.000000e+00 : f32
    %7 = vector.broadcast %cst : f32 to vector<32x128xf32>
    %8 = arith.maximumf %6, %7 : vector<32x128xf32>
    %9 = arith.truncf %8 : vector<32x128xf32> to vector<32x128xbf16>
    %c0_5 = arith.constant 0 : index
    %c0_6 = arith.constant 0 : index
    %10 = vector.load %arg4[%c0_5, %c0_6] : memref<128x128xbf16, #tpu.memory_space<vmem>>, vector<128x128xbf16>
    %cst_7 = arith.constant dense<0.000000e+00> : vector<32x128xf32>
    %11 = tpu.matmul %9, %10, %cst_7 {dimension_numbers = #tpu.dot_dimension_numbers<[1], [0], [0], [1], [0, 0, 1, 1], [], []>} : vector<32x128xbf16>, vector<128x128xbf16>, vector<32x128xf32> -> vector<32x128xf32>
    %c0_8 = arith.constant 0 : index
    %c0_9 = arith.constant 0 : index
    %12 = vector.load %arg5[%c0_8, %c0_9] : memref<8x32xbf16, #tpu.memory_space<vmem>>, vector<8x32xbf16>
    %13 = arith.truncf %11 : vector<32x128xf32> to vector<32x128xbf16>
    %cst_10 = arith.constant dense<0.000000e+00> : vector<8x128xf32>
    %14 = tpu.matmul %12, %13, %cst_10 {dimension_numbers = #tpu.dot_dimension_numbers<[1], [0], [0], [1], [0, 0, 1, 1], [], []>} : vector<8x32xbf16>, vector<32x128xbf16>, vector<8x128xf32> -> vector<8x128xf32>
    %c0_11 = arith.constant 0 : index
    %c0_12 = arith.constant 0 : index
    %15 = vector.load %arg6[%c0_11, %c0_12] : memref<8x128xf32, #tpu.memory_space<vmem>>, vector<8x128xf32>
    tpu.vector_store %arg6[%c0_11, %c0_12], %14 {strides = array<i32>} : memref<8x128xf32, #tpu.memory_space<vmem>>, vector<8x128xf32>,
    return
  }
  func.func @transform_0(%arg0: i32) -> (i32, i32) {
    %c0_i32 = arith.constant 0 : i32
    %c0_i32_0 = arith.constant 0 : i32
    %c0_i32_1 = arith.constant 0 : i32
    return %c0_i32, %c0_i32_0 : i32, i32
  }
  func.func @transform_1(%arg0: i32) -> (i32, i32) {
    %c0_i32 = arith.constant 0 : i32
    %c0_i32_0 = arith.constant 0 : i32
    %c0_i32_1 = arith.constant 0 : i32
    return %c0_i32, %c0_i32_0 : i32, i32
  }
  func.func @transform_2(%arg0: i32) -> (i32, i32) {
    %c0_i32 = arith.constant 0 : i32
    %c0_i32_0 = arith.constant 0 : i32
    %c0_i32_1 = arith.constant 0 : i32
    return %c0_i32, %c0_i32_0 : i32, i32
  }
  func.func @transform_3(%arg0: i32) -> (i32, i32) {
    %c0_i32 = arith.constant 0 : i32
    %c0_i32_0 = arith.constant 0 : i32
    %c0_i32_1 = arith.constant 0 : i32
    return %c0_i32, %c0_i32_0 : i32, i32
  }
  func.func @transform_4(%arg0: i32) -> (i32, i32) {
    %c0_i32 = arith.constant 0 : i32
    %c0_i32_0 = arith.constant 0 : i32
    %c0_i32_1 = arith.constant 0 : i32
    return %c0_i32, %c0_i32_0 : i32, i32
  }
  func.func @transform_5(%arg0: i32) -> (i32, i32) {
    %c0_i32 = arith.constant 0 : i32
    %c0_i32_0 = arith.constant 0 : i32
    %c0_i32_1 = arith.constant 0 : i32
    return %c0_i32, %c0_i32_0 : i32, i32
  }
}

module attributes {stable_mosaic.version = 11 : i64} {
  func.func @_dense_layer_kernel(%arg0: i32, %arg1: memref<8x128xf32, #tpu.memory_space<vmem>>, %arg2: memref<1x128xf32, #tpu.memory_space<vmem>>, %arg3: memref<1x128xf32, #tpu.memory_space<vmem>>, %arg4: memref<128x128xbf16, #tpu.memory_space<vmem>>, %arg5: memref<1x128xf32, #tpu.memory_space<vmem>>, %arg6: memref<1x128xf32, #tpu.memory_space<vmem>>, %arg7: memref<128x1152xbf16, #tpu.memory_space<vmem>>, %arg8: memref<9x8x8xbf16, #tpu.memory_space<vmem>>, %arg9: memref<8x128xf32, #tpu.memory_space<vmem>>) attributes {dimension_semantics = [#tpu.dimension_semantics<arbitrary>], iteration_bounds = array<i64: 1>, scalar_prefetch = 0 : i64, scratch_operands = 0 : i64, tpu.core_type = #tpu.core_type<tc>, window_params = [{pipeline_mode = #tpu.pipeline_mode<synchronous>, transform_indices = @transform_0, window_bounds = array<i64: 8, 128>}, {pipeline_mode = #tpu.pipeline_mode<synchronous>, transform_indices = @transform_1, window_bounds = array<i64: 1, 128>}, {pipeline_mode = #tpu.pipeline_mode<synchronous>, transform_indices = @transform_2, window_bounds = array<i64: 1, 128>}, {pipeline_mode = #tpu.pipeline_mode<synchronous>, transform_indices = @transform_3, window_bounds = array<i64: 128, 128>}, {pipeline_mode = #tpu.pipeline_mode<synchronous>, transform_indices = @transform_4, window_bounds = array<i64: 1, 128>}, {pipeline_mode = #tpu.pipeline_mode<synchronous>, transform_indices = @transform_5, window_bounds = array<i64: 1, 128>}, {pipeline_mode = #tpu.pipeline_mode<synchronous>, transform_indices = @transform_6, window_bounds = array<i64: 128, 1152>}, {pipeline_mode = #tpu.pipeline_mode<synchronous>, transform_indices = @transform_7, window_bounds = array<i64: 9, 8, 8>}, {pipeline_mode = #tpu.pipeline_mode<synchronous>, transform_indices = @transform_8, window_bounds = array<i64: 8, 128>}]} {
    %c0 = arith.constant 0 : index
    %c0_0 = arith.constant 0 : index
    %0 = vector.load %arg1[%c0, %c0_0] : memref<8x128xf32, #tpu.memory_space<vmem>>, vector<8x128xf32>
    %c0_1 = arith.constant 0 : index
    %c0_2 = arith.constant 0 : index
    %1 = vector.load %arg2[%c0_1, %c0_2] : memref<1x128xf32, #tpu.memory_space<vmem>>, vector<1x128xf32>
    %2 = vector.broadcast %1 : vector<1x128xf32> to vector<8x128xf32>
    %3 = arith.mulf %0, %2 : vector<8x128xf32>
    %c0_3 = arith.constant 0 : index
    %c0_4 = arith.constant 0 : index
    %4 = vector.load %arg3[%c0_3, %c0_4] : memref<1x128xf32, #tpu.memory_space<vmem>>, vector<1x128xf32>
    %5 = vector.broadcast %4 : vector<1x128xf32> to vector<8x128xf32>
    %6 = arith.addf %3, %5 : vector<8x128xf32>
    %cst = arith.constant 0.000000e+00 : f32
    %7 = vector.broadcast %cst : f32 to vector<8x128xf32>
    %8 = arith.maximumf %6, %7 : vector<8x128xf32>
    %9 = arith.truncf %8 : vector<8x128xf32> to vector<8x128xbf16>
    %c0_5 = arith.constant 0 : index
    %c0_6 = arith.constant 0 : index
    %10 = vector.load %arg4[%c0_5, %c0_6] : memref<128x128xbf16, #tpu.memory_space<vmem>>, vector<128x128xbf16>
    %cst_7 = arith.constant dense<0.000000e+00> : vector<8x128xf32>
    %11 = tpu.matmul %9, %10, %cst_7 {dimension_numbers = #tpu.dot_dimension_numbers<[1], [0], [0], [1], [0, 0, 1, 1], [], []>} : vector<8x128xbf16>, vector<128x128xbf16>, vector<8x128xf32> -> vector<8x128xf32>
    %c0_8 = arith.constant 0 : index
    %c0_9 = arith.constant 0 : index
    %12 = vector.load %arg5[%c0_8, %c0_9] : memref<1x128xf32, #tpu.memory_space<vmem>>, vector<1x128xf32>
    %13 = vector.broadcast %12 : vector<1x128xf32> to vector<8x128xf32>
    %14 = arith.mulf %11, %13 : vector<8x128xf32>
    %c0_10 = arith.constant 0 : index
    %c0_11 = arith.constant 0 : index
    %15 = vector.load %arg6[%c0_10, %c0_11] : memref<1x128xf32, #tpu.memory_space<vmem>>, vector<1x128xf32>
    %16 = vector.broadcast %15 : vector<1x128xf32> to vector<8x128xf32>
    %17 = arith.addf %14, %16 : vector<8x128xf32>
    %cst_12 = arith.constant 0.000000e+00 : f32
    %18 = vector.broadcast %cst_12 : f32 to vector<8x128xf32>
    %19 = arith.maximumf %17, %18 : vector<8x128xf32>
    %20 = arith.truncf %19 : vector<8x128xf32> to vector<8x128xbf16>
    %c0_13 = arith.constant 0 : index
    %c0_14 = arith.constant 0 : index
    %21 = vector.load %arg7[%c0_13, %c0_14] : memref<128x1152xbf16, #tpu.memory_space<vmem>>, vector<128x1152xbf16>
    %cst_15 = arith.constant dense<0.000000e+00> : vector<8x1152xf32>
    %22 = tpu.matmul %20, %21, %cst_15 {dimension_numbers = #tpu.dot_dimension_numbers<[1], [0], [0], [1], [0, 0, 1, 1], [], []>} : vector<8x128xbf16>, vector<128x1152xbf16>, vector<8x1152xf32> -> vector<8x1152xf32>
    %23 = vector.extract_strided_slice %22 {offsets = [0, 0], sizes = [8, 128], strides = [1, 1]} : vector<8x1152xf32> to vector<8x128xf32>
    %24 = arith.truncf %23 : vector<8x128xf32> to vector<8x128xbf16>
    %c0_16 = arith.constant 0 : index
    %c0_17 = arith.constant 0 : index
    %c0_18 = arith.constant 0 : index
    %25 = vector.load %arg8[%c0_16, %c0_17, %c0_18] : memref<9x8x8xbf16, #tpu.memory_space<vmem>>, vector<1x8x8xbf16>
    %26 = vector.shape_cast %25 : vector<1x8x8xbf16> to vector<8x8xbf16>
    %cst_19 = arith.constant dense<0.000000e+00> : vector<8x128xf32>
    %27 = tpu.matmul %26, %24, %cst_19 {dimension_numbers = #tpu.dot_dimension_numbers<[1], [0], [0], [1], [0, 0, 1, 1], [], []>} : vector<8x8xbf16>, vector<8x128xbf16>, vector<8x128xf32> -> vector<8x128xf32>
    %28 = arith.addf %0, %27 : vector<8x128xf32>
    %29 = vector.extract_strided_slice %22 {offsets = [0, 128], sizes = [8, 128], strides = [1, 1]} : vector<8x1152xf32> to vector<8x128xf32>
    %30 = arith.truncf %29 : vector<8x128xf32> to vector<8x128xbf16>
    %c1 = arith.constant 1 : index
    %c0_20 = arith.constant 0 : index
    %c0_21 = arith.constant 0 : index
    %31 = vector.load %arg8[%c1, %c0_20, %c0_21] : memref<9x8x8xbf16, #tpu.memory_space<vmem>>, vector<1x8x8xbf16>
    %32 = vector.shape_cast %31 : vector<1x8x8xbf16> to vector<8x8xbf16>
    %cst_22 = arith.constant dense<0.000000e+00> : vector<8x128xf32>
    %33 = tpu.matmul %32, %30, %cst_22 {dimension_numbers = #tpu.dot_dimension_numbers<[1], [0], [0], [1], [0, 0, 1, 1], [], []>} : vector<8x8xbf16>, vector<8x128xbf16>, vector<8x128xf32> -> vector<8x128xf32>
    %34 = arith.addf %28, %33 : vector<8x128xf32>
    %35 = vector.extract_strided_slice %22 {offsets = [0, 256], sizes = [8, 128], strides = [1, 1]} : vector<8x1152xf32> to vector<8x128xf32>
    %36 = arith.truncf %35 : vector<8x128xf32> to vector<8x128xbf16>
    %c2 = arith.constant 2 : index
    %c0_23 = arith.constant 0 : index
    %c0_24 = arith.constant 0 : index
    %37 = vector.load %arg8[%c2, %c0_23, %c0_24] : memref<9x8x8xbf16, #tpu.memory_space<vmem>>, vector<1x8x8xbf16>
    %38 = vector.shape_cast %37 : vector<1x8x8xbf16> to vector<8x8xbf16>
    %cst_25 = arith.constant dense<0.000000e+00> : vector<8x128xf32>
    %39 = tpu.matmul %38, %36, %cst_25 {dimension_numbers = #tpu.dot_dimension_numbers<[1], [0], [0], [1], [0, 0, 1, 1], [], []>} : vector<8x8xbf16>, vector<8x128xbf16>, vector<8x128xf32> -> vector<8x128xf32>
    %40 = arith.addf %34, %39 : vector<8x128xf32>
    %41 = vector.extract_strided_slice %22 {offsets = [0, 384], sizes = [8, 128], strides = [1, 1]} : vector<8x1152xf32> to vector<8x128xf32>
    %42 = arith.truncf %41 : vector<8x128xf32> to vector<8x128xbf16>
    %c3 = arith.constant 3 : index
    %c0_26 = arith.constant 0 : index
    %c0_27 = arith.constant 0 : index
    %43 = vector.load %arg8[%c3, %c0_26, %c0_27] : memref<9x8x8xbf16, #tpu.memory_space<vmem>>, vector<1x8x8xbf16>
    %44 = vector.shape_cast %43 : vector<1x8x8xbf16> to vector<8x8xbf16>
    %cst_28 = arith.constant dense<0.000000e+00> : vector<8x128xf32>
    %45 = tpu.matmul %44, %42, %cst_28 {dimension_numbers = #tpu.dot_dimension_numbers<[1], [0], [0], [1], [0, 0, 1, 1], [], []>} : vector<8x8xbf16>, vector<8x128xbf16>, vector<8x128xf32> -> vector<8x128xf32>
    %46 = arith.addf %40, %45 : vector<8x128xf32>
    %47 = vector.extract_strided_slice %22 {offsets = [0, 512], sizes = [8, 128], strides = [1, 1]} : vector<8x1152xf32> to vector<8x128xf32>
    %48 = arith.truncf %47 : vector<8x128xf32> to vector<8x128xbf16>
    %c4 = arith.constant 4 : index
    %c0_29 = arith.constant 0 : index
    %c0_30 = arith.constant 0 : index
    %49 = vector.load %arg8[%c4, %c0_29, %c0_30] : memref<9x8x8xbf16, #tpu.memory_space<vmem>>, vector<1x8x8xbf16>
    %50 = vector.shape_cast %49 : vector<1x8x8xbf16> to vector<8x8xbf16>
    %cst_31 = arith.constant dense<0.000000e+00> : vector<8x128xf32>
    %51 = tpu.matmul %50, %48, %cst_31 {dimension_numbers = #tpu.dot_dimension_numbers<[1], [0], [0], [1], [0, 0, 1, 1], [], []>} : vector<8x8xbf16>, vector<8x128xbf16>, vector<8x128xf32> -> vector<8x128xf32>
    %52 = arith.addf %46, %51 : vector<8x128xf32>
    %53 = vector.extract_strided_slice %22 {offsets = [0, 640], sizes = [8, 128], strides = [1, 1]} : vector<8x1152xf32> to vector<8x128xf32>
    %54 = arith.truncf %53 : vector<8x128xf32> to vector<8x128xbf16>
    %c5 = arith.constant 5 : index
    %c0_32 = arith.constant 0 : index
    %c0_33 = arith.constant 0 : index
    %55 = vector.load %arg8[%c5, %c0_32, %c0_33] : memref<9x8x8xbf16, #tpu.memory_space<vmem>>, vector<1x8x8xbf16>
    %56 = vector.shape_cast %55 : vector<1x8x8xbf16> to vector<8x8xbf16>
    %cst_34 = arith.constant dense<0.000000e+00> : vector<8x128xf32>
    %57 = tpu.matmul %56, %54, %cst_34 {dimension_numbers = #tpu.dot_dimension_numbers<[1], [0], [0], [1], [0, 0, 1, 1], [], []>} : vector<8x8xbf16>, vector<8x128xbf16>, vector<8x128xf32> -> vector<8x128xf32>
    %58 = arith.addf %52, %57 : vector<8x128xf32>
    %59 = vector.extract_strided_slice %22 {offsets = [0, 768], sizes = [8, 128], strides = [1, 1]} : vector<8x1152xf32> to vector<8x128xf32>
    %60 = arith.truncf %59 : vector<8x128xf32> to vector<8x128xbf16>
    %c6 = arith.constant 6 : index
    %c0_35 = arith.constant 0 : index
    %c0_36 = arith.constant 0 : index
    %61 = vector.load %arg8[%c6, %c0_35, %c0_36] : memref<9x8x8xbf16, #tpu.memory_space<vmem>>, vector<1x8x8xbf16>
    %62 = vector.shape_cast %61 : vector<1x8x8xbf16> to vector<8x8xbf16>
    %cst_37 = arith.constant dense<0.000000e+00> : vector<8x128xf32>
    %63 = tpu.matmul %62, %60, %cst_37 {dimension_numbers = #tpu.dot_dimension_numbers<[1], [0], [0], [1], [0, 0, 1, 1], [], []>} : vector<8x8xbf16>, vector<8x128xbf16>, vector<8x128xf32> -> vector<8x128xf32>
    %64 = arith.addf %58, %63 : vector<8x128xf32>
    %65 = vector.extract_strided_slice %22 {offsets = [0, 896], sizes = [8, 128], strides = [1, 1]} : vector<8x1152xf32> to vector<8x128xf32>
    %66 = arith.truncf %65 : vector<8x128xf32> to vector<8x128xbf16>
    %c7 = arith.constant 7 : index
    %c0_38 = arith.constant 0 : index
    %c0_39 = arith.constant 0 : index
    %67 = vector.load %arg8[%c7, %c0_38, %c0_39] : memref<9x8x8xbf16, #tpu.memory_space<vmem>>, vector<1x8x8xbf16>
    %68 = vector.shape_cast %67 : vector<1x8x8xbf16> to vector<8x8xbf16>
    %cst_40 = arith.constant dense<0.000000e+00> : vector<8x128xf32>
    %69 = tpu.matmul %68, %66, %cst_40 {dimension_numbers = #tpu.dot_dimension_numbers<[1], [0], [0], [1], [0, 0, 1, 1], [], []>} : vector<8x8xbf16>, vector<8x128xbf16>, vector<8x128xf32> -> vector<8x128xf32>
    %70 = arith.addf %64, %69 : vector<8x128xf32>
    %71 = vector.extract_strided_slice %22 {offsets = [0, 1024], sizes = [8, 128], strides = [1, 1]} : vector<8x1152xf32> to vector<8x128xf32>
    %72 = arith.truncf %71 : vector<8x128xf32> to vector<8x128xbf16>
    %c8 = arith.constant 8 : index
    %c0_41 = arith.constant 0 : index
    %c0_42 = arith.constant 0 : index
    %73 = vector.load %arg8[%c8, %c0_41, %c0_42] : memref<9x8x8xbf16, #tpu.memory_space<vmem>>, vector<1x8x8xbf16>
    %74 = vector.shape_cast %73 : vector<1x8x8xbf16> to vector<8x8xbf16>
    %cst_43 = arith.constant dense<0.000000e+00> : vector<8x128xf32>
    %75 = tpu.matmul %74, %72, %cst_43 {dimension_numbers = #tpu.dot_dimension_numbers<[1], [0], [0], [1], [0, 0, 1, 1], [], []>} : vector<8x8xbf16>, vector<8x128xbf16>, vector<8x128xf32> -> vector<8x128xf32>
    %76 = arith.addf %70, %75 : vector<8x128xf32>
    %c0_44 = arith.constant 0 : index
    %c0_45 = arith.constant 0 : index
    %77 = vector.load %arg9[%c0_44, %c0_45] : memref<8x128xf32, #tpu.memory_space<vmem>>, vector<8x128xf32>
    tpu.vector_store %arg9[%c0_44, %c0_45], %76 {strides = array<i32>} : memref<8x128xf32, #tpu.memory_space<vmem>>, vector<8x128xf32>,
    return
  }
  func.func @transform_0(%arg0: i32) -> (i32, i32) {
    %c0_i32 = arith.constant 0 : i32
    %c0_i32_0 = arith.constant 0 : i32
    %c0_i32_1 = arith.constant 0 : i32
    return %c0_i32, %c0_i32_0 : i32, i32
  }
  func.func @transform_1(%arg0: i32) -> (i32, i32) {
    %c0_i32 = arith.constant 0 : i32
    %c0_i32_0 = arith.constant 0 : i32
    %c0_i32_1 = arith.constant 0 : i32
    return %c0_i32, %c0_i32_0 : i32, i32
  }
  func.func @transform_2(%arg0: i32) -> (i32, i32) {
    %c0_i32 = arith.constant 0 : i32
    %c0_i32_0 = arith.constant 0 : i32
    %c0_i32_1 = arith.constant 0 : i32
    return %c0_i32, %c0_i32_0 : i32, i32
  }
  func.func @transform_3(%arg0: i32) -> (i32, i32) {
    %c0_i32 = arith.constant 0 : i32
    %c0_i32_0 = arith.constant 0 : i32
    %c0_i32_1 = arith.constant 0 : i32
    return %c0_i32, %c0_i32_0 : i32, i32
  }
  func.func @transform_4(%arg0: i32) -> (i32, i32) {
    %c0_i32 = arith.constant 0 : i32
    %c0_i32_0 = arith.constant 0 : i32
    %c0_i32_1 = arith.constant 0 : i32
    return %c0_i32, %c0_i32_0 : i32, i32
  }
  func.func @transform_5(%arg0: i32) -> (i32, i32) {
    %c0_i32 = arith.constant 0 : i32
    %c0_i32_0 = arith.constant 0 : i32
    %c0_i32_1 = arith.constant 0 : i32
    return %c0_i32, %c0_i32_0 : i32, i32
  }
  func.func @transform_6(%arg0: i32) -> (i32, i32) {
    %c0_i32 = arith.constant 0 : i32
    %c0_i32_0 = arith.constant 0 : i32
    %c0_i32_1 = arith.constant 0 : i32
    return %c0_i32, %c0_i32_0 : i32, i32
  }
  func.func @transform_7(%arg0: i32) -> (i32, i32, i32) {
    %c0_i32 = arith.constant 0 : i32
    %c0_i32_0 = arith.constant 0 : i32
    %c0_i32_1 = arith.constant 0 : i32
    %c0_i32_2 = arith.constant 0 : i32
    return %c0_i32, %c0_i32_0, %c0_i32_1 : i32, i32, i32
  }
  func.func @transform_8(%arg0: i32) -> (i32, i32) {
    %c0_i32 = arith.constant 0 : i32
    %c0_i32_0 = arith.constant 0 : i32
    %c0_i32_1 = arith.constant 0 : i32
    return %c0_i32, %c0_i32_0 : i32, i32
  }
}

module attributes {stable_mosaic.version = 11 : i64} {
  func.func @_transition_kernel(%arg0: i32, %arg1: memref<8x128xf32, #tpu.memory_space<vmem>>, %arg2: memref<1x128xf32, #tpu.memory_space<vmem>>, %arg3: memref<1x128xf32, #tpu.memory_space<vmem>>, %arg4: memref<128x128xbf16, #tpu.memory_space<vmem>>, %arg5: memref<2x8xbf16, #tpu.memory_space<vmem>>, %arg6: memref<2x128xf32, #tpu.memory_space<vmem>>) attributes {dimension_semantics = [#tpu.dimension_semantics<arbitrary>], iteration_bounds = array<i64: 1>, scalar_prefetch = 0 : i64, scratch_operands = 0 : i64, tpu.core_type = #tpu.core_type<tc>, window_params = [{pipeline_mode = #tpu.pipeline_mode<synchronous>, transform_indices = @transform_0, window_bounds = array<i64: 8, 128>}, {pipeline_mode = #tpu.pipeline_mode<synchronous>, transform_indices = @transform_1, window_bounds = array<i64: 1, 128>}, {pipeline_mode = #tpu.pipeline_mode<synchronous>, transform_indices = @transform_2, window_bounds = array<i64: 1, 128>}, {pipeline_mode = #tpu.pipeline_mode<synchronous>, transform_indices = @transform_3, window_bounds = array<i64: 128, 128>}, {pipeline_mode = #tpu.pipeline_mode<synchronous>, transform_indices = @transform_4, window_bounds = array<i64: 2, 8>}, {pipeline_mode = #tpu.pipeline_mode<synchronous>, transform_indices = @transform_5, window_bounds = array<i64: 2, 128>}]} {
    %c0 = arith.constant 0 : index
    %c0_0 = arith.constant 0 : index
    %0 = vector.load %arg1[%c0, %c0_0] : memref<8x128xf32, #tpu.memory_space<vmem>>, vector<8x128xf32>
    %c0_1 = arith.constant 0 : index
    %c0_2 = arith.constant 0 : index
    %1 = vector.load %arg2[%c0_1, %c0_2] : memref<1x128xf32, #tpu.memory_space<vmem>>, vector<1x128xf32>
    %2 = vector.broadcast %1 : vector<1x128xf32> to vector<8x128xf32>
    %3 = arith.mulf %0, %2 : vector<8x128xf32>
    %c0_3 = arith.constant 0 : index
    %c0_4 = arith.constant 0 : index
    %4 = vector.load %arg3[%c0_3, %c0_4] : memref<1x128xf32, #tpu.memory_space<vmem>>, vector<1x128xf32>
    %5 = vector.broadcast %4 : vector<1x128xf32> to vector<8x128xf32>
    %6 = arith.addf %3, %5 : vector<8x128xf32>
    %cst = arith.constant 0.000000e+00 : f32
    %7 = vector.broadcast %cst : f32 to vector<8x128xf32>
    %8 = arith.maximumf %6, %7 : vector<8x128xf32>
    %9 = arith.truncf %8 : vector<8x128xf32> to vector<8x128xbf16>
    %c0_5 = arith.constant 0 : index
    %c0_6 = arith.constant 0 : index
    %10 = vector.load %arg4[%c0_5, %c0_6] : memref<128x128xbf16, #tpu.memory_space<vmem>>, vector<128x128xbf16>
    %cst_7 = arith.constant dense<0.000000e+00> : vector<8x128xf32>
    %11 = tpu.matmul %9, %10, %cst_7 {dimension_numbers = #tpu.dot_dimension_numbers<[1], [0], [0], [1], [0, 0, 1, 1], [], []>} : vector<8x128xbf16>, vector<128x128xbf16>, vector<8x128xf32> -> vector<8x128xf32>
    %c0_8 = arith.constant 0 : index
    %c0_9 = arith.constant 0 : index
    %12 = vector.load %arg5[%c0_8, %c0_9] : memref<2x8xbf16, #tpu.memory_space<vmem>>, vector<2x8xbf16>
    %13 = arith.truncf %11 : vector<8x128xf32> to vector<8x128xbf16>
    %cst_10 = arith.constant dense<0.000000e+00> : vector<2x128xf32>
    %14 = tpu.matmul %12, %13, %cst_10 {dimension_numbers = #tpu.dot_dimension_numbers<[1], [0], [0], [1], [0, 0, 1, 1], [], []>} : vector<2x8xbf16>, vector<8x128xbf16>, vector<2x128xf32> -> vector<2x128xf32>
    %c0_11 = arith.constant 0 : index
    %c0_12 = arith.constant 0 : index
    %15 = vector.load %arg6[%c0_11, %c0_12] : memref<2x128xf32, #tpu.memory_space<vmem>>, vector<2x128xf32>
    tpu.vector_store %arg6[%c0_11, %c0_12], %14 {strides = array<i32>} : memref<2x128xf32, #tpu.memory_space<vmem>>, vector<2x128xf32>,
    return
  }
  func.func @transform_0(%arg0: i32) -> (i32, i32) {
    %c0_i32 = arith.constant 0 : i32
    %c0_i32_0 = arith.constant 0 : i32
    %c0_i32_1 = arith.constant 0 : i32
    return %c0_i32, %c0_i32_0 : i32, i32
  }
  func.func @transform_1(%arg0: i32) -> (i32, i32) {
    %c0_i32 = arith.constant 0 : i32
    %c0_i32_0 = arith.constant 0 : i32
    %c0_i32_1 = arith.constant 0 : i32
    return %c0_i32, %c0_i32_0 : i32, i32
  }
  func.func @transform_2(%arg0: i32) -> (i32, i32) {
    %c0_i32 = arith.constant 0 : i32
    %c0_i32_0 = arith.constant 0 : i32
    %c0_i32_1 = arith.constant 0 : i32
    return %c0_i32, %c0_i32_0 : i32, i32
  }
  func.func @transform_3(%arg0: i32) -> (i32, i32) {
    %c0_i32 = arith.constant 0 : i32
    %c0_i32_0 = arith.constant 0 : i32
    %c0_i32_1 = arith.constant 0 : i32
    return %c0_i32, %c0_i32_0 : i32, i32
  }
  func.func @transform_4(%arg0: i32) -> (i32, i32) {
    %c0_i32 = arith.constant 0 : i32
    %c0_i32_0 = arith.constant 0 : i32
    %c0_i32_1 = arith.constant 0 : i32
    return %c0_i32, %c0_i32_0 : i32, i32
  }
  func.func @transform_5(%arg0: i32) -> (i32, i32) {
    %c0_i32 = arith.constant 0 : i32
    %c0_i32_0 = arith.constant 0 : i32
    %c0_i32_1 = arith.constant 0 : i32
    return %c0_i32, %c0_i32_0 : i32, i32
  }
}

module attributes {stable_mosaic.version = 11 : i64} {
  func.func @_head_kernel(%arg0: i32, %arg1: memref<2x128xf32, #tpu.memory_space<vmem>>, %arg2: memref<1x128xf32, #tpu.memory_space<vmem>>, %arg3: memref<1x128xf32, #tpu.memory_space<vmem>>, %arg4: memref<2x2xbf16, #tpu.memory_space<vmem>>, %arg5: memref<128x128xbf16, #tpu.memory_space<vmem>>, %arg6: memref<1x128xf32, #tpu.memory_space<vmem>>, %arg7: memref<2x128xf32, #tpu.memory_space<vmem>>) attributes {dimension_semantics = [#tpu.dimension_semantics<arbitrary>], iteration_bounds = array<i64: 1>, scalar_prefetch = 0 : i64, scratch_operands = 0 : i64, tpu.core_type = #tpu.core_type<tc>, window_params = [{pipeline_mode = #tpu.pipeline_mode<synchronous>, transform_indices = @transform_0, window_bounds = array<i64: 2, 128>}, {pipeline_mode = #tpu.pipeline_mode<synchronous>, transform_indices = @transform_1, window_bounds = array<i64: 1, 128>}, {pipeline_mode = #tpu.pipeline_mode<synchronous>, transform_indices = @transform_2, window_bounds = array<i64: 1, 128>}, {pipeline_mode = #tpu.pipeline_mode<synchronous>, transform_indices = @transform_3, window_bounds = array<i64: 2, 2>}, {pipeline_mode = #tpu.pipeline_mode<synchronous>, transform_indices = @transform_4, window_bounds = array<i64: 128, 128>}, {pipeline_mode = #tpu.pipeline_mode<synchronous>, transform_indices = @transform_5, window_bounds = array<i64: 1, 128>}, {pipeline_mode = #tpu.pipeline_mode<synchronous>, transform_indices = @transform_6, window_bounds = array<i64: 2, 128>}]} {
    %c0 = arith.constant 0 : index
    %c0_0 = arith.constant 0 : index
    %0 = vector.load %arg1[%c0, %c0_0] : memref<2x128xf32, #tpu.memory_space<vmem>>, vector<2x128xf32>
    %c0_1 = arith.constant 0 : index
    %c0_2 = arith.constant 0 : index
    %1 = vector.load %arg2[%c0_1, %c0_2] : memref<1x128xf32, #tpu.memory_space<vmem>>, vector<1x128xf32>
    %2 = vector.broadcast %1 : vector<1x128xf32> to vector<2x128xf32>
    %3 = arith.mulf %0, %2 : vector<2x128xf32>
    %c0_3 = arith.constant 0 : index
    %c0_4 = arith.constant 0 : index
    %4 = vector.load %arg3[%c0_3, %c0_4] : memref<1x128xf32, #tpu.memory_space<vmem>>, vector<1x128xf32>
    %5 = vector.broadcast %4 : vector<1x128xf32> to vector<2x128xf32>
    %6 = arith.addf %3, %5 : vector<2x128xf32>
    %cst = arith.constant 0.000000e+00 : f32
    %7 = vector.broadcast %cst : f32 to vector<2x128xf32>
    %8 = arith.maximumf %6, %7 : vector<2x128xf32>
    %c0_5 = arith.constant 0 : index
    %c0_6 = arith.constant 0 : index
    %9 = vector.load %arg4[%c0_5, %c0_6] : memref<2x2xbf16, #tpu.memory_space<vmem>>, vector<2x2xbf16>
    %10 = arith.truncf %8 : vector<2x128xf32> to vector<2x128xbf16>
    %cst_7 = arith.constant dense<0.000000e+00> : vector<2x128xf32>
    %11 = tpu.matmul %9, %10, %cst_7 {dimension_numbers = #tpu.dot_dimension_numbers<[1], [0], [0], [1], [0, 0, 1, 1], [], []>} : vector<2x2xbf16>, vector<2x128xbf16>, vector<2x128xf32> -> vector<2x128xf32>
    %12 = arith.truncf %11 : vector<2x128xf32> to vector<2x128xbf16>
    %c0_8 = arith.constant 0 : index
    %c0_9 = arith.constant 0 : index
    %13 = vector.load %arg5[%c0_8, %c0_9] : memref<128x128xbf16, #tpu.memory_space<vmem>>, vector<128x128xbf16>
    %cst_10 = arith.constant dense<0.000000e+00> : vector<2x128xf32>
    %14 = tpu.matmul %12, %13, %cst_10 {dimension_numbers = #tpu.dot_dimension_numbers<[1], [0], [0], [1], [0, 0, 1, 1], [], []>} : vector<2x128xbf16>, vector<128x128xbf16>, vector<2x128xf32> -> vector<2x128xf32>
    %c0_11 = arith.constant 0 : index
    %c0_12 = arith.constant 0 : index
    %15 = vector.load %arg6[%c0_11, %c0_12] : memref<1x128xf32, #tpu.memory_space<vmem>>, vector<1x128xf32>
    %16 = vector.broadcast %15 : vector<1x128xf32> to vector<2x128xf32>
    %17 = arith.addf %14, %16 : vector<2x128xf32>
    %c0_13 = arith.constant 0 : index
    %c0_14 = arith.constant 0 : index
    %18 = vector.load %arg7[%c0_13, %c0_14] : memref<2x128xf32, #tpu.memory_space<vmem>>, vector<2x128xf32>
    tpu.vector_store %arg7[%c0_13, %c0_14], %17 {strides = array<i32>} : memref<2x128xf32, #tpu.memory_space<vmem>>, vector<2x128xf32>,
    return
  }
  func.func @transform_0(%arg0: i32) -> (i32, i32) {
    %c0_i32 = arith.constant 0 : i32
    %c0_i32_0 = arith.constant 0 : i32
    %c0_i32_1 = arith.constant 0 : i32
    return %c0_i32, %c0_i32_0 : i32, i32
  }
  func.func @transform_1(%arg0: i32) -> (i32, i32) {
    %c0_i32 = arith.constant 0 : i32
    %c0_i32_0 = arith.constant 0 : i32
    %c0_i32_1 = arith.constant 0 : i32
    return %c0_i32, %c0_i32_0 : i32, i32
  }
  func.func @transform_2(%arg0: i32) -> (i32, i32) {
    %c0_i32 = arith.constant 0 : i32
    %c0_i32_0 = arith.constant 0 : i32
    %c0_i32_1 = arith.constant 0 : i32
    return %c0_i32, %c0_i32_0 : i32, i32
  }
  func.func @transform_3(%arg0: i32) -> (i32, i32) {
    %c0_i32 = arith.constant 0 : i32
    %c0_i32_0 = arith.constant 0 : i32
    %c0_i32_1 = arith.constant 0 : i32
    return %c0_i32, %c0_i32_0 : i32, i32
  }
  func.func @transform_4(%arg0: i32) -> (i32, i32) {
    %c0_i32 = arith.constant 0 : i32
    %c0_i32_0 = arith.constant 0 : i32
    %c0_i32_1 = arith.constant 0 : i32
    return %c0_i32, %c0_i32_0 : i32, i32
  }
  func.func @transform_5(%arg0: i32) -> (i32, i32) {
    %c0_i32 = arith.constant 0 : i32
    %c0_i32_0 = arith.constant 0 : i32
    %c0_i32_1 = arith.constant 0 : i32
    return %c0_i32, %c0_i32_0 : i32, i32
  }
  func.func @transform_6(%arg0: i32) -> (i32, i32) {
    %c0_i32 = arith.constant 0 : i32
    %c0_i32_0 = arith.constant 0 : i32
    %c0_i32_1 = arith.constant 0 : i32
    return %c0_i32, %c0_i32_0 : i32, i32
  }
}

module attributes {stable_mosaic.version = 11 : i64} {
  func.func @_dense_layer_kernel(%arg0: i32, %arg1: memref<2x128xf32, #tpu.memory_space<vmem>>, %arg2: memref<1x128xf32, #tpu.memory_space<vmem>>, %arg3: memref<1x128xf32, #tpu.memory_space<vmem>>, %arg4: memref<128x128xbf16, #tpu.memory_space<vmem>>, %arg5: memref<1x128xf32, #tpu.memory_space<vmem>>, %arg6: memref<1x128xf32, #tpu.memory_space<vmem>>, %arg7: memref<128x1152xbf16, #tpu.memory_space<vmem>>, %arg8: memref<9x2x2xbf16, #tpu.memory_space<vmem>>, %arg9: memref<2x128xf32, #tpu.memory_space<vmem>>) attributes {dimension_semantics = [#tpu.dimension_semantics<arbitrary>], iteration_bounds = array<i64: 1>, scalar_prefetch = 0 : i64, scratch_operands = 0 : i64, tpu.core_type = #tpu.core_type<tc>, window_params = [{pipeline_mode = #tpu.pipeline_mode<synchronous>, transform_indices = @transform_0, window_bounds = array<i64: 2, 128>}, {pipeline_mode = #tpu.pipeline_mode<synchronous>, transform_indices = @transform_1, window_bounds = array<i64: 1, 128>}, {pipeline_mode = #tpu.pipeline_mode<synchronous>, transform_indices = @transform_2, window_bounds = array<i64: 1, 128>}, {pipeline_mode = #tpu.pipeline_mode<synchronous>, transform_indices = @transform_3, window_bounds = array<i64: 128, 128>}, {pipeline_mode = #tpu.pipeline_mode<synchronous>, transform_indices = @transform_4, window_bounds = array<i64: 1, 128>}, {pipeline_mode = #tpu.pipeline_mode<synchronous>, transform_indices = @transform_5, window_bounds = array<i64: 1, 128>}, {pipeline_mode = #tpu.pipeline_mode<synchronous>, transform_indices = @transform_6, window_bounds = array<i64: 128, 1152>}, {pipeline_mode = #tpu.pipeline_mode<synchronous>, transform_indices = @transform_7, window_bounds = array<i64: 9, 2, 2>}, {pipeline_mode = #tpu.pipeline_mode<synchronous>, transform_indices = @transform_8, window_bounds = array<i64: 2, 128>}]} {
    %c0 = arith.constant 0 : index
    %c0_0 = arith.constant 0 : index
    %0 = vector.load %arg1[%c0, %c0_0] : memref<2x128xf32, #tpu.memory_space<vmem>>, vector<2x128xf32>
    %c0_1 = arith.constant 0 : index
    %c0_2 = arith.constant 0 : index
    %1 = vector.load %arg2[%c0_1, %c0_2] : memref<1x128xf32, #tpu.memory_space<vmem>>, vector<1x128xf32>
    %2 = vector.broadcast %1 : vector<1x128xf32> to vector<2x128xf32>
    %3 = arith.mulf %0, %2 : vector<2x128xf32>
    %c0_3 = arith.constant 0 : index
    %c0_4 = arith.constant 0 : index
    %4 = vector.load %arg3[%c0_3, %c0_4] : memref<1x128xf32, #tpu.memory_space<vmem>>, vector<1x128xf32>
    %5 = vector.broadcast %4 : vector<1x128xf32> to vector<2x128xf32>
    %6 = arith.addf %3, %5 : vector<2x128xf32>
    %cst = arith.constant 0.000000e+00 : f32
    %7 = vector.broadcast %cst : f32 to vector<2x128xf32>
    %8 = arith.maximumf %6, %7 : vector<2x128xf32>
    %9 = arith.truncf %8 : vector<2x128xf32> to vector<2x128xbf16>
    %c0_5 = arith.constant 0 : index
    %c0_6 = arith.constant 0 : index
    %10 = vector.load %arg4[%c0_5, %c0_6] : memref<128x128xbf16, #tpu.memory_space<vmem>>, vector<128x128xbf16>
    %cst_7 = arith.constant dense<0.000000e+00> : vector<2x128xf32>
    %11 = tpu.matmul %9, %10, %cst_7 {dimension_numbers = #tpu.dot_dimension_numbers<[1], [0], [0], [1], [0, 0, 1, 1], [], []>} : vector<2x128xbf16>, vector<128x128xbf16>, vector<2x128xf32> -> vector<2x128xf32>
    %c0_8 = arith.constant 0 : index
    %c0_9 = arith.constant 0 : index
    %12 = vector.load %arg5[%c0_8, %c0_9] : memref<1x128xf32, #tpu.memory_space<vmem>>, vector<1x128xf32>
    %13 = vector.broadcast %12 : vector<1x128xf32> to vector<2x128xf32>
    %14 = arith.mulf %11, %13 : vector<2x128xf32>
    %c0_10 = arith.constant 0 : index
    %c0_11 = arith.constant 0 : index
    %15 = vector.load %arg6[%c0_10, %c0_11] : memref<1x128xf32, #tpu.memory_space<vmem>>, vector<1x128xf32>
    %16 = vector.broadcast %15 : vector<1x128xf32> to vector<2x128xf32>
    %17 = arith.addf %14, %16 : vector<2x128xf32>
    %cst_12 = arith.constant 0.000000e+00 : f32
    %18 = vector.broadcast %cst_12 : f32 to vector<2x128xf32>
    %19 = arith.maximumf %17, %18 : vector<2x128xf32>
    %20 = arith.truncf %19 : vector<2x128xf32> to vector<2x128xbf16>
    %c0_13 = arith.constant 0 : index
    %c0_14 = arith.constant 0 : index
    %21 = vector.load %arg7[%c0_13, %c0_14] : memref<128x1152xbf16, #tpu.memory_space<vmem>>, vector<128x1152xbf16>
    %cst_15 = arith.constant dense<0.000000e+00> : vector<2x1152xf32>
    %22 = tpu.matmul %20, %21, %cst_15 {dimension_numbers = #tpu.dot_dimension_numbers<[1], [0], [0], [1], [0, 0, 1, 1], [], []>} : vector<2x128xbf16>, vector<128x1152xbf16>, vector<2x1152xf32> -> vector<2x1152xf32>
    %23 = vector.extract_strided_slice %22 {offsets = [0, 0], sizes = [2, 128], strides = [1, 1]} : vector<2x1152xf32> to vector<2x128xf32>
    %24 = arith.truncf %23 : vector<2x128xf32> to vector<2x128xbf16>
    %c0_16 = arith.constant 0 : index
    %c0_17 = arith.constant 0 : index
    %c0_18 = arith.constant 0 : index
    %25 = vector.load %arg8[%c0_16, %c0_17, %c0_18] : memref<9x2x2xbf16, #tpu.memory_space<vmem>>, vector<1x2x2xbf16>
    %26 = vector.shape_cast %25 : vector<1x2x2xbf16> to vector<2x2xbf16>
    %cst_19 = arith.constant dense<0.000000e+00> : vector<2x128xf32>
    %27 = tpu.matmul %26, %24, %cst_19 {dimension_numbers = #tpu.dot_dimension_numbers<[1], [0], [0], [1], [0, 0, 1, 1], [], []>} : vector<2x2xbf16>, vector<2x128xbf16>, vector<2x128xf32> -> vector<2x128xf32>
    %28 = arith.addf %0, %27 : vector<2x128xf32>
    %29 = vector.extract_strided_slice %22 {offsets = [0, 128], sizes = [2, 128], strides = [1, 1]} : vector<2x1152xf32> to vector<2x128xf32>
    %30 = arith.truncf %29 : vector<2x128xf32> to vector<2x128xbf16>
    %c1 = arith.constant 1 : index
    %c0_20 = arith.constant 0 : index
    %c0_21 = arith.constant 0 : index
    %31 = vector.load %arg8[%c1, %c0_20, %c0_21] : memref<9x2x2xbf16, #tpu.memory_space<vmem>>, vector<1x2x2xbf16>
    %32 = vector.shape_cast %31 : vector<1x2x2xbf16> to vector<2x2xbf16>
    %cst_22 = arith.constant dense<0.000000e+00> : vector<2x128xf32>
    %33 = tpu.matmul %32, %30, %cst_22 {dimension_numbers = #tpu.dot_dimension_numbers<[1], [0], [0], [1], [0, 0, 1, 1], [], []>} : vector<2x2xbf16>, vector<2x128xbf16>, vector<2x128xf32> -> vector<2x128xf32>
    %34 = arith.addf %28, %33 : vector<2x128xf32>
    %35 = vector.extract_strided_slice %22 {offsets = [0, 256], sizes = [2, 128], strides = [1, 1]} : vector<2x1152xf32> to vector<2x128xf32>
    %36 = arith.truncf %35 : vector<2x128xf32> to vector<2x128xbf16>
    %c2 = arith.constant 2 : index
    %c0_23 = arith.constant 0 : index
    %c0_24 = arith.constant 0 : index
    %37 = vector.load %arg8[%c2, %c0_23, %c0_24] : memref<9x2x2xbf16, #tpu.memory_space<vmem>>, vector<1x2x2xbf16>
    %38 = vector.shape_cast %37 : vector<1x2x2xbf16> to vector<2x2xbf16>
    %cst_25 = arith.constant dense<0.000000e+00> : vector<2x128xf32>
    %39 = tpu.matmul %38, %36, %cst_25 {dimension_numbers = #tpu.dot_dimension_numbers<[1], [0], [0], [1], [0, 0, 1, 1], [], []>} : vector<2x2xbf16>, vector<2x128xbf16>, vector<2x128xf32> -> vector<2x128xf32>
    %40 = arith.addf %34, %39 : vector<2x128xf32>
    %41 = vector.extract_strided_slice %22 {offsets = [0, 384], sizes = [2, 128], strides = [1, 1]} : vector<2x1152xf32> to vector<2x128xf32>
    %42 = arith.truncf %41 : vector<2x128xf32> to vector<2x128xbf16>
    %c3 = arith.constant 3 : index
    %c0_26 = arith.constant 0 : index
    %c0_27 = arith.constant 0 : index
    %43 = vector.load %arg8[%c3, %c0_26, %c0_27] : memref<9x2x2xbf16, #tpu.memory_space<vmem>>, vector<1x2x2xbf16>
    %44 = vector.shape_cast %43 : vector<1x2x2xbf16> to vector<2x2xbf16>
    %cst_28 = arith.constant dense<0.000000e+00> : vector<2x128xf32>
    %45 = tpu.matmul %44, %42, %cst_28 {dimension_numbers = #tpu.dot_dimension_numbers<[1], [0], [0], [1], [0, 0, 1, 1], [], []>} : vector<2x2xbf16>, vector<2x128xbf16>, vector<2x128xf32> -> vector<2x128xf32>
    %46 = arith.addf %40, %45 : vector<2x128xf32>
    %47 = vector.extract_strided_slice %22 {offsets = [0, 512], sizes = [2, 128], strides = [1, 1]} : vector<2x1152xf32> to vector<2x128xf32>
    %48 = arith.truncf %47 : vector<2x128xf32> to vector<2x128xbf16>
    %c4 = arith.constant 4 : index
    %c0_29 = arith.constant 0 : index
    %c0_30 = arith.constant 0 : index
    %49 = vector.load %arg8[%c4, %c0_29, %c0_30] : memref<9x2x2xbf16, #tpu.memory_space<vmem>>, vector<1x2x2xbf16>
    %50 = vector.shape_cast %49 : vector<1x2x2xbf16> to vector<2x2xbf16>
    %cst_31 = arith.constant dense<0.000000e+00> : vector<2x128xf32>
    %51 = tpu.matmul %50, %48, %cst_31 {dimension_numbers = #tpu.dot_dimension_numbers<[1], [0], [0], [1], [0, 0, 1, 1], [], []>} : vector<2x2xbf16>, vector<2x128xbf16>, vector<2x128xf32> -> vector<2x128xf32>
    %52 = arith.addf %46, %51 : vector<2x128xf32>
    %53 = vector.extract_strided_slice %22 {offsets = [0, 640], sizes = [2, 128], strides = [1, 1]} : vector<2x1152xf32> to vector<2x128xf32>
    %54 = arith.truncf %53 : vector<2x128xf32> to vector<2x128xbf16>
    %c5 = arith.constant 5 : index
    %c0_32 = arith.constant 0 : index
    %c0_33 = arith.constant 0 : index
    %55 = vector.load %arg8[%c5, %c0_32, %c0_33] : memref<9x2x2xbf16, #tpu.memory_space<vmem>>, vector<1x2x2xbf16>
    %56 = vector.shape_cast %55 : vector<1x2x2xbf16> to vector<2x2xbf16>
    %cst_34 = arith.constant dense<0.000000e+00> : vector<2x128xf32>
    %57 = tpu.matmul %56, %54, %cst_34 {dimension_numbers = #tpu.dot_dimension_numbers<[1], [0], [0], [1], [0, 0, 1, 1], [], []>} : vector<2x2xbf16>, vector<2x128xbf16>, vector<2x128xf32> -> vector<2x128xf32>
    %58 = arith.addf %52, %57 : vector<2x128xf32>
    %59 = vector.extract_strided_slice %22 {offsets = [0, 768], sizes = [2, 128], strides = [1, 1]} : vector<2x1152xf32> to vector<2x128xf32>
    %60 = arith.truncf %59 : vector<2x128xf32> to vector<2x128xbf16>
    %c6 = arith.constant 6 : index
    %c0_35 = arith.constant 0 : index
    %c0_36 = arith.constant 0 : index
    %61 = vector.load %arg8[%c6, %c0_35, %c0_36] : memref<9x2x2xbf16, #tpu.memory_space<vmem>>, vector<1x2x2xbf16>
    %62 = vector.shape_cast %61 : vector<1x2x2xbf16> to vector<2x2xbf16>
    %cst_37 = arith.constant dense<0.000000e+00> : vector<2x128xf32>
    %63 = tpu.matmul %62, %60, %cst_37 {dimension_numbers = #tpu.dot_dimension_numbers<[1], [0], [0], [1], [0, 0, 1, 1], [], []>} : vector<2x2xbf16>, vector<2x128xbf16>, vector<2x128xf32> -> vector<2x128xf32>
    %64 = arith.addf %58, %63 : vector<2x128xf32>
    %65 = vector.extract_strided_slice %22 {offsets = [0, 896], sizes = [2, 128], strides = [1, 1]} : vector<2x1152xf32> to vector<2x128xf32>
    %66 = arith.truncf %65 : vector<2x128xf32> to vector<2x128xbf16>
    %c7 = arith.constant 7 : index
    %c0_38 = arith.constant 0 : index
    %c0_39 = arith.constant 0 : index
    %67 = vector.load %arg8[%c7, %c0_38, %c0_39] : memref<9x2x2xbf16, #tpu.memory_space<vmem>>, vector<1x2x2xbf16>
    %68 = vector.shape_cast %67 : vector<1x2x2xbf16> to vector<2x2xbf16>
    %cst_40 = arith.constant dense<0.000000e+00> : vector<2x128xf32>
    %69 = tpu.matmul %68, %66, %cst_40 {dimension_numbers = #tpu.dot_dimension_numbers<[1], [0], [0], [1], [0, 0, 1, 1], [], []>} : vector<2x2xbf16>, vector<2x128xbf16>, vector<2x128xf32> -> vector<2x128xf32>
    %70 = arith.addf %64, %69 : vector<2x128xf32>
    %71 = vector.extract_strided_slice %22 {offsets = [0, 1024], sizes = [2, 128], strides = [1, 1]} : vector<2x1152xf32> to vector<2x128xf32>
    %72 = arith.truncf %71 : vector<2x128xf32> to vector<2x128xbf16>
    %c8 = arith.constant 8 : index
    %c0_41 = arith.constant 0 : index
    %c0_42 = arith.constant 0 : index
    %73 = vector.load %arg8[%c8, %c0_41, %c0_42] : memref<9x2x2xbf16, #tpu.memory_space<vmem>>, vector<1x2x2xbf16>
    %74 = vector.shape_cast %73 : vector<1x2x2xbf16> to vector<2x2xbf16>
    %cst_43 = arith.constant dense<0.000000e+00> : vector<2x128xf32>
    %75 = tpu.matmul %74, %72, %cst_43 {dimension_numbers = #tpu.dot_dimension_numbers<[1], [0], [0], [1], [0, 0, 1, 1], [], []>} : vector<2x2xbf16>, vector<2x128xbf16>, vector<2x128xf32> -> vector<2x128xf32>
    %76 = arith.addf %70, %75 : vector<2x128xf32>
    %c0_44 = arith.constant 0 : index
    %c0_45 = arith.constant 0 : index
    %77 = vector.load %arg9[%c0_44, %c0_45] : memref<2x128xf32, #tpu.memory_space<vmem>>, vector<2x128xf32>
    tpu.vector_store %arg9[%c0_44, %c0_45], %76 {strides = array<i32>} : memref<2x128xf32, #tpu.memory_space<vmem>>, vector<2x128xf32>,
    return
  }
  func.func @transform_0(%arg0: i32) -> (i32, i32) {
    %c0_i32 = arith.constant 0 : i32
    %c0_i32_0 = arith.constant 0 : i32
    %c0_i32_1 = arith.constant 0 : i32
    return %c0_i32, %c0_i32_0 : i32, i32
  }
  func.func @transform_1(%arg0: i32) -> (i32, i32) {
    %c0_i32 = arith.constant 0 : i32
    %c0_i32_0 = arith.constant 0 : i32
    %c0_i32_1 = arith.constant 0 : i32
    return %c0_i32, %c0_i32_0 : i32, i32
  }
  func.func @transform_2(%arg0: i32) -> (i32, i32) {
    %c0_i32 = arith.constant 0 : i32
    %c0_i32_0 = arith.constant 0 : i32
    %c0_i32_1 = arith.constant 0 : i32
    return %c0_i32, %c0_i32_0 : i32, i32
  }
  func.func @transform_3(%arg0: i32) -> (i32, i32) {
    %c0_i32 = arith.constant 0 : i32
    %c0_i32_0 = arith.constant 0 : i32
    %c0_i32_1 = arith.constant 0 : i32
    return %c0_i32, %c0_i32_0 : i32, i32
  }
  func.func @transform_4(%arg0: i32) -> (i32, i32) {
    %c0_i32 = arith.constant 0 : i32
    %c0_i32_0 = arith.constant 0 : i32
    %c0_i32_1 = arith.constant 0 : i32
    return %c0_i32, %c0_i32_0 : i32, i32
  }
  func.func @transform_5(%arg0: i32) -> (i32, i32) {
    %c0_i32 = arith.constant 0 : i32
    %c0_i32_0 = arith.constant 0 : i32
    %c0_i32_1 = arith.constant 0 : i32
    return %c0_i32, %c0_i32_0 : i32, i32
  }
  func.func @transform_6(%arg0: i32) -> (i32, i32) {
    %c0_i32 = arith.constant 0 : i32
    %c0_i32_0 = arith.constant 0 : i32
    %c0_i32_1 = arith.constant 0 : i32
    return %c0_i32, %c0_i32_0 : i32, i32
  }
  func.func @transform_7(%arg0: i32) -> (i32, i32, i32) {
    %c0_i32 = arith.constant 0 : i32
    %c0_i32_0 = arith.constant 0 : i32
    %c0_i32_1 = arith.constant 0 : i32
    %c0_i32_2 = arith.constant 0 : i32
    return %c0_i32, %c0_i32_0, %c0_i32_1 : i32, i32, i32
  }
  func.func @transform_8(%arg0: i32) -> (i32, i32) {
    %c0_i32 = arith.constant 0 : i32
    %c0_i32_0 = arith.constant 0 : i32
    %c0_i32_1 = arith.constant 0 : i32
    return %c0_i32, %c0_i32_0 : i32, i32
  }
}

</mosaic_0001>

<bundles_post_ra>
// kernel: _lambda_.16
= control target key start
LH: loop header
LB: loop body
LE: loop exit
PB: predicated region body
PF: predicated region fallthrough
CT: control target
= control target key end

     0   :  { %s611_s3 = inlined_call_operand.vmem [shape: bf16[128,128], index: 3, kind: input, shape index: {}]   ;;  %s612_s0 = inlined_call_operand.vmem [shape: f32[128,128], index: 0, kind: input, shape index: {}]   ;;  %s613_s1 = inlined_call_operand.vmem [shape: f32[1,128], index: 1, kind: input, shape index: {}]   ;;  %s614_s2 = inlined_call_operand.vmem [shape: f32[1,128], index: 2, kind: input, shape index: {}]   ;;  %s615_s4 = inlined_call_operand.vmem [shape: bf16[32,128], index: 4, kind: input, shape index: {}]   ;;  %s616_s5 = inlined_call_operand.vmem [shape: f32[32,128], index: 5, kind: output, shape index: {}]  }
   0x1   :  { %v439_v0 = vld [vmem:[%s611_s3] sm:$0xff]   ;;  %v440_v1 = vld [vmem:[%s611_s3 + $0x8] sm:$0xff]   ;;  %v441_v2 = vld [vmem:[%s611_s3 + $0x10] sm:$0xff]  }
   0x2   :  { %387 = vmatprep.subr.bf16.mxu0 %v439_v0  ;;  %v442_v3 = vld [vmem:[%s611_s3 + $0x18] sm:$0xff]   ;;  %v21_v4 = vld [vmem:[%s612_s0] sm:$0xff]  ;;  %v22_v5 = vld [vmem:[%s612_s0 + $0x8] sm:$0xff] }
   0x3   :  { %388 = vmatpush3.bf16.msra.mxu0 %v439_v0  ;;  %v500_v6 = vld [vmem:[%s613_s1] ss:$0 sm:$0xff]  ;;  %v23_v16 = vld [vmem:[%s612_s0 + $0x10] sm:$0xff]  ;;  %v24_v17 = vld [vmem:[%s612_s0 + $0x18] sm:$0xff] }
   0x4   :  { %389 = vmatprep.subr.bf16.mxu0 %v440_v1  ;;  %v44_v7 = vmul.f32 %v500_v6, %v21_v4  ;;  %v45_v8 = vmul.f32 %v500_v6, %v22_v5  ;;  %v507_v9 = vld [vmem:[%s614_s2] ss:$0 sm:$0xff]  ;;  %v444_v18 = vld [vmem:[%s611_s3 + $0x28] sm:$0xff]   ;;  %v46_v21 = vmul.f32 %v500_v6, %v23_v16  ;;  %v47_v22 = vmul.f32 %v500_v6, %v24_v17  ;;  %v445_v25 = vld [vmem:[%s611_s3 + $0x30] sm:$0xff]  }
   0x5   :  { %v443_v12 = vld [vmem:[%s611_s3 + $0x20] sm:$0xff]   ;;  %v26_v20 = vld [vmem:[%s612_s0 + $0x28] sm:$0xff]  ;;  %v27_v30 = vld [vmem:[%s612_s0 + $0x30] sm:$0xff] }
   0x6   :  { %v67_v10 = vadd.f32 %v507_v9, %v44_v7  ;;  %v68_v11 = vadd.f32 %v507_v9, %v45_v8  ;;  %v25_v19 = vld [vmem:[%s612_s0 + $0x20] sm:$0xff]  ;;  %v49_v24 = vmul.f32 %v500_v6, %v26_v20  ;;  %v69_v26 = vadd.f32 %v507_v9, %v46_v21  ;;  %v28_v31 = vld [vmem:[%s612_s0 + $0x38] sm:$0xff]  ;;  %v30_v34 = vld [vmem:[%s612_s0 + $0x48] sm:$0xff] }
   0x7   :  { %390 = vmatpush3.bf16.msra.mxu0 %v440_v1  ;;  %v48_v23 = vmul.f32 %v500_v6, %v25_v19  ;;  %v70_v27 = vadd.f32 %v507_v9, %v47_v22  ;;  %v446_v32 = vld [vmem:[%s611_s3 + $0x38] sm:$0xff]   ;;  %v29_v33 = vld [vmem:[%s612_s0 + $0x40] sm:$0xff]  ;;  %v50_v37 = vmul.f32 %v500_v6, %v27_v30  ;;  %v51_v38 = vmul.f32 %v500_v6, %v28_v31  ;;  %v31_v49 = vld [vmem:[%s612_s0 + $0x50] sm:$0xff] }
   0x8   :  { %391 = vmatprep.subr.bf16.mxu0 %v441_v2  ;;  %v83_v13 = vmax.f32 %v67_v10, 0.0  ;;  %v84_v14 = vmax.f32 %v68_v11, 0.0  ;;  %v72_v29 = vadd.f32 %v507_v9, %v49_v24  ;;  %v85_v35 = vmax.f32 %v69_v26, 0.0  ;;  %v32_v50 = vld [vmem:[%s612_s0 + $0x58] sm:$0xff]  ;;  %v33_v51 = vld [vmem:[%s612_s0 + $0x60] sm:$0xff]  ;;  %v34_v52 = vld [vmem:[%s612_s0 + $0x68] sm:$0xff] }
   0x9   :  { %v71_v28 = vadd.f32 %v507_v9, %v48_v23  ;;  %v86_v36 = vmax.f32 %v70_v27, 0.0  ;;  %v52_v41 = vmul.f32 %v500_v6, %v29_v33  ;;  %v53_v42 = vmul.f32 %v500_v6, %v30_v34  ;;  %v36_v4 = vld [vmem:[%s612_s0 + $0x78] sm:$0xff]  ;;  %v447_v20 = vld [vmem:[%s615_s4] sm:$0xff]  }
   0xa   :  { %v99_v15 = vpack.c.bf16 %v84_v14, %v83_v13  ;;  %v88_v40 = vmax.f32 %v72_v29, 0.0  ;;  %v73_v44 = vadd.f32 %v507_v9, %v50_v37  ;;  %v74_v45 = vadd.f32 %v507_v9, %v51_v38  ;;  %435 = vmatprep.mubr.bf16.mxu1 %v447_v20 }
   0xb   :  { %392 = vmatpush3.bf16.msra.mxu0 %v441_v2  ;;  %v87_v39 = vmax.f32 %v71_v28, 0.0  ;;  %v100_v43 = vpack.c.bf16 %v86_v36, %v85_v35  ;;  %v75_v47 = vadd.f32 %v507_v9, %v52_v41  ;;  %v76_v48 = vadd.f32 %v507_v9, %v53_v42 }
   0xc   :  { %393 = vmatprep.subr.bf16.mxu0 %v442_v3  ;;  %403 = vmatprep.mubr.bf16.mxu0 %v99_v15  ;;  %v89_v53 = vmax.f32 %v73_v44, 0.0  ;;  %v90_v54 = vmax.f32 %v74_v45, 0.0  ;;  %v54_v55 = vmul.f32 %v500_v6, %v31_v49  ;;  %v55_v56 = vmul.f32 %v500_v6, %v32_v50 }
   0xd   :  { %v101_v46 = vpack.c.bf16 %v88_v40, %v87_v39  ;;  %v91_v57 = vmax.f32 %v75_v47, 0.0  ;;  %v92_v58 = vmax.f32 %v76_v48, 0.0  ;;  %v56_v59 = vmul.f32 %v500_v6, %v33_v51 }
   0xe   :  { %v57_v60 = vmul.f32 %v500_v6, %v34_v52  ;;  %v102_v61 = vpack.c.bf16 %v90_v54, %v89_v53  ;;  %v77_v62 = vadd.f32 %v507_v9, %v54_v55  ;;  %v78_v63 = vadd.f32 %v507_v9, %v55_v56 }
   0xf   :  { %394 = vmatpush3.bf16.msra.mxu0 %v442_v3  ;;  %v103_v0 = vpack.c.bf16 %v92_v58, %v91_v57  ;;  %v79_v1 = vadd.f32 %v507_v9, %v56_v59  ;;  %v35_v3 = vld [vmem:[%s612_s0 + $0x70] sm:$0xff]  ;;  %v59_v10 = vmul.f32 %v500_v6, %v36_v4 }
  0x10   :  { %395 = vmatprep.subr.bf16.mxu0 %v443_v12  ;;  %v80_v2 = vadd.f32 %v507_v9, %v57_v60  ;;  %v93_v5 = vmax.f32 %v77_v62, 0.0  ;;  %v94_v7 = vmax.f32 %v78_v63, 0.0  ;;  %v58_v8 = vmul.f32 %v500_v6, %v35_v3 }
  0x11   :  { %v95_v11 = vmax.f32 %v79_v1, 0.0  ;;  %v82_v15 = vadd.f32 %v507_v9, %v59_v10 }
  0x12   :  { %v104_v13 = vpack.c.bf16 %v94_v7, %v93_v5  ;;  %v81_v14 = vadd.f32 %v507_v9, %v58_v8 }
  0x13   :  { %396 = vmatpush3.bf16.msra.mxu0 %v443_v12  ;;  %v96_v12 = vmax.f32 %v80_v2, 0.0 }
  0x14   :  { %397 = vmatprep.subr.bf16.mxu0 %v444_v18  ;;  %v97_v17 = vmax.f32 %v81_v14, 0.0 }
  0x15   :  { %v105_v16 = vpack.c.bf16 %v96_v12, %v95_v11 }
  0x17   :  { %398 = vmatpush3.bf16.msra.mxu0 %v444_v18  ;;  %v98_v18 = vmax.f32 %v82_v15, 0.0 }
  0x18   :  { %399 = vmatprep.subr.bf16.mxu0 %v445_v25 }
  0x19   :  { %v106_v19 = vpack.c.bf16 %v98_v18, %v97_v17 }
  0x1b   :  { %400 = vmatpush3.bf16.msra.mxu0 %v445_v25 }
  0x1c   :  { %401 = vmatprep.subr.bf16.mxu0 %v446_v32 }
  0x1f   :  { %402 = vmatpush3.bf16.msra.mxu0 %v446_v32 }
  0x22   :  { %404 = vmatmul.mubr.bf16.vlgmr.msra.gmra.mrb[0].mxu0 %v100_v43  ;;  %v448_v43 = vld [vmem:[%s615_s4 + $0x8] sm:$0xff]  }
  0x23   :  { %407 = vmatprep.mubr.bf16.mxu0 %v101_v46 }
  0x2a   :  { %408 = vmatmul.mubr.bf16.gmra.mrb[4].mxu0 %v102_v61 }
  0x2b   :  { %411 = vmatprep.mubr.bf16.mxu0 %v103_v0 }
  0x32   :  { %412 = vmatmul.mubr.bf16.gmra.mrb[8].mxu0 %v104_v13 }
  0x33   :  { %415 = vmatprep.mubr.bf16.mxu0 %v105_v16 }
  0x3a   :  { %416 = vmatmul.mubr.bf16.gmra.mrb[12].mxu0 %v106_v19 }
  0xf5   :  { %v405_v6 = vpop.f32.mrb[0].mxu0 }
  0xf6   :  { %v205_v21 = vpop.f32.mrb[1].mxu0 }
  0xf7   :  { %v406_v22 = vpop.f32.mrb[2].mxu0 }
  0xf8   :  { %v273_v23 = vpack.c.bf16 %v406_v22, %v405_v6  ;;  %v208_v24 = vpop.f32.mrb[3].mxu0 }
  0xf9   :  { %v272_v25 = vpack.c.bf16 %v208_v24, %v205_v21 }
  0xfb   :  { %419 = vmatprep.subr.bf16.mxu1 %v272_v25 }
  0xfc   :  { %420 = vmatpush3.bf16.msra.mxu1 %v272_v25 }
  0xfd   :  { %v409_v9 = vpop.f32.mrb[4].mxu0  ;;  %421 = vmatprep.subr.bf16.mxu1 %v273_v23 }
  0xfe   :  { %v221_v26 = vpop.f32.mrb[5].mxu0 }
  0xff   :  { %v410_v27 = vpop.f32.mrb[6].mxu0 }
 0x100   :  { %v275_v28 = vpack.c.bf16 %v410_v27, %v409_v9  ;;  %v224_v29 = vpop.f32.mrb[7].mxu0  ;;  %422 = vmatpush3.bf16.msra.mxu1 %v273_v23 }
 0x101   :  { %v274_v30 = vpack.c.bf16 %v224_v29, %v221_v26 }
 0x103   :  { %423 = vmatprep.subr.bf16.mxu1 %v274_v30 }
 0x104   :  { %424 = vmatpush3.bf16.msra.mxu1 %v274_v30 }
 0x105   :  { %v413_v31 = vpop.f32.mrb[8].mxu0  ;;  %425 = vmatprep.subr.bf16.mxu1 %v275_v28 }
 0x106   :  { %v237_v32 = vpop.f32.mrb[9].mxu0 }
 0x107   :  { %v414_v33 = vpop.f32.mrb[10].mxu0 }
 0x108   :  { %v277_v34 = vpack.c.bf16 %v414_v33, %v413_v31  ;;  %v240_v35 = vpop.f32.mrb[11].mxu0  ;;  %426 = vmatpush3.bf16.msra.mxu1 %v275_v28 }
 0x109   :  { %v276_v36 = vpack.c.bf16 %v240_v35, %v237_v32 }
 0x10b   :  { %427 = vmatprep.subr.bf16.mxu1 %v276_v36 }
 0x10c   :  { %428 = vmatpush3.bf16.msra.mxu1 %v276_v36 }
 0x10d   :  { %v417_v37 = vpop.f32.mrb[12].mxu0  ;;  %429 = vmatprep.subr.bf16.mxu1 %v277_v34 }
 0x10e   :  { %v253_v38 = vpop.f32.mrb[13].mxu0 }
 0x10f   :  { %v418_v39 = vpop.f32.mrb[14].mxu0 }
 0x110   :  { %v279_v40 = vpack.c.bf16 %v418_v39, %v417_v37  ;;  %v256_v41 = vpop.f32.mrb[15].mxu0  ;;  %430 = vmatpush3.bf16.msra.mxu1 %v277_v34 }
 0x111   :  { %v278_v42 = vpack.c.bf16 %v256_v41, %v253_v38 }
 0x113   :  { %431 = vmatprep.subr.bf16.mxu1 %v278_v42 }
 0x114   :  { %432 = vmatpush3.bf16.msra.mxu1 %v278_v42 }
 0x115   :  { %433 = vmatprep.subr.bf16.mxu1 %v279_v40 }
 0x118   :  { %434 = vmatpush3.bf16.msra.mxu1 %v279_v40 }
 0x11b   :  { %436 = vmatmul.mubr.bf16.vlgmr.msra.gmra.mrb[0].mxu1 %v448_v43 }
 0x1ee   :  { %v437_v44 = vpop.f32.mrb[0].mxu1 }
 0x1ef   :  { %343 = vst [vmem:[%s616_s5 + $0x10] sm:$0xff] %v437_v44  ;;  %v326_v45 = vpop.f32.mrb[1].mxu1 }
 0x1f0   :  { %341 = vst [vmem:[%s616_s5] sm:$0xff] %v326_v45  ;;  %v438_v46 = vpop.f32.mrb[2].mxu1 }
 0x1f1   :  { %344 = vst [vmem:[%s616_s5 + $0x18] sm:$0xff] %v438_v46  ;;  %v329_v47 = vpop.f32.mrb[3].mxu1 }
 0x1f2   :  { %342 = vst [vmem:[%s616_s5 + $0x8] sm:$0xff] %v329_v47 }

// kernel: _lambda_.13
= control target key start
LH: loop header
LB: loop body
LE: loop exit
PB: predicated region body
PF: predicated region fallthrough
CT: control target
= control target key end

     0   :  { %s1180_s15 = smov 0   ;;  %s1394_s0 = inlined_call_operand.vmem [shape: bf16[512,256], index: 0, kind: input, shape index: {}]   ;;  %s1395_s1 = inlined_call_operand.vmem [shape: bf16[256,128], index: 1, kind: input, shape index: {}]   ;;  %s1396_s2 = inlined_call_operand.vmem [shape: f32[1,128], index: 2, kind: input, shape index: {}]   ;;  %s1397_s3 = inlined_call_operand.vmem [shape: f32[1,128], index: 3, kind: input, shape index: {}]   ;;  %s1398_s4 = inlined_call_operand.vmem [shape: f32[512,128], index: 4, kind: output, shape index: {}]  }
   0x1 LB: > { %s884_s16 = sadd.s32 4294967295, %s1153_s15   ;;  %p888_p0 = scmp.ge.s32.totalorder %s1153_s15, 1  ;;  %s1153_s15 = sphi %s1180_s15, %s14_s15  }
   0x2   : > { %p164_p1 = scmp.lt.s32.totalorder %s1153_s15, 3 }
   0x4   : > { %p165_p2 = pnand %p888_p0, %p164_p1 }
   0x5   : > { %v1083_v0 = vld [vmem:[%s1395_s1 + $0x40] sm:$0xff] (!%p165_p2)   ;;  %s889_s19 = sshll.u32 (!%p165_p2), %s884_s16, 5  ;;  %v1085_v2 = vld [vmem:[%s1395_s1 + $0x48] sm:$0xff] (!%p165_p2)   ;;  %v1087_v4 = vld [vmem:[%s1395_s1 + $0x50] sm:$0xff] (!%p165_p2)  }
   0x6   : > { %168 = sbr.rel (%p165_p2) target bundleno = 319 (0x13f), region = 36  ;;  %v1084_v1 = vld [vmem:[%s1395_s1] sm:$0xff] (!%p165_p2)   ;;  %947 = vmatprep.subr.bf16.mxu0 (!%p165_p2), %v1083_v0  ;;  %1059 = vmatprep.subr.bf16.mxu1 (!%p165_p2), %v1083_v0  ;;  %v1086_v3 = vld [vmem:[%s1395_s1 + $0x8] sm:$0xff] (!%p165_p2)   ;;  %p192_p3 = scmp.lt.s32.totalorder (!%p165_p2), %s889_s19, 63  ;;  %v1088_v5 = vld [vmem:[%s1395_s1 + $0x10] sm:$0xff] (!%p165_p2)  }
   0x7   : > { %948 = vmatpush3.bf16.msra.mxu0 (!%p165_p2), %v1084_v1  ;;  %1067 = vmatpush3.bf16.msra.mxu1 (!%p165_p2), %v1084_v1  ;;  %v1089_v6 = vld [vmem:[%s1395_s1 + $0x58] sm:$0xff] (!%p165_p2)   ;;  %v1091_v8 = vld [vmem:[%s1395_s1 + $0x60] sm:$0xff] (!%p165_p2)   ;;  %v1093_v10 = vld [vmem:[%s1395_s1 + $0x68] sm:$0xff] (!%p165_p2)  }
   0x8   : > { %949 = vmatprep.subr.bf16.mxu0 (!%p165_p2), %v1085_v2  ;;  %1060 = vmatprep.subr.bf16.mxu1 (!%p165_p2), %v1085_v2  ;;  %v1090_v7 = vld [vmem:[%s1395_s1 + $0x18] sm:$0xff] (!%p165_p2)   ;;  %v1092_v9 = vld [vmem:[%s1395_s1 + $0x20] sm:$0xff] (!%p165_p2)   ;;  %v1094_v13 = vld [vmem:[%s1395_s1 + $0x28] sm:$0xff] (!%p165_p2)  }
   0x9   : > { %v1095_v14 = vld [vmem:[%s1395_s1 + $0x70] sm:$0xff] (!%p165_p2)   ;;  %v1097_v16 = vld [vmem:[%s1395_s1 + $0x78] sm:$0xff] (!%p165_p2)   ;;  %v1281_v51 = vld [vmem:[%s1396_s2] ss:$0 sm:$0xff] (!%p165_p2) }
   0xa   : > { %v1096_v15 = vld [vmem:[%s1395_s1 + $0x30] sm:$0xff] (!%p165_p2)   ;;  %v1098_v17 = vld [vmem:[%s1395_s1 + $0x38] sm:$0xff] (!%p165_p2)   ;;  %v1286_v57 = vld [vmem:[%s1397_s3] ss:$0 sm:$0xff] (!%p165_p2) }
   0xb   : > { %950 = vmatpush3.bf16.msra.mxu0 (!%p165_p2), %v1086_v3  ;;  %1068 = vmatpush3.bf16.msra.mxu1 (!%p165_p2), %v1086_v3 }
   0xc   : > { %951 = vmatprep.subr.bf16.mxu0 (!%p165_p2), %v1087_v4  ;;  %1061 = vmatprep.subr.bf16.mxu1 (!%p165_p2), %v1087_v4 }
   0xd   : > { %s1400_s19 = smov (!%p192_p3, %s889_s19), 63 }
   0xe   : > { %s946_s8 = sshll.u32 %s1400_s19, 3 }
   0xf   : > { %952 = vmatpush3.bf16.msra.mxu0 %v1088_v5  ;;  %1069 = vmatpush3.bf16.msra.mxu1 %v1088_v5  ;;  %s1223_s13 = scalar_lea.vmem %s1394_s0, %s946_s8  ;;  %s1299_s11 = scalar_lea.vmem %s1398_s4, %s946_s8 }
  0x10   : > { %953 = vmatprep.subr.bf16.mxu0 %v1089_v6  ;;  %1062 = vmatprep.subr.bf16.mxu1 %v1089_v6  ;;  %v1101_v11 = vld [vmem:[%s1223_s13 + $0x4] ss:$8 sps:$4 sm:$0xff]   ;;  %v1099_v18 = vld [vmem:[%s1223_s13] ss:$8 sps:$4 sm:$0xff]   ;;  %v1105_v20 = vld [vmem:[%s1223_s13 + $0x14] ss:$8 sps:$4 sm:$0xff]  }
  0x11   : > { %v1104_v12 = vld [vmem:[%s1223_s13 + $0x84] ss:$8 sps:$4 sm:$0xff]   ;;  %557 = vmatprep.mubr.bf16.mxu0 %v1101_v11  ;;  %v1102_v19 = vld [vmem:[%s1223_s13 + $0x80] ss:$8 sps:$4 sm:$0xff]   ;;  %v1107_v21 = vld [vmem:[%s1223_s13 + $0x94] ss:$8 sps:$4 sm:$0xff]  }
  0x12   : > { %621 = vmatprep.mubr.bf16.mxu1 %v1104_v12  ;;  %v1109_v22 = vld [vmem:[%s1223_s13 + $0x10] ss:$8 sps:$4 sm:$0xff]   ;;  %v1111_v24 = vld [vmem:[%s1223_s13 + $0x24] ss:$8 sps:$4 sm:$0xff]   ;;  %v1115_v26 = vld [vmem:[%s1223_s13 + $0x20] ss:$8 sps:$4 sm:$0xff]  }
  0x13   : > { %954 = vmatpush3.bf16.msra.mxu0 %v1090_v7  ;;  %1070 = vmatpush3.bf16.msra.mxu1 %v1090_v7  ;;  %v1110_v23 = vld [vmem:[%s1223_s13 + $0x90] ss:$8 sps:$4 sm:$0xff]   ;;  %v1113_v25 = vld [vmem:[%s1223_s13 + $0xa4] ss:$8 sps:$4 sm:$0xff]   ;;  %v1116_v27 = vld [vmem:[%s1223_s13 + $0xa0] ss:$8 sps:$4 sm:$0xff]  }
  0x14   : > { %955 = vmatprep.subr.bf16.mxu0 %v1091_v8  ;;  %1063 = vmatprep.subr.bf16.mxu1 %v1091_v8  ;;  %v1117_v28 = vld [vmem:[%s1223_s13 + $0x34] ss:$8 sps:$4 sm:$0xff]   ;;  %v1121_v30 = vld [vmem:[%s1223_s13 + $0x30] ss:$8 sps:$4 sm:$0xff]   ;;  %v1123_v32 = vld [vmem:[%s1223_s13 + $0x44] ss:$8 sps:$4 sm:$0xff]  }
  0x15   : > { %v1119_v29 = vld [vmem:[%s1223_s13 + $0xb4] ss:$8 sps:$4 sm:$0xff]   ;;  %v1122_v31 = vld [vmem:[%s1223_s13 + $0xb0] ss:$8 sps:$4 sm:$0xff]   ;;  %v1125_v33 = vld [vmem:[%s1223_s13 + $0xc4] ss:$8 sps:$4 sm:$0xff]  }
  0x16   : > { %v1127_v34 = vld [vmem:[%s1223_s13 + $0x40] ss:$8 sps:$4 sm:$0xff]   ;;  %v1129_v36 = vld [vmem:[%s1223_s13 + $0x54] ss:$8 sps:$4 sm:$0xff]   ;;  %v1133_v38 = vld [vmem:[%s1223_s13 + $0x50] ss:$8 sps:$4 sm:$0xff]  }
  0x17   : > { %956 = vmatpush3.bf16.msra.mxu0 %v1092_v9  ;;  %1071 = vmatpush3.bf16.msra.mxu1 %v1092_v9  ;;  %v1128_v35 = vld [vmem:[%s1223_s13 + $0xc0] ss:$8 sps:$4 sm:$0xff]   ;;  %v1131_v37 = vld [vmem:[%s1223_s13 + $0xd4] ss:$8 sps:$4 sm:$0xff]   ;;  %v1134_v39 = vld [vmem:[%s1223_s13 + $0xd0] ss:$8 sps:$4 sm:$0xff]  }
  0x18   : > { %957 = vmatprep.subr.bf16.mxu0 %v1093_v10  ;;  %1064 = vmatprep.subr.bf16.mxu1 %v1093_v10  ;;  %v1135_v40 = vld [vmem:[%s1223_s13 + $0x64] ss:$8 sps:$4 sm:$0xff]   ;;  %v1139_v42 = vld [vmem:[%s1223_s13 + $0x60] ss:$8 sps:$4 sm:$0xff]   ;;  %v1141_v44 = vld [vmem:[%s1223_s13 + $0x74] ss:$8 sps:$4 sm:$0xff]  }
  0x19   : > { %v1137_v41 = vld [vmem:[%s1223_s13 + $0xe4] ss:$8 sps:$4 sm:$0xff]   ;;  %v1140_v43 = vld [vmem:[%s1223_s13 + $0xe0] ss:$8 sps:$4 sm:$0xff]   ;;  %v1143_v45 = vld [vmem:[%s1223_s13 + $0xf4] ss:$8 sps:$4 sm:$0xff]  }
  0x1a   : > { %v1145_v46 = vld [vmem:[%s1223_s13 + $0x70] ss:$8 sps:$4 sm:$0xff]  }
  0x1b   : > { %958 = vmatpush3.bf16.msra.mxu0 %v1094_v13  ;;  %1072 = vmatpush3.bf16.msra.mxu1 %v1094_v13  ;;  %v1146_v47 = vld [vmem:[%s1223_s13 + $0xf0] ss:$8 sps:$4 sm:$0xff]  }
  0x1c   : > { %959 = vmatprep.subr.bf16.mxu0 %v1095_v14  ;;  %1065 = vmatprep.subr.bf16.mxu1 %v1095_v14 }
  0x1f   : > { %960 = vmatpush3.bf16.msra.mxu0 %v1096_v15  ;;  %1073 = vmatpush3.bf16.msra.mxu1 %v1096_v15 }
  0x20   : > { %961 = vmatprep.subr.bf16.mxu0 %v1097_v16  ;;  %1066 = vmatprep.subr.bf16.mxu1 %v1097_v16 }
  0x23   : > { %962 = vmatpush3.bf16.msra.mxu0 %v1098_v17  ;;  %1074 = vmatpush3.bf16.msra.mxu1 %v1098_v17 }
  0x26   : > { %558 = vmatmul.mubr.bf16.vlgmr.msra.gmra.mrb[0].mxu0 %v1099_v18  ;;  %622 = vmatmul.mubr.bf16.vlgmr.msra.gmra.mrb[0].mxu1 %v1102_v19 }
  0x27   : > { %565 = vmatprep.mubr.bf16.mxu0 %v1105_v20  ;;  %629 = vmatprep.mubr.bf16.mxu1 %v1107_v21 }
  0x2e   : > { %566 = vmatmul.mubr.bf16.gmra.mrb[4].mxu0 %v1109_v22  ;;  %630 = vmatmul.mubr.bf16.gmra.mrb[4].mxu1 %v1110_v23 }
  0x2f   : > { %573 = vmatprep.mubr.bf16.mxu0 %v1111_v24  ;;  %637 = vmatprep.mubr.bf16.mxu1 %v1113_v25 }
  0x36   : > { %574 = vmatmul.mubr.bf16.gmra.mrb[8].mxu0 %v1115_v26  ;;  %638 = vmatmul.mubr.bf16.gmra.mrb[8].mxu1 %v1116_v27 }
  0x37   : > { %581 = vmatprep.mubr.bf16.mxu0 %v1117_v28  ;;  %645 = vmatprep.mubr.bf16.mxu1 %v1119_v29 }
  0x3e   : > { %582 = vmatmul.mubr.bf16.gmra.mrb[12].mxu0 %v1121_v30  ;;  %646 = vmatmul.mubr.bf16.gmra.mrb[12].mxu1 %v1122_v31 }
  0x3f   : > { %589 = vmatprep.mubr.bf16.mxu0 %v1123_v32  ;;  %653 = vmatprep.mubr.bf16.mxu1 %v1125_v33 }
  0x46   : > { %590 = vmatmul.mubr.bf16.gmra.mrb[16].mxu0 %v1127_v34  ;;  %654 = vmatmul.mubr.bf16.gmra.mrb[16].mxu1 %v1128_v35 }
  0x47   : > { %597 = vmatprep.mubr.bf16.mxu0 %v1129_v36  ;;  %661 = vmatprep.mubr.bf16.mxu1 %v1131_v37 }
  0x4e   : > { %598 = vmatmul.mubr.bf16.gmra.mrb[20].mxu0 %v1133_v38  ;;  %662 = vmatmul.mubr.bf16.gmra.mrb[20].mxu1 %v1134_v39 }
  0x4f   : > { %605 = vmatprep.mubr.bf16.mxu0 %v1135_v40  ;;  %669 = vmatprep.mubr.bf16.mxu1 %v1137_v41 }
  0x56   : > { %606 = vmatmul.mubr.bf16.gmra.mrb[24].mxu0 %v1139_v42  ;;  %670 = vmatmul.mubr.bf16.gmra.mrb[24].mxu1 %v1140_v43 }
  0x57   : > { %613 = vmatprep.mubr.bf16.mxu0 %v1141_v44  ;;  %677 = vmatprep.mubr.bf16.mxu1 %v1143_v45 }
  0x5e   : > { %614 = vmatmul.mubr.bf16.gmra.mrb[28].mxu0 %v1145_v46  ;;  %678 = vmatmul.mubr.bf16.gmra.mrb[28].mxu1 %v1146_v47 }
  0xf9   : > { %v963_v48 = vpop.f32.mrb[0].mxu0  ;;  %v1011_v49 = vpop.f32.mrb[0].mxu1 }
  0xfa   : > { %v964_v50 = vpop.f32.mrb[1].mxu0  ;;  %v1012_v52 = vpop.f32.mrb[1].mxu1 }
  0xfb   : > { %v965_v53 = vadd.f32 %v964_v50, %v963_v48  ;;  %v1013_v54 = vadd.f32 %v1012_v52, %v1011_v49  ;;  %v966_v55 = vpop.f32.mrb[2].mxu0  ;;  %v1014_v56 = vpop.f32.mrb[2].mxu1 }
  0xfc   : > { %v967_v58 = vpop.f32.mrb[3].mxu0  ;;  %v1015_v59 = vpop.f32.mrb[3].mxu1 }
  0xfd   : > { %v693_v60 = vmul.f32 %v965_v53, %v1281_v51  ;;  %v709_v61 = vmul.f32 %v1013_v54, %v1281_v51  ;;  %v968_v62 = vadd.f32 %v967_v58, %v966_v55  ;;  %v1016_v63 = vadd.f32 %v1015_v59, %v1014_v56 }
  0xff   : > { %v732_v0 = vadd.f32 %v1286_v57, %v693_v60  ;;  %v748_v1 = vadd.f32 %v1286_v57, %v709_v61  ;;  %v694_v2 = vmul.f32 %v968_v62, %v1281_v51  ;;  %v710_v3 = vmul.f32 %v1016_v63, %v1281_v51 }
 0x101   : > { %v764_v4 = vmax.f32 %v732_v0, 0.0  ;;  %v780_v5 = vmax.f32 %v748_v1, 0.0  ;;  %v733_v6 = vadd.f32 %v1286_v57, %v694_v2  ;;  %v749_v7 = vadd.f32 %v1286_v57, %v710_v3  ;;  %v969_v8 = vpop.f32.mrb[4].mxu0  ;;  %v1017_v9 = vpop.f32.mrb[4].mxu1 }
 0x102   : > { %v970_v10 = vpop.f32.mrb[5].mxu0  ;;  %v1018_v11 = vpop.f32.mrb[5].mxu1 }
 0x103   : > { %796 = vst [vmem:[%s1299_s11] sm:$0xff] %v764_v4  ;;  %812 = vst [vmem:[%s1299_s11 + $0x80] sm:$0xff] %v780_v5  ;;  %v765_v12 = vmax.f32 %v733_v6, 0.0  ;;  %v781_v13 = vmax.f32 %v749_v7, 0.0  ;;  %v971_v14 = vadd.f32 %v970_v10, %v969_v8  ;;  %v1019_v15 = vadd.f32 %v1018_v11, %v1017_v9  ;;  %v972_v16 = vpop.f32.mrb[6].mxu0  ;;  %v1020_v17 = vpop.f32.mrb[6].mxu1 }
 0x104   : > { %v973_v18 = vpop.f32.mrb[7].mxu0  ;;  %v1021_v19 = vpop.f32.mrb[7].mxu1 }
 0x105   : > { %797 = vst [vmem:[%s1299_s11 + $0x8] sm:$0xff] %v765_v12  ;;  %813 = vst [vmem:[%s1299_s11 + $0x88] sm:$0xff] %v781_v13  ;;  %v695_v20 = vmul.f32 %v971_v14, %v1281_v51  ;;  %v711_v21 = vmul.f32 %v1019_v15, %v1281_v51  ;;  %v974_v22 = vadd.f32 %v973_v18, %v972_v16 }
 0x106   : > { %v1022_v23 = vadd.f32 %v1021_v19, %v1020_v17 }
 0x107   : > { %v734_v24 = vadd.f32 %v1286_v57, %v695_v20  ;;  %v750_v25 = vadd.f32 %v1286_v57, %v711_v21  ;;  %v696_v26 = vmul.f32 %v974_v22, %v1281_v51 }
 0x108   : > { %v712_v27 = vmul.f32 %v1022_v23, %v1281_v51 }
 0x109   : > { %v766_v28 = vmax.f32 %v734_v24, 0.0  ;;  %v782_v29 = vmax.f32 %v750_v25, 0.0  ;;  %v735_v30 = vadd.f32 %v1286_v57, %v696_v26  ;;  %v975_v32 = vpop.f32.mrb[8].mxu0  ;;  %v1023_v33 = vpop.f32.mrb[8].mxu1 }
 0x10a   : > { %v751_v31 = vadd.f32 %v1286_v57, %v712_v27  ;;  %v976_v34 = vpop.f32.mrb[9].mxu0  ;;  %v1024_v35 = vpop.f32.mrb[9].mxu1 }
 0x10b   : > { %798 = vst [vmem:[%s1299_s11 + $0x10] sm:$0xff] %v766_v28  ;;  %814 = vst [vmem:[%s1299_s11 + $0x90] sm:$0xff] %v782_v29  ;;  %v767_v36 = vmax.f32 %v735_v30, 0.0  ;;  %v977_v38 = vadd.f32 %v976_v34, %v975_v32  ;;  %v1025_v39 = vadd.f32 %v1024_v35, %v1023_v33  ;;  %v978_v40 = vpop.f32.mrb[10].mxu0  ;;  %v1026_v41 = vpop.f32.mrb[10].mxu1 }
 0x10c   : > { %v783_v37 = vmax.f32 %v751_v31, 0.0  ;;  %v979_v42 = vpop.f32.mrb[11].mxu0  ;;  %v1027_v43 = vpop.f32.mrb[11].mxu1 }
 0x10d   : > { %799 = vst [vmem:[%s1299_s11 + $0x18] sm:$0xff] %v767_v36  ;;  %v697_v44 = vmul.f32 %v977_v38, %v1281_v51  ;;  %v713_v45 = vmul.f32 %v1025_v39, %v1281_v51  ;;  %v980_v46 = vadd.f32 %v979_v42, %v978_v40  ;;  %v1028_v47 = vadd.f32 %v1027_v43, %v1026_v41 }
 0x10e   : > { %815 = vst [vmem:[%s1299_s11 + $0x98] sm:$0xff] %v783_v37 }
 0x10f   : > { %v736_v48 = vadd.f32 %v1286_v57, %v697_v44  ;;  %v752_v49 = vadd.f32 %v1286_v57, %v713_v45  ;;  %v698_v50 = vmul.f32 %v980_v46, %v1281_v51  ;;  %v714_v52 = vmul.f32 %v1028_v47, %v1281_v51 }
 0x111   : > { %v768_v53 = vmax.f32 %v736_v48, 0.0  ;;  %v784_v54 = vmax.f32 %v752_v49, 0.0  ;;  %v737_v55 = vadd.f32 %v1286_v57, %v698_v50  ;;  %v753_v56 = vadd.f32 %v1286_v57, %v714_v52  ;;  %v981_v58 = vpop.f32.mrb[12].mxu0  ;;  %v1029_v59 = vpop.f32.mrb[12].mxu1 }
 0x112   : > { %v982_v60 = vpop.f32.mrb[13].mxu0  ;;  %v1030_v61 = vpop.f32.mrb[13].mxu1 }
 0x113   : > { %800 = vst [vmem:[%s1299_s11 + $0x20] sm:$0xff] %v768_v53  ;;  %816 = vst [vmem:[%s1299_s11 + $0xa0] sm:$0xff] %v784_v54  ;;  %v769_v62 = vmax.f32 %v737_v55, 0.0  ;;  %v785_v63 = vmax.f32 %v753_v56, 0.0  ;;  %v983_v0 = vadd.f32 %v982_v60, %v981_v58  ;;  %v1031_v1 = vadd.f32 %v1030_v61, %v1029_v59  ;;  %v984_v2 = vpop.f32.mrb[14].mxu0  ;;  %v1032_v3 = vpop.f32.mrb[14].mxu1 }
 0x114   : > { %v985_v4 = vpop.f32.mrb[15].mxu0  ;;  %v1033_v5 = vpop.f32.mrb[15].mxu1 }
 0x115   : > { %801 = vst [vmem:[%s1299_s11 + $0x28] sm:$0xff] %v769_v62  ;;  %817 = vst [vmem:[%s1299_s11 + $0xa8] sm:$0xff] %v785_v63  ;;  %v699_v6 = vmul.f32 %v983_v0, %v1281_v51  ;;  %v715_v7 = vmul.f32 %v1031_v1, %v1281_v51  ;;  %v986_v8 = vadd.f32 %v985_v4, %v984_v2 }
 0x116   : > { %v1034_v9 = vadd.f32 %v1033_v5, %v1032_v3 }
 0x117   : > { %v738_v10 = vadd.f32 %v1286_v57, %v699_v6  ;;  %v754_v11 = vadd.f32 %v1286_v57, %v715_v7  ;;  %v700_v12 = vmul.f32 %v986_v8, %v1281_v51 }
 0x118   : > { %v716_v13 = vmul.f32 %v1034_v9, %v1281_v51 }
 0x119   : > { %v770_v14 = vmax.f32 %v738_v10, 0.0  ;;  %v786_v15 = vmax.f32 %v754_v11, 0.0  ;;  %v739_v16 = vadd.f32 %v1286_v57, %v700_v12  ;;  %v987_v18 = vpop.f32.mrb[16].mxu0  ;;  %v1035_v19 = vpop.f32.mrb[16].mxu1 }
 0x11a   : > { %v755_v17 = vadd.f32 %v1286_v57, %v716_v13  ;;  %v988_v20 = vpop.f32.mrb[17].mxu0  ;;  %v1036_v21 = vpop.f32.mrb[17].mxu1 }
 0x11b   : > { %802 = vst [vmem:[%s1299_s11 + $0x30] sm:$0xff] %v770_v14  ;;  %818 = vst [vmem:[%s1299_s11 + $0xb0] sm:$0xff] %v786_v15  ;;  %v771_v22 = vmax.f32 %v739_v16, 0.0  ;;  %v989_v24 = vadd.f32 %v988_v20, %v987_v18  ;;  %v1037_v25 = vadd.f32 %v1036_v21, %v1035_v19  ;;  %v990_v26 = vpop.f32.mrb[18].mxu0  ;;  %v1038_v27 = vpop.f32.mrb[18].mxu1 }
 0x11c   : > { %v787_v23 = vmax.f32 %v755_v17, 0.0  ;;  %v991_v28 = vpop.f32.mrb[19].mxu0  ;;  %v1039_v29 = vpop.f32.mrb[19].mxu1 }
 0x11d   : > { %803 = vst [vmem:[%s1299_s11 + $0x38] sm:$0xff] %v771_v22  ;;  %v701_v30 = vmul.f32 %v989_v24, %v1281_v51  ;;  %v717_v31 = vmul.f32 %v1037_v25, %v1281_v51  ;;  %v992_v32 = vadd.f32 %v991_v28, %v990_v26  ;;  %v1040_v33 = vadd.f32 %v1039_v29, %v1038_v27 }
 0x11e   : > { %819 = vst [vmem:[%s1299_s11 + $0xb8] sm:$0xff] %v787_v23 }
 0x11f   : > { %v740_v34 = vadd.f32 %v1286_v57, %v701_v30  ;;  %v756_v35 = vadd.f32 %v1286_v57, %v717_v31  ;;  %v702_v36 = vmul.f32 %v992_v32, %v1281_v51  ;;  %v718_v37 = vmul.f32 %v1040_v33, %v1281_v51 }
 0x121   : > { %v772_v38 = vmax.f32 %v740_v34, 0.0  ;;  %v788_v39 = vmax.f32 %v756_v35, 0.0  ;;  %v741_v40 = vadd.f32 %v1286_v57, %v702_v36  ;;  %v757_v41 = vadd.f32 %v1286_v57, %v718_v37  ;;  %v993_v42 = vpop.f32.mrb[20].mxu0  ;;  %v1041_v43 = vpop.f32.mrb[20].mxu1 }
 0x122   : > { %v994_v44 = vpop.f32.mrb[21].mxu0  ;;  %v1042_v45 = vpop.f32.mrb[21].mxu1 }
 0x123   : > { %804 = vst [vmem:[%s1299_s11 + $0x40] sm:$0xff] %v772_v38  ;;  %820 = vst [vmem:[%s1299_s11 + $0xc0] sm:$0xff] %v788_v39  ;;  %v773_v46 = vmax.f32 %v741_v40, 0.0  ;;  %v789_v47 = vmax.f32 %v757_v41, 0.0  ;;  %v995_v48 = vadd.f32 %v994_v44, %v993_v42  ;;  %v1043_v49 = vadd.f32 %v1042_v45, %v1041_v43  ;;  %v996_v50 = vpop.f32.mrb[22].mxu0  ;;  %v1044_v52 = vpop.f32.mrb[22].mxu1 }
 0x124   : > { %v997_v53 = vpop.f32.mrb[23].mxu0  ;;  %v1045_v54 = vpop.f32.mrb[23].mxu1 }
 0x125   : > { %805 = vst [vmem:[%s1299_s11 + $0x48] sm:$0xff] %v773_v46  ;;  %821 = vst [vmem:[%s1299_s11 + $0xc8] sm:$0xff] %v789_v47  ;;  %v703_v55 = vmul.f32 %v995_v48, %v1281_v51  ;;  %v719_v56 = vmul.f32 %v1043_v49, %v1281_v51  ;;  %v998_v58 = vadd.f32 %v997_v53, %v996_v50 }
 0x126   : > { %v1046_v59 = vadd.f32 %v1045_v54, %v1044_v52 }
 0x127   : > { %v742_v60 = vadd.f32 %v1286_v57, %v703_v55  ;;  %v758_v61 = vadd.f32 %v1286_v57, %v719_v56  ;;  %v704_v62 = vmul.f32 %v998_v58, %v1281_v51 }
 0x128   : > { %v720_v63 = vmul.f32 %v1046_v59, %v1281_v51 }
 0x129   : > { %v774_v0 = vmax.f32 %v742_v60, 0.0  ;;  %v790_v1 = vmax.f32 %v758_v61, 0.0  ;;  %v743_v2 = vadd.f32 %v1286_v57, %v704_v62  ;;  %v999_v4 = vpop.f32.mrb[24].mxu0  ;;  %v1047_v5 = vpop.f32.mrb[24].mxu1 }
 0x12a   : > { %v759_v3 = vadd.f32 %v1286_v57, %v720_v63  ;;  %v1000_v6 = vpop.f32.mrb[25].mxu0  ;;  %v1048_v7 = vpop.f32.mrb[25].mxu1 }
 0x12b   : > { %806 = vst [vmem:[%s1299_s11 + $0x50] sm:$0xff] %v774_v0  ;;  %822 = vst [vmem:[%s1299_s11 + $0xd0] sm:$0xff] %v790_v1  ;;  %v775_v8 = vmax.f32 %v743_v2, 0.0  ;;  %v1001_v10 = vadd.f32 %v1000_v6, %v999_v4  ;;  %v1049_v11 = vadd.f32 %v1048_v7, %v1047_v5  ;;  %v1002_v12 = vpop.f32.mrb[26].mxu0  ;;  %v1050_v13 = vpop.f32.mrb[26].mxu1 }
 0x12c   : > { %v791_v9 = vmax.f32 %v759_v3, 0.0  ;;  %v1003_v14 = vpop.f32.mrb[27].mxu0  ;;  %v1051_v15 = vpop.f32.mrb[27].mxu1 }
 0x12d   : > { %807 = vst [vmem:[%s1299_s11 + $0x58] sm:$0xff] %v775_v8  ;;  %v705_v16 = vmul.f32 %v1001_v10, %v1281_v51  ;;  %v721_v17 = vmul.f32 %v1049_v11, %v1281_v51  ;;  %v1004_v18 = vadd.f32 %v1003_v14, %v1002_v12  ;;  %v1052_v19 = vadd.f32 %v1051_v15, %v1050_v13 }
 0x12e   : > { %823 = vst [vmem:[%s1299_s11 + $0xd8] sm:$0xff] %v791_v9 }
 0x12f   : > { %v744_v20 = vadd.f32 %v1286_v57, %v705_v16  ;;  %v760_v21 = vadd.f32 %v1286_v57, %v721_v17  ;;  %v706_v22 = vmul.f32 %v1004_v18, %v1281_v51  ;;  %v722_v23 = vmul.f32 %v1052_v19, %v1281_v51 }
 0x131   : > { %v776_v24 = vmax.f32 %v744_v20, 0.0  ;;  %v792_v25 = vmax.f32 %v760_v21, 0.0  ;;  %v745_v26 = vadd.f32 %v1286_v57, %v706_v22  ;;  %v761_v27 = vadd.f32 %v1286_v57, %v722_v23  ;;  %v1005_v28 = vpop.f32.mrb[28].mxu0  ;;  %v1053_v29 = vpop.f32.mrb[28].mxu1 }
 0x132   : > { %v1006_v30 = vpop.f32.mrb[29].mxu0  ;;  %v1054_v31 = vpop.f32.mrb[29].mxu1 }
 0x133   : > { %808 = vst [vmem:[%s1299_s11 + $0x60] sm:$0xff] %v776_v24  ;;  %824 = vst [vmem:[%s1299_s11 + $0xe0] sm:$0xff] %v792_v25  ;;  %v777_v32 = vmax.f32 %v745_v26, 0.0  ;;  %v793_v33 = vmax.f32 %v761_v27, 0.0  ;;  %v1007_v34 = vadd.f32 %v1006_v30, %v1005_v28  ;;  %v1055_v35 = vadd.f32 %v1054_v31, %v1053_v29  ;;  %v1008_v36 = vpop.f32.mrb[30].mxu0  ;;  %v1056_v37 = vpop.f32.mrb[30].mxu1 }
 0x134   : > { %v1009_v38 = vpop.f32.mrb[31].mxu0  ;;  %v1057_v39 = vpop.f32.mrb[31].mxu1 }
 0x135   : > { %809 = vst [vmem:[%s1299_s11 + $0x68] sm:$0xff] %v777_v32  ;;  %825 = vst [vmem:[%s1299_s11 + $0xe8] sm:$0xff] %v793_v33  ;;  %v707_v40 = vmul.f32 %v1007_v34, %v1281_v51  ;;  %v723_v41 = vmul.f32 %v1055_v35, %v1281_v51  ;;  %v1010_v42 = vadd.f32 %v1009_v38, %v1008_v36 }
 0x136   : > { %v1058_v43 = vadd.f32 %v1057_v39, %v1056_v37 }
 0x137   : > { %v746_v44 = vadd.f32 %v1286_v57, %v707_v40  ;;  %v762_v45 = vadd.f32 %v1286_v57, %v723_v41  ;;  %v708_v46 = vmul.f32 %v1010_v42, %v1281_v51 }
 0x138   : > { %v724_v47 = vmul.f32 %v1058_v43, %v1281_v51 }
 0x139   : > { %v778_v48 = vmax.f32 %v746_v44, 0.0  ;;  %v794_v49 = vmax.f32 %v762_v45, 0.0  ;;  %v747_v50 = vadd.f32 %v1286_v57, %v708_v46 }
 0x13a   : > { %v763_v52 = vadd.f32 %v1286_v57, %v724_v47 }
 0x13b   : > { %810 = vst [vmem:[%s1299_s11 + $0x70] sm:$0xff] %v778_v48  ;;  %826 = vst [vmem:[%s1299_s11 + $0xf0] sm:$0xff] %v794_v49  ;;  %v779_v53 = vmax.f32 %v747_v50, 0.0 }
 0x13c   : > { %v795_v54 = vmax.f32 %v763_v52, 0.0 }
 0x13d   : > { %811 = vst [vmem:[%s1299_s11 + $0x78] sm:$0xff] %v779_v53 }
 0x13e   : > { %827 = vst [vmem:[%s1299_s11 + $0xf8] sm:$0xff] %v795_v54 }
 0x13f PF: > { %s14_s15 = sadd.s32 1, %s1153_s15  }
 0x140   : > { %p11_p4 = scmp.ge.s32.totalorder %s14_s15, 4  }
 0x142   :  { %13 = sbr.rel (!%p11_p4) target bundleno = 1 (0x1), region = 66 }

// kernel: _lambda_.19
= control target key start
LH: loop header
LB: loop body
LE: loop exit
PB: predicated region body
PF: predicated region fallthrough
CT: control target
= control target key end

     0   :  { %v280_v28 = vmov 0.0   ;;  %vm281_vm0 = vmmov 0   ;;  %vm169_vm1 = vcmask 261120   ;;  %s360_s3 = inlined_call_operand.vmem [shape: bf16[128,128], index: 3, kind: input, shape index: {}]   ;;  %s361_s0 = inlined_call_operand.vmem [shape: f32[32,128], index: 0, kind: input, shape index: {}]   ;;  %s362_s1 = inlined_call_operand.vmem [shape: f32[1,128], index: 1, kind: input, shape index: {}]   ;;  %s363_s2 = inlined_call_operand.vmem [shape: f32[1,128], index: 2, kind: input, shape index: {}]   ;;  %s364_s4 = inlined_call_operand.vmem [shape: bf16[8,32], index: 4, kind: input, shape index: {}]   ;;  %s365_s5 = inlined_call_operand.vmem [shape: f32[8,128], index: 5, kind: output, shape index: {}]  }
   0x1   :  { %v272_v0 = vld [vmem:[%s360_s3] sm:$0xff]   ;;  %v273_v1 = vld [vmem:[%s360_s3 + $0x8] sm:$0xff]   ;;  %v274_v2 = vld [vmem:[%s360_s3 + $0x10] sm:$0xff]   ;;  %262 = vmatprep.subr.bf16.mxu1 %v280_v28  ;;  %266 = vmatprep.mubr.msk.bf16.mxu1 %vm281_vm0, %v280_v28 }
   0x2   :  { %242 = vmatprep.subr.bf16.mxu0 %v272_v0  ;;  %v275_v3 = vld [vmem:[%s360_s3 + $0x18] sm:$0xff]   ;;  %v21_v4 = vld [vmem:[%s361_s0] sm:$0xff]  ;;  %v22_v5 = vld [vmem:[%s361_s0 + $0x8] sm:$0xff] }
   0x3   :  { %243 = vmatpush3.bf16.msra.mxu0 %v272_v0  ;;  %v218_v6 = vld [vmem:[%s362_s1] ss:$0 sm:$0xff]  ;;  %v23_v16 = vld [vmem:[%s361_s0 + $0x10] sm:$0xff]  ;;  %v24_v17 = vld [vmem:[%s361_s0 + $0x18] sm:$0xff] }
   0x4   :  { %244 = vmatprep.subr.bf16.mxu0 %v273_v1  ;;  %v32_v7 = vmul.f32 %v218_v6, %v21_v4  ;;  %v33_v8 = vmul.f32 %v218_v6, %v22_v5  ;;  %v219_v9 = vld [vmem:[%s363_s2] ss:$0 sm:$0xff]  ;;  %v277_v18 = vld [vmem:[%s360_s3 + $0x28] sm:$0xff]   ;;  %v34_v19 = vmul.f32 %v218_v6, %v23_v16  ;;  %v35_v20 = vmul.f32 %v218_v6, %v24_v17  ;;  %v278_v21 = vld [vmem:[%s360_s3 + $0x30] sm:$0xff]  }
   0x5   :  { %v276_v12 = vld [vmem:[%s360_s3 + $0x20] sm:$0xff]   ;;  %v279_v24 = vld [vmem:[%s360_s3 + $0x38] sm:$0xff]  }
   0x6   :  { %v43_v10 = vadd.f32 %v219_v9, %v32_v7  ;;  %v44_v11 = vadd.f32 %v219_v9, %v33_v8  ;;  %v45_v22 = vadd.f32 %v219_v9, %v34_v19  ;;  %v46_v23 = vadd.f32 %v219_v9, %v35_v20  ;;  %v166_v35 = vld [vmem:[%s364_s4] sm:$0xf] }
   0x7   :  { %245 = vmatpush3.bf16.msra.mxu0 %v273_v1 }
   0x8   :  { %246 = vmatprep.subr.bf16.mxu0 %v274_v2  ;;  %v47_v13 = vmax.f32 %v43_v10, 0.0  ;;  %v48_v14 = vmax.f32 %v44_v11, 0.0  ;;  %v49_v25 = vmax.f32 %v45_v22, 0.0  ;;  %v50_v26 = vmax.f32 %v46_v23, 0.0 }
   0xa   :  { %v51_v15 = vpack.c.bf16 %v48_v14, %v47_v13  ;;  %v52_v27 = vpack.c.bf16 %v50_v26, %v49_v25 }
   0xb   :  { %247 = vmatpush3.bf16.msra.mxu0 %v274_v2 }
   0xc   :  { %248 = vmatprep.subr.bf16.mxu0 %v275_v3  ;;  %258 = vmatprep.mubr.bf16.mxu0 %v51_v15 }
   0xf   :  { %249 = vmatpush3.bf16.msra.mxu0 %v275_v3 }
  0x10   :  { %250 = vmatprep.subr.bf16.mxu0 %v276_v12 }
  0x13   :  { %251 = vmatpush3.bf16.msra.mxu0 %v276_v12 }
  0x14   :  { %252 = vmatprep.subr.bf16.mxu0 %v277_v18 }
  0x17   :  { %253 = vmatpush3.bf16.msra.mxu0 %v277_v18 }
  0x18   :  { %254 = vmatprep.subr.bf16.mxu0 %v278_v21 }
  0x1b   :  { %255 = vmatpush3.bf16.msra.mxu0 %v278_v21 }
  0x1c   :  { %256 = vmatprep.subr.bf16.mxu0 %v279_v24 }
  0x1f   :  { %257 = vmatpush3.bf16.msra.mxu0 %v279_v24 }
  0x22   :  { %259 = vmatmul.mubr.bf16.vlgmr.msra.gmra.mrb[0].mxu0 %v52_v27 }
  0xf5   :  { %v260_v29 = vpop.f32.mrb[0].mxu0 }
  0xf6   :  { %v151_v30 = vpop.f32.mrb[1].mxu0 }
  0xf7   :  { %v261_v31 = vpop.f32.mrb[2].mxu0 }
  0xf8   :  { %v168_v32 = vpack.c.bf16 %v261_v31, %v260_v29  ;;  %v154_v33 = vpop.f32.mrb[3].mxu0 }
  0xf9   :  { %v167_v34 = vpack.c.bf16 %v154_v33, %v151_v30 }
  0xfb   :  { %263 = vmatpush3.bf16.msra.mxu1 %v167_v34 }
  0xfc   :  { %264 = vmatprep.subr.bf16.mxu1 %v280_v28 }
  0xff   :  { %265 = vmatpush3.bf16.msra.mxu1 %v168_v32 }
 0x102   :  { %267 = vmatmul.mubr.msk.bf16.vlgmr.msra.gmra.mrb[0].mxu1 %vm169_vm1, %v166_v35 }
 0x1d5   :  { %v207_v36 = vpop.f32.mrb[0].mxu1 }
 0x1d6   :  { %213 = vst [vmem:[%s365_s5] sm:$0xff] %v207_v36  ;;  %v268_v37 = vpop.f32.mrb[1].mxu1 }
 0x1d7   :  { %v210_v38 = vpop.f32.mrb[2].mxu1 }
 0x1d8   :  { %v269_v39 = vpop.f32.mrb[3].mxu1 }

// kernel: _lambda_.14
= control target key start
LH: loop header
LB: loop body
LE: loop exit
PB: predicated region body
PF: predicated region fallthrough
CT: control target
= control target key end

     0   :  { %s5156_s3 = inlined_call_operand.vmem [shape: bf16[128,128], index: 3, kind: input, shape index: {}]   ;;  %s5157_s0 = inlined_call_operand.vmem [shape: f32[128,128], index: 0, kind: input, shape index: {}]   ;;  %s5158_s1 = inlined_call_operand.vmem [shape: f32[1,128], index: 1, kind: input, shape index: {}]   ;;  %s5159_s2 = inlined_call_operand.vmem [shape: f32[1,128], index: 2, kind: input, shape index: {}]   ;;  %s5160_s6 = inlined_call_operand.vmem [shape: bf16[128,1152], index: 6, kind: input, shape index: {}]   ;;  %s5161_s4 = inlined_call_operand.vmem [shape: f32[1,128], index: 4, kind: input, shape index: {}]   ;;  %s5162_s5 = inlined_call_operand.vmem [shape: f32[1,128], index: 5, kind: input, shape index: {}]   ;;  %s5163_s7 = inlined_call_operand.vmem [shape: bf16[9,128,128], index: 7, kind: input, shape index: {}]   ;;  %s5164_s8 = inlined_call_operand.vmem [shape: f32[128,128], index: 8, kind: output, shape index: {}]  }
   0x1   :  { %v4010_v0 = vld [vmem:[%s5156_s3] sm:$0xff]   ;;  %v4011_v1 = vld [vmem:[%s5156_s3 + $0x8] sm:$0xff]   ;;  %v4012_v2 = vld [vmem:[%s5156_s3 + $0x10] sm:$0xff]  }
   0x2   :  { %3497 = vmatprep.subr.bf16.mxu0 %v4010_v0  ;;  %v4013_v3 = vld [vmem:[%s5156_s3 + $0x18] sm:$0xff]   ;;  %v30_v4 = vld [vmem:[%s5157_s0] sm:$0xff]  ;;  %v31_v5 = vld [vmem:[%s5157_s0 + $0x8] sm:$0xff] }
   0x3   :  { %3498 = vmatpush3.bf16.msra.mxu0 %v4010_v0  ;;  %v4277_v6 = vld [vmem:[%s5158_s1] ss:$0 sm:$0xff]  ;;  %v32_v15 = vld [vmem:[%s5157_s0 + $0x10] sm:$0xff]  ;;  %v33_v16 = vld [vmem:[%s5157_s0 + $0x18] sm:$0xff] }
   0x4   :  { %3499 = vmatprep.subr.bf16.mxu0 %v4011_v1  ;;  %v53_v7 = vmul.f32 %v4277_v6, %v30_v4  ;;  %v54_v8 = vmul.f32 %v4277_v6, %v31_v5  ;;  %v4284_v9 = vld [vmem:[%s5159_s2] ss:$0 sm:$0xff]  ;;  %v4015_v17 = vld [vmem:[%s5156_s3 + $0x28] sm:$0xff]   ;;  %v55_v24 = vmul.f32 %v4277_v6, %v32_v15  ;;  %v56_v25 = vmul.f32 %v4277_v6, %v33_v16  ;;  %v4016_v27 = vld [vmem:[%s5156_s3 + $0x30] sm:$0xff]  }
   0x5   :  { %v4014_v12 = vld [vmem:[%s5156_s3 + $0x20] sm:$0xff]   ;;  %v35_v22 = vld [vmem:[%s5157_s0 + $0x28] sm:$0xff]  ;;  %v4024_v30 = vld [vmem:[%s5160_s6 + $0x94] ss:$36 sps:$4 sm:$0xff]  }
   0x6   :  { %v76_v10 = vadd.f32 %v4284_v9, %v53_v7  ;;  %v77_v11 = vadd.f32 %v4284_v9, %v54_v8  ;;  %v4018_v18 = vld [vmem:[%s5160_s6 + $0x4] ss:$36 sps:$4 sm:$0xff]   ;;  %v4021_v23 = vld [vmem:[%s5160_s6 + $0x4c] ss:$36 sps:$4 sm:$0xff]   ;;  %v58_v29 = vmul.f32 %v4277_v6, %v35_v22  ;;  %v37_v32 = vld [vmem:[%s5157_s0 + $0x38] sm:$0xff]  ;;  %v78_v36 = vadd.f32 %v4284_v9, %v55_v24 }
   0x7   :  { %3500 = vmatpush3.bf16.msra.mxu0 %v4011_v1  ;;  %v4020_v20 = vld [vmem:[%s5160_s6] ss:$36 sps:$4 sm:$0xff]   ;;  %795 = vmatprep.subr.bf16.mxu1 %v4018_v18  ;;  %v4023_v26 = vld [vmem:[%s5160_s6 + $0x48] ss:$36 sps:$4 sm:$0xff]   ;;  %v36_v31 = vld [vmem:[%s5157_s0 + $0x30] sm:$0xff]  ;;  %v79_v37 = vadd.f32 %v4284_v9, %v56_v25  ;;  %v60_v45 = vmul.f32 %v4277_v6, %v37_v32 }
   0x8   :  { %3501 = vmatprep.subr.bf16.mxu0 %v4012_v2  ;;  %v92_v13 = vmax.f32 %v76_v10, 0.0  ;;  %v93_v14 = vmax.f32 %v77_v11, 0.0  ;;  %v34_v21 = vld [vmem:[%s5157_s0 + $0x20] sm:$0xff]  ;;  %796 = vmatpush1.bf16.msra.mxu1 %v4020_v20  ;;  %v4026_v33 = vld [vmem:[%s5160_s6 + $0x90] ss:$36 sps:$4 sm:$0xff]   ;;  %v4017_v35 = vld [vmem:[%s5156_s3 + $0x38] sm:$0xff]   ;;  %v81_v41 = vadd.f32 %v4284_v9, %v58_v29  ;;  %v59_v44 = vmul.f32 %v4277_v6, %v36_v31 }
   0x9   :  { %v57_v28 = vmul.f32 %v4277_v6, %v34_v21  ;;  %797 = vmatprep.subr.bf16.mxu1 %v4021_v23  ;;  %v4027_v34 = vld [vmem:[%s5160_s6 + $0xdc] ss:$36 sps:$4 sm:$0xff]   ;;  %v39_v39 = vld [vmem:[%s5157_s0 + $0x48] sm:$0xff]  ;;  %v40_v42 = vld [vmem:[%s5157_s0 + $0x50] sm:$0xff]  ;;  %v94_v50 = vmax.f32 %v78_v36, 0.0  ;;  %v95_v51 = vmax.f32 %v79_v37, 0.0  ;;  %v83_v58 = vadd.f32 %v4284_v9, %v60_v45 }
   0xa   :  { %v108_v19 = vpack.c.bf16 %v93_v14, %v92_v13  ;;  %v38_v38 = vld [vmem:[%s5157_s0 + $0x40] sm:$0xff]  ;;  %v4029_v43 = vld [vmem:[%s5160_s6 + $0xd8] ss:$36 sps:$4 sm:$0xff]   ;;  %v43_v48 = vld [vmem:[%s5157_s0 + $0x68] sm:$0xff]  ;;  %v97_v53 = vmax.f32 %v81_v41, 0.0  ;;  %v62_v55 = vmul.f32 %v4277_v6, %v39_v39  ;;  %v82_v57 = vadd.f32 %v4284_v9, %v59_v44 }
   0xb   :  { %3502 = vmatpush3.bf16.msra.mxu0 %v4012_v2  ;;  %v80_v40 = vadd.f32 %v4284_v9, %v57_v28  ;;  %v41_v46 = vld [vmem:[%s5157_s0 + $0x58] sm:$0xff]  ;;  %v42_v47 = vld [vmem:[%s5157_s0 + $0x60] sm:$0xff]  ;;  %v61_v54 = vmul.f32 %v4277_v6, %v38_v38  ;;  %v63_v59 = vmul.f32 %v4277_v6, %v40_v42  ;;  %v109_v60 = vpack.c.bf16 %v95_v51, %v94_v50  ;;  %v44_v14 = vld [vmem:[%s5157_s0 + $0x70] sm:$0xff] }
   0xc   :  { %3503 = vmatprep.subr.bf16.mxu0 %v4013_v3  ;;  %3513 = vmatprep.mubr.bf16.mxu0 %v108_v19  ;;  %v4030_v49 = vld [vmem:[%s5160_s6 + $0x124] ss:$36 sps:$4 sm:$0xff]   ;;  %v64_v61 = vmul.f32 %v4277_v6, %v41_v46  ;;  %v65_v62 = vmul.f32 %v4277_v6, %v42_v47  ;;  %v66_v63 = vmul.f32 %v4277_v6, %v43_v48  ;;  %v99_v5 = vmax.f32 %v83_v58, 0.0  ;;  %v45_v15 = vld [vmem:[%s5157_s0 + $0x78] sm:$0xff]  ;;  %v4038_v31 = vld [vmem:[%s5160_s6 + $0x1b0] ss:$36 sps:$4 sm:$0xff]  }
   0xd   :  { %798 = vmatpush1.bf16.msra.mxu1 %v4023_v26  ;;  %v96_v52 = vmax.f32 %v80_v40, 0.0  ;;  %v4032_v56 = vld [vmem:[%s5160_s6 + $0x120] ss:$36 sps:$4 sm:$0xff]   ;;  %v84_v1 = vadd.f32 %v4284_v9, %v61_v54  ;;  %v85_v2 = vadd.f32 %v4284_v9, %v62_v55  ;;  %v86_v4 = vadd.f32 %v4284_v9, %v63_v59 }
   0xe   :  { %799 = vmatprep.subr.bf16.mxu1 %v4024_v30  ;;  %v87_v7 = vadd.f32 %v4284_v9, %v64_v61  ;;  %v88_v8 = vadd.f32 %v4284_v9, %v65_v62  ;;  %v89_v10 = vadd.f32 %v4284_v9, %v66_v63  ;;  %v67_v21 = vmul.f32 %v4277_v6, %v44_v14  ;;  %v4033_v30 = vld [vmem:[%s5160_s6 + $0x16c] ss:$36 sps:$4 sm:$0xff]   ;;  %v4039_v32 = vld [vmem:[%s5160_s6 + $0x1fc] ss:$36 sps:$4 sm:$0xff]   ;;  %v4047_v62 = vld [vmem:[%s5160_s6 + $0x54] ss:$36 sps:$4 sm:$0xff]  }
   0xf   :  { %3504 = vmatpush3.bf16.msra.mxu0 %v4013_v3  ;;  %v110_v0 = vpack.c.bf16 %v97_v53, %v96_v52  ;;  %v98_v3 = vmax.f32 %v82_v57, 0.0  ;;  %v100_v11 = vmax.f32 %v84_v1, 0.0  ;;  %v102_v13 = vmax.f32 %v86_v4, 0.0  ;;  %v4425_v36 = vld [vmem:[%s5161_s4] ss:$0 sm:$0xff] }
  0x10   :  { %3505 = vmatprep.subr.bf16.mxu0 %v4014_v12  ;;  %v104_v18 = vmax.f32 %v88_v8, 0.0  ;;  %v105_v19 = vmax.f32 %v89_v10, 0.0  ;;  %v68_v22 = vmul.f32 %v4277_v6, %v45_v15  ;;  %v90_v24 = vadd.f32 %v4284_v9, %v67_v21  ;;  %v4035_v6 = vld [vmem:[%s5160_s6 + $0x168] ss:$36 sps:$4 sm:$0xff]   ;;  %v4430_v38 = vld [vmem:[%s5162_s5] ss:$0 sm:$0xff] }
  0x11   :  { %800 = vmatpush1.bf16.msra.mxu1 %v4026_v33  ;;  %v111_v16 = vpack.c.bf16 %v99_v5, %v98_v3  ;;  %v4041_v33 = vld [vmem:[%s5160_s6 + $0x1f8] ss:$36 sps:$4 sm:$0xff]  }
  0x12   :  { %801 = vmatprep.subr.bf16.mxu1 %v4027_v34  ;;  %v91_v25 = vadd.f32 %v4284_v9, %v68_v22  ;;  %v114_v26 = vpack.c.bf16 %v105_v19, %v104_v18  ;;  %v4036_v9 = vld [vmem:[%s5160_s6 + $0x1b4] ss:$36 sps:$4 sm:$0xff]   ;;  %v4210_v34 = vmov 0   ;;  %v4053_v22 = vld [vmem:[%s5160_s6 + $0xe4] ss:$36 sps:$4 sm:$0xff]  }
  0x13   :  { %3506 = vmatpush3.bf16.msra.mxu0 %v4014_v12  ;;  %v101_v12 = vmax.f32 %v85_v2, 0.0  ;;  %827 = vmatprep.mubr.bf16.mxu1 %v4210_v34 }
  0x14   :  { %3507 = vmatprep.subr.bf16.mxu0 %v4015_v17  ;;  %v107_v28 = vmax.f32 %v91_v25, 0.0 }
  0x15   :  { %802 = vmatpush1.bf16.msra.mxu1 %v4029_v43  ;;  %v112_v20 = vpack.c.bf16 %v101_v12, %v100_v11  ;;  %v4050_v11 = vld [vmem:[%s5160_s6 + $0x9c] ss:$36 sps:$4 sm:$0xff]  }
  0x16   :  { %803 = vmatprep.subr.bf16.mxu1 %v4030_v49 }
  0x17   :  { %3508 = vmatpush3.bf16.msra.mxu0 %v4015_v17  ;;  %v103_v17 = vmax.f32 %v87_v7, 0.0  ;;  %v4045_v7 = vld [vmem:[%s5160_s6 + $0x50] ss:$36 sps:$4 sm:$0xff]  }
  0x18   :  { %3509 = vmatprep.subr.bf16.mxu0 %v4016_v27 }
  0x19   :  { %804 = vmatpush1.bf16.msra.mxu1 %v4032_v56  ;;  %v113_v23 = vpack.c.bf16 %v103_v17, %v102_v13  ;;  %v4042_v56 = vld [vmem:[%s5160_s6 + $0x8] ss:$36 sps:$4 sm:$0xff]  }
  0x1a   :  { %805 = vmatprep.subr.bf16.mxu1 %v4033_v30  ;;  %v4051_v30 = vld [vmem:[%s5160_s6 + $0xe0] ss:$36 sps:$4 sm:$0xff]  }
  0x1b   :  { %3510 = vmatpush3.bf16.msra.mxu0 %v4016_v27  ;;  %v106_v27 = vmax.f32 %v90_v24, 0.0 }
  0x1c   :  { %3511 = vmatprep.subr.bf16.mxu0 %v4017_v35 }
  0x1d   :  { %v115_v29 = vpack.c.bf16 %v107_v28, %v106_v27  ;;  %806 = vmatpush1.bf16.msra.mxu1 %v4035_v6 }
  0x1e   :  { %807 = vmatprep.subr.bf16.mxu1 %v4036_v9 }
  0x1f   :  { %3512 = vmatpush3.bf16.msra.mxu0 %v4017_v35  ;;  %v4044_v35 = vld [vmem:[%s5160_s6 + $0xc] ss:$36 sps:$4 sm:$0xff]  }
  0x21   :  { %808 = vmatpush1.bf16.msra.mxu1 %v4038_v31  ;;  %v4056_v31 = vld [vmem:[%s5160_s6 + $0x12c] ss:$36 sps:$4 sm:$0xff]  }
  0x22   :  { %3514 = vmatmul.mubr.bf16.vlgmr.msra.gmra.mrb[0].mxu0 %v109_v60  ;;  %809 = vmatprep.subr.bf16.mxu1 %v4039_v32 }
  0x23   :  { %3517 = vmatprep.mubr.bf16.mxu0 %v110_v0 }
  0x25   :  { %810 = vmatpush1.bf16.msra.mxu1 %v4041_v33 }
  0x26   :  { %908 = vmatprep.subr.bf16.mxu1 %v4044_v35 }
  0x2a   :  { %3518 = vmatmul.mubr.bf16.gmra.mrb[4].mxu0 %v111_v16  ;;  %v4048_v16 = vld [vmem:[%s5160_s6 + $0x98] ss:$36 sps:$4 sm:$0xff]  }
  0x2b   :  { %3521 = vmatprep.mubr.bf16.mxu0 %v112_v20 }
  0x32   :  { %3522 = vmatmul.mubr.bf16.gmra.mrb[8].mxu0 %v113_v23 }
  0x33   :  { %3525 = vmatprep.mubr.bf16.mxu0 %v114_v26 }
  0x3a   :  { %3526 = vmatmul.mubr.bf16.gmra.mrb[12].mxu0 %v115_v29 }
  0xf5   :  { %v3515_v37 = vpop.f32.mrb[0].mxu0 }
  0xf6   :  { %v286_v39 = vmul.f32 %v3515_v37, %v4425_v36  ;;  %v214_v40 = vpop.f32.mrb[1].mxu0 }
  0xf7   :  { %v284_v41 = vmul.f32 %v4425_v36, %v214_v40  ;;  %v3516_v42 = vpop.f32.mrb[2].mxu0 }
  0xf8   :  { %v309_v43 = vadd.f32 %v4430_v38, %v286_v39  ;;  %v287_v44 = vmul.f32 %v3516_v42, %v4425_v36  ;;  %v217_v45 = vpop.f32.mrb[3].mxu0  ;;  %v4054_v39 = vld [vmem:[%s5160_s6 + $0x128] ss:$36 sps:$4 sm:$0xff]  }
  0xf9   :  { %v307_v46 = vadd.f32 %v4430_v38, %v284_v41  ;;  %v285_v47 = vmul.f32 %v4425_v36, %v217_v45  ;;  %v4059_v45 = vld [vmem:[%s5160_s6 + $0x174] ss:$36 sps:$4 sm:$0xff]  }
  0xfa   :  { %v310_v48 = vadd.f32 %v4430_v38, %v287_v44  ;;  %v325_v50 = vmax.f32 %v309_v43, 0.0 }
  0xfb   :  { %v308_v49 = vadd.f32 %v4430_v38, %v285_v47  ;;  %v323_v52 = vmax.f32 %v307_v46, 0.0 }
  0xfc   :  { %v326_v51 = vmax.f32 %v310_v48, 0.0 }
  0xfd   :  { %v324_v53 = vmax.f32 %v308_v49, 0.0  ;;  %v3519_v54 = vpop.f32.mrb[4].mxu0 }
  0xfe   :  { %v4440_v55 = vpack.c.bf16 %v326_v51, %v325_v50  ;;  %v290_v57 = vmul.f32 %v3519_v54, %v4425_v36  ;;  %v230_v58 = vpop.f32.mrb[5].mxu0 }
  0xff   :  { %v4446_v59 = vpack.c.bf16 %v324_v53, %v323_v52  ;;  %v288_v60 = vmul.f32 %v4425_v36, %v230_v58  ;;  %v3520_v61 = vpop.f32.mrb[6].mxu0  ;;  %v4057_v53 = vld [vmem:[%s5160_s6 + $0x170] ss:$36 sps:$4 sm:$0xff]  }
 0x100   :  { %v313_v63 = vadd.f32 %v4430_v38, %v290_v57  ;;  %v291_v0 = vmul.f32 %v3520_v61, %v4425_v36  ;;  %v233_v1 = vpop.f32.mrb[7].mxu0  ;;  %v4062_v57 = vld [vmem:[%s5160_s6 + $0x1bc] ss:$36 sps:$4 sm:$0xff]  }
 0x101   :  { %828 = vmatmul.mubr.bf16.vlgmr.msra.gmra.mrb[0].mxu1 %v4446_v59  ;;  %v311_v2 = vadd.f32 %v4430_v38, %v288_v60  ;;  %v289_v3 = vmul.f32 %v4425_v36, %v233_v1  ;;  %v4060_v61 = vld [vmem:[%s5160_s6 + $0x1b8] ss:$36 sps:$4 sm:$0xff]   ;;  %v4066_v1 = vld [vmem:[%s5160_s6 + $0x10] ss:$36 sps:$4 sm:$0xff]  }
 0x102   :  { %v329_v4 = vmax.f32 %v313_v63, 0.0  ;;  %909 = vmatpush1.bf16.msra.mxu1 %v4042_v56  ;;  %v314_v5 = vadd.f32 %v4430_v38, %v291_v0  ;;  %837 = vmatprep.mubr.bf16.mxu1 %v4210_v34  ;;  %v4063_v63 = vld [vmem:[%s5160_s6 + $0x200] ss:$36 sps:$4 sm:$0xff]   ;;  %v4068_v0 = vld [vmem:[%s5160_s6 + $0x14] ss:$36 sps:$4 sm:$0xff]  }
 0x103   :  { %v327_v8 = vmax.f32 %v311_v2, 0.0  ;;  %v312_v10 = vadd.f32 %v4430_v38, %v289_v3  ;;  %910 = vmatprep.subr.bf16.mxu1 %v4047_v62  ;;  %v4071_v2 = vld [vmem:[%s5160_s6 + $0x5c] ss:$36 sps:$4 sm:$0xff]  }
 0x104   :  { %v330_v12 = vmax.f32 %v314_v5, 0.0  ;;  %v4069_v3 = vld [vmem:[%s5160_s6 + $0x58] ss:$36 sps:$4 sm:$0xff]   ;;  %v4072_v5 = vld [vmem:[%s5160_s6 + $0xa0] ss:$36 sps:$4 sm:$0xff]  }
 0x105   :  { %v328_v13 = vmax.f32 %v312_v10, 0.0  ;;  %v3523_v14 = vpop.f32.mrb[8].mxu0  ;;  %v4080_v10 = vld [vmem:[%s5160_s6 + $0x134] ss:$36 sps:$4 sm:$0xff]  }
 0x106   :  { %v4466_v15 = vpack.c.bf16 %v330_v12, %v329_v4  ;;  %911 = vmatpush1.bf16.msra.mxu1 %v4045_v7  ;;  %v294_v17 = vmul.f32 %v3523_v14, %v4425_v36  ;;  %v246_v18 = vpop.f32.mrb[9].mxu0  ;;  %v4074_v4 = vld [vmem:[%s5160_s6 + $0xa4] ss:$36 sps:$4 sm:$0xff]   ;;  %v4077_v7 = vld [vmem:[%s5160_s6 + $0xec] ss:$36 sps:$4 sm:$0xff]  }
 0x107   :  { %v4472_v19 = vpack.c.bf16 %v328_v13, %v327_v8  ;;  %912 = vmatprep.subr.bf16.mxu1 %v4050_v11  ;;  %v292_v20 = vmul.f32 %v4425_v36, %v246_v18  ;;  %v3524_v21 = vpop.f32.mrb[10].mxu0  ;;  %v4075_v8 = vld [vmem:[%s5160_s6 + $0xe8] ss:$36 sps:$4 sm:$0xff]   ;;  %v4078_v11 = vld [vmem:[%s5160_s6 + $0x130] ss:$36 sps:$4 sm:$0xff]  }
 0x108   :  { %v317_v23 = vadd.f32 %v4430_v38, %v294_v17  ;;  %v295_v24 = vmul.f32 %v3524_v21, %v4425_v36  ;;  %v249_v25 = vpop.f32.mrb[11].mxu0  ;;  %v4083_v12 = vld [vmem:[%s5160_s6 + $0x17c] ss:$36 sps:$4 sm:$0xff]   ;;  %v4086_v14 = vld [vmem:[%s5160_s6 + $0x1c4] ss:$36 sps:$4 sm:$0xff]  }
 0x109   :  { %838 = vmatmul.mubr.bf16.gmra.mrb[4].mxu1 %v4440_v55  ;;  %v315_v26 = vadd.f32 %v4430_v38, %v292_v20  ;;  %v293_v27 = vmul.f32 %v4425_v36, %v249_v25  ;;  %v4081_v13 = vld [vmem:[%s5160_s6 + $0x178] ss:$36 sps:$4 sm:$0xff]   ;;  %v4089_v17 = vld [vmem:[%s5160_s6 + $0x20c] ss:$36 sps:$4 sm:$0xff]  }
 0x10a   :  { %847 = vmatprep.mubr.bf16.mxu1 %v4210_v34  ;;  %v333_v28 = vmax.f32 %v317_v23, 0.0  ;;  %913 = vmatpush1.bf16.msra.mxu1 %v4048_v16  ;;  %v318_v29 = vadd.f32 %v4430_v38, %v295_v24  ;;  %v4084_v16 = vld [vmem:[%s5160_s6 + $0x1c0] ss:$36 sps:$4 sm:$0xff]   ;;  %v4087_v18 = vld [vmem:[%s5160_s6 + $0x208] ss:$36 sps:$4 sm:$0xff]  }
 0x10b   :  { %v331_v6 = vmax.f32 %v315_v26, 0.0  ;;  %v316_v9 = vadd.f32 %v4430_v38, %v293_v27  ;;  %914 = vmatprep.subr.bf16.mxu1 %v4053_v22  ;;  %v4092_v20 = vld [vmem:[%s5160_s6 + $0x1c] ss:$36 sps:$4 sm:$0xff]   ;;  %v4095_v22 = vld [vmem:[%s5160_s6 + $0x64] ss:$36 sps:$4 sm:$0xff]  }
 0x10c   :  { %v334_v32 = vmax.f32 %v318_v29, 0.0  ;;  %v4090_v21 = vld [vmem:[%s5160_s6 + $0x18] ss:$36 sps:$4 sm:$0xff]   ;;  %v4093_v23 = vld [vmem:[%s5160_s6 + $0x60] ss:$36 sps:$4 sm:$0xff]  }
 0x10d   :  { %v332_v33 = vmax.f32 %v316_v9, 0.0  ;;  %v3527_v35 = vpop.f32.mrb[12].mxu0  ;;  %v4098_v24 = vld [vmem:[%s5160_s6 + $0xac] ss:$36 sps:$4 sm:$0xff]   ;;  %v4101_v26 = vld [vmem:[%s5160_s6 + $0xf4] ss:$36 sps:$4 sm:$0xff]  }
 0x10e   :  { %v4492_v37 = vpack.c.bf16 %v334_v32, %v333_v28  ;;  %915 = vmatpush1.bf16.msra.mxu1 %v4051_v30  ;;  %v298_v40 = vmul.f32 %v3527_v35, %v4425_v36  ;;  %v262_v41 = vpop.f32.mrb[13].mxu0  ;;  %v4096_v25 = vld [vmem:[%s5160_s6 + $0xa8] ss:$36 sps:$4 sm:$0xff]   ;;  %v4099_v27 = vld [vmem:[%s5160_s6 + $0xf0] ss:$36 sps:$4 sm:$0xff]   ;;  %v4122_v9 = vld [vmem:[%s5163_s7] sm:$0xff]  }
 0x10f   :  { %v4498_v42 = vpack.c.bf16 %v332_v33, %v331_v6  ;;  %916 = vmatprep.subr.bf16.mxu1 %v4056_v31  ;;  %v296_v43 = vmul.f32 %v4425_v36, %v262_v41  ;;  %v3528_v44 = vpop.f32.mrb[14].mxu0  ;;  %v4104_v28 = vld [vmem:[%s5160_s6 + $0x13c] ss:$36 sps:$4 sm:$0xff]   ;;  %v4107_v30 = vld [vmem:[%s5160_s6 + $0x184] ss:$36 sps:$4 sm:$0xff]   ;;  %3577 = vmatprep.mubr.bf16.mxu0 %v4122_v9 }
 0x110   :  { %v321_v46 = vadd.f32 %v4430_v38, %v298_v40  ;;  %v299_v47 = vmul.f32 %v3528_v44, %v4425_v36  ;;  %v265_v48 = vpop.f32.mrb[15].mxu0  ;;  %v4102_v29 = vld [vmem:[%s5160_s6 + $0x138] ss:$36 sps:$4 sm:$0xff]   ;;  %v4105_v6 = vld [vmem:[%s5160_s6 + $0x180] ss:$36 sps:$4 sm:$0xff]  }
 0x111   :  { %848 = vmatmul.mubr.bf16.gmra.mrb[8].mxu1 %v4472_v19  ;;  %v319_v49 = vadd.f32 %v4430_v38, %v296_v43  ;;  %v297_v50 = vmul.f32 %v4425_v36, %v265_v48  ;;  %v4110_v31 = vld [vmem:[%s5160_s6 + $0x1cc] ss:$36 sps:$4 sm:$0xff]   ;;  %v4113_v33 = vld [vmem:[%s5160_s6 + $0x214] ss:$36 sps:$4 sm:$0xff]   ;;  %v4118_v44 = vld [vmem:[%s5160_s6 + $0x140] ss:$36 sps:$4 sm:$0xff]  }
 0x112   :  { %857 = vmatprep.mubr.bf16.mxu1 %v4210_v34  ;;  %v337_v51 = vmax.f32 %v321_v46, 0.0  ;;  %917 = vmatpush1.bf16.msra.mxu1 %v4054_v39  ;;  %v322_v52 = vadd.f32 %v4430_v38, %v299_v47  ;;  %v4108_v32 = vld [vmem:[%s5160_s6 + $0x1c8] ss:$36 sps:$4 sm:$0xff]   ;;  %v4111_v35 = vld [vmem:[%s5160_s6 + $0x210] ss:$36 sps:$4 sm:$0xff]  }
 0x113   :  { %v335_v54 = vmax.f32 %v319_v49, 0.0  ;;  %v320_v56 = vadd.f32 %v4430_v38, %v297_v50  ;;  %918 = vmatprep.subr.bf16.mxu1 %v4059_v45  ;;  %v4065_v38 = vld [vmem:[%s5160_s6 + $0x204] ss:$36 sps:$4 sm:$0xff]   ;;  %v4116_v41 = vld [vmem:[%s5160_s6 + $0xb0] ss:$36 sps:$4 sm:$0xff]  }
 0x114   :  { %v338_v58 = vmax.f32 %v322_v52, 0.0  ;;  %v4114_v39 = vld [vmem:[%s5160_s6 + $0x20] ss:$36 sps:$4 sm:$0xff]   ;;  %v4115_v40 = vld [vmem:[%s5160_s6 + $0x68] ss:$36 sps:$4 sm:$0xff]  }
 0x115   :  { %v336_v36 = vmax.f32 %v320_v56, 0.0  ;;  %v4117_v43 = vld [vmem:[%s5160_s6 + $0xf8] ss:$36 sps:$4 sm:$0xff]   ;;  %v4119_v45 = vld [vmem:[%s5160_s6 + $0x188] ss:$36 sps:$4 sm:$0xff]  }
 0x116   :  { %v4518_v60 = vpack.c.bf16 %v338_v58, %v337_v51  ;;  %919 = vmatpush1.bf16.msra.mxu1 %v4057_v53  ;;  %v4120_v46 = vld [vmem:[%s5160_s6 + $0x1d0] ss:$36 sps:$4 sm:$0xff]   ;;  %v4121_v53 = vld [vmem:[%s5160_s6 + $0x218] ss:$36 sps:$4 sm:$0xff]  }
 0x117   :  { %v4523_v62 = vpack.c.bf16 %v336_v36, %v335_v54  ;;  %920 = vmatprep.subr.bf16.mxu1 %v4062_v57 }
 0x119   :  { %858 = vmatmul.mubr.bf16.gmra.mrb[12].mxu1 %v4466_v15 }
 0x11a   :  { %867 = vmatprep.mubr.bf16.mxu1 %v4210_v34  ;;  %921 = vmatpush1.bf16.msra.mxu1 %v4060_v61 }
 0x11b   :  { %922 = vmatprep.subr.bf16.mxu1 %v4065_v38 }
 0x11e   :  { %923 = vmatpush1.bf16.msra.mxu1 %v4063_v63 }
 0x11f   :  { %1021 = vmatprep.subr.bf16.mxu1 %v4068_v0 }
 0x121   :  { %868 = vmatmul.mubr.bf16.gmra.mrb[16].mxu1 %v4498_v42 }
 0x122   :  { %877 = vmatprep.mubr.bf16.mxu1 %v4210_v34 }
 0x129   :  { %878 = vmatmul.mubr.bf16.gmra.mrb[20].mxu1 %v4492_v37 }
 0x12a   :  { %887 = vmatprep.mubr.bf16.mxu1 %v4210_v34 }
 0x131   :  { %888 = vmatmul.mubr.bf16.gmra.mrb[24].mxu1 %v4523_v62 }
 0x132   :  { %897 = vmatprep.mubr.bf16.mxu1 %v4210_v34 }
 0x139   :  { %898 = vmatmul.mubr.bf16.gmra.mrb[28].mxu1 %v4518_v60 }
 0x13a   :  { %940 = vmatprep.mubr.bf16.mxu1 %v4210_v34 }
 0x141   :  { %941 = vmatmul.mubr.bf16.vlgmr.msra.gmra.mrb[32].mxu1 %v4446_v59 }
 0x142   :  { %1022 = vmatpush1.bf16.msra.mxu1 %v4066_v1  ;;  %950 = vmatprep.mubr.bf16.mxu1 %v4210_v34 }
 0x143   :  { %1023 = vmatprep.subr.bf16.mxu1 %v4071_v2 }
 0x146   :  { %1024 = vmatpush1.bf16.msra.mxu1 %v4069_v3 }
 0x147   :  { %1025 = vmatprep.subr.bf16.mxu1 %v4074_v4 }
 0x149   :  { %951 = vmatmul.mubr.bf16.gmra.mrb[36].mxu1 %v4440_v55 }
 0x14a   :  { %960 = vmatprep.mubr.bf16.mxu1 %v4210_v34  ;;  %1026 = vmatpush1.bf16.msra.mxu1 %v4072_v5 }
 0x14b   :  { %1027 = vmatprep.subr.bf16.mxu1 %v4077_v7 }
 0x14e   :  { %1028 = vmatpush1.bf16.msra.mxu1 %v4075_v8 }
 0x14f   :  { %1029 = vmatprep.subr.bf16.mxu1 %v4080_v10 }
 0x151   :  { %961 = vmatmul.mubr.bf16.gmra.mrb[40].mxu1 %v4472_v19 }
 0x152   :  { %970 = vmatprep.mubr.bf16.mxu1 %v4210_v34  ;;  %1030 = vmatpush1.bf16.msra.mxu1 %v4078_v11 }
 0x153   :  { %1031 = vmatprep.subr.bf16.mxu1 %v4083_v12 }
 0x156   :  { %1032 = vmatpush1.bf16.msra.mxu1 %v4081_v13 }
 0x157   :  { %1033 = vmatprep.subr.bf16.mxu1 %v4086_v14 }
 0x159   :  { %971 = vmatmul.mubr.bf16.gmra.mrb[44].mxu1 %v4466_v15 }
 0x15a   :  { %980 = vmatprep.mubr.bf16.mxu1 %v4210_v34  ;;  %1034 = vmatpush1.bf16.msra.mxu1 %v4084_v16 }
 0x15b   :  { %1035 = vmatprep.subr.bf16.mxu1 %v4089_v17 }
 0x15e   :  { %1036 = vmatpush1.bf16.msra.mxu1 %v4087_v18 }
 0x15f   :  { %1134 = vmatprep.subr.bf16.mxu1 %v4092_v20 }
 0x161   :  { %981 = vmatmul.mubr.bf16.gmra.mrb[48].mxu1 %v4498_v42 }
 0x162   :  { %990 = vmatprep.mubr.bf16.mxu1 %v4210_v34 }
 0x169   :  { %991 = vmatmul.mubr.bf16.gmra.mrb[52].mxu1 %v4492_v37 }
 0x16a   :  { %1000 = vmatprep.mubr.bf16.mxu1 %v4210_v34 }
 0x171   :  { %1001 = vmatmul.mubr.bf16.gmra.mrb[56].mxu1 %v4523_v62 }
 0x172   :  { %1010 = vmatprep.mubr.bf16.mxu1 %v4210_v34 }
 0x179   :  { %1011 = vmatmul.mubr.bf16.gmra.mrb[60].mxu1 %v4518_v60 }
 0x17a   :  { %1053 = vmatprep.mubr.bf16.mxu1 %v4210_v34 }
 0x181   :  { %1054 = vmatmul.mubr.bf16.vlgmr.msra.gmra.mrb[64].mxu1 %v4446_v59 }
 0x182   :  { %1135 = vmatpush1.bf16.msra.mxu1 %v4090_v21  ;;  %1063 = vmatprep.mubr.bf16.mxu1 %v4210_v34 }
 0x183   :  { %1136 = vmatprep.subr.bf16.mxu1 %v4095_v22 }
 0x186   :  { %1137 = vmatpush1.bf16.msra.mxu1 %v4093_v23 }
 0x187   :  { %1138 = vmatprep.subr.bf16.mxu1 %v4098_v24 }
 0x189   :  { %1064 = vmatmul.mubr.bf16.gmra.mrb[68].mxu1 %v4440_v55 }
 0x18a   :  { %1073 = vmatprep.mubr.bf16.mxu1 %v4210_v34  ;;  %1139 = vmatpush1.bf16.msra.mxu1 %v4096_v25 }
 0x18b   :  { %1140 = vmatprep.subr.bf16.mxu1 %v4101_v26 }
 0x18e   :  { %1141 = vmatpush1.bf16.msra.mxu1 %v4099_v27 }
 0x18f   :  { %1142 = vmatprep.subr.bf16.mxu1 %v4104_v28 }
 0x191   :  { %1074 = vmatmul.mubr.bf16.gmra.mrb[72].mxu1 %v4472_v19 }
 0x192   :  { %1083 = vmatprep.mubr.bf16.mxu1 %v4210_v34  ;;  %1143 = vmatpush1.bf16.msra.mxu1 %v4102_v29 }
 0x193   :  { %1144 = vmatprep.subr.bf16.mxu1 %v4107_v30 }
 0x196   :  { %1145 = vmatpush1.bf16.msra.mxu1 %v4105_v6 }
 0x197   :  { %1146 = vmatprep.subr.bf16.mxu1 %v4110_v31 }
 0x199   :  { %1084 = vmatmul.mubr.bf16.gmra.mrb[76].mxu1 %v4466_v15 }
 0x19a   :  { %1093 = vmatprep.mubr.bf16.mxu1 %v4210_v34  ;;  %1147 = vmatpush1.bf16.msra.mxu1 %v4108_v32  ;;  %v4123_v32 = vld [vmem:[%s5163_s7 + $0x8] sm:$0xff]  }
 0x19b   :  { %1148 = vmatprep.subr.bf16.mxu1 %v4113_v33 }
 0x19e   :  { %1149 = vmatpush1.bf16.msra.mxu1 %v4111_v35 }
 0x19f   :  { %3529 = vmatprep.subr.bf16.mxu1 %v4114_v39 }
 0x1a1   :  { %1094 = vmatmul.mubr.bf16.gmra.mrb[80].mxu1 %v4498_v42 }
 0x1a2   :  { %1103 = vmatprep.mubr.bf16.mxu1 %v4210_v34 }
 0x1a9   :  { %1104 = vmatmul.mubr.bf16.gmra.mrb[84].mxu1 %v4492_v37 }
 0x1aa   :  { %1113 = vmatprep.mubr.bf16.mxu1 %v4210_v34 }
 0x1b1   :  { %1114 = vmatmul.mubr.bf16.gmra.mrb[88].mxu1 %v4523_v62 }
 0x1b2   :  { %1123 = vmatprep.mubr.bf16.mxu1 %v4210_v34 }
 0x1b9   :  { %1124 = vmatmul.mubr.bf16.gmra.mrb[92].mxu1 %v4518_v60 }
 0x1ba   :  { %1166 = vmatprep.mubr.bf16.mxu1 %v4210_v34 }
 0x1c1   :  { %1167 = vmatmul.mubr.bf16.vlgmr.msra.gmra.mrb[96].mxu1 %v4446_v59 }
 0x1c2   :  { %1176 = vmatprep.mubr.bf16.mxu1 %v4210_v34  ;;  %3530 = vmatpush3.bf16.msra.mxu1 %v4114_v39 }
 0x1c3   :  { %3531 = vmatprep.subr.bf16.mxu1 %v4115_v40 }
 0x1c6   :  { %3532 = vmatpush3.bf16.msra.mxu1 %v4115_v40 }
 0x1c7   :  { %3533 = vmatprep.subr.bf16.mxu1 %v4116_v41 }
 0x1c9   :  { %1177 = vmatmul.mubr.bf16.gmra.mrb[100].mxu1 %v4440_v55 }
 0x1ca   :  { %1186 = vmatprep.mubr.bf16.mxu1 %v4210_v34  ;;  %3534 = vmatpush3.bf16.msra.mxu1 %v4116_v41  ;;  %v4126_v41 = vld [vmem:[%s5163_s7 + $0x20] sm:$0xff]  }
 0x1cb   :  { %3535 = vmatprep.subr.bf16.mxu1 %v4117_v43 }
 0x1ce   :  { %3536 = vmatpush3.bf16.msra.mxu1 %v4117_v43 }
 0x1cf   :  { %3537 = vmatprep.subr.bf16.mxu1 %v4118_v44 }
 0x1d1   :  { %1187 = vmatmul.mubr.bf16.gmra.mrb[104].mxu1 %v4472_v19 }
 0x1d2   :  { %1196 = vmatprep.mubr.bf16.mxu1 %v4210_v34  ;;  %3538 = vmatpush3.bf16.msra.mxu1 %v4118_v44 }
 0x1d3   :  { %3539 = vmatprep.subr.bf16.mxu1 %v4119_v45 }
 0x1d4   :  { %v829_v47 = vpop.f32.mrb[0].mxu1 }
 0x1d5   :  { %v831_v48 = vpop.f32.mrb[1].mxu1 }
 0x1d6   :  { %v833_v49 = vpop.f32.mrb[2].mxu1  ;;  %3540 = vmatpush3.bf16.msra.mxu1 %v4119_v45 }
 0x1d7   :  { %v1344_v50 = vpack.c.bf16 %v833_v49, %v829_v47  ;;  %v835_v51 = vpop.f32.mrb[3].mxu1  ;;  %3541 = vmatprep.subr.bf16.mxu1 %v4120_v46  ;;  %v4128_v49 = vld [vmem:[%s5163_s7 + $0x30] sm:$0xff]  }
 0x1d8   :  { %v4699_v52 = vpack.c.bf16 %v835_v51, %v831_v48  ;;  %v4127_v48 = vld [vmem:[%s5163_s7 + $0x28] sm:$0xff]  }
 0x1d9   :  { %1197 = vmatmul.mubr.bf16.gmra.mrb[108].mxu1 %v4466_v15  ;;  %3561 = vmatprep.subr.bf16.mxu0 %v1344_v50 }
 0x1da   :  { %3562 = vmatpush3.bf16.msra.mxu0 %v1344_v50  ;;  %1206 = vmatprep.mubr.bf16.mxu1 %v4210_v34 }
 0x1db   :  { %3542 = vmatpush3.bf16.msra.mxu1 %v4120_v46 }
 0x1dc   :  { %v839_v54 = vpop.f32.mrb[4].mxu1  ;;  %3543 = vmatprep.subr.bf16.mxu1 %v4121_v53 }
 0x1dd   :  { %v841_v56 = vpop.f32.mrb[5].mxu1 }
 0x1de   :  { %v843_v57 = vpop.f32.mrb[6].mxu1 }
 0x1df   :  { %v1345_v58 = vpack.c.bf16 %v843_v57, %v839_v54  ;;  %v845_v36 = vpop.f32.mrb[7].mxu1  ;;  %3544 = vmatpush3.bf16.msra.mxu1 %v4121_v53  ;;  %v4129_v57 = vld [vmem:[%s5163_s7 + $0x38] sm:$0xff]  }
 0x1e0   :  { %v4706_v61 = vpack.c.bf16 %v845_v36, %v841_v56 }
 0x1e1   :  { %1207 = vmatmul.mubr.bf16.gmra.mrb[112].mxu1 %v4498_v42  ;;  %3563 = vmatprep.subr.bf16.mxu0 %v1345_v58 }
 0x1e2   :  { %3564 = vmatpush3.bf16.msra.mxu0 %v1345_v58  ;;  %1216 = vmatprep.mubr.bf16.mxu1 %v4210_v34  ;;  %v4130_v58 = vld [vmem:[%s5163_s7 + $0x40] sm:$0xff]  }
 0x1e4   :  { %v849_v38 = vpop.f32.mrb[8].mxu1 }
 0x1e5   :  { %v851_v63 = vpop.f32.mrb[9].mxu1 }
 0x1e6   :  { %v853_v0 = vpop.f32.mrb[10].mxu1 }
 0x1e7   :  { %v1346_v1 = vpack.c.bf16 %v853_v0, %v849_v38  ;;  %v855_v2 = vpop.f32.mrb[11].mxu1 }
 0x1e8   :  { %v4710_v3 = vpack.c.bf16 %v855_v2, %v851_v63  ;;  %v4131_v2 = vld [vmem:[%s5163_s7 + $0x48] sm:$0xff]  }
 0x1e9   :  { %1217 = vmatmul.mubr.bf16.gmra.mrb[116].mxu1 %v4492_v37  ;;  %3565 = vmatprep.subr.bf16.mxu0 %v1346_v1 }
 0x1ea   :  { %3566 = vmatpush3.bf16.msra.mxu0 %v1346_v1  ;;  %1226 = vmatprep.mubr.bf16.mxu1 %v4210_v34 }
 0x1ec   :  { %v859_v4 = vpop.f32.mrb[12].mxu1 }
 0x1ed   :  { %v861_v5 = vpop.f32.mrb[13].mxu1 }
 0x1ee   :  { %v863_v7 = vpop.f32.mrb[14].mxu1 }
 0x1ef   :  { %v1347_v8 = vpack.c.bf16 %v863_v7, %v859_v4  ;;  %v865_v10 = vpop.f32.mrb[15].mxu1 }
 0x1f0   :  { %v4714_v11 = vpack.c.bf16 %v865_v10, %v861_v5 }
 0x1f1   :  { %1227 = vmatmul.mubr.bf16.gmra.mrb[120].mxu1 %v4523_v62  ;;  %3567 = vmatprep.subr.bf16.mxu0 %v1347_v8 }
 0x1f2   :  { %3568 = vmatpush3.bf16.msra.mxu0 %v1347_v8  ;;  %1236 = vmatprep.mubr.bf16.mxu1 %v4210_v34 }
 0x1f4   :  { %v869_v12 = vpop.f32.mrb[16].mxu1 }
 0x1f5   :  { %v871_v13 = vpop.f32.mrb[17].mxu1 }
 0x1f6   :  { %v873_v14 = vpop.f32.mrb[18].mxu1 }
 0x1f7   :  { %v1348_v16 = vpack.c.bf16 %v873_v14, %v869_v12  ;;  %v875_v17 = vpop.f32.mrb[19].mxu1  ;;  %v4133_v12 = vld [vmem:[%s5163_s7 + $0x58] sm:$0xff]  }
 0x1f8   :  { %v4718_v18 = vpack.c.bf16 %v875_v17, %v871_v13  ;;  %v4134_v13 = vld [vmem:[%s5163_s7 + $0x60] sm:$0xff]  }
 0x1f9   :  { %1237 = vmatmul.mubr.bf16.gmra.mrb[124].mxu1 %v4518_v60  ;;  %3569 = vmatprep.subr.bf16.mxu0 %v1348_v16 }
 0x1fa   :  { %3545 = vmatprep.mubr.bf16.mxu1 %v4446_v59  ;;  %3570 = vmatpush3.bf16.msra.mxu0 %v1348_v16 }
 0x1fc   :  { %v879_v20 = vpop.f32.mrb[20].mxu1 }
 0x1fd   :  { %v881_v21 = vpop.f32.mrb[21].mxu1 }
 0x1fe   :  { %v883_v22 = vpop.f32.mrb[22].mxu1 }
 0x1ff   :  { %v1349_v23 = vpack.c.bf16 %v883_v22, %v879_v20  ;;  %v885_v24 = vpop.f32.mrb[23].mxu1  ;;  %v4135_v22 = vld [vmem:[%s5163_s7 + $0x68] sm:$0xff]  }
 0x200   :  { %v4722_v25 = vpack.c.bf16 %v885_v24, %v881_v21 }
 0x201   :  { %3546 = vmatmul.mubr.bf16.vlgmr.msra.gmra.mrb[128].mxu1 %v4440_v55  ;;  %3571 = vmatprep.subr.bf16.mxu0 %v1349_v23 }
 0x202   :  { %3549 = vmatprep.mubr.bf16.mxu1 %v4472_v19  ;;  %3572 = vmatpush3.bf16.msra.mxu0 %v1349_v23  ;;  %v4136_v23 = vld [vmem:[%s5163_s7 + $0x70] sm:$0xff]  }
 0x204   :  { %v889_v34 = vpop.f32.mrb[24].mxu1 }
 0x205   :  { %v891_v26 = vpop.f32.mrb[25].mxu1 }
 0x206   :  { %v893_v27 = vpop.f32.mrb[26].mxu1 }
 0x207   :  { %v1350_v28 = vpack.c.bf16 %v893_v27, %v889_v34  ;;  %v895_v29 = vpop.f32.mrb[27].mxu1 }
 0x208   :  { %v4726_v59 = vpack.c.bf16 %v895_v29, %v891_v26  ;;  %v4137_v29 = vld [vmem:[%s5163_s7 + $0x78] sm:$0xff]  }
 0x209   :  { %3550 = vmatmul.mubr.bf16.gmra.mrb[132].mxu1 %v4466_v15  ;;  %3573 = vmatprep.subr.bf16.mxu0 %v1350_v28  ;;  %v4124_v15 = vld [vmem:[%s5163_s7 + $0x10] sm:$0xff]  }
 0x20a   :  { %3553 = vmatprep.mubr.bf16.mxu1 %v4498_v42  ;;  %3574 = vmatpush3.bf16.msra.mxu0 %v1350_v28 }
 0x20c   :  { %v899_v30 = vpop.f32.mrb[28].mxu1 }
 0x20d   :  { %v901_v6 = vpop.f32.mrb[29].mxu1 }
 0x20e   :  { %v903_v55 = vpop.f32.mrb[30].mxu1 }
 0x20f   :  { %v1351_v9 = vpack.c.bf16 %v903_v55, %v899_v30  ;;  %v905_v31 = vpop.f32.mrb[31].mxu1 }
 0x210   :  { %v1536_v19 = vpack.c.bf16 %v905_v31, %v901_v6 }
 0x211   :  { %3554 = vmatmul.mubr.bf16.gmra.mrb[136].mxu1 %v4492_v37  ;;  %3575 = vmatprep.subr.bf16.mxu0 %v1351_v9 }
 0x212   :  { %3557 = vmatprep.mubr.bf16.mxu1 %v4523_v62  ;;  %3576 = vmatpush3.bf16.msra.mxu0 %v1351_v9  ;;  %v4125_v62 = vld [vmem:[%s5163_s7 + $0x18] sm:$0xff]  }
 0x213   :  { %3593 = vmatprep.subr.bf16.mxu0 %v4699_v52 }
 0x214   :  { %v942_v42 = vpop.f32.mrb[32].mxu1 }
 0x215   :  { %v944_v33 = vpop.f32.mrb[33].mxu1  ;;  %3578 = vmatmul.mubr.bf16.vlgmr.msra.gmra.mrb[16].mxu0 %v4123_v32  ;;  %v4139_v32 = vld [vmem:[%s5163_s7 + $0x88] sm:$0xff]  }
 0x216   :  { %v946_v35 = vpop.f32.mrb[34].mxu1  ;;  %3594 = vmatpush3.bf16.msra.mxu0 %v4699_v52  ;;  %3581 = vmatprep.mubr.bf16.mxu0 %v4124_v15  ;;  %v4140_v15 = vld [vmem:[%s5163_s7 + $0x90] sm:$0xff]  }
 0x217   :  { %v1715_v37 = vpack.c.bf16 %v946_v35, %v942_v42  ;;  %v948_v39 = vpop.f32.mrb[35].mxu1  ;;  %3595 = vmatprep.subr.bf16.mxu0 %v4706_v61 }
 0x218   :  { %v4741_v40 = vpack.c.bf16 %v948_v39, %v944_v33 }
 0x219   :  { %3558 = vmatmul.mubr.bf16.gmra.mrb[140].mxu1 %v4518_v60 }
 0x21a   :  { %3596 = vmatpush3.bf16.msra.mxu0 %v4706_v61 }
 0x21b   :  { %3597 = vmatprep.subr.bf16.mxu0 %v4710_v3 }
 0x21c   :  { %v952_v43 = vpop.f32.mrb[36].mxu1 }
 0x21d   :  { %v954_v44 = vpop.f32.mrb[37].mxu1  ;;  %3582 = vmatmul.mubr.bf16.gmra.mrb[20].mxu0 %v4125_v62 }
 0x21e   :  { %v956_v45 = vpop.f32.mrb[38].mxu1  ;;  %3598 = vmatpush3.bf16.msra.mxu0 %v4710_v3  ;;  %3585 = vmatprep.mubr.bf16.mxu0 %v4126_v41  ;;  %v4132_v3 = vld [vmem:[%s5163_s7 + $0x50] sm:$0xff]   ;;  %v4141_v41 = vld [vmem:[%s5163_s7 + $0x98] sm:$0xff]  }
 0x21f   :  { %v1716_v60 = vpack.c.bf16 %v956_v45, %v952_v43  ;;  %v958_v46 = vpop.f32.mrb[39].mxu1  ;;  %3599 = vmatprep.subr.bf16.mxu0 %v4714_v11  ;;  %v4142_v43 = vld [vmem:[%s5163_s7 + $0xa0] sm:$0xff]  }
 0x220   :  { %v4754_v47 = vpack.c.bf16 %v958_v46, %v954_v44 }
 0x222   :  { %3600 = vmatpush3.bf16.msra.mxu0 %v4714_v11 }
 0x223   :  { %3601 = vmatprep.subr.bf16.mxu0 %v4718_v18 }
 0x224   :  { %v962_v50 = vpop.f32.mrb[40].mxu1 }
 0x225   :  { %v964_v51 = vpop.f32.mrb[41].mxu1  ;;  %3586 = vmatmul.mubr.bf16.gmra.mrb[24].mxu0 %v4127_v48 }
 0x226   :  { %v966_v52 = vpop.f32.mrb[42].mxu1  ;;  %3602 = vmatpush3.bf16.msra.mxu0 %v4718_v18  ;;  %3589 = vmatprep.mubr.bf16.mxu0 %v4128_v49  ;;  %v4144_v49 = vld [vmem:[%s5163_s7 + $0xb0] sm:$0xff]  }
 0x227   :  { %v1717_v53 = vpack.c.bf16 %v966_v52, %v962_v50  ;;  %v968_v54 = vpop.f32.mrb[43].mxu1  ;;  %3603 = vmatprep.subr.bf16.mxu0 %v4722_v25 }
 0x228   :  { %v4766_v56 = vpack.c.bf16 %v968_v54, %v964_v51 }
 0x22a   :  { %3604 = vmatpush3.bf16.msra.mxu0 %v4722_v25 }
 0x22b   :  { %3605 = vmatprep.subr.bf16.mxu0 %v4726_v59 }
 0x22c   :  { %v972_v36 = vpop.f32.mrb[44].mxu1 }
 0x22d   :  { %v974_v61 = vpop.f32.mrb[45].mxu1  ;;  %3590 = vmatmul.mubr.bf16.gmra.mrb[28].mxu0 %v4129_v57  ;;  %v4145_v57 = vld [vmem:[%s5163_s7 + $0xb8] sm:$0xff]  }
 0x22e   :  { %v976_v38 = vpop.f32.mrb[46].mxu1  ;;  %3606 = vmatpush3.bf16.msra.mxu0 %v4726_v59  ;;  %3609 = vmatprep.mubr.bf16.mxu0 %v4130_v58  ;;  %v4138_v59 = vld [vmem:[%s5163_s7 + $0x80] sm:$0xff]  }
 0x22f   :  { %v1718_v63 = vpack.c.bf16 %v976_v38, %v972_v36  ;;  %v978_v0 = vpop.f32.mrb[47].mxu1  ;;  %3607 = vmatprep.subr.bf16.mxu0 %v1536_v19  ;;  %v4146_v58 = vld [vmem:[%s5163_s7 + $0xc0] sm:$0xff]  }
 0x230   :  { %v4777_v1 = vpack.c.bf16 %v978_v0, %v974_v61 }
 0x232   :  { %3608 = vmatpush3.bf16.msra.mxu0 %v1536_v19 }
 0x233   :  { %3625 = vmatprep.subr.bf16.mxu0 %v1715_v37 }
 0x234   :  { %v982_v4 = vpop.f32.mrb[48].mxu1 }
 0x235   :  { %v984_v5 = vpop.f32.mrb[49].mxu1  ;;  %3610 = vmatmul.mubr.bf16.vlgmr.msra.gmra.mrb[16].mxu0 %v4131_v2  ;;  %v4147_v2 = vld [vmem:[%s5163_s7 + $0xc8] sm:$0xff]  }
 0x236   :  { %v986_v7 = vpop.f32.mrb[50].mxu1  ;;  %3626 = vmatpush3.bf16.msra.mxu0 %v1715_v37  ;;  %3613 = vmatprep.mubr.bf16.mxu0 %v4132_v3  ;;  %v4148_v3 = vld [vmem:[%s5163_s7 + $0xd0] sm:$0xff]  }
 0x237   :  { %v1719_v8 = vpack.c.bf16 %v986_v7, %v982_v4  ;;  %v988_v10 = vpop.f32.mrb[51].mxu1  ;;  %3627 = vmatprep.subr.bf16.mxu0 %v1716_v60 }
 0x238   :  { %v4785_v11 = vpack.c.bf16 %v988_v10, %v984_v5 }
 0x23a   :  { %3628 = vmatpush3.bf16.msra.mxu0 %v1716_v60 }
 0x23b   :  { %3629 = vmatprep.subr.bf16.mxu0 %v1717_v53 }
 0x23c   :  { %v992_v14 = vpop.f32.mrb[52].mxu1 }
 0x23d   :  { %v994_v16 = vpop.f32.mrb[53].mxu1  ;;  %3614 = vmatmul.mubr.bf16.gmra.mrb[20].mxu0 %v4133_v12  ;;  %v4149_v12 = vld [vmem:[%s5163_s7 + $0xd8] sm:$0xff]  }
 0x23e   :  { %v996_v17 = vpop.f32.mrb[54].mxu1  ;;  %3630 = vmatpush3.bf16.msra.mxu0 %v1717_v53  ;;  %3617 = vmatprep.mubr.bf16.mxu0 %v4134_v13  ;;  %v4150_v13 = vld [vmem:[%s5163_s7 + $0xe0] sm:$0xff]  }
 0x23f   :  { %v1720_v18 = vpack.c.bf16 %v996_v17, %v992_v14  ;;  %v998_v20 = vpop.f32.mrb[55].mxu1  ;;  %3631 = vmatprep.subr.bf16.mxu0 %v1718_v63 }
 0x240   :  { %v4793_v21 = vpack.c.bf16 %v998_v20, %v994_v16 }
 0x242   :  { %3632 = vmatpush3.bf16.msra.mxu0 %v1718_v63 }
 0x243   :  { %3633 = vmatprep.subr.bf16.mxu0 %v1719_v8 }
 0x244   :  { %v1002_v24 = vpop.f32.mrb[56].mxu1 }
 0x245   :  { %v1004_v25 = vpop.f32.mrb[57].mxu1  ;;  %3618 = vmatmul.mubr.bf16.gmra.mrb[24].mxu0 %v4135_v22  ;;  %v4151_v22 = vld [vmem:[%s5163_s7 + $0xe8] sm:$0xff]  }
 0x246   :  { %v1006_v34 = vpop.f32.mrb[58].mxu1  ;;  %3634 = vmatpush3.bf16.msra.mxu0 %v1719_v8  ;;  %3621 = vmatprep.mubr.bf16.mxu0 %v4136_v23  ;;  %v4152_v23 = vld [vmem:[%s5163_s7 + $0xf0] sm:$0xff]  }
 0x247   :  { %v1721_v26 = vpack.c.bf16 %v1006_v34, %v1002_v24  ;;  %v1008_v27 = vpop.f32.mrb[59].mxu1  ;;  %3635 = vmatprep.subr.bf16.mxu0 %v1720_v18 }
 0x248   :  { %v4801_v28 = vpack.c.bf16 %v1008_v27, %v1004_v25  ;;  %v4184_v25 = vld [vmem:[%s5163_s7 + $0x220] sm:$0xff]  }
 0x249   :  { %3841 = vmatprep.mubr.bf16.mxu1 %v4184_v25 }
 0x24a   :  { %3636 = vmatpush3.bf16.msra.mxu0 %v1720_v18 }
 0x24b   :  { %3637 = vmatprep.subr.bf16.mxu0 %v1721_v26 }
 0x24c   :  { %v1012_v30 = vpop.f32.mrb[60].mxu1 }
 0x24d   :  { %v1014_v6 = vpop.f32.mrb[61].mxu1  ;;  %3622 = vmatmul.mubr.bf16.gmra.mrb[28].mxu0 %v4137_v29 }
 0x24e   :  { %v1016_v55 = vpop.f32.mrb[62].mxu1  ;;  %3638 = vmatpush3.bf16.msra.mxu0 %v1721_v26  ;;  %3641 = vmatprep.mubr.bf16.mxu0 %v4138_v59  ;;  %v4153_v59 = vld [vmem:[%s5163_s7 + $0xf8] sm:$0xff]  }
 0x24f   :  { %v1722_v9 = vpack.c.bf16 %v1016_v55, %v1012_v30  ;;  %v1018_v31 = vpop.f32.mrb[63].mxu1  ;;  %v4154_v30 = vld [vmem:[%s5163_s7 + $0x100] sm:$0xff]  }
 0x250   :  { %v1908_v19 = vpack.c.bf16 %v1018_v31, %v1014_v6 }
 0x251   :  { %3639 = vmatprep.subr.bf16.mxu0 %v1722_v9 }
 0x252   :  { %3640 = vmatpush3.bf16.msra.mxu0 %v1722_v9 }
 0x253   :  { %3657 = vmatprep.subr.bf16.mxu0 %v4741_v40 }
 0x254   :  { %v1055_v42 = vpop.f32.mrb[64].mxu1 }
 0x255   :  { %v1057_v33 = vpop.f32.mrb[65].mxu1  ;;  %3642 = vmatmul.mubr.bf16.vlgmr.msra.gmra.mrb[16].mxu0 %v4139_v32 }
 0x256   :  { %v1059_v35 = vpop.f32.mrb[66].mxu1  ;;  %3658 = vmatpush3.bf16.msra.mxu0 %v4741_v40  ;;  %3645 = vmatprep.mubr.bf16.mxu0 %v4140_v15  ;;  %v4155_v15 = vld [vmem:[%s5163_s7 + $0x108] sm:$0xff]  }
 0x257   :  { %v2087_v37 = vpack.c.bf16 %v1059_v35, %v1055_v42  ;;  %v1061_v39 = vpop.f32.mrb[67].mxu1  ;;  %3659 = vmatprep.subr.bf16.mxu0 %v4754_v47  ;;  %v4156_v42 = vld [vmem:[%s5163_s7 + $0x110] sm:$0xff]  }
 0x258   :  { %v4818_v62 = vpack.c.bf16 %v1061_v39, %v1057_v33 }
 0x25a   :  { %3660 = vmatpush3.bf16.msra.mxu0 %v4754_v47  ;;  %v4143_v47 = vld [vmem:[%s5163_s7 + $0xa8] sm:$0xff]  }
 0x25b   :  { %3661 = vmatprep.subr.bf16.mxu0 %v4766_v56 }
 0x25c   :  { %v1065_v40 = vpop.f32.mrb[68].mxu1 }
 0x25d   :  { %v1067_v44 = vpop.f32.mrb[69].mxu1  ;;  %3646 = vmatmul.mubr.bf16.gmra.mrb[20].mxu0 %v4141_v41 }
 0x25e   :  { %v1069_v45 = vpop.f32.mrb[70].mxu1  ;;  %3662 = vmatpush3.bf16.msra.mxu0 %v4766_v56  ;;  %3649 = vmatprep.mubr.bf16.mxu0 %v4142_v43 }
 0x25f   :  { %v2088_v60 = vpack.c.bf16 %v1069_v45, %v1065_v40  ;;  %v1071_v46 = vpop.f32.mrb[71].mxu1  ;;  %3663 = vmatprep.subr.bf16.mxu0 %v4777_v1  ;;  %v4157_v40 = vld [vmem:[%s5163_s7 + $0x118] sm:$0xff]  }
 0x260   :  { %v4830_v48 = vpack.c.bf16 %v1071_v46, %v1067_v44  ;;  %v4158_v44 = vld [vmem:[%s5163_s7 + $0x120] sm:$0xff]  }
 0x262   :  { %3664 = vmatpush3.bf16.msra.mxu0 %v4777_v1 }
 0x263   :  { %3665 = vmatprep.subr.bf16.mxu0 %v4785_v11 }
 0x264   :  { %v1075_v50 = vpop.f32.mrb[72].mxu1 }
 0x265   :  { %v1077_v51 = vpop.f32.mrb[73].mxu1  ;;  %3650 = vmatmul.mubr.bf16.gmra.mrb[24].mxu0 %v4143_v47 }
 0x266   :  { %v1079_v52 = vpop.f32.mrb[74].mxu1  ;;  %3666 = vmatpush3.bf16.msra.mxu0 %v4785_v11  ;;  %3653 = vmatprep.mubr.bf16.mxu0 %v4144_v49 }
 0x267   :  { %v2089_v53 = vpack.c.bf16 %v1079_v52, %v1075_v50  ;;  %v1081_v54 = vpop.f32.mrb[75].mxu1  ;;  %3667 = vmatprep.subr.bf16.mxu0 %v4793_v21  ;;  %v4160_v50 = vld [vmem:[%s5163_s7 + $0x130] sm:$0xff]  }
 0x268   :  { %v4842_v56 = vpack.c.bf16 %v1081_v54, %v1077_v51 }
 0x26a   :  { %3668 = vmatpush3.bf16.msra.mxu0 %v4793_v21 }
 0x26b   :  { %3669 = vmatprep.subr.bf16.mxu0 %v4801_v28 }
 0x26c   :  { %v1085_v36 = vpop.f32.mrb[76].mxu1 }
 0x26d   :  { %v1087_v61 = vpop.f32.mrb[77].mxu1  ;;  %3654 = vmatmul.mubr.bf16.gmra.mrb[28].mxu0 %v4145_v57 }
 0x26e   :  { %v1089_v38 = vpop.f32.mrb[78].mxu1  ;;  %3670 = vmatpush3.bf16.msra.mxu0 %v4801_v28  ;;  %3673 = vmatprep.mubr.bf16.mxu0 %v4146_v58  ;;  %v4161_v58 = vld [vmem:[%s5163_s7 + $0x138] sm:$0xff]  }
 0x26f   :  { %v2090_v63 = vpack.c.bf16 %v1089_v38, %v1085_v36  ;;  %v1091_v0 = vpop.f32.mrb[79].mxu1  ;;  %3671 = vmatprep.subr.bf16.mxu0 %v1908_v19  ;;  %v4162_v36 = vld [vmem:[%s5163_s7 + $0x140] sm:$0xff]  }
 0x270   :  { %v4853_v1 = vpack.c.bf16 %v1091_v0, %v1087_v61 }
 0x272   :  { %3672 = vmatpush3.bf16.msra.mxu0 %v1908_v19 }
 0x273   :  { %3689 = vmatprep.subr.bf16.mxu0 %v2087_v37 }
 0x274   :  { %v1095_v4 = vpop.f32.mrb[80].mxu1 }
 0x275   :  { %v1097_v5 = vpop.f32.mrb[81].mxu1  ;;  %3674 = vmatmul.mubr.bf16.vlgmr.msra.gmra.mrb[16].mxu0 %v4147_v2 }
 0x276   :  { %v1099_v7 = vpop.f32.mrb[82].mxu1  ;;  %3690 = vmatpush3.bf16.msra.mxu0 %v2087_v37  ;;  %3677 = vmatprep.mubr.bf16.mxu0 %v4148_v3  ;;  %v4163_v3 = vld [vmem:[%s5163_s7 + $0x148] sm:$0xff]  }
 0x277   :  { %v2091_v8 = vpack.c.bf16 %v1099_v7, %v1095_v4  ;;  %v1101_v10 = vpop.f32.mrb[83].mxu1  ;;  %3691 = vmatprep.subr.bf16.mxu0 %v2088_v60  ;;  %v4164_v4 = vld [vmem:[%s5163_s7 + $0x150] sm:$0xff]  }
 0x278   :  { %v4861_v11 = vpack.c.bf16 %v1101_v10, %v1097_v5 }
 0x27a   :  { %3692 = vmatpush3.bf16.msra.mxu0 %v2088_v60 }
 0x27b   :  { %3693 = vmatprep.subr.bf16.mxu0 %v2089_v53 }
 0x27c   :  { %v1105_v14 = vpop.f32.mrb[84].mxu1 }
 0x27d   :  { %v1107_v16 = vpop.f32.mrb[85].mxu1  ;;  %3678 = vmatmul.mubr.bf16.gmra.mrb[20].mxu0 %v4149_v12 }
 0x27e   :  { %v1109_v17 = vpop.f32.mrb[86].mxu1  ;;  %3694 = vmatpush3.bf16.msra.mxu0 %v2089_v53  ;;  %3681 = vmatprep.mubr.bf16.mxu0 %v4150_v13  ;;  %v4165_v13 = vld [vmem:[%s5163_s7 + $0x158] sm:$0xff]  }
 0x27f   :  { %v2092_v18 = vpack.c.bf16 %v1109_v17, %v1105_v14  ;;  %v1111_v20 = vpop.f32.mrb[87].mxu1  ;;  %3695 = vmatprep.subr.bf16.mxu0 %v2090_v63  ;;  %v4166_v14 = vld [vmem:[%s5163_s7 + $0x160] sm:$0xff]  }
 0x280   :  { %v4869_v21 = vpack.c.bf16 %v1111_v20, %v1107_v16 }
 0x282   :  { %3696 = vmatpush3.bf16.msra.mxu0 %v2090_v63 }
 0x283   :  { %3697 = vmatprep.subr.bf16.mxu0 %v2091_v8 }
 0x284   :  { %v1115_v24 = vpop.f32.mrb[88].mxu1 }
 0x285   :  { %v1117_v34 = vpop.f32.mrb[89].mxu1  ;;  %3682 = vmatmul.mubr.bf16.gmra.mrb[24].mxu0 %v4151_v22 }
 0x286   :  { %v1119_v26 = vpop.f32.mrb[90].mxu1  ;;  %3698 = vmatpush3.bf16.msra.mxu0 %v2091_v8  ;;  %3685 = vmatprep.mubr.bf16.mxu0 %v4152_v23  ;;  %v4167_v23 = vld [vmem:[%s5163_s7 + $0x168] sm:$0xff]  }
 0x287   :  { %v2093_v27 = vpack.c.bf16 %v1119_v26, %v1115_v24  ;;  %v1121_v28 = vpop.f32.mrb[91].mxu1  ;;  %3699 = vmatprep.subr.bf16.mxu0 %v2092_v18  ;;  %v4168_v24 = vld [vmem:[%s5163_s7 + $0x170] sm:$0xff]  }
 0x288   :  { %v4880_v29 = vpack.c.bf16 %v1121_v28, %v1117_v34 }
 0x28a   :  { %3700 = vmatpush3.bf16.msra.mxu0 %v2092_v18 }
 0x28b   :  { %3701 = vmatprep.subr.bf16.mxu0 %v2093_v27 }
 0x28c   :  { %v1125_v6 = vpop.f32.mrb[92].mxu1 }
 0x28d   :  { %v1127_v55 = vpop.f32.mrb[93].mxu1  ;;  %3686 = vmatmul.mubr.bf16.gmra.mrb[28].mxu0 %v4153_v59  ;;  %v4169_v59 = vld [vmem:[%s5163_s7 + $0x178] sm:$0xff]  }
 0x28e   :  { %v1129_v9 = vpop.f32.mrb[94].mxu1  ;;  %3702 = vmatpush3.bf16.msra.mxu0 %v2093_v27  ;;  %3705 = vmatprep.mubr.bf16.mxu0 %v4154_v30  ;;  %v4170_v30 = vld [vmem:[%s5163_s7 + $0x180] sm:$0xff]  }
 0x28f   :  { %v2094_v31 = vpack.c.bf16 %v1129_v9, %v1125_v6  ;;  %v1131_v19 = vpop.f32.mrb[95].mxu1 }
 0x290   :  { %v2280_v32 = vpack.c.bf16 %v1131_v19, %v1127_v55 }
 0x291   :  { %3703 = vmatprep.subr.bf16.mxu0 %v2094_v31 }
 0x292   :  { %3704 = vmatpush3.bf16.msra.mxu0 %v2094_v31 }
 0x293   :  { %3721 = vmatprep.subr.bf16.mxu0 %v4818_v62 }
 0x294   :  { %v1168_v33 = vpop.f32.mrb[96].mxu1 }
 0x295   :  { %v1170_v35 = vpop.f32.mrb[97].mxu1  ;;  %3706 = vmatmul.mubr.bf16.vlgmr.msra.gmra.mrb[16].mxu0 %v4155_v15  ;;  %v4171_v15 = vld [vmem:[%s5163_s7 + $0x188] sm:$0xff]  }
 0x296   :  { %v1172_v37 = vpop.f32.mrb[98].mxu1  ;;  %3722 = vmatpush3.bf16.msra.mxu0 %v4818_v62  ;;  %3709 = vmatprep.mubr.bf16.mxu0 %v4156_v42  ;;  %v4172_v42 = vld [vmem:[%s5163_s7 + $0x190] sm:$0xff]  }
 0x297   :  { %v2459_v39 = vpack.c.bf16 %v1172_v37, %v1168_v33  ;;  %v1174_v41 = vpop.f32.mrb[99].mxu1  ;;  %3723 = vmatprep.subr.bf16.mxu0 %v4830_v48 }
 0x298   :  { %v4897_v43 = vpack.c.bf16 %v1174_v41, %v1170_v35 }
 0x29a   :  { %3724 = vmatpush3.bf16.msra.mxu0 %v4830_v48  ;;  %v4159_v48 = vld [vmem:[%s5163_s7 + $0x128] sm:$0xff]  }
 0x29b   :  { %3725 = vmatprep.subr.bf16.mxu0 %v4842_v56 }
 0x29c   :  { %v1178_v62 = vpop.f32.mrb[100].mxu1 }
 0x29d   :  { %v1180_v45 = vpop.f32.mrb[101].mxu1  ;;  %3710 = vmatmul.mubr.bf16.gmra.mrb[20].mxu0 %v4157_v40 }
 0x29e   :  { %v1182_v60 = vpop.f32.mrb[102].mxu1  ;;  %3726 = vmatpush3.bf16.msra.mxu0 %v4842_v56  ;;  %3713 = vmatprep.mubr.bf16.mxu0 %v4158_v44  ;;  %v4173_v44 = vld [vmem:[%s5163_s7 + $0x198] sm:$0xff]  }
 0x29f   :  { %v2460_v46 = vpack.c.bf16 %v1182_v60, %v1178_v62  ;;  %v1184_v47 = vpop.f32.mrb[103].mxu1  ;;  %3727 = vmatprep.subr.bf16.mxu0 %v4853_v1  ;;  %v4174_v62 = vld [vmem:[%s5163_s7 + $0x1a0] sm:$0xff]  }
 0x2a0   :  { %v4909_v49 = vpack.c.bf16 %v1184_v47, %v1180_v45 }
 0x2a2   :  { %3728 = vmatpush3.bf16.msra.mxu0 %v4853_v1 }
 0x2a3   :  { %3729 = vmatprep.subr.bf16.mxu0 %v4861_v11 }
 0x2a4   :  { %v1188_v51 = vpop.f32.mrb[104].mxu1 }
 0x2a5   :  { %v1190_v52 = vpop.f32.mrb[105].mxu1  ;;  %3714 = vmatmul.mubr.bf16.gmra.mrb[24].mxu0 %v4159_v48  ;;  %v4175_v48 = vld [vmem:[%s5163_s7 + $0x1a8] sm:$0xff]  }
 0x2a6   :  { %v1192_v53 = vpop.f32.mrb[106].mxu1  ;;  %3730 = vmatpush3.bf16.msra.mxu0 %v4861_v11  ;;  %3717 = vmatprep.mubr.bf16.mxu0 %v4160_v50  ;;  %v4176_v50 = vld [vmem:[%s5163_s7 + $0x1b0] sm:$0xff]  }
 0x2a7   :  { %v2461_v54 = vpack.c.bf16 %v1192_v53, %v1188_v51  ;;  %v1194_v56 = vpop.f32.mrb[107].mxu1  ;;  %3731 = vmatprep.subr.bf16.mxu0 %v4869_v21 }
 0x2a8   :  { %v4921_v57 = vpack.c.bf16 %v1194_v56, %v1190_v52 }
 0x2aa   :  { %3732 = vmatpush3.bf16.msra.mxu0 %v4869_v21 }
 0x2ab   :  { %3733 = vmatprep.subr.bf16.mxu0 %v4880_v29 }
 0x2ac   :  { %v1198_v61 = vpop.f32.mrb[108].mxu1 }
 0x2ad   :  { %v1200_v38 = vpop.f32.mrb[109].mxu1  ;;  %3718 = vmatmul.mubr.bf16.gmra.mrb[28].mxu0 %v4161_v58  ;;  %v4177_v58 = vld [vmem:[%s5163_s7 + $0x1b8] sm:$0xff]  }
 0x2ae   :  { %v1202_v63 = vpop.f32.mrb[110].mxu1  ;;  %3734 = vmatpush3.bf16.msra.mxu0 %v4880_v29  ;;  %3737 = vmatprep.mubr.bf16.mxu0 %v4162_v36  ;;  %v4178_v36 = vld [vmem:[%s5163_s7 + $0x1c0] sm:$0xff]  }
 0x2af   :  { %v2462_v0 = vpack.c.bf16 %v1202_v63, %v1198_v61  ;;  %v1204_v1 = vpop.f32.mrb[111].mxu1  ;;  %3735 = vmatprep.subr.bf16.mxu0 %v2280_v32 }
 0x2b0   :  { %v4932_v2 = vpack.c.bf16 %v1204_v1, %v1200_v38 }
 0x2b2   :  { %3736 = vmatpush3.bf16.msra.mxu0 %v2280_v32 }
 0x2b3   :  { %3753 = vmatprep.subr.bf16.mxu0 %v2459_v39 }
 0x2b4   :  { %v1208_v5 = vpop.f32.mrb[112].mxu1 }
 0x2b5   :  { %v1210_v7 = vpop.f32.mrb[113].mxu1  ;;  %3738 = vmatmul.mubr.bf16.vlgmr.msra.gmra.mrb[16].mxu0 %v4163_v3  ;;  %v4179_v3 = vld [vmem:[%s5163_s7 + $0x1c8] sm:$0xff]  }
 0x2b6   :  { %v1212_v8 = vpop.f32.mrb[114].mxu1  ;;  %3754 = vmatpush3.bf16.msra.mxu0 %v2459_v39  ;;  %3741 = vmatprep.mubr.bf16.mxu0 %v4164_v4  ;;  %v4180_v4 = vld [vmem:[%s5163_s7 + $0x1d0] sm:$0xff]  }
 0x2b7   :  { %v2463_v10 = vpack.c.bf16 %v1212_v8, %v1208_v5  ;;  %v1214_v11 = vpop.f32.mrb[115].mxu1  ;;  %3755 = vmatprep.subr.bf16.mxu0 %v2460_v46  ;;  %v4185_v5 = vld [vmem:[%s5163_s7 + $0x228] sm:$0xff]   ;;  %v4181_v8 = vld [vmem:[%s5163_s7 + $0x1d8] sm:$0xff]  }
 0x2b8   :  { %v4940_v12 = vpack.c.bf16 %v1214_v11, %v1210_v7  ;;  %v4188_v7 = vld [vmem:[%s5163_s7 + $0x230] sm:$0xff]   ;;  %v4189_v11 = vld [vmem:[%s5163_s7 + $0x238] sm:$0xff]  }
 0x2ba   :  { %3756 = vmatpush3.bf16.msra.mxu0 %v2460_v46 }
 0x2bb   :  { %3757 = vmatprep.subr.bf16.mxu0 %v2461_v54 }
 0x2bc   :  { %v1218_v16 = vpop.f32.mrb[116].mxu1 }
 0x2bd   :  { %v1220_v17 = vpop.f32.mrb[117].mxu1  ;;  %3742 = vmatmul.mubr.bf16.gmra.mrb[20].mxu0 %v4165_v13  ;;  %v4186_v13 = vld [vmem:[%s5163_s7 + $0x1f0] sm:$0xff]  }
 0x2be   :  { %v1222_v18 = vpop.f32.mrb[118].mxu1  ;;  %3758 = vmatpush3.bf16.msra.mxu0 %v2461_v54  ;;  %3745 = vmatprep.mubr.bf16.mxu0 %v4166_v14  ;;  %v4187_v14 = vld [vmem:[%s5163_s7 + $0x1f8] sm:$0xff]  }
 0x2bf   :  { %v2464_v20 = vpack.c.bf16 %v1222_v18, %v1218_v16  ;;  %v1224_v21 = vpop.f32.mrb[119].mxu1  ;;  %3759 = vmatprep.subr.bf16.mxu0 %v2462_v0  ;;  %v4190_v16 = vld [vmem:[%s5163_s7 + $0x200] sm:$0xff]   ;;  %v4192_v18 = vld [vmem:[%s5163_s7 + $0x210] sm:$0xff]  }
 0x2c0   :  { %v4948_v22 = vpack.c.bf16 %v1224_v21, %v1220_v17  ;;  %v4191_v17 = vld [vmem:[%s5163_s7 + $0x208] sm:$0xff]  }
 0x2c2   :  { %3760 = vmatpush3.bf16.msra.mxu0 %v2462_v0 }
 0x2c3   :  { %3761 = vmatprep.subr.bf16.mxu0 %v2463_v10 }
 0x2c4   :  { %v1228_v25 = vpop.f32.mrb[120].mxu1 }
 0x2c5   :  { %v1230_v34 = vpop.f32.mrb[121].mxu1  ;;  %3746 = vmatmul.mubr.bf16.gmra.mrb[24].mxu0 %v4167_v23 }
 0x2c6   :  { %v1232_v26 = vpop.f32.mrb[122].mxu1  ;;  %3762 = vmatpush3.bf16.msra.mxu0 %v2463_v10  ;;  %3749 = vmatprep.mubr.bf16.mxu0 %v4168_v24  ;;  %v4182_v10 = vld [vmem:[%s5163_s7 + $0x1e0] sm:$0xff]  }
 0x2c7   :  { %v2465_v27 = vpack.c.bf16 %v1232_v26, %v1228_v25  ;;  %v1234_v28 = vpop.f32.mrb[123].mxu1  ;;  %3763 = vmatprep.subr.bf16.mxu0 %v2464_v20 }
 0x2c8   :  { %v4956_v29 = vpack.c.bf16 %v1234_v28, %v1230_v34 }
 0x2ca   :  { %3764 = vmatpush3.bf16.msra.mxu0 %v2464_v20  ;;  %v4193_v20 = vld [vmem:[%s5163_s7 + $0x218] sm:$0xff]  }
 0x2cb   :  { %3765 = vmatprep.subr.bf16.mxu0 %v2465_v27 }
 0x2cc   :  { %v1238_v6 = vpop.f32.mrb[124].mxu1 }
 0x2cd   :  { %v1240_v55 = vpop.f32.mrb[125].mxu1  ;;  %3750 = vmatmul.mubr.bf16.gmra.mrb[28].mxu0 %v4169_v59 }
 0x2ce   :  { %v1242_v9 = vpop.f32.mrb[126].mxu1  ;;  %3766 = vmatpush3.bf16.msra.mxu0 %v2465_v27  ;;  %3769 = vmatprep.mubr.bf16.mxu0 %v4170_v30 }
 0x2cf   :  { %v2466_v31 = vpack.c.bf16 %v1242_v9, %v1238_v6  ;;  %v1244_v19 = vpop.f32.mrb[127].mxu1  ;;  %v4195_v6 = vld [vmem:[%s5157_s0 + $0x40] sm:$0xff] }
 0x2d0   :  { %v4964_v32 = vpack.c.bf16 %v1244_v19, %v1240_v55 }
 0x2d1   :  { %3767 = vmatprep.subr.bf16.mxu0 %v2466_v31 }
 0x2d2   :  { %3768 = vmatpush3.bf16.msra.mxu0 %v2466_v31  ;;  %v4196_v31 = vld [vmem:[%s5157_s0 + $0x58] sm:$0xff] }
 0x2d3   :  { %3785 = vmatprep.subr.bf16.mxu0 %v4897_v43 }
 0x2d4   :  { %v3547_v33 = vpop.f32.mrb[128].mxu1 }
 0x2d5   :  { %v1281_v35 = vpop.f32.mrb[129].mxu1  ;;  %3770 = vmatmul.mubr.bf16.vlgmr.msra.gmra.mrb[16].mxu0 %v4171_v15 }
 0x2d6   :  { %v3548_v37 = vpop.f32.mrb[130].mxu1  ;;  %3786 = vmatpush3.bf16.msra.mxu0 %v4897_v43  ;;  %3773 = vmatprep.mubr.bf16.mxu0 %v4172_v42  ;;  %v4197_v42 = vld [vmem:[%s5157_s0 + $0x48] sm:$0xff] }
 0x2d7   :  { %v4974_v39 = vpack.c.bf16 %v3548_v37, %v3547_v33  ;;  %v1284_v41 = vpop.f32.mrb[131].mxu1  ;;  %3787 = vmatprep.subr.bf16.mxu0 %v4909_v49 }
 0x2d8   :  { %v2831_v40 = vpack.c.bf16 %v1284_v41, %v1281_v35 }
 0x2da   :  { %3788 = vmatpush3.bf16.msra.mxu0 %v4909_v49  ;;  %3849 = vmatprep.subr.bf16.mxu1 %v2831_v40 }
 0x2db   :  { %3789 = vmatprep.subr.bf16.mxu0 %v4921_v57  ;;  %3857 = vmatpush3.bf16.msra.mxu1 %v2831_v40 }
 0x2dc   :  { %v3551_v43 = vpop.f32.mrb[132].mxu1  ;;  %3850 = vmatprep.subr.bf16.mxu1 %v4974_v39 }
 0x2dd   :  { %v1297_v45 = vpop.f32.mrb[133].mxu1  ;;  %3774 = vmatmul.mubr.bf16.gmra.mrb[20].mxu0 %v4173_v44 }
 0x2de   :  { %v3552_v60 = vpop.f32.mrb[134].mxu1  ;;  %3790 = vmatpush3.bf16.msra.mxu0 %v4921_v57  ;;  %3777 = vmatprep.mubr.bf16.mxu0 %v4174_v62 }
 0x2df   :  { %v4987_v46 = vpack.c.bf16 %v3552_v60, %v3551_v43  ;;  %v1300_v47 = vpop.f32.mrb[135].mxu1  ;;  %3791 = vmatprep.subr.bf16.mxu0 %v4932_v2  ;;  %3858 = vmatpush3.bf16.msra.mxu1 %v4974_v39  ;;  %v4199_v43 = vld [vmem:[%s5157_s0 + $0x60] sm:$0xff] }
 0x2e0   :  { %v2833_v49 = vpack.c.bf16 %v1300_v47, %v1297_v45 }
 0x2e2   :  { %3792 = vmatpush3.bf16.msra.mxu0 %v4932_v2  ;;  %3851 = vmatprep.subr.bf16.mxu1 %v2833_v49 }
 0x2e3   :  { %3793 = vmatprep.subr.bf16.mxu0 %v4940_v12  ;;  %3859 = vmatpush3.bf16.msra.mxu1 %v2833_v49 }
 0x2e4   :  { %v3555_v51 = vpop.f32.mrb[136].mxu1  ;;  %3852 = vmatprep.subr.bf16.mxu1 %v4987_v46 }
 0x2e5   :  { %v1313_v52 = vpop.f32.mrb[137].mxu1  ;;  %3778 = vmatmul.mubr.bf16.gmra.mrb[24].mxu0 %v4175_v48 }
 0x2e6   :  { %v3556_v53 = vpop.f32.mrb[138].mxu1  ;;  %3794 = vmatpush3.bf16.msra.mxu0 %v4940_v12  ;;  %3781 = vmatprep.mubr.bf16.mxu0 %v4176_v50  ;;  %v4183_v12 = vld [vmem:[%s5163_s7 + $0x1e8] sm:$0xff]  }
 0x2e7   :  { %v2836_v54 = vpack.c.bf16 %v3556_v53, %v3555_v51  ;;  %v1316_v56 = vpop.f32.mrb[139].mxu1  ;;  %3795 = vmatprep.subr.bf16.mxu0 %v4948_v22  ;;  %3860 = vmatpush3.bf16.msra.mxu1 %v4987_v46  ;;  %v4201_v50 = vld [vmem:[%s5157_s0 + $0x68] sm:$0xff] }
 0x2e8   :  { %v2835_v57 = vpack.c.bf16 %v1316_v56, %v1313_v52 }
 0x2ea   :  { %3796 = vmatpush3.bf16.msra.mxu0 %v4948_v22  ;;  %3853 = vmatprep.subr.bf16.mxu1 %v2835_v57 }
 0x2eb   :  { %3797 = vmatprep.subr.bf16.mxu0 %v4956_v29  ;;  %3861 = vmatpush3.bf16.msra.mxu1 %v2835_v57 }
 0x2ec   :  { %v3559_v61 = vpop.f32.mrb[140].mxu1  ;;  %3854 = vmatprep.subr.bf16.mxu1 %v2836_v54 }
 0x2ed   :  { %v1329_v38 = vpop.f32.mrb[141].mxu1  ;;  %3782 = vmatmul.mubr.bf16.gmra.mrb[28].mxu0 %v4177_v58 }
 0x2ee   :  { %v3560_v63 = vpop.f32.mrb[142].mxu1  ;;  %3798 = vmatpush3.bf16.msra.mxu0 %v4956_v29  ;;  %3801 = vmatprep.mubr.bf16.mxu0 %v4178_v36  ;;  %v4194_v29 = vld [vmem:[%s5157_s0 + $0x50] sm:$0xff] }
 0x2ef   :  { %v2838_v0 = vpack.c.bf16 %v3560_v63, %v3559_v61  ;;  %v1332_v1 = vpop.f32.mrb[143].mxu1  ;;  %3799 = vmatprep.subr.bf16.mxu0 %v4964_v32  ;;  %3862 = vmatpush3.bf16.msra.mxu1 %v2836_v54  ;;  %v4203_v61 = vld [vmem:[%s5157_s0] sm:$0xff] }
 0x2f0   :  { %v2837_v2 = vpack.c.bf16 %v1332_v1, %v1329_v38 }
 0x2f2   :  { %3800 = vmatpush3.bf16.msra.mxu0 %v4964_v32  ;;  %3855 = vmatprep.subr.bf16.mxu1 %v2837_v2 }
 0x2f3   :  { %3817 = vmatprep.subr.bf16.mxu0 %v2831_v40  ;;  %3863 = vmatpush3.bf16.msra.mxu1 %v2837_v2 }
 0x2f4   :  { %3856 = vmatprep.subr.bf16.mxu1 %v2838_v0 }
 0x2f5   :  { %3802 = vmatmul.mubr.bf16.vlgmr.msra.gmra.mrb[16].mxu0 %v4179_v3  ;;  %v4205_v3 = vld [vmem:[%s5157_s0 + $0x8] sm:$0xff] }
 0x2f6   :  { %3818 = vmatpush3.bf16.msra.mxu0 %v2831_v40  ;;  %3805 = vmatprep.mubr.bf16.mxu0 %v4180_v4  ;;  %v4198_v40 = vld [vmem:[%s5157_s0 + $0x70] sm:$0xff] }
 0x2f7   :  { %3819 = vmatprep.subr.bf16.mxu0 %v4974_v39  ;;  %3864 = vmatpush3.bf16.msra.mxu1 %v2838_v0 }
 0x2fa   :  { %3820 = vmatpush3.bf16.msra.mxu0 %v4974_v39  ;;  %3842 = vmatmul.mubr.bf16.vlgmr.msra.gmra.mrb[144].mxu1 %v4185_v5 }
 0x2fb   :  { %3821 = vmatprep.subr.bf16.mxu0 %v2833_v49  ;;  %3845 = vmatprep.mubr.bf16.mxu1 %v4188_v7  ;;  %v4206_v7 = vld [vmem:[%s5157_s0 + $0x30] sm:$0xff] }
 0x2fd   :  { %3806 = vmatmul.mubr.bf16.gmra.mrb[20].mxu0 %v4181_v8 }
 0x2fe   :  { %3822 = vmatpush3.bf16.msra.mxu0 %v2833_v49  ;;  %3809 = vmatprep.mubr.bf16.mxu0 %v4182_v10 }
 0x2ff   :  { %3823 = vmatprep.subr.bf16.mxu0 %v4987_v46 }
 0x302   :  { %3824 = vmatpush3.bf16.msra.mxu0 %v4987_v46  ;;  %3846 = vmatmul.mubr.bf16.gmra.mrb[148].mxu1 %v4189_v11  ;;  %v4200_v46 = vld [vmem:[%s5157_s0 + $0x78] sm:$0xff]  ;;  %v4207_v11 = vld [vmem:[%s5157_s0 + $0x20] sm:$0xff] }
 0x303   :  { %3825 = vmatprep.subr.bf16.mxu0 %v2835_v57 }
 0x305   :  { %3810 = vmatmul.mubr.bf16.gmra.mrb[24].mxu0 %v4183_v12 }
 0x306   :  { %3826 = vmatpush3.bf16.msra.mxu0 %v2835_v57  ;;  %3813 = vmatprep.mubr.bf16.mxu0 %v4186_v13  ;;  %v4202_v57 = vld [vmem:[%s5157_s0 + $0x10] sm:$0xff] }
 0x307   :  { %3827 = vmatprep.subr.bf16.mxu0 %v2836_v54 }
 0x30a   :  { %3828 = vmatpush3.bf16.msra.mxu0 %v2836_v54 }
 0x30b   :  { %3829 = vmatprep.subr.bf16.mxu0 %v2837_v2 }
 0x30d   :  { %3814 = vmatmul.mubr.bf16.gmra.mrb[28].mxu0 %v4187_v14  ;;  %v4208_v14 = vld [vmem:[%s5157_s0 + $0x38] sm:$0xff] }
 0x30e   :  { %3830 = vmatpush3.bf16.msra.mxu0 %v2837_v2  ;;  %3833 = vmatprep.mubr.bf16.mxu0 %v4190_v16 }
 0x30f   :  { %3831 = vmatprep.subr.bf16.mxu0 %v2838_v0 }
 0x312   :  { %3832 = vmatpush3.bf16.msra.mxu0 %v2838_v0  ;;  %v4204_v0 = vld [vmem:[%s5157_s0 + $0x18] sm:$0xff] }
 0x315   :  { %3834 = vmatmul.mubr.bf16.vlgmr.msra.gmra.mrb[16].mxu0 %v4191_v17 }
 0x316   :  { %3837 = vmatprep.mubr.bf16.mxu0 %v4192_v18  ;;  %v4209_v18 = vld [vmem:[%s5157_s0 + $0x28] sm:$0xff] }
 0x31d   :  { %3838 = vmatmul.mubr.bf16.gmra.mrb[20].mxu0 %v4193_v20 }
 0x3cd   :  { %v3843_v21 = vpop.f32.mrb[144].mxu1 }
 0x3ce   :  { %v2970_v22 = vpop.f32.mrb[145].mxu1 }
 0x3cf   :  { %v3844_v23 = vpop.f32.mrb[146].mxu1 }
 0x3d0   :  { %v2973_v24 = vpop.f32.mrb[147].mxu1 }
 0x3d5   :  { %v3847_v25 = vpop.f32.mrb[148].mxu1 }
 0x3d6   :  { %v2986_v34 = vpop.f32.mrb[149].mxu1 }
 0x3d7   :  { %v3848_v26 = vpop.f32.mrb[150].mxu1 }
 0x3d8   :  { %v3811_v27 = vpop.f32.mrb[24].mxu0  ;;  %v2989_v28 = vpop.f32.mrb[151].mxu1 }
 0x3d9   :  { %v3873_v59 = vadd.f32 %v4194_v29, %v3811_v27  ;;  %v2784_v30 = vpop.f32.mrb[25].mxu0 }
 0x3da   :  { %v3875_v55 = vadd.f32 %v4195_v6, %v2784_v30  ;;  %v3812_v9 = vpop.f32.mrb[26].mxu0 }
 0x3db   :  { %v3877_v19 = vadd.f32 %v4196_v31, %v3812_v9  ;;  %v3874_v32 = vadd.f32 %v3873_v59, %v3843_v21  ;;  %v2787_v15 = vpop.f32.mrb[27].mxu0 }
 0x3dc   :  { %v3879_v33 = vadd.f32 %v4197_v42, %v2787_v15  ;;  %v3876_v35 = vadd.f32 %v3875_v55, %v2970_v22 }
 0x3dd   :  { %3027 = vst [vmem:[%s5164_s8 + $0x50] sm:$0xff] %v3874_v32  ;;  %v3878_v37 = vadd.f32 %v3877_v19, %v3844_v23 }
 0x3de   :  { %3025 = vst [vmem:[%s5164_s8 + $0x40] sm:$0xff] %v3876_v35  ;;  %v3880_v39 = vadd.f32 %v3879_v33, %v2973_v24 }
 0x3df   :  { %3028 = vst [vmem:[%s5164_s8 + $0x58] sm:$0xff] %v3878_v37 }
 0x3e0   :  { %3026 = vst [vmem:[%s5164_s8 + $0x48] sm:$0xff] %v3880_v39  ;;  %v3815_v41 = vpop.f32.mrb[28].mxu0 }
 0x3e1   :  { %v3881_v44 = vadd.f32 %v4198_v40, %v3815_v41  ;;  %v2800_v62 = vpop.f32.mrb[29].mxu0 }
 0x3e2   :  { %v3883_v45 = vadd.f32 %v4199_v43, %v2800_v62  ;;  %v3816_v60 = vpop.f32.mrb[30].mxu0 }
 0x3e3   :  { %v3885_v47 = vadd.f32 %v4200_v46, %v3816_v60  ;;  %v3882_v49 = vadd.f32 %v3881_v44, %v3847_v25  ;;  %v2803_v48 = vpop.f32.mrb[31].mxu0 }
 0x3e4   :  { %v3887_v51 = vadd.f32 %v4201_v50, %v2803_v48  ;;  %v3884_v52 = vadd.f32 %v3883_v45, %v2986_v34 }
 0x3e5   :  { %3031 = vst [vmem:[%s5164_s8 + $0x70] sm:$0xff] %v3882_v49  ;;  %v3886_v53 = vadd.f32 %v3885_v47, %v3848_v26 }
 0x3e6   :  { %3029 = vst [vmem:[%s5164_s8 + $0x60] sm:$0xff] %v3884_v52  ;;  %v3888_v54 = vadd.f32 %v3887_v51, %v2989_v28 }
 0x3e7   :  { %3032 = vst [vmem:[%s5164_s8 + $0x78] sm:$0xff] %v3886_v53 }
 0x3e8   :  { %3030 = vst [vmem:[%s5164_s8 + $0x68] sm:$0xff] %v3888_v54  ;;  %v3835_v56 = vpop.f32.mrb[16].mxu0 }
 0x3e9   :  { %v3865_v58 = vadd.f32 %v4202_v57, %v3835_v56  ;;  %v2938_v36 = vpop.f32.mrb[17].mxu0 }
 0x3ea   :  { %v3866_v38 = vadd.f32 %v4203_v61, %v2938_v36  ;;  %v3836_v63 = vpop.f32.mrb[18].mxu0 }
 0x3eb   :  { %3019 = vst [vmem:[%s5164_s8 + $0x10] sm:$0xff] %v3865_v58  ;;  %v3867_v1 = vadd.f32 %v4204_v0, %v3836_v63  ;;  %v2941_v2 = vpop.f32.mrb[19].mxu0 }
 0x3ec   :  { %3017 = vst [vmem:[%s5164_s8] sm:$0xff] %v3866_v38  ;;  %v3868_v4 = vadd.f32 %v4205_v3, %v2941_v2 }
 0x3ed   :  { %3020 = vst [vmem:[%s5164_s8 + $0x18] sm:$0xff] %v3867_v1 }
 0x3ee   :  { %3018 = vst [vmem:[%s5164_s8 + $0x8] sm:$0xff] %v3868_v4 }
 0x3f0   :  { %v3839_v5 = vpop.f32.mrb[20].mxu0 }
 0x3f1   :  { %v3869_v8 = vadd.f32 %v4206_v7, %v3839_v5  ;;  %v2954_v10 = vpop.f32.mrb[21].mxu0 }
 0x3f2   :  { %v3870_v12 = vadd.f32 %v4207_v11, %v2954_v10  ;;  %v3840_v13 = vpop.f32.mrb[22].mxu0 }
 0x3f3   :  { %3023 = vst [vmem:[%s5164_s8 + $0x30] sm:$0xff] %v3869_v8  ;;  %v3871_v16 = vadd.f32 %v4208_v14, %v3840_v13  ;;  %v2957_v17 = vpop.f32.mrb[23].mxu0 }
 0x3f4   :  { %3021 = vst [vmem:[%s5164_s8 + $0x20] sm:$0xff] %v3870_v12  ;;  %v3872_v20 = vadd.f32 %v4209_v18, %v2957_v17 }
 0x3f5   :  { %3024 = vst [vmem:[%s5164_s8 + $0x38] sm:$0xff] %v3871_v16 }
 0x3f6   :  { %3022 = vst [vmem:[%s5164_s8 + $0x28] sm:$0xff] %v3872_v20 }

// kernel: _lambda_.22
= control target key start
LH: loop header
LB: loop body
LE: loop exit
PB: predicated region body
PF: predicated region fallthrough
CT: control target
= control target key end

     0   :  { %v257_v0 = vmov 0.0   ;;  %vm258_vm0 = vmmov 0   ;;  %vm150_vm1 = vcmask 1043456   ;;  %vm146_vm2 = vcmask 64512   ;;  %s328_s3 = inlined_call_operand.vmem [shape: bf16[128,128], index: 3, kind: input, shape index: {}]   ;;  %s329_s0 = inlined_call_operand.vmem [shape: f32[8,128], index: 0, kind: input, shape index: {}]   ;;  %s330_s1 = inlined_call_operand.vmem [shape: f32[1,128], index: 1, kind: input, shape index: {}]   ;;  %s331_s2 = inlined_call_operand.vmem [shape: f32[1,128], index: 2, kind: input, shape index: {}]   ;;  %s332_s4 = inlined_call_operand.vmem [shape: bf16[2,8], index: 4, kind: input, shape index: {}]   ;;  %s333_s5 = inlined_call_operand.vmem [shape: f32[2,128], index: 5, kind: output, shape index: {}]  }
   0x1   :  { %221 = vmatprep.subr.bf16.mxu0 %v257_v0  ;;  %v249_v1 = vld [vmem:[%s328_s3] sm:$0xff]   ;;  %237 = vmatprep.mubr.msk.bf16.mxu0 %vm258_vm0, %v257_v0  ;;  %v250_v2 = vld [vmem:[%s328_s3 + $0x8] sm:$0xff]   ;;  %v251_v3 = vld [vmem:[%s328_s3 + $0x10] sm:$0xff]  }
   0x2   :  { %241 = vmatprep.subr.bf16.mxu1 %v257_v0  ;;  %243 = vmatprep.mubr.msk.bf16.mxu1 %vm258_vm0, %v257_v0  ;;  %v252_v4 = vld [vmem:[%s328_s3 + $0x18] sm:$0xff]   ;;  %v253_v5 = vld [vmem:[%s328_s3 + $0x20] sm:$0xff]   ;;  %v254_v9 = vld [vmem:[%s328_s3 + $0x28] sm:$0xff]  }
   0x3   :  { %222 = vmatpush3.bf16.msra.mxu0 %v249_v1  ;;  %v21_v6 = vld [vmem:[%s329_s0] sm:$0xff]  ;;  %v255_v12 = vld [vmem:[%s328_s3 + $0x30] sm:$0xff]   ;;  %v256_v14 = vld [vmem:[%s328_s3 + $0x38] sm:$0xff]  }
   0x4   :  { %223 = vmatprep.subr.bf16.mxu0 %v257_v0  ;;  %v199_v7 = vld [vmem:[%s330_s1] ss:$0 sm:$0xff] }
   0x5   :  { %v29_v8 = vmul.f32 %v199_v7, %v21_v6  ;;  %v200_v10 = vld [vmem:[%s331_s2] ss:$0 sm:$0xff] }
   0x6   :  { %v144_v22 = vld [vmem:[%s332_s4] sm:$0x1] }
   0x7   :  { %224 = vmatpush3.bf16.msra.mxu0 %v250_v2  ;;  %v37_v11 = vadd.f32 %v200_v10, %v29_v8 }
   0x8   :  { %225 = vmatprep.subr.bf16.mxu0 %v257_v0 }
   0x9   :  { %v38_v13 = vmax.f32 %v37_v11, 0.0 }
   0xb   :  { %226 = vmatpush3.bf16.msra.mxu0 %v251_v3  ;;  %v39_v15 = vpack.c.bf16 %v38_v13, %v38_v13 }
   0xc   :  { %227 = vmatprep.subr.bf16.mxu0 %v257_v0 }
   0xf   :  { %228 = vmatpush3.bf16.msra.mxu0 %v252_v4 }
  0x10   :  { %229 = vmatprep.subr.bf16.mxu0 %v257_v0 }
  0x13   :  { %230 = vmatpush3.bf16.msra.mxu0 %v253_v5 }
  0x14   :  { %231 = vmatprep.subr.bf16.mxu0 %v257_v0 }
  0x17   :  { %232 = vmatpush3.bf16.msra.mxu0 %v254_v9 }
  0x18   :  { %233 = vmatprep.subr.bf16.mxu0 %v257_v0 }
  0x1b   :  { %234 = vmatpush3.bf16.msra.mxu0 %v255_v12 }
  0x1c   :  { %235 = vmatprep.subr.bf16.mxu0 %v257_v0 }
  0x1f   :  { %236 = vmatpush3.bf16.msra.mxu0 %v256_v14 }
  0x22   :  { %238 = vmatmul.mubr.bf16.vlgmr.msra.gmra.mrb[0].mxu0 %v39_v15 }
  0xf5   :  { %v138_v16 = vpop.f32.mrb[0].mxu0 }
  0xf6   :  { %v145_v17 = vpack.c.bf16 %v138_v16, %v138_v16  ;;  %v239_v18 = vpop.f32.mrb[1].mxu0 }
  0xf7   :  { %v141_v19 = vpop.f32.mrb[2].mxu0 }
  0xf8   :  { %v240_v20 = vpop.f32.mrb[3].mxu0  ;;  %v152_v21 = vsel %vm150_vm1, %v145_v17, 0 }
  0xf9   :  { %242 = vmatpush3.bf16.msra.mxu1 %v152_v21 }
  0xfc   :  { %244 = vmatmul.mubr.msk.bf16.vlgmr.msra.gmra.mrb[0].mxu1 %vm146_vm2, %v144_v22 }
 0x1cf   :  { %v188_v23 = vpop.f32.mrb[0].mxu1 }
 0x1d0   :  { %194 = vst [vmem:[%s333_s5] sm:$0x3] %v188_v23  ;;  %v245_v24 = vpop.f32.mrb[1].mxu1 }
 0x1d1   :  { %v191_v25 = vpop.f32.mrb[2].mxu1 }
 0x1d2   :  { %v246_v26 = vpop.f32.mrb[3].mxu1 }

// kernel: _lambda_.20
= control target key start
LH: loop header
LB: loop body
LE: loop exit
PB: predicated region body
PF: predicated region fallthrough
CT: control target
= control target key end

     0   :  { %v1658_v0 = vmov 0.0   ;;  %vm1659_vm0 = vmmov 0   ;;  %v1660_v50 = vmov 0   ;;  %vm829_vm1 = vcmask 1043456   ;;  %s2067_s3 = inlined_call_operand.vmem [shape: bf16[128,128], index: 3, kind: input, shape index: {}]   ;;  %s2068_s6 = inlined_call_operand.vmem [shape: bf16[128,1152], index: 6, kind: input, shape index: {}]   ;;  %s2069_s0 = inlined_call_operand.vmem [shape: f32[8,128], index: 0, kind: input, shape index: {}]   ;;  %s2070_s1 = inlined_call_operand.vmem [shape: f32[1,128], index: 1, kind: input, shape index: {}]   ;;  %s2071_s2 = inlined_call_operand.vmem [shape: f32[1,128], index: 2, kind: input, shape index: {}]   ;;  %s2072_s4 = inlined_call_operand.vmem [shape: f32[1,128], index: 4, kind: input, shape index: {}]   ;;  %s2073_s5 = inlined_call_operand.vmem [shape: f32[1,128], index: 5, kind: input, shape index: {}]   ;;  %s2074_s7 = inlined_call_operand.vmem [shape: bf16[9,8,8], index: 7, kind: input, shape index: {}]   ;;  %s2075_s8 = inlined_call_operand.vmem [shape: f32[8,128], index: 8, kind: output, shape index: {}]  }
   0x1   :  { %1416 = vmatprep.subr.bf16.mxu1 %v1658_v0  ;;  %v1546_v1 = vld [vmem:[%s2067_s3] sm:$0xff]   ;;  %1432 = vmatprep.mubr.msk.bf16.mxu1 %vm1659_vm0, %v1658_v0  ;;  %v1547_v2 = vld [vmem:[%s2067_s3 + $0x8] sm:$0xff]   ;;  %v1548_v3 = vld [vmem:[%s2067_s3 + $0x10] sm:$0xff]   ;;  %vm825_vm2 = vcmask 64512  }
   0x2   :  { %1417 = vmatpush3.bf16.msra.mxu1 %v1546_v1  ;;  %v1549_v4 = vld [vmem:[%s2067_s3 + $0x18] sm:$0xff]   ;;  %v1557_v5 = vld [vmem:[%s2068_s6 + $0xc] ss:$36 sps:$4 sm:$0xff]   ;;  %v1550_v7 = vld [vmem:[%s2067_s3 + $0x20] sm:$0xff]   ;;  %692 = vmatprep.mubr.bf16.mxu0 %v1660_v50 }
   0x3   :  { %1418 = vmatprep.subr.bf16.mxu1 %v1658_v0  ;;  %v1559_v6 = vld [vmem:[%s2068_s6 + $0x8] ss:$36 sps:$4 sm:$0xff]   ;;  %v1736_v8 = vld [vmem:[%s2069_s0] sm:$0xff]  ;;  %660 = vmatprep.subr.bf16.mxu0 %v1557_v5  ;;  %v1563_v10 = vld [vmem:[%s2068_s6 + $0x54] ss:$36 sps:$4 sm:$0xff]  }
   0x4   :  { %v1279_v9 = vld [vmem:[%s2070_s1] ss:$0 sm:$0xff]  ;;  %661 = vmatpush1.bf16.msra.mxu0 %v1559_v6  ;;  %v1565_v11 = vld [vmem:[%s2068_s6 + $0x50] ss:$36 sps:$4 sm:$0xff]   ;;  %v1551_v12 = vld [vmem:[%s2067_s3 + $0x28] sm:$0xff]  }
   0x5   :  { %662 = vmatprep.subr.bf16.mxu0 %v1563_v10  ;;  %v1569_v13 = vld [vmem:[%s2068_s6 + $0x9c] ss:$36 sps:$4 sm:$0xff]   ;;  %v38_v14 = vmul.f32 %v1279_v9, %v1736_v8  ;;  %v1575_v17 = vld [vmem:[%s2068_s6 + $0xe4] ss:$36 sps:$4 sm:$0xff]   ;;  %v1552_v18 = vld [vmem:[%s2067_s3 + $0x30] sm:$0xff]  }
   0x6   :  { %1419 = vmatpush3.bf16.msra.mxu1 %v1547_v2  ;;  %v1280_v15 = vld [vmem:[%s2071_s2] ss:$0 sm:$0xff]  ;;  %v1571_v16 = vld [vmem:[%s2068_s6 + $0x98] ss:$36 sps:$4 sm:$0xff]   ;;  %v1581_v21 = vld [vmem:[%s2068_s6 + $0x12c] ss:$36 sps:$4 sm:$0xff]  }
   0x7   :  { %1420 = vmatprep.subr.bf16.mxu1 %v1658_v0  ;;  %v46_v19 = vadd.f32 %v1280_v15, %v38_v14  ;;  %v1577_v20 = vld [vmem:[%s2068_s6 + $0xe0] ss:$36 sps:$4 sm:$0xff]   ;;  %v1553_v22 = vld [vmem:[%s2067_s3 + $0x38] sm:$0xff]   ;;  %v1583_v23 = vld [vmem:[%s2068_s6 + $0x128] ss:$36 sps:$4 sm:$0xff]  }
   0x8   :  { %663 = vmatpush1.bf16.msra.mxu0 %v1565_v11  ;;  %v1556_v25 = vld [vmem:[%s2068_s6 + $0x4] ss:$36 sps:$4 sm:$0xff]   ;;  %v1587_v26 = vld [vmem:[%s2068_s6 + $0x174] ss:$36 sps:$4 sm:$0xff]   ;;  %v1562_v30 = vld [vmem:[%s2068_s6 + $0x4c] ss:$36 sps:$4 sm:$0xff]  }
   0x9   :  { %664 = vmatprep.subr.bf16.mxu0 %v1569_v13  ;;  %v47_v24 = vmax.f32 %v46_v19, 0.0  ;;  %v1554_v27 = vld [vmem:[%s2068_s6] ss:$36 sps:$4 sm:$0xff]   ;;  %v1589_v28 = vld [vmem:[%s2068_s6 + $0x170] ss:$36 sps:$4 sm:$0xff]  }
   0xa   :  { %1421 = vmatpush3.bf16.msra.mxu1 %v1548_v3  ;;  %v1560_v31 = vld [vmem:[%s2068_s6 + $0x48] ss:$36 sps:$4 sm:$0xff]   ;;  %v1568_v32 = vld [vmem:[%s2068_s6 + $0x94] ss:$36 sps:$4 sm:$0xff]   ;;  %v1574_v34 = vld [vmem:[%s2068_s6 + $0xdc] ss:$36 sps:$4 sm:$0xff]  }
   0xb   :  { %1422 = vmatprep.subr.bf16.mxu1 %v1658_v0  ;;  %v48_v29 = vpack.c.bf16 %v47_v24, %v47_v24  ;;  %v1566_v33 = vld [vmem:[%s2068_s6 + $0x90] ss:$36 sps:$4 sm:$0xff]   ;;  %v1572_v35 = vld [vmem:[%s2068_s6 + $0xd8] ss:$36 sps:$4 sm:$0xff]   ;;  %v1580_v36 = vld [vmem:[%s2068_s6 + $0x124] ss:$36 sps:$4 sm:$0xff]  }
   0xc   :  { %665 = vmatpush1.bf16.msra.mxu0 %v1571_v16  ;;  %v1578_v37 = vld [vmem:[%s2068_s6 + $0x120] ss:$36 sps:$4 sm:$0xff]   ;;  %v1586_v38 = vld [vmem:[%s2068_s6 + $0x16c] ss:$36 sps:$4 sm:$0xff]   ;;  %v1592_v40 = vld [vmem:[%s2068_s6 + $0x1b4] ss:$36 sps:$4 sm:$0xff]  }
   0xd   :  { %666 = vmatprep.subr.bf16.mxu0 %v1575_v17  ;;  %v1584_v39 = vld [vmem:[%s2068_s6 + $0x168] ss:$36 sps:$4 sm:$0xff]   ;;  %v1593_v41 = vld [vmem:[%s2068_s6 + $0x1bc] ss:$36 sps:$4 sm:$0xff]   ;;  %v1590_v42 = vld [vmem:[%s2068_s6 + $0x1b0] ss:$36 sps:$4 sm:$0xff]  }
   0xe   :  { %1423 = vmatpush3.bf16.msra.mxu1 %v1549_v4  ;;  %v1595_v43 = vld [vmem:[%s2068_s6 + $0x1b8] ss:$36 sps:$4 sm:$0xff]   ;;  %v1599_v45 = vld [vmem:[%s2068_s6 + $0x204] ss:$36 sps:$4 sm:$0xff]   ;;  %v1289_v51 = vld [vmem:[%s2072_s4] ss:$0 sm:$0xff] }
   0xf   :  { %1424 = vmatprep.subr.bf16.mxu1 %v1658_v0  ;;  %v1598_v44 = vld [vmem:[%s2068_s6 + $0x1fc] ss:$36 sps:$4 sm:$0xff]   ;;  %v1604_v48 = vld [vmem:[%s2068_s6 + $0x14] ss:$36 sps:$4 sm:$0xff]   ;;  %v1613_v1 = vld [vmem:[%s2068_s6 + $0x64] ss:$36 sps:$4 sm:$0xff]  }
  0x10   :  { %667 = vmatpush1.bf16.msra.mxu0 %v1577_v20  ;;  %v1596_v46 = vld [vmem:[%s2068_s6 + $0x1f8] ss:$36 sps:$4 sm:$0xff]   ;;  %v1601_v47 = vld [vmem:[%s2068_s6 + $0x200] ss:$36 sps:$4 sm:$0xff]   ;;  %v1602_v60 = vld [vmem:[%s2068_s6 + $0x10] ss:$36 sps:$4 sm:$0xff]  }
  0x11   :  { %668 = vmatprep.subr.bf16.mxu0 %v1581_v21  ;;  %v1607_v49 = vld [vmem:[%s2068_s6 + $0x1c] ss:$36 sps:$4 sm:$0xff]   ;;  %v1616_v4 = vld [vmem:[%s2068_s6 + $0xa4] ss:$36 sps:$4 sm:$0xff]   ;;  %v1619_v5 = vld [vmem:[%s2068_s6 + $0xac] ss:$36 sps:$4 sm:$0xff]  }
  0x12   :  { %1425 = vmatpush3.bf16.msra.mxu1 %v1550_v7  ;;  %v1290_v53 = vld [vmem:[%s2073_s5] ss:$0 sm:$0xff]  ;;  %v1605_v61 = vld [vmem:[%s2068_s6 + $0x18] ss:$36 sps:$4 sm:$0xff]   ;;  %v1617_v7 = vld [vmem:[%s2068_s6 + $0xa8] ss:$36 sps:$4 sm:$0xff]  }
  0x13   :  { %1426 = vmatprep.subr.bf16.mxu1 %v1658_v0  ;;  %v1610_v63 = vld [vmem:[%s2068_s6 + $0x5c] ss:$36 sps:$4 sm:$0xff]   ;;  %v1622_v9 = vld [vmem:[%s2068_s6 + $0xec] ss:$36 sps:$4 sm:$0xff]   ;;  %v1625_v10 = vld [vmem:[%s2068_s6 + $0xf4] ss:$36 sps:$4 sm:$0xff]  }
  0x14   :  { %669 = vmatpush1.bf16.msra.mxu0 %v1583_v23  ;;  %v1608_v2 = vld [vmem:[%s2068_s6 + $0x58] ss:$36 sps:$4 sm:$0xff]   ;;  %v1611_v3 = vld [vmem:[%s2068_s6 + $0x60] ss:$36 sps:$4 sm:$0xff]   ;;  %v1620_v11 = vld [vmem:[%s2068_s6 + $0xe8] ss:$36 sps:$4 sm:$0xff]  }
  0x15   :  { %670 = vmatprep.subr.bf16.mxu0 %v1587_v26  ;;  %v1614_v6 = vld [vmem:[%s2068_s6 + $0xa0] ss:$36 sps:$4 sm:$0xff]   ;;  %v1628_v13 = vld [vmem:[%s2068_s6 + $0x134] ss:$36 sps:$4 sm:$0xff]   ;;  %v1641_v24 = vld [vmem:[%s2068_s6 + $0x1c8] ss:$36 sps:$4 sm:$0xff]  }
  0x16   :  { %1427 = vmatpush3.bf16.msra.mxu1 %v1551_v12  ;;  %v1623_v12 = vld [vmem:[%s2068_s6 + $0xf0] ss:$36 sps:$4 sm:$0xff]   ;;  %v1631_v14 = vld [vmem:[%s2068_s6 + $0x13c] ss:$36 sps:$4 sm:$0xff]   ;;  %v1640_v21 = vld [vmem:[%s2068_s6 + $0x1c4] ss:$36 sps:$4 sm:$0xff]  }
  0x17   :  { %1428 = vmatprep.subr.bf16.mxu1 %v1658_v0  ;;  %v1626_v15 = vld [vmem:[%s2068_s6 + $0x130] ss:$36 sps:$4 sm:$0xff]   ;;  %v1629_v16 = vld [vmem:[%s2068_s6 + $0x138] ss:$36 sps:$4 sm:$0xff]   ;;  %v1635_v20 = vld [vmem:[%s2068_s6 + $0x180] ss:$36 sps:$4 sm:$0xff]  }
  0x18   :  { %671 = vmatpush1.bf16.msra.mxu0 %v1589_v28  ;;  %v1634_v17 = vld [vmem:[%s2068_s6 + $0x17c] ss:$36 sps:$4 sm:$0xff]   ;;  %v1649_v26 = vld [vmem:[%s2068_s6 + $0x214] ss:$36 sps:$4 sm:$0xff]  }
  0x19   :  { %672 = vmatprep.subr.bf16.mxu0 %v1593_v41  ;;  %v1632_v19 = vld [vmem:[%s2068_s6 + $0x178] ss:$36 sps:$4 sm:$0xff]   ;;  %v1638_v23 = vld [vmem:[%s2068_s6 + $0x1c0] ss:$36 sps:$4 sm:$0xff]   ;;  %v1647_v28 = vld [vmem:[%s2068_s6 + $0x210] ss:$36 sps:$4 sm:$0xff]  }
  0x1a   :  { %1429 = vmatpush3.bf16.msra.mxu1 %v1552_v18  ;;  %v1637_v18 = vld [vmem:[%s2068_s6 + $0x184] ss:$36 sps:$4 sm:$0xff]  }
  0x1b   :  { %1430 = vmatprep.subr.bf16.mxu1 %v1658_v0 }
  0x1c   :  { %673 = vmatpush1.bf16.msra.mxu0 %v1595_v43 }
  0x1d   :  { %674 = vmatprep.subr.bf16.mxu0 %v1599_v45 }
  0x1e   :  { %1431 = vmatpush3.bf16.msra.mxu1 %v1553_v22  ;;  %v1643_v22 = vld [vmem:[%s2068_s6 + $0x1cc] ss:$36 sps:$4 sm:$0xff]  }
  0x1f   :  { %619 = vmatprep.subr.bf16.mxu1 %v1556_v25  ;;  %v1646_v25 = vld [vmem:[%s2068_s6 + $0x20c] ss:$36 sps:$4 sm:$0xff]  }
  0x20   :  { %675 = vmatpush1.bf16.msra.mxu0 %v1601_v47 }
  0x21   :  { %1433 = vmatmul.mubr.bf16.vlgmr.msra.gmra.mrb[0].mxu1 %v48_v29  ;;  %742 = vmatprep.subr.bf16.mxu0 %v1607_v49  ;;  %v1650_v29 = vld [vmem:[%s2068_s6 + $0x20] ss:$36 sps:$4 sm:$0xff]  }
  0x22   :  { %620 = vmatpush1.bf16.msra.mxu1 %v1554_v27  ;;  %651 = vmatprep.mubr.bf16.mxu1 %v1660_v50  ;;  %v1644_v27 = vld [vmem:[%s2068_s6 + $0x208] ss:$36 sps:$4 sm:$0xff]  }
  0x23   :  { %621 = vmatprep.subr.bf16.mxu1 %v1562_v30  ;;  %v1651_v30 = vld [vmem:[%s2068_s6 + $0x68] ss:$36 sps:$4 sm:$0xff]  }
  0x26   :  { %622 = vmatpush1.bf16.msra.mxu1 %v1560_v31  ;;  %v1652_v31 = vld [vmem:[%s2068_s6 + $0xb0] ss:$36 sps:$4 sm:$0xff]  }
  0x27   :  { %623 = vmatprep.subr.bf16.mxu1 %v1568_v32  ;;  %v1653_v32 = vld [vmem:[%s2068_s6 + $0xf8] ss:$36 sps:$4 sm:$0xff]  }
  0x2a   :  { %624 = vmatpush1.bf16.msra.mxu1 %v1566_v33  ;;  %v1654_v33 = vld [vmem:[%s2068_s6 + $0x140] ss:$36 sps:$4 sm:$0xff]  }
  0x2b   :  { %625 = vmatprep.subr.bf16.mxu1 %v1574_v34  ;;  %v1655_v34 = vld [vmem:[%s2068_s6 + $0x188] ss:$36 sps:$4 sm:$0xff]  }
  0x2e   :  { %626 = vmatpush1.bf16.msra.mxu1 %v1572_v35  ;;  %v1656_v35 = vld [vmem:[%s2068_s6 + $0x1d0] ss:$36 sps:$4 sm:$0xff]  }
  0x2f   :  { %627 = vmatprep.subr.bf16.mxu1 %v1580_v36  ;;  %v1657_v36 = vld [vmem:[%s2068_s6 + $0x218] ss:$36 sps:$4 sm:$0xff]  }
  0x32   :  { %628 = vmatpush1.bf16.msra.mxu1 %v1578_v37 }
  0x33   :  { %629 = vmatprep.subr.bf16.mxu1 %v1586_v38 }
  0x36   :  { %630 = vmatpush1.bf16.msra.mxu1 %v1584_v39 }
  0x37   :  { %631 = vmatprep.subr.bf16.mxu1 %v1592_v40 }
  0x3a   :  { %632 = vmatpush1.bf16.msra.mxu1 %v1590_v42 }
  0x3b   :  { %633 = vmatprep.subr.bf16.mxu1 %v1598_v44 }
  0x3e   :  { %634 = vmatpush1.bf16.msra.mxu1 %v1596_v46 }
  0x3f   :  { %701 = vmatprep.subr.bf16.mxu1 %v1604_v48  ;;  %v824_v48 = vld [vmem:[%s2074_s7] sm:$0xf] }
  0xf4   :  { %v147_v52 = vpop.f32.mrb[0].mxu1 }
  0xf5   :  { %v160_v54 = vmul.f32 %v1289_v51, %v147_v52  ;;  %v1434_v55 = vpop.f32.mrb[1].mxu1  ;;  %v1364_v51 = vld [vmem:[%s2074_s7 + $0x4] sm:$0xf] }
  0xf6   :  { %v150_v56 = vpop.f32.mrb[2].mxu1 }
  0xf7   :  { %v168_v57 = vadd.f32 %v1290_v53, %v160_v54  ;;  %v1435_v58 = vpop.f32.mrb[3].mxu1  ;;  %v1366_v54 = vld [vmem:[%s2074_s7 + $0x8] sm:$0xf] }
  0xf9   :  { %v169_v59 = vmax.f32 %v168_v57, 0.0 }
  0xfb   :  { %v1866_v62 = vpack.c.bf16 %v169_v59, %v169_v59 }
  0xfd   :  { %652 = vmatmul.mubr.bf16.vlgmr.msra.gmra.mrb[4].mxu1 %v1866_v62  ;;  %693 = vmatmul.mubr.bf16.vlgmr.msra.gmra.mrb[0].mxu0 %v1866_v62 }
  0xfe   :  { %702 = vmatpush1.bf16.msra.mxu1 %v1602_v60  ;;  %743 = vmatpush1.bf16.msra.mxu0 %v1605_v61 }
  0xff   :  { %703 = vmatprep.subr.bf16.mxu1 %v1610_v63  ;;  %744 = vmatprep.subr.bf16.mxu0 %v1613_v1 }
 0x100   :  { %733 = vmatprep.mubr.bf16.mxu1 %v1660_v50  ;;  %774 = vmatprep.mubr.bf16.mxu0 %v1660_v50 }
 0x102   :  { %704 = vmatpush1.bf16.msra.mxu1 %v1608_v2  ;;  %745 = vmatpush1.bf16.msra.mxu0 %v1611_v3 }
 0x103   :  { %705 = vmatprep.subr.bf16.mxu1 %v1616_v4  ;;  %746 = vmatprep.subr.bf16.mxu0 %v1619_v5 }
 0x106   :  { %706 = vmatpush1.bf16.msra.mxu1 %v1614_v6  ;;  %747 = vmatpush1.bf16.msra.mxu0 %v1617_v7  ;;  %v1368_v6 = vld [vmem:[%s2074_s7 + $0xc] sm:$0xf] }
 0x107   :  { %707 = vmatprep.subr.bf16.mxu1 %v1622_v9  ;;  %748 = vmatprep.subr.bf16.mxu0 %v1625_v10  ;;  %v1370_v10 = vld [vmem:[%s2074_s7 + $0x10] sm:$0xf] }
 0x10a   :  { %708 = vmatpush1.bf16.msra.mxu1 %v1620_v11  ;;  %749 = vmatpush1.bf16.msra.mxu0 %v1623_v12 }
 0x10b   :  { %709 = vmatprep.subr.bf16.mxu1 %v1628_v13  ;;  %750 = vmatprep.subr.bf16.mxu0 %v1631_v14  ;;  %v1372_v13 = vld [vmem:[%s2074_s7 + $0x14] sm:$0xf] }
 0x10e   :  { %710 = vmatpush1.bf16.msra.mxu1 %v1626_v15  ;;  %751 = vmatpush1.bf16.msra.mxu0 %v1629_v16 }
 0x10f   :  { %711 = vmatprep.subr.bf16.mxu1 %v1634_v17  ;;  %752 = vmatprep.subr.bf16.mxu0 %v1637_v18 }
 0x112   :  { %712 = vmatpush1.bf16.msra.mxu1 %v1632_v19  ;;  %753 = vmatpush1.bf16.msra.mxu0 %v1635_v20  ;;  %v1374_v19 = vld [vmem:[%s2074_s7 + $0x18] sm:$0xf]  ;;  %v1376_v20 = vld [vmem:[%s2074_s7 + $0x1c] sm:$0xf] }
 0x113   :  { %713 = vmatprep.subr.bf16.mxu1 %v1640_v21  ;;  %754 = vmatprep.subr.bf16.mxu0 %v1643_v22  ;;  %v1378_v21 = vld [vmem:[%s2074_s7 + $0x20] sm:$0xf] }
 0x116   :  { %714 = vmatpush1.bf16.msra.mxu1 %v1638_v23  ;;  %755 = vmatpush1.bf16.msra.mxu0 %v1641_v24 }
 0x117   :  { %715 = vmatprep.subr.bf16.mxu1 %v1646_v25  ;;  %756 = vmatprep.subr.bf16.mxu0 %v1649_v26 }
 0x11a   :  { %716 = vmatpush1.bf16.msra.mxu1 %v1644_v27  ;;  %757 = vmatpush1.bf16.msra.mxu0 %v1647_v28 }
 0x11b   :  { %1436 = vmatprep.subr.bf16.mxu1 %v1658_v0  ;;  %1456 = vmatprep.subr.bf16.mxu0 %v1658_v0 }
 0x11d   :  { %734 = vmatmul.mubr.bf16.vlgmr.msra.gmra.mrb[8].mxu1 %v1866_v62  ;;  %775 = vmatmul.mubr.bf16.vlgmr.msra.gmra.mrb[4].mxu0 %v1866_v62 }
 0x11e   :  { %1437 = vmatpush3.bf16.msra.mxu1 %v1650_v29  ;;  %1452 = vmatprep.mubr.msk.bf16.mxu1 %vm1659_vm0, %v1658_v0 }
 0x11f   :  { %1438 = vmatprep.subr.bf16.mxu1 %v1658_v0  ;;  %1458 = vmatprep.mubr.msk.bf16.mxu0 %vm1659_vm0, %v1658_v0 }
 0x122   :  { %1439 = vmatpush3.bf16.msra.mxu1 %v1651_v30 }
 0x123   :  { %1440 = vmatprep.subr.bf16.mxu1 %v1658_v0 }
 0x126   :  { %1441 = vmatpush3.bf16.msra.mxu1 %v1652_v31 }
 0x127   :  { %1442 = vmatprep.subr.bf16.mxu1 %v1658_v0 }
 0x12a   :  { %1443 = vmatpush3.bf16.msra.mxu1 %v1653_v32 }
 0x12b   :  { %1444 = vmatprep.subr.bf16.mxu1 %v1658_v0 }
 0x12e   :  { %1445 = vmatpush3.bf16.msra.mxu1 %v1654_v33 }
 0x12f   :  { %1446 = vmatprep.subr.bf16.mxu1 %v1658_v0 }
 0x132   :  { %1447 = vmatpush3.bf16.msra.mxu1 %v1655_v34 }
 0x133   :  { %1448 = vmatprep.subr.bf16.mxu1 %v1658_v0 }
 0x136   :  { %1449 = vmatpush3.bf16.msra.mxu1 %v1656_v35 }
 0x137   :  { %1450 = vmatprep.subr.bf16.mxu1 %v1658_v0 }
 0x13a   :  { %1451 = vmatpush3.bf16.msra.mxu1 %v1657_v36 }
 0x13d   :  { %1453 = vmatmul.mubr.bf16.vlgmr.msra.gmra.mrb[12].mxu1 %v1866_v62 }
 0x1d0   :  { %v653_v37 = vpop.f32.mrb[4].mxu1  ;;  %v694_v38 = vpop.f32.mrb[0].mxu0 }
 0x1d1   :  { %v823_v39 = vpack.c.bf16 %v653_v37, %v653_v37  ;;  %v655_v40 = vpop.f32.mrb[5].mxu1  ;;  %v696_v41 = vpop.f32.mrb[1].mxu0  ;;  %v924_v50 = vpack.c.bf16 %v694_v38, %v694_v38 }
 0x1d2   :  { %v657_v42 = vpop.f32.mrb[6].mxu1  ;;  %v698_v43 = vpop.f32.mrb[2].mxu0  ;;  %v874_v45 = vpack.c.bf16 %v655_v40, %v655_v40  ;;  %v974_v53 = vpack.c.bf16 %v696_v41, %v696_v41 }
 0x1d3   :  { %v831_v44 = vsel %vm829_vm1, %v823_v39, 0  ;;  %v658_v46 = vpop.f32.mrb[7].mxu1  ;;  %v699_v47 = vpop.f32.mrb[3].mxu0  ;;  %v931_v52 = vsel %vm829_vm1, %v924_v50, 0 }
 0x1d4   :  { %1457 = vmatpush3.bf16.msra.mxu0 %v831_v44  ;;  %v881_v49 = vsel %vm829_vm1, %v874_v45, 0  ;;  %v981_v55 = vsel %vm829_vm1, %v974_v53, 0 }
 0x1d5   :  { %1462 = vmatprep.subr.bf16.mxu0 %v1658_v0 }
 0x1d7   :  { %1459 = vmatmul.mubr.msk.bf16.vlgmr.msra.gmra.mrb[8].mxu0 %vm825_vm2, %v824_v48 }
 0x1d8   :  { %1463 = vmatpush3.bf16.msra.mxu0 %v881_v49  ;;  %1464 = vmatprep.mubr.msk.bf16.mxu0 %vm1659_vm0, %v1658_v0 }
 0x1d9   :  { %1468 = vmatprep.subr.bf16.mxu0 %v1658_v0 }
 0x1e3   :  { %1465 = vmatmul.mubr.msk.bf16.vlgmr.msra.gmra.mrb[8].mxu0 %vm825_vm2, %v1364_v51 }
 0x1e4   :  { %1469 = vmatpush3.bf16.msra.mxu0 %v931_v52  ;;  %1470 = vmatprep.mubr.msk.bf16.mxu0 %vm1659_vm0, %v1658_v0 }
 0x1e5   :  { %1474 = vmatprep.subr.bf16.mxu0 %v1658_v0 }
 0x1ef   :  { %1471 = vmatmul.mubr.msk.bf16.vlgmr.msra.gmra.mrb[8].mxu0 %vm825_vm2, %v1366_v54 }
 0x1f0   :  { %v735_v56 = vpop.f32.mrb[8].mxu1  ;;  %v776_v57 = vpop.f32.mrb[4].mxu0  ;;  %1475 = vmatpush3.bf16.msra.mxu0 %v981_v55  ;;  %1476 = vmatprep.mubr.msk.bf16.mxu0 %vm1659_vm0, %v1658_v0 }
 0x1f1   :  { %v1124_v58 = vpack.c.bf16 %v776_v57, %v776_v57  ;;  %v737_v59 = vpop.f32.mrb[9].mxu1  ;;  %v778_v60 = vpop.f32.mrb[5].mxu0  ;;  %1480 = vmatprep.subr.bf16.mxu0 %v1658_v0  ;;  %v1024_v5 = vpack.c.bf16 %v735_v56, %v735_v56 }
 0x1f2   :  { %v1174_v61 = vpack.c.bf16 %v778_v60, %v778_v60  ;;  %v739_v62 = vpop.f32.mrb[10].mxu1  ;;  %v780_v63 = vpop.f32.mrb[6].mxu0  ;;  %v1074_v9 = vpack.c.bf16 %v737_v59, %v737_v59 }
 0x1f3   :  { %v1131_v1 = vsel %vm829_vm1, %v1124_v58, 0  ;;  %v740_v2 = vpop.f32.mrb[11].mxu1  ;;  %v781_v3 = vpop.f32.mrb[7].mxu0  ;;  %v1031_v7 = vsel %vm829_vm1, %v1024_v5, 0 }
 0x1f4   :  { %v1181_v4 = vsel %vm829_vm1, %v1174_v61, 0  ;;  %v1081_v11 = vsel %vm829_vm1, %v1074_v9, 0 }
 0x1fb   :  { %1477 = vmatmul.mubr.msk.bf16.vlgmr.msra.gmra.mrb[8].mxu0 %vm825_vm2, %v1368_v6 }
 0x1fc   :  { %1481 = vmatpush3.bf16.msra.mxu0 %v1031_v7  ;;  %1482 = vmatprep.mubr.msk.bf16.mxu0 %vm1659_vm0, %v1658_v0 }
 0x1fd   :  { %1486 = vmatprep.subr.bf16.mxu0 %v1658_v0 }
 0x207   :  { %1483 = vmatmul.mubr.msk.bf16.vlgmr.msra.gmra.mrb[8].mxu0 %vm825_vm2, %v1370_v10 }
 0x208   :  { %1487 = vmatpush3.bf16.msra.mxu0 %v1081_v11  ;;  %1488 = vmatprep.mubr.msk.bf16.mxu0 %vm1659_vm0, %v1658_v0 }
 0x209   :  { %1492 = vmatprep.subr.bf16.mxu0 %v1658_v0 }
 0x210   :  { %v817_v12 = vpop.f32.mrb[12].mxu1 }
 0x211   :  { %v1224_v14 = vpack.c.bf16 %v817_v12, %v817_v12  ;;  %v1454_v15 = vpop.f32.mrb[13].mxu1 }
 0x212   :  { %v820_v16 = vpop.f32.mrb[14].mxu1 }
 0x213   :  { %v1231_v17 = vsel %vm829_vm1, %v1224_v14, 0  ;;  %v1455_v18 = vpop.f32.mrb[15].mxu1  ;;  %1489 = vmatmul.mubr.msk.bf16.vlgmr.msra.gmra.mrb[8].mxu0 %vm825_vm2, %v1372_v13 }
 0x214   :  { %1493 = vmatpush3.bf16.msra.mxu0 %v1131_v1  ;;  %1494 = vmatprep.mubr.msk.bf16.mxu0 %vm1659_vm0, %v1658_v0 }
 0x215   :  { %1498 = vmatprep.subr.bf16.mxu0 %v1658_v0 }
 0x21f   :  { %1495 = vmatmul.mubr.msk.bf16.vlgmr.msra.gmra.mrb[8].mxu0 %vm825_vm2, %v1374_v19 }
 0x220   :  { %1499 = vmatpush3.bf16.msra.mxu0 %v1181_v4  ;;  %1500 = vmatprep.mubr.msk.bf16.mxu0 %vm1659_vm0, %v1658_v0 }
 0x221   :  { %1504 = vmatprep.subr.bf16.mxu0 %v1658_v0 }
 0x22b   :  { %1501 = vmatmul.mubr.msk.bf16.vlgmr.msra.gmra.mrb[8].mxu0 %vm825_vm2, %v1376_v20 }
 0x22c   :  { %1505 = vmatpush3.bf16.msra.mxu0 %v1231_v17  ;;  %1506 = vmatprep.mubr.msk.bf16.mxu0 %vm1659_vm0, %v1658_v0 }
 0x237   :  { %1507 = vmatmul.mubr.msk.bf16.vlgmr.msra.gmra.mrb[8].mxu0 %vm825_vm2, %v1378_v21 }
 0x30a   :  { %v1267_v22 = vpop.f32.mrb[8].mxu0 }
 0x30b   :  { %v1510_v23 = vadd.f32 %v1267_v22, %v1736_v8  ;;  %v1508_v24 = vpop.f32.mrb[9].mxu0 }
 0x30c   :  { %v1270_v25 = vpop.f32.mrb[10].mxu0 }
 0x30d   :  { %1274 = vst [vmem:[%s2075_s8] sm:$0xff] %v1510_v23  ;;  %v1509_v26 = vpop.f32.mrb[11].mxu0 }

// kernel: _lambda_.17
= control target key start
LH: loop header
LB: loop body
LE: loop exit
PB: predicated region body
PF: predicated region fallthrough
CT: control target
= control target key end

     0   :  { %v2091_v62 = vmov 0   ;;  %vm928_vm0 = vcmask 261120   ;;  %s2543_s3 = inlined_call_operand.vmem [shape: bf16[128,128], index: 3, kind: input, shape index: {}]   ;;  %s2544_s0 = inlined_call_operand.vmem [shape: f32[32,128], index: 0, kind: input, shape index: {}]   ;;  %s2545_s1 = inlined_call_operand.vmem [shape: f32[1,128], index: 1, kind: input, shape index: {}]   ;;  %s2546_s2 = inlined_call_operand.vmem [shape: f32[1,128], index: 2, kind: input, shape index: {}]   ;;  %s2547_s6 = inlined_call_operand.vmem [shape: bf16[128,1152], index: 6, kind: input, shape index: {}]   ;;  %s2548_s4 = inlined_call_operand.vmem [shape: f32[1,128], index: 4, kind: input, shape index: {}]   ;;  %s2549_s5 = inlined_call_operand.vmem [shape: f32[1,128], index: 5, kind: input, shape index: {}]   ;;  %s2550_s7 = inlined_call_operand.vmem [shape: bf16[9,32,32], index: 7, kind: input, shape index: {}]   ;;  %s2551_s8 = inlined_call_operand.vmem [shape: f32[32,128], index: 8, kind: output, shape index: {}]  }
   0x1   :  { %v1961_v0 = vld [vmem:[%s2543_s3] sm:$0xff]   ;;  %v1962_v1 = vld [vmem:[%s2543_s3 + $0x8] sm:$0xff]   ;;  %v1963_v2 = vld [vmem:[%s2543_s3 + $0x10] sm:$0xff]   ;;  %789 = vmatprep.mubr.bf16.mxu1 %v2091_v62 }
   0x2   :  { %1812 = vmatprep.subr.bf16.mxu0 %v1961_v0  ;;  %v1964_v3 = vld [vmem:[%s2543_s3 + $0x18] sm:$0xff]   ;;  %v2152_v4 = vld [vmem:[%s2544_s0] sm:$0xff]  ;;  %v2157_v5 = vld [vmem:[%s2544_s0 + $0x8] sm:$0xff] }
   0x3   :  { %1813 = vmatpush3.bf16.msra.mxu0 %v1961_v0  ;;  %v1604_v6 = vld [vmem:[%s2545_s1] ss:$0 sm:$0xff]  ;;  %v1972_v13 = vld [vmem:[%s2547_s6 + $0x14] ss:$36 sps:$4 sm:$0xff]   ;;  %v1966_v22 = vld [vmem:[%s2543_s3 + $0x28] sm:$0xff]  }
   0x4   :  { %1814 = vmatprep.subr.bf16.mxu0 %v1962_v1  ;;  %v41_v7 = vmul.f32 %v1604_v6, %v2152_v4  ;;  %v42_v8 = vmul.f32 %v1604_v6, %v2157_v5  ;;  %v1605_v9 = vld [vmem:[%s2546_s2] ss:$0 sm:$0xff]  ;;  %v1974_v14 = vld [vmem:[%s2547_s6 + $0x10] ss:$36 sps:$4 sm:$0xff]   ;;  %v2184_v18 = vld [vmem:[%s2544_s0 + $0x18] sm:$0xff]  ;;  %757 = vmatprep.subr.bf16.mxu1 %v1972_v13 }
   0x5   :  { %v1965_v10 = vld [vmem:[%s2543_s3 + $0x20] sm:$0xff]   ;;  %v2179_v17 = vld [vmem:[%s2544_s0 + $0x10] sm:$0xff]  ;;  %758 = vmatpush1.bf16.msra.mxu1 %v1974_v14  ;;  %v1980_v21 = vld [vmem:[%s2547_s6 + $0x58] ss:$36 sps:$4 sm:$0xff]   ;;  %v44_v25 = vmul.f32 %v1604_v6, %v2184_v18 }
   0x6   :  { %v52_v11 = vadd.f32 %v1605_v9, %v41_v7  ;;  %v53_v12 = vadd.f32 %v1605_v9, %v42_v8  ;;  %v1978_v20 = vld [vmem:[%s2547_s6 + $0x5c] ss:$36 sps:$4 sm:$0xff]   ;;  %v1984_v23 = vld [vmem:[%s2547_s6 + $0xa4] ss:$36 sps:$4 sm:$0xff]   ;;  %v43_v24 = vmul.f32 %v1604_v6, %v2179_v17  ;;  %v1967_v27 = vld [vmem:[%s2543_s3 + $0x30] sm:$0xff]  }
   0x7   :  { %1815 = vmatpush3.bf16.msra.mxu0 %v1962_v1  ;;  %759 = vmatprep.subr.bf16.mxu1 %v1978_v20  ;;  %v1986_v26 = vld [vmem:[%s2547_s6 + $0xa0] ss:$36 sps:$4 sm:$0xff]   ;;  %v1990_v28 = vld [vmem:[%s2547_s6 + $0xec] ss:$36 sps:$4 sm:$0xff]   ;;  %v55_v30 = vadd.f32 %v1605_v9, %v44_v25  ;;  %v1968_v32 = vld [vmem:[%s2543_s3 + $0x38] sm:$0xff]  }
   0x8   :  { %1816 = vmatprep.subr.bf16.mxu0 %v1963_v2  ;;  %v56_v15 = vmax.f32 %v52_v11, 0.0  ;;  %v57_v16 = vmax.f32 %v53_v12, 0.0  ;;  %v54_v29 = vadd.f32 %v1605_v9, %v43_v24  ;;  %v1992_v31 = vld [vmem:[%s2547_s6 + $0xe8] ss:$36 sps:$4 sm:$0xff]   ;;  %v1996_v33 = vld [vmem:[%s2547_s6 + $0x134] ss:$36 sps:$4 sm:$0xff]  }
   0x9   :  { %760 = vmatpush1.bf16.msra.mxu1 %v1980_v21  ;;  %v1998_v34 = vld [vmem:[%s2547_s6 + $0x130] ss:$36 sps:$4 sm:$0xff]   ;;  %v59_v36 = vmax.f32 %v55_v30, 0.0  ;;  %v1971_v37 = vld [vmem:[%s2547_s6 + $0x4] ss:$36 sps:$4 sm:$0xff]  }
   0xa   :  { %v60_v19 = vpack.c.bf16 %v57_v16, %v56_v15  ;;  %761 = vmatprep.subr.bf16.mxu1 %v1984_v23  ;;  %v58_v35 = vmax.f32 %v54_v29, 0.0  ;;  %v2002_v38 = vld [vmem:[%s2547_s6 + $0x17c] ss:$36 sps:$4 sm:$0xff]   ;;  %v1977_v41 = vld [vmem:[%s2547_s6 + $0x4c] ss:$36 sps:$4 sm:$0xff]  }
   0xb   :  { %1817 = vmatpush3.bf16.msra.mxu0 %v1963_v2  ;;  %v1969_v39 = vld [vmem:[%s2547_s6] ss:$36 sps:$4 sm:$0xff]   ;;  %v1975_v42 = vld [vmem:[%s2547_s6 + $0x48] ss:$36 sps:$4 sm:$0xff]   ;;  %v1983_v43 = vld [vmem:[%s2547_s6 + $0x94] ss:$36 sps:$4 sm:$0xff]  }
   0xc   :  { %1818 = vmatprep.subr.bf16.mxu0 %v1964_v3  ;;  %1828 = vmatprep.mubr.bf16.mxu0 %v60_v19  ;;  %v61_v40 = vpack.c.bf16 %v59_v36, %v58_v35  ;;  %v1981_v44 = vld [vmem:[%s2547_s6 + $0x90] ss:$36 sps:$4 sm:$0xff]   ;;  %v1989_v45 = vld [vmem:[%s2547_s6 + $0xdc] ss:$36 sps:$4 sm:$0xff]   ;;  %v1995_v47 = vld [vmem:[%s2547_s6 + $0x124] ss:$36 sps:$4 sm:$0xff]  }
   0xd   :  { %762 = vmatpush1.bf16.msra.mxu1 %v1986_v26  ;;  %v1987_v46 = vld [vmem:[%s2547_s6 + $0xd8] ss:$36 sps:$4 sm:$0xff]   ;;  %v1993_v48 = vld [vmem:[%s2547_s6 + $0x120] ss:$36 sps:$4 sm:$0xff]   ;;  %v2001_v49 = vld [vmem:[%s2547_s6 + $0x16c] ss:$36 sps:$4 sm:$0xff]  }
   0xe   :  { %763 = vmatprep.subr.bf16.mxu1 %v1990_v28  ;;  %v1999_v50 = vld [vmem:[%s2547_s6 + $0x168] ss:$36 sps:$4 sm:$0xff]   ;;  %v2004_v51 = vld [vmem:[%s2547_s6 + $0x178] ss:$36 sps:$4 sm:$0xff]   ;;  %v2005_v54 = vld [vmem:[%s2547_s6 + $0x1b0] ss:$36 sps:$4 sm:$0xff]  }
   0xf   :  { %1819 = vmatpush3.bf16.msra.mxu0 %v1964_v3  ;;  %v2007_v52 = vld [vmem:[%s2547_s6 + $0x1b4] ss:$36 sps:$4 sm:$0xff]   ;;  %v2008_v53 = vld [vmem:[%s2547_s6 + $0x1c4] ss:$36 sps:$4 sm:$0xff]   ;;  %v2013_v56 = vld [vmem:[%s2547_s6 + $0x1fc] ss:$36 sps:$4 sm:$0xff]  }
  0x10   :  { %1820 = vmatprep.subr.bf16.mxu0 %v1965_v10  ;;  %v2010_v55 = vld [vmem:[%s2547_s6 + $0x1c0] ss:$36 sps:$4 sm:$0xff]   ;;  %v2014_v57 = vld [vmem:[%s2547_s6 + $0x20c] ss:$36 sps:$4 sm:$0xff]   ;;  %v2011_v58 = vld [vmem:[%s2547_s6 + $0x1f8] ss:$36 sps:$4 sm:$0xff]  }
  0x11   :  { %764 = vmatpush1.bf16.msra.mxu1 %v1992_v31  ;;  %v2016_v59 = vld [vmem:[%s2547_s6 + $0x208] ss:$36 sps:$4 sm:$0xff]   ;;  %v2020_v61 = vld [vmem:[%s2547_s6 + $0x20] ss:$36 sps:$4 sm:$0xff]   ;;  %v2023_v24 = vld [vmem:[%s2547_s6 + $0x54] ss:$36 sps:$4 sm:$0xff]  }
  0x12   :  { %765 = vmatprep.subr.bf16.mxu1 %v1996_v33  ;;  %v2019_v60 = vld [vmem:[%s2547_s6 + $0xc] ss:$36 sps:$4 sm:$0xff]   ;;  %v1614_v63 = vld [vmem:[%s2548_s4] ss:$0 sm:$0xff]  ;;  %v2025_v29 = vld [vmem:[%s2547_s6 + $0x98] ss:$36 sps:$4 sm:$0xff]  }
  0x13   :  { %1821 = vmatpush3.bf16.msra.mxu0 %v1965_v10  ;;  %v1615_v1 = vld [vmem:[%s2549_s5] ss:$0 sm:$0xff]  ;;  %v2024_v25 = vld [vmem:[%s2547_s6 + $0x68] ss:$36 sps:$4 sm:$0xff]   ;;  %v2021_v26 = vld [vmem:[%s2547_s6 + $0x50] ss:$36 sps:$4 sm:$0xff]  }
  0x14   :  { %1822 = vmatprep.subr.bf16.mxu0 %v1966_v22  ;;  %v2028_v28 = vld [vmem:[%s2547_s6 + $0xb0] ss:$36 sps:$4 sm:$0xff]   ;;  %v2031_v30 = vld [vmem:[%s2547_s6 + $0xe4] ss:$36 sps:$4 sm:$0xff]   ;;  %v2032_v31 = vld [vmem:[%s2547_s6 + $0xf8] ss:$36 sps:$4 sm:$0xff]  }
  0x15   :  { %766 = vmatpush1.bf16.msra.mxu1 %v1998_v34  ;;  %v2035_v33 = vld [vmem:[%s2547_s6 + $0x12c] ss:$36 sps:$4 sm:$0xff]   ;;  %v2036_v34 = vld [vmem:[%s2547_s6 + $0x140] ss:$36 sps:$4 sm:$0xff]   ;;  %v2039_v36 = vld [vmem:[%s2547_s6 + $0x174] ss:$36 sps:$4 sm:$0xff]  }
  0x16   :  { %767 = vmatprep.subr.bf16.mxu1 %v2002_v38  ;;  %v2033_v35 = vld [vmem:[%s2547_s6 + $0x128] ss:$36 sps:$4 sm:$0xff]   ;;  %v2037_v38 = vld [vmem:[%s2547_s6 + $0x170] ss:$36 sps:$4 sm:$0xff]  }
  0x17   :  { %1823 = vmatpush3.bf16.msra.mxu0 %v1966_v22  ;;  %v2017_v22 = vld [vmem:[%s2547_s6 + $0x8] ss:$36 sps:$4 sm:$0xff]  }
  0x18   :  { %1824 = vmatprep.subr.bf16.mxu0 %v1967_v27 }
  0x19   :  { %768 = vmatpush1.bf16.msra.mxu1 %v2004_v51  ;;  %v2060_v51 = vld [vmem:[%s2547_s6 + $0xf4] ss:$36 sps:$4 sm:$0xff]  }
  0x1a   :  { %769 = vmatprep.subr.bf16.mxu1 %v2008_v53  ;;  %v2063_v53 = vld [vmem:[%s2547_s6 + $0x13c] ss:$36 sps:$4 sm:$0xff]  }
  0x1b   :  { %1825 = vmatpush3.bf16.msra.mxu0 %v1967_v27  ;;  %v2027_v27 = vld [vmem:[%s2547_s6 + $0x9c] ss:$36 sps:$4 sm:$0xff]  }
  0x1c   :  { %1826 = vmatprep.subr.bf16.mxu0 %v1968_v32 }
  0x1d   :  { %770 = vmatpush1.bf16.msra.mxu1 %v2010_v55  ;;  %v2066_v55 = vld [vmem:[%s2547_s6 + $0x184] ss:$36 sps:$4 sm:$0xff]  }
  0x1e   :  { %771 = vmatprep.subr.bf16.mxu1 %v2014_v57  ;;  %v2069_v57 = vld [vmem:[%s2547_s6 + $0x1cc] ss:$36 sps:$4 sm:$0xff]  }
  0x1f   :  { %1827 = vmatpush3.bf16.msra.mxu0 %v1968_v32  ;;  %v2029_v32 = vld [vmem:[%s2547_s6 + $0xe0] ss:$36 sps:$4 sm:$0xff]  }
  0x20   :  { %651 = vmatprep.subr.bf16.mxu0 %v1971_v37  ;;  %v2040_v37 = vld [vmem:[%s2547_s6 + $0x188] ss:$36 sps:$4 sm:$0xff]  }
  0x21   :  { %772 = vmatpush1.bf16.msra.mxu1 %v2016_v59  ;;  %v2072_v59 = vld [vmem:[%s2547_s6 + $0x214] ss:$36 sps:$4 sm:$0xff]  }
  0x22   :  { %1829 = vmatmul.mubr.bf16.vlgmr.msra.gmra.mrb[0].mxu0 %v61_v40  ;;  %1832 = vmatprep.subr.bf16.mxu1 %v2020_v61  ;;  %v2044_v40 = vld [vmem:[%s2547_s6 + $0x1d0] ss:$36 sps:$4 sm:$0xff]  }
  0x23   :  { %652 = vmatpush1.bf16.msra.mxu0 %v1969_v39  ;;  %683 = vmatprep.mubr.bf16.mxu0 %v2091_v62  ;;  %v2043_v39 = vld [vmem:[%s2547_s6 + $0x1bc] ss:$36 sps:$4 sm:$0xff]  }
  0x24   :  { %653 = vmatprep.subr.bf16.mxu0 %v1977_v41  ;;  %v2041_v41 = vld [vmem:[%s2547_s6 + $0x1b8] ss:$36 sps:$4 sm:$0xff]  }
  0x27   :  { %654 = vmatpush1.bf16.msra.mxu0 %v1975_v42  ;;  %v2047_v42 = vld [vmem:[%s2547_s6 + $0x204] ss:$36 sps:$4 sm:$0xff]  }
  0x28   :  { %655 = vmatprep.subr.bf16.mxu0 %v1983_v43  ;;  %v2048_v43 = vld [vmem:[%s2547_s6 + $0x218] ss:$36 sps:$4 sm:$0xff]  }
  0x2b   :  { %656 = vmatpush1.bf16.msra.mxu0 %v1981_v44  ;;  %v2045_v44 = vld [vmem:[%s2547_s6 + $0x200] ss:$36 sps:$4 sm:$0xff]  }
  0x2c   :  { %657 = vmatprep.subr.bf16.mxu0 %v1989_v45  ;;  %v2051_v45 = vld [vmem:[%s2547_s6 + $0x1c] ss:$36 sps:$4 sm:$0xff]  }
  0x2f   :  { %658 = vmatpush1.bf16.msra.mxu0 %v1987_v46  ;;  %v2049_v46 = vld [vmem:[%s2547_s6 + $0x18] ss:$36 sps:$4 sm:$0xff]  }
  0x30   :  { %659 = vmatprep.subr.bf16.mxu0 %v1995_v47  ;;  %v2054_v47 = vld [vmem:[%s2547_s6 + $0x64] ss:$36 sps:$4 sm:$0xff]  }
  0x33   :  { %660 = vmatpush1.bf16.msra.mxu0 %v1993_v48  ;;  %v2052_v48 = vld [vmem:[%s2547_s6 + $0x60] ss:$36 sps:$4 sm:$0xff]  }
  0x34   :  { %661 = vmatprep.subr.bf16.mxu0 %v2001_v49  ;;  %v2057_v49 = vld [vmem:[%s2547_s6 + $0xac] ss:$36 sps:$4 sm:$0xff]  }
  0x37   :  { %662 = vmatpush1.bf16.msra.mxu0 %v1999_v50  ;;  %v2055_v50 = vld [vmem:[%s2547_s6 + $0xa8] ss:$36 sps:$4 sm:$0xff]  }
  0x38   :  { %663 = vmatprep.subr.bf16.mxu0 %v2007_v52  ;;  %v2058_v52 = vld [vmem:[%s2547_s6 + $0xf0] ss:$36 sps:$4 sm:$0xff]  }
  0x3b   :  { %664 = vmatpush1.bf16.msra.mxu0 %v2005_v54  ;;  %v2061_v54 = vld [vmem:[%s2547_s6 + $0x138] ss:$36 sps:$4 sm:$0xff]  }
  0x3c   :  { %665 = vmatprep.subr.bf16.mxu0 %v2013_v56  ;;  %v2064_v56 = vld [vmem:[%s2547_s6 + $0x180] ss:$36 sps:$4 sm:$0xff]  }
  0x3f   :  { %666 = vmatpush1.bf16.msra.mxu0 %v2011_v58  ;;  %v2067_v58 = vld [vmem:[%s2547_s6 + $0x1c8] ss:$36 sps:$4 sm:$0xff]  }
  0x40   :  { %704 = vmatprep.subr.bf16.mxu0 %v2019_v60  ;;  %v2070_v60 = vld [vmem:[%s2547_s6 + $0x210] ss:$36 sps:$4 sm:$0xff]  }
  0xf5   :  { %v1830_v0 = vpop.f32.mrb[0].mxu0 }
  0xf6   :  { %v184_v2 = vmul.f32 %v1830_v0, %v1614_v63  ;;  %v160_v3 = vpop.f32.mrb[1].mxu0 }
  0xf7   :  { %v182_v6 = vmul.f32 %v1614_v63, %v160_v3  ;;  %v1831_v7 = vpop.f32.mrb[2].mxu0 }
  0xf8   :  { %v195_v8 = vadd.f32 %v1615_v1, %v184_v2  ;;  %v185_v9 = vmul.f32 %v1831_v7, %v1614_v63  ;;  %v163_v10 = vpop.f32.mrb[3].mxu0 }
  0xf9   :  { %v193_v11 = vadd.f32 %v1615_v1, %v182_v6  ;;  %v183_v12 = vmul.f32 %v1614_v63, %v163_v10 }
  0xfa   :  { %v196_v13 = vadd.f32 %v1615_v1, %v185_v9  ;;  %v199_v15 = vmax.f32 %v195_v8, 0.0 }
  0xfb   :  { %v194_v14 = vadd.f32 %v1615_v1, %v183_v12  ;;  %v197_v19 = vmax.f32 %v193_v11, 0.0 }
  0xfc   :  { %v200_v16 = vmax.f32 %v196_v13, 0.0 }
  0xfd   :  { %v198_v20 = vmax.f32 %v194_v14, 0.0 }
  0xfe   :  { %v2301_v21 = vpack.c.bf16 %v200_v16, %v199_v15 }
  0xff   :  { %v2306_v23 = vpack.c.bf16 %v198_v20, %v197_v19 }
 0x101   :  { %684 = vmatmul.mubr.bf16.vlgmr.msra.gmra.mrb[4].mxu0 %v2306_v23  ;;  %790 = vmatmul.mubr.bf16.vlgmr.msra.gmra.mrb[0].mxu1 %v2306_v23 }
 0x102   :  { %705 = vmatpush1.bf16.msra.mxu0 %v2017_v22  ;;  %1833 = vmatpush3.bf16.msra.mxu1 %v2020_v61  ;;  %v2073_v61 = vld [vmem:[%s2550_s7] sm:$0xff]  }
 0x103   :  { %706 = vmatprep.subr.bf16.mxu0 %v2023_v24  ;;  %1834 = vmatprep.subr.bf16.mxu1 %v2024_v25 }
 0x104   :  { %693 = vmatprep.mubr.bf16.mxu0 %v2091_v62  ;;  %799 = vmatprep.mubr.bf16.mxu1 %v2091_v62 }
 0x106   :  { %707 = vmatpush1.bf16.msra.mxu0 %v2021_v26  ;;  %1835 = vmatpush3.bf16.msra.mxu1 %v2024_v25  ;;  %v2074_v26 = vld [vmem:[%s2550_s7 + $0x8] sm:$0xff]  }
 0x107   :  { %708 = vmatprep.subr.bf16.mxu0 %v2027_v27  ;;  %1836 = vmatprep.subr.bf16.mxu1 %v2028_v28  ;;  %v2075_v27 = vld [vmem:[%s2550_s7 + $0x10] sm:$0xff]  }
 0x109   :  { %694 = vmatmul.mubr.bf16.gmra.mrb[8].mxu0 %v2301_v21  ;;  %800 = vmatmul.mubr.bf16.gmra.mrb[4].mxu1 %v2301_v21 }
 0x10a   :  { %709 = vmatpush1.bf16.msra.mxu0 %v2025_v29  ;;  %1837 = vmatpush3.bf16.msra.mxu1 %v2028_v28  ;;  %v2076_v28 = vld [vmem:[%s2550_s7 + $0x18] sm:$0xff]   ;;  %v2077_v29 = vld [vmem:[%s2550_s7 + $0x20] sm:$0xff]  }
 0x10b   :  { %1848 = vmatprep.mubr.bf16.mxu1 %v2306_v23  ;;  %710 = vmatprep.subr.bf16.mxu0 %v2031_v30 }
 0x10c   :  { %1838 = vmatprep.subr.bf16.mxu1 %v2032_v31  ;;  %736 = vmatprep.mubr.bf16.mxu0 %v2091_v62 }
 0x10e   :  { %711 = vmatpush1.bf16.msra.mxu0 %v2029_v32  ;;  %1839 = vmatpush3.bf16.msra.mxu1 %v2032_v31 }
 0x10f   :  { %712 = vmatprep.subr.bf16.mxu0 %v2035_v33  ;;  %1840 = vmatprep.subr.bf16.mxu1 %v2036_v34 }
 0x112   :  { %713 = vmatpush1.bf16.msra.mxu0 %v2033_v35  ;;  %1841 = vmatpush3.bf16.msra.mxu1 %v2036_v34 }
 0x113   :  { %714 = vmatprep.subr.bf16.mxu0 %v2039_v36  ;;  %1842 = vmatprep.subr.bf16.mxu1 %v2040_v37 }
 0x116   :  { %715 = vmatpush1.bf16.msra.mxu0 %v2037_v38  ;;  %1843 = vmatpush3.bf16.msra.mxu1 %v2040_v37 }
 0x117   :  { %716 = vmatprep.subr.bf16.mxu0 %v2043_v39  ;;  %1844 = vmatprep.subr.bf16.mxu1 %v2044_v40 }
 0x11a   :  { %717 = vmatpush1.bf16.msra.mxu0 %v2041_v41  ;;  %1845 = vmatpush3.bf16.msra.mxu1 %v2044_v40 }
 0x11b   :  { %718 = vmatprep.subr.bf16.mxu0 %v2047_v42  ;;  %1846 = vmatprep.subr.bf16.mxu1 %v2048_v43 }
 0x11e   :  { %719 = vmatpush1.bf16.msra.mxu0 %v2045_v44  ;;  %1847 = vmatpush3.bf16.msra.mxu1 %v2048_v43 }
 0x11f   :  { %810 = vmatprep.subr.bf16.mxu0 %v2051_v45 }
 0x121   :  { %737 = vmatmul.mubr.bf16.vlgmr.msra.gmra.mrb[12].mxu0 %v2306_v23  ;;  %1849 = vmatmul.mubr.bf16.vlgmr.msra.gmra.mrb[8].mxu1 %v2301_v21 }
 0x122   :  { %811 = vmatpush1.bf16.msra.mxu0 %v2049_v46  ;;  %746 = vmatprep.mubr.bf16.mxu0 %v2091_v62 }
 0x123   :  { %812 = vmatprep.subr.bf16.mxu0 %v2054_v47  ;;  %1856 = vmatprep.mubr.msk.bf16.mxu1 %vm928_vm0, %v2073_v61 }
 0x126   :  { %813 = vmatpush1.bf16.msra.mxu0 %v2052_v48  ;;  %v2078_v48 = vld [vmem:[%s2550_s7 + $0x28] sm:$0xff]  }
 0x127   :  { %814 = vmatprep.subr.bf16.mxu0 %v2057_v49  ;;  %v2079_v49 = vld [vmem:[%s2550_s7 + $0x30] sm:$0xff]  }
 0x129   :  { %747 = vmatmul.mubr.bf16.gmra.mrb[16].mxu0 %v2301_v21 }
 0x12a   :  { %815 = vmatpush1.bf16.msra.mxu0 %v2055_v50  ;;  %842 = vmatprep.mubr.bf16.mxu0 %v2091_v62  ;;  %v2080_v50 = vld [vmem:[%s2550_s7 + $0x38] sm:$0xff]  }
 0x12b   :  { %816 = vmatprep.subr.bf16.mxu0 %v2060_v51  ;;  %v2081_v51 = vld [vmem:[%s2550_s7 + $0x40] sm:$0xff]  }
 0x12e   :  { %817 = vmatpush1.bf16.msra.mxu0 %v2058_v52 }
 0x12f   :  { %818 = vmatprep.subr.bf16.mxu0 %v2063_v53 }
 0x132   :  { %819 = vmatpush1.bf16.msra.mxu0 %v2061_v54 }
 0x133   :  { %820 = vmatprep.subr.bf16.mxu0 %v2066_v55 }
 0x136   :  { %821 = vmatpush1.bf16.msra.mxu0 %v2064_v56 }
 0x137   :  { %822 = vmatprep.subr.bf16.mxu0 %v2069_v57 }
 0x13a   :  { %823 = vmatpush1.bf16.msra.mxu0 %v2067_v58  ;;  %v2082_v58 = vld [vmem:[%s2550_s7 + $0x48] sm:$0xff]  }
 0x13b   :  { %824 = vmatprep.subr.bf16.mxu0 %v2072_v59  ;;  %v2083_v59 = vld [vmem:[%s2550_s7 + $0x50] sm:$0xff]  }
 0x13e   :  { %825 = vmatpush1.bf16.msra.mxu0 %v2070_v60 }
 0x141   :  { %843 = vmatmul.mubr.bf16.vlgmr.msra.gmra.mrb[20].mxu0 %v2306_v23 }
 0x142   :  { %852 = vmatprep.mubr.bf16.mxu0 %v2091_v62 }
 0x149   :  { %853 = vmatmul.mubr.bf16.gmra.mrb[24].mxu0 %v2301_v21 }
 0x1d4   :  { %v685_v63 = vpop.f32.mrb[4].mxu0  ;;  %v791_v0 = vpop.f32.mrb[0].mxu1 }
 0x1d5   :  { %v687_v1 = vpop.f32.mrb[5].mxu0  ;;  %v793_v2 = vpop.f32.mrb[1].mxu1 }
 0x1d6   :  { %v689_v3 = vpop.f32.mrb[6].mxu0  ;;  %v795_v6 = vpop.f32.mrb[2].mxu1 }
 0x1d7   :  { %v912_v7 = vpack.c.bf16 %v689_v3, %v685_v63  ;;  %v2439_v8 = vpack.c.bf16 %v795_v6, %v791_v0  ;;  %v691_v9 = vpop.f32.mrb[7].mxu0  ;;  %v797_v62 = vpop.f32.mrb[3].mxu1  ;;  %v2084_v3 = vld [vmem:[%s2550_s7 + $0x58] sm:$0xff]   ;;  %v2085_v6 = vld [vmem:[%s2550_s7 + $0x60] sm:$0xff]  }
 0x1d8   :  { %v988_v10 = vpack.c.bf16 %v691_v9, %v687_v1  ;;  %v2441_v11 = vpack.c.bf16 %v797_v62, %v793_v2  ;;  %v2088_v9 = vld [vmem:[%s2550_s7 + $0x78] sm:$0xff]   ;;  %v2089_v62 = vld [vmem:[%s2550_s7 + $0x80] sm:$0xff]  }
 0x1d9   :  { %1852 = vmatprep.subr.bf16.mxu1 %v912_v7 }
 0x1da   :  { %1853 = vmatpush3.bf16.msra.mxu1 %v912_v7  ;;  %v2086_v7 = vld [vmem:[%s2550_s7 + $0x68] sm:$0xff]  }
 0x1dc   :  { %v695_v12 = vpop.f32.mrb[8].mxu0  ;;  %v801_v13 = vpop.f32.mrb[4].mxu1 }
 0x1dd   :  { %v697_v14 = vpop.f32.mrb[9].mxu0  ;;  %v803_v15 = vpop.f32.mrb[5].mxu1 }
 0x1de   :  { %v699_v16 = vpop.f32.mrb[10].mxu0  ;;  %v805_v19 = vpop.f32.mrb[6].mxu1 }
 0x1df   :  { %v913_v20 = vpack.c.bf16 %v699_v16, %v695_v12  ;;  %v1217_v21 = vpack.c.bf16 %v805_v19, %v801_v13  ;;  %v701_v22 = vpop.f32.mrb[11].mxu0  ;;  %v807_v23 = vpop.f32.mrb[7].mxu1 }
 0x1e0   :  { %v989_v24 = vpack.c.bf16 %v701_v22, %v697_v14  ;;  %v2443_v25 = vpack.c.bf16 %v807_v23, %v803_v15 }
 0x1e1   :  { %1854 = vmatprep.subr.bf16.mxu1 %v913_v20 }
 0x1e2   :  { %1855 = vmatpush3.bf16.msra.mxu1 %v913_v20 }
 0x1e3   :  { %1860 = vmatprep.subr.bf16.mxu1 %v988_v10 }
 0x1e5   :  { %1857 = vmatmul.mubr.msk.bf16.vlgmr.msra.gmra.mrb[12].mxu1 %vm928_vm0, %v2074_v26 }
 0x1e6   :  { %1861 = vmatpush3.bf16.msra.mxu1 %v988_v10  ;;  %1864 = vmatprep.mubr.msk.bf16.mxu1 %vm928_vm0, %v2075_v27  ;;  %v2090_v10 = vld [vmem:[%s2550_s7 + $0x88] sm:$0xff]  }
 0x1e7   :  { %1862 = vmatprep.subr.bf16.mxu1 %v989_v24 }
 0x1ea   :  { %1863 = vmatpush3.bf16.msra.mxu1 %v989_v24 }
 0x1f1   :  { %1865 = vmatmul.mubr.msk.bf16.vlgmr.msra.gmra.mrb[12].mxu1 %vm928_vm0, %v2076_v28 }
 0x1f2   :  { %1872 = vmatprep.mubr.msk.bf16.mxu1 %vm928_vm0, %v2077_v29 }
 0x1f4   :  { %v738_v30 = vpop.f32.mrb[12].mxu0  ;;  %v1850_v31 = vpop.f32.mrb[8].mxu1 }
 0x1f5   :  { %v740_v32 = vpop.f32.mrb[13].mxu0  ;;  %v897_v33 = vpop.f32.mrb[9].mxu1 }
 0x1f6   :  { %v742_v34 = vpop.f32.mrb[14].mxu0  ;;  %v1851_v35 = vpop.f32.mrb[10].mxu1 }
 0x1f7   :  { %v1064_v36 = vpack.c.bf16 %v742_v34, %v738_v30  ;;  %v2461_v37 = vpack.c.bf16 %v1851_v35, %v1850_v31  ;;  %v744_v38 = vpop.f32.mrb[15].mxu0  ;;  %v900_v39 = vpop.f32.mrb[11].mxu1 }
 0x1f8   :  { %v1140_v40 = vpack.c.bf16 %v744_v38, %v740_v32  ;;  %v2463_v41 = vpack.c.bf16 %v900_v39, %v897_v33 }
 0x1f9   :  { %1868 = vmatprep.subr.bf16.mxu1 %v1064_v36 }
 0x1fa   :  { %1869 = vmatpush3.bf16.msra.mxu1 %v1064_v36 }
 0x1fc   :  { %v748_v42 = vpop.f32.mrb[16].mxu0 }
 0x1fd   :  { %v750_v43 = vpop.f32.mrb[17].mxu0 }
 0x1fe   :  { %v752_v44 = vpop.f32.mrb[18].mxu0 }
 0x1ff   :  { %v1065_v45 = vpack.c.bf16 %v752_v44, %v748_v42  ;;  %v754_v46 = vpop.f32.mrb[19].mxu0 }
 0x200   :  { %v1141_v47 = vpack.c.bf16 %v754_v46, %v750_v43 }
 0x201   :  { %1870 = vmatprep.subr.bf16.mxu1 %v1065_v45 }
 0x202   :  { %1871 = vmatpush3.bf16.msra.mxu1 %v1065_v45 }
 0x203   :  { %1876 = vmatprep.subr.bf16.mxu1 %v1140_v40 }
 0x205   :  { %1873 = vmatmul.mubr.msk.bf16.vlgmr.msra.gmra.mrb[12].mxu1 %vm928_vm0, %v2078_v48 }
 0x206   :  { %1877 = vmatpush3.bf16.msra.mxu1 %v1140_v40  ;;  %1880 = vmatprep.mubr.msk.bf16.mxu1 %vm928_vm0, %v2079_v49 }
 0x207   :  { %1878 = vmatprep.subr.bf16.mxu1 %v1141_v47 }
 0x20a   :  { %1879 = vmatpush3.bf16.msra.mxu1 %v1141_v47 }
 0x20b   :  { %1884 = vmatprep.subr.bf16.mxu1 %v2439_v8 }
 0x211   :  { %1881 = vmatmul.mubr.msk.bf16.vlgmr.msra.gmra.mrb[12].mxu1 %vm928_vm0, %v2080_v50 }
 0x212   :  { %1885 = vmatpush3.bf16.msra.mxu1 %v2439_v8  ;;  %1888 = vmatprep.mubr.msk.bf16.mxu1 %vm928_vm0, %v2081_v51  ;;  %v2087_v8 = vld [vmem:[%s2550_s7 + $0x70] sm:$0xff]  }
 0x213   :  { %1886 = vmatprep.subr.bf16.mxu1 %v1217_v21 }
 0x214   :  { %v844_v52 = vpop.f32.mrb[20].mxu0 }
 0x215   :  { %v846_v53 = vpop.f32.mrb[21].mxu0 }
 0x216   :  { %1887 = vmatpush3.bf16.msra.mxu1 %v1217_v21  ;;  %v848_v54 = vpop.f32.mrb[22].mxu0 }
 0x217   :  { %v1368_v55 = vpack.c.bf16 %v848_v54, %v844_v52  ;;  %1892 = vmatprep.subr.bf16.mxu1 %v2441_v11  ;;  %v850_v56 = vpop.f32.mrb[23].mxu0 }
 0x218   :  { %v1444_v57 = vpack.c.bf16 %v850_v56, %v846_v53 }
 0x21c   :  { %v854_v60 = vpop.f32.mrb[24].mxu0 }
 0x21d   :  { %v856_v61 = vpop.f32.mrb[25].mxu0  ;;  %1889 = vmatmul.mubr.msk.bf16.vlgmr.msra.gmra.mrb[12].mxu1 %vm928_vm0, %v2082_v58 }
 0x21e   :  { %1893 = vmatpush3.bf16.msra.mxu1 %v2441_v11  ;;  %v858_v63 = vpop.f32.mrb[26].mxu0  ;;  %1896 = vmatprep.mubr.msk.bf16.mxu1 %vm928_vm0, %v2083_v59 }
 0x21f   :  { %v1369_v0 = vpack.c.bf16 %v858_v63, %v854_v60  ;;  %1894 = vmatprep.subr.bf16.mxu1 %v2443_v25  ;;  %v860_v1 = vpop.f32.mrb[27].mxu0 }
 0x220   :  { %v1445_v2 = vpack.c.bf16 %v860_v1, %v856_v61 }
 0x222   :  { %1895 = vmatpush3.bf16.msra.mxu1 %v2443_v25 }
 0x223   :  { %1900 = vmatprep.subr.bf16.mxu1 %v1368_v55 }
 0x229   :  { %1897 = vmatmul.mubr.msk.bf16.vlgmr.msra.gmra.mrb[12].mxu1 %vm928_vm0, %v2084_v3 }
 0x22a   :  { %1901 = vmatpush3.bf16.msra.mxu1 %v1368_v55  ;;  %1904 = vmatprep.mubr.msk.bf16.mxu1 %vm928_vm0, %v2085_v6 }
 0x22b   :  { %1902 = vmatprep.subr.bf16.mxu1 %v1369_v0 }
 0x22e   :  { %1903 = vmatpush3.bf16.msra.mxu1 %v1369_v0 }
 0x22f   :  { %1908 = vmatprep.subr.bf16.mxu1 %v1444_v57 }
 0x235   :  { %1905 = vmatmul.mubr.msk.bf16.vlgmr.msra.gmra.mrb[12].mxu1 %vm928_vm0, %v2086_v7 }
 0x236   :  { %1909 = vmatpush3.bf16.msra.mxu1 %v1444_v57  ;;  %1912 = vmatprep.mubr.msk.bf16.mxu1 %vm928_vm0, %v2087_v8 }
 0x237   :  { %1910 = vmatprep.subr.bf16.mxu1 %v1445_v2 }
 0x23a   :  { %1911 = vmatpush3.bf16.msra.mxu1 %v1445_v2 }
 0x23b   :  { %1916 = vmatprep.subr.bf16.mxu1 %v2463_v41 }
 0x241   :  { %1913 = vmatmul.mubr.msk.bf16.vlgmr.msra.gmra.mrb[12].mxu1 %vm928_vm0, %v2088_v9 }
 0x242   :  { %1917 = vmatpush3.bf16.msra.mxu1 %v2463_v41  ;;  %1920 = vmatprep.mubr.msk.bf16.mxu1 %vm928_vm0, %v2089_v62 }
 0x243   :  { %1918 = vmatprep.subr.bf16.mxu1 %v2461_v37 }
 0x246   :  { %1919 = vmatpush3.bf16.msra.mxu1 %v2461_v37 }
 0x24d   :  { %1921 = vmatmul.mubr.msk.bf16.vlgmr.msra.gmra.mrb[12].mxu1 %vm928_vm0, %v2090_v10 }
 0x320   :  { %v1922_v11 = vpop.f32.mrb[12].mxu1 }
 0x321   :  { %v1924_v12 = vadd.f32 %v1922_v11, %v2179_v17  ;;  %v1577_v13 = vpop.f32.mrb[13].mxu1 }
 0x322   :  { %v1925_v14 = vadd.f32 %v1577_v13, %v2152_v4  ;;  %v1923_v15 = vpop.f32.mrb[14].mxu1 }
 0x323   :  { %1598 = vst [vmem:[%s2551_s8 + $0x10] sm:$0xff] %v1924_v12  ;;  %v1926_v16 = vadd.f32 %v1923_v15, %v2184_v18  ;;  %v1580_v19 = vpop.f32.mrb[15].mxu1 }
 0x324   :  { %1596 = vst [vmem:[%s2551_s8] sm:$0xff] %v1925_v14  ;;  %v1927_v20 = vadd.f32 %v1580_v19, %v2157_v5 }
 0x325   :  { %1599 = vst [vmem:[%s2551_s8 + $0x18] sm:$0xff] %v1926_v16 }
 0x326   :  { %1597 = vst [vmem:[%s2551_s8 + $0x8] sm:$0xff] %v1927_v20 }

// kernel: _lambda_.25
= control target key start
LH: loop header
LB: loop body
LE: loop exit
PB: predicated region body
PF: predicated region fallthrough
CT: control target
= control target key end

     0   :  { %v304_v2 = vmov 0.0   ;;  %vm305_vm0 = vmmov 0   ;;  %vm49_vm1 = vcmask 1040384   ;;  %vm45_vm2 = vcmask 15360   ;;  %s393_s0 = inlined_call_operand.vmem [shape: f32[2,128], index: 0, kind: input, shape index: {}]   ;;  %s394_s1 = inlined_call_operand.vmem [shape: f32[1,128], index: 1, kind: input, shape index: {}]   ;;  %s395_s2 = inlined_call_operand.vmem [shape: f32[1,128], index: 2, kind: input, shape index: {}]   ;;  %s396_s3 = inlined_call_operand.vmem [shape: bf16[2,2], index: 3, kind: input, shape index: {}]   ;;  %s397_s4 = inlined_call_operand.vmem [shape: bf16[128,128], index: 4, kind: input, shape index: {}]   ;;  %s398_s5 = inlined_call_operand.vmem [shape: f32[1,128], index: 5, kind: input, shape index: {}]   ;;  %s399_s6 = inlined_call_operand.hbm [shape: f32[2,128], index: 6, kind: output, shape index: {}]  }
   0x1   :  { %v25_v0 = vld [vmem:[%s393_s0] sm:$0x3]  ;;  %243 = vmatprep.subr.bf16.mxu0 %v304_v2  ;;  %249 = vmatprep.subr.bf16.mxu1 %v304_v2  ;;  %v273_v7 = vld [vmem:[%s397_s4 + $0x8] sm:$0xff]   ;;  %v274_v10 = vld [vmem:[%s397_s4 + $0x10] sm:$0xff]  }
   0x2   :  { %v220_v1 = vld [vmem:[%s394_s1] ss:$0 sm:$0xff]  ;;  %245 = vmatprep.mubr.msk.bf16.mxu0 %vm305_vm0, %v304_v2  ;;  %265 = vmatprep.mubr.msk.bf16.mxu1 %vm305_vm0, %v304_v2 }
   0x3   :  { %v33_v3 = vmul.f32 %v220_v1, %v25_v0  ;;  %v221_v4 = vld [vmem:[%s395_s2] ss:$0 sm:$0xff] }
   0x4   :  { %v272_v5 = vld [vmem:[%s397_s4] sm:$0xff]  }
   0x5   :  { %v41_v6 = vadd.f32 %v221_v4, %v33_v3  ;;  %250 = vmatpush3.bf16.msra.mxu1 %v272_v5  ;;  %v43_v12 = vld [vmem:[%s396_s3] sm:$0x1] }
   0x6   :  { %251 = vmatprep.subr.bf16.mxu1 %v304_v2 }
   0x7   :  { %v42_v8 = vmax.f32 %v41_v6, 0.0 }
   0x9   :  { %v44_v9 = vpack.c.bf16 %v42_v8, %v42_v8  ;;  %252 = vmatpush3.bf16.msra.mxu1 %v273_v7 }
   0xa   :  { %253 = vmatprep.subr.bf16.mxu1 %v304_v2 }
   0xb   :  { %v51_v11 = vsel %vm49_vm1, %v44_v9, 0 }
   0xc   :  { %244 = vmatpush3.bf16.msra.mxu0 %v51_v11 }
   0xd   :  { %11 = vsyncpa [#allocation3], 0  ;;  %254 = vmatpush3.bf16.msra.mxu1 %v274_v10  ;;  %v275_v13 = vld [vmem:[%s397_s4 + $0x18] sm:$0xff]   ;;  %v276_v14 = vld [vmem:[%s397_s4 + $0x20] sm:$0xff]   ;;  %s306_s19 = smov [#allocation2]  }
   0xe   :  { %255 = vmatprep.subr.bf16.mxu1 %v304_v2  ;;  %v277_v15 = vld [vmem:[%s397_s4 + $0x28] sm:$0xff]   ;;  %v278_v16 = vld [vmem:[%s397_s4 + $0x30] sm:$0xff]   ;;  %v279_v17 = vld [vmem:[%s397_s4 + $0x38] sm:$0xff]   ;;  %s212_s20 = sshll.u32 %s306_s19, 4  ;;  %s213_s20 = int_to_ptr.vmem [resolvable:$true] %s212_s20 }
   0xf   :  { %246 = vmatmul.mubr.msk.bf16.vlgmr.msra.gmra.mrb[0].mxu0 %vm45_vm2, %v43_v12  ;;  %v223_v23 = vld [vmem:[%s398_s5] ss:$0 sm:$0xff]  ;;  %s280_s4 = scalar_lea.vmem %s213_s20, 32  ;;  %p285_p1 = scmp.lt.s32.totalorder %s213_s20, %s213_s20 }
  0x10   :  { %p281_p0 = scmp.ne.s32.totalorder %s213_s20, %s280_s4  ;;  %p286_p2 = scmp.lt.s32.totalorder %s280_s4, %s280_s4 }
  0x11   :  { %256 = vmatpush3.bf16.msra.mxu1 %v275_v13 }
  0x12   :  { %257 = vmatprep.subr.bf16.mxu1 %v304_v2  ;;  %p287_p3 = por %p286_p2, %p285_p1 }
  0x14   :  { %p288_p4 = pnand %p287_p3, %p281_p0 }
  0x15   :  { %258 = vmatpush3.bf16.msra.mxu1 %v276_v14 }
  0x16   :  { %259 = vmatprep.subr.bf16.mxu1 %v304_v2 }
  0x19   :  { %260 = vmatpush3.bf16.msra.mxu1 %v277_v15 }
  0x1a   :  { %261 = vmatprep.subr.bf16.mxu1 %v304_v2 }
  0x1d   :  { %262 = vmatpush3.bf16.msra.mxu1 %v278_v16 }
  0x1e   :  { %263 = vmatprep.subr.bf16.mxu1 %v304_v2 }
  0x21   :  { %264 = vmatpush3.bf16.msra.mxu1 %v279_v17 }
  0xe2   :  { %v87_v18 = vpop.f32.mrb[0].mxu0 }
  0xe3   :  { %v93_v19 = vpack.c.bf16 %v87_v18, %v87_v18  ;;  %v247_v20 = vpop.f32.mrb[1].mxu0 }
  0xe4   :  { %v90_v21 = vpop.f32.mrb[2].mxu0 }
  0xe5   :  { %v248_v22 = vpop.f32.mrb[3].mxu0  ;;  %266 = vmatmul.mubr.bf16.vlgmr.msra.gmra.mrb[0].mxu1 %v93_v19 }
 0x1b8   :  { %v199_v24 = vpop.f32.mrb[0].mxu1 }
 0x1b9   :  { %v200_v25 = vadd.f32 %v223_v23, %v199_v24  ;;  %v267_v26 = vpop.f32.mrb[1].mxu1 }
 0x1ba   :  { %v202_v27 = vpop.f32.mrb[2].mxu1 }
 0x1bb   :  { %205 = vst [vmem:[#allocation2] sm:$0x3] %v200_v25  ;;  %v268_v28 = vpop.f32.mrb[3].mxu1 }
 0x1bc   :  { %291 = shalt.err (!%p288_p4)
}
 0x1bd   :  { %s292_s5 = scalar_lea.hbm %s399_s6, 32 }
 0x1be   :  { %p293_p5 = scmp.ne.s32.totalorder %s399_s6, %s292_s5  ;;  %p296_p6 = scmp.lt.u32.totalorder %s292_s5, %s399_s6 }
 0x1c0   :  { %p298_p7 = pnand %p296_p6, %p293_p5 }
 0x1c2   :  { %301 = shalt.err (!%p298_p7)
}
 0x1c3   :  { %215 = dma.vmem_to_hbm [thread:$0]  %s213_s20, 32, %s399_s6, [#allocation3]  }
 0x1c4   :  { %302 = dma.done.wait [#allocation3], 32  }
 0x1c5   :  { %303 = vsyncadd [#allocation3], 4294967264 }
 0x1c6   :  { %219 = vsyncpa [#allocation3], 1 }

// kernel: _lambda_.23
= control target key start
LH: loop header
LB: loop body
LE: loop exit
PB: predicated region body
PF: predicated region fallthrough
CT: control target
= control target key end

     0   :  { %v1658_v0 = vmov 0.0   ;;  %vm1659_vm0 = vmmov 0   ;;  %v1660_v50 = vmov 0   ;;  %vm829_vm1 = vcmask 1040384   ;;  %s2067_s3 = inlined_call_operand.vmem [shape: bf16[128,128], index: 3, kind: input, shape index: {}]   ;;  %s2068_s6 = inlined_call_operand.vmem [shape: bf16[128,1152], index: 6, kind: input, shape index: {}]   ;;  %s2069_s0 = inlined_call_operand.vmem [shape: f32[2,128], index: 0, kind: input, shape index: {}]   ;;  %s2070_s1 = inlined_call_operand.vmem [shape: f32[1,128], index: 1, kind: input, shape index: {}]   ;;  %s2071_s2 = inlined_call_operand.vmem [shape: f32[1,128], index: 2, kind: input, shape index: {}]   ;;  %s2072_s4 = inlined_call_operand.vmem [shape: f32[1,128], index: 4, kind: input, shape index: {}]   ;;  %s2073_s5 = inlined_call_operand.vmem [shape: f32[1,128], index: 5, kind: input, shape index: {}]   ;;  %s2074_s7 = inlined_call_operand.vmem [shape: bf16[9,2,2], index: 7, kind: input, shape index: {}]   ;;  %s2075_s8 = inlined_call_operand.vmem [shape: f32[2,128], index: 8, kind: output, shape index: {}]  }
   0x1   :  { %1416 = vmatprep.subr.bf16.mxu1 %v1658_v0  ;;  %v1546_v1 = vld [vmem:[%s2067_s3] sm:$0xff]   ;;  %1432 = vmatprep.mubr.msk.bf16.mxu1 %vm1659_vm0, %v1658_v0  ;;  %v1547_v2 = vld [vmem:[%s2067_s3 + $0x8] sm:$0xff]   ;;  %v1548_v3 = vld [vmem:[%s2067_s3 + $0x10] sm:$0xff]   ;;  %vm825_vm2 = vcmask 15360  }
   0x2   :  { %1417 = vmatpush3.bf16.msra.mxu1 %v1546_v1  ;;  %v1549_v4 = vld [vmem:[%s2067_s3 + $0x18] sm:$0xff]   ;;  %v1557_v5 = vld [vmem:[%s2068_s6 + $0xc] ss:$36 sps:$4 sm:$0xff]   ;;  %v1550_v7 = vld [vmem:[%s2067_s3 + $0x20] sm:$0xff]   ;;  %692 = vmatprep.mubr.bf16.mxu0 %v1660_v50 }
   0x3   :  { %1418 = vmatprep.subr.bf16.mxu1 %v1658_v0  ;;  %v1559_v6 = vld [vmem:[%s2068_s6 + $0x8] ss:$36 sps:$4 sm:$0xff]   ;;  %v1736_v8 = vld [vmem:[%s2069_s0] sm:$0x3]  ;;  %660 = vmatprep.subr.bf16.mxu0 %v1557_v5  ;;  %v1563_v10 = vld [vmem:[%s2068_s6 + $0x54] ss:$36 sps:$4 sm:$0xff]  }
   0x4   :  { %v1279_v9 = vld [vmem:[%s2070_s1] ss:$0 sm:$0xff]  ;;  %661 = vmatpush1.bf16.msra.mxu0 %v1559_v6  ;;  %v1565_v11 = vld [vmem:[%s2068_s6 + $0x50] ss:$36 sps:$4 sm:$0xff]   ;;  %v1551_v12 = vld [vmem:[%s2067_s3 + $0x28] sm:$0xff]  }
   0x5   :  { %662 = vmatprep.subr.bf16.mxu0 %v1563_v10  ;;  %v1569_v13 = vld [vmem:[%s2068_s6 + $0x9c] ss:$36 sps:$4 sm:$0xff]   ;;  %v38_v14 = vmul.f32 %v1279_v9, %v1736_v8  ;;  %v1575_v17 = vld [vmem:[%s2068_s6 + $0xe4] ss:$36 sps:$4 sm:$0xff]   ;;  %v1552_v18 = vld [vmem:[%s2067_s3 + $0x30] sm:$0xff]  }
   0x6   :  { %1419 = vmatpush3.bf16.msra.mxu1 %v1547_v2  ;;  %v1280_v15 = vld [vmem:[%s2071_s2] ss:$0 sm:$0xff]  ;;  %v1571_v16 = vld [vmem:[%s2068_s6 + $0x98] ss:$36 sps:$4 sm:$0xff]   ;;  %v1581_v21 = vld [vmem:[%s2068_s6 + $0x12c] ss:$36 sps:$4 sm:$0xff]  }
   0x7   :  { %1420 = vmatprep.subr.bf16.mxu1 %v1658_v0  ;;  %v46_v19 = vadd.f32 %v1280_v15, %v38_v14  ;;  %v1577_v20 = vld [vmem:[%s2068_s6 + $0xe0] ss:$36 sps:$4 sm:$0xff]   ;;  %v1553_v22 = vld [vmem:[%s2067_s3 + $0x38] sm:$0xff]   ;;  %v1583_v23 = vld [vmem:[%s2068_s6 + $0x128] ss:$36 sps:$4 sm:$0xff]  }
   0x8   :  { %663 = vmatpush1.bf16.msra.mxu0 %v1565_v11  ;;  %v1556_v25 = vld [vmem:[%s2068_s6 + $0x4] ss:$36 sps:$4 sm:$0xff]   ;;  %v1587_v26 = vld [vmem:[%s2068_s6 + $0x174] ss:$36 sps:$4 sm:$0xff]   ;;  %v1562_v30 = vld [vmem:[%s2068_s6 + $0x4c] ss:$36 sps:$4 sm:$0xff]  }
   0x9   :  { %664 = vmatprep.subr.bf16.mxu0 %v1569_v13  ;;  %v47_v24 = vmax.f32 %v46_v19, 0.0  ;;  %v1554_v27 = vld [vmem:[%s2068_s6] ss:$36 sps:$4 sm:$0xff]   ;;  %v1589_v28 = vld [vmem:[%s2068_s6 + $0x170] ss:$36 sps:$4 sm:$0xff]  }
   0xa   :  { %1421 = vmatpush3.bf16.msra.mxu1 %v1548_v3  ;;  %v1560_v31 = vld [vmem:[%s2068_s6 + $0x48] ss:$36 sps:$4 sm:$0xff]   ;;  %v1568_v32 = vld [vmem:[%s2068_s6 + $0x94] ss:$36 sps:$4 sm:$0xff]   ;;  %v1574_v34 = vld [vmem:[%s2068_s6 + $0xdc] ss:$36 sps:$4 sm:$0xff]  }
   0xb   :  { %1422 = vmatprep.subr.bf16.mxu1 %v1658_v0  ;;  %v48_v29 = vpack.c.bf16 %v47_v24, %v47_v24  ;;  %v1566_v33 = vld [vmem:[%s2068_s6 + $0x90] ss:$36 sps:$4 sm:$0xff]   ;;  %v1572_v35 = vld [vmem:[%s2068_s6 + $0xd8] ss:$36 sps:$4 sm:$0xff]   ;;  %v1580_v36 = vld [vmem:[%s2068_s6 + $0x124] ss:$36 sps:$4 sm:$0xff]  }
   0xc   :  { %665 = vmatpush1.bf16.msra.mxu0 %v1571_v16  ;;  %v1578_v37 = vld [vmem:[%s2068_s6 + $0x120] ss:$36 sps:$4 sm:$0xff]   ;;  %v1586_v38 = vld [vmem:[%s2068_s6 + $0x16c] ss:$36 sps:$4 sm:$0xff]   ;;  %v1592_v40 = vld [vmem:[%s2068_s6 + $0x1b4] ss:$36 sps:$4 sm:$0xff]  }
   0xd   :  { %666 = vmatprep.subr.bf16.mxu0 %v1575_v17  ;;  %v1584_v39 = vld [vmem:[%s2068_s6 + $0x168] ss:$36 sps:$4 sm:$0xff]   ;;  %v1593_v41 = vld [vmem:[%s2068_s6 + $0x1bc] ss:$36 sps:$4 sm:$0xff]   ;;  %v1590_v42 = vld [vmem:[%s2068_s6 + $0x1b0] ss:$36 sps:$4 sm:$0xff]  }
   0xe   :  { %1423 = vmatpush3.bf16.msra.mxu1 %v1549_v4  ;;  %v1595_v43 = vld [vmem:[%s2068_s6 + $0x1b8] ss:$36 sps:$4 sm:$0xff]   ;;  %v1599_v45 = vld [vmem:[%s2068_s6 + $0x204] ss:$36 sps:$4 sm:$0xff]   ;;  %v1289_v51 = vld [vmem:[%s2072_s4] ss:$0 sm:$0xff] }
   0xf   :  { %1424 = vmatprep.subr.bf16.mxu1 %v1658_v0  ;;  %v1598_v44 = vld [vmem:[%s2068_s6 + $0x1fc] ss:$36 sps:$4 sm:$0xff]   ;;  %v1604_v48 = vld [vmem:[%s2068_s6 + $0x14] ss:$36 sps:$4 sm:$0xff]   ;;  %v1613_v1 = vld [vmem:[%s2068_s6 + $0x64] ss:$36 sps:$4 sm:$0xff]  }
  0x10   :  { %667 = vmatpush1.bf16.msra.mxu0 %v1577_v20  ;;  %v1596_v46 = vld [vmem:[%s2068_s6 + $0x1f8] ss:$36 sps:$4 sm:$0xff]   ;;  %v1601_v47 = vld [vmem:[%s2068_s6 + $0x200] ss:$36 sps:$4 sm:$0xff]   ;;  %v1602_v60 = vld [vmem:[%s2068_s6 + $0x10] ss:$36 sps:$4 sm:$0xff]  }
  0x11   :  { %668 = vmatprep.subr.bf16.mxu0 %v1581_v21  ;;  %v1607_v49 = vld [vmem:[%s2068_s6 + $0x1c] ss:$36 sps:$4 sm:$0xff]   ;;  %v1616_v4 = vld [vmem:[%s2068_s6 + $0xa4] ss:$36 sps:$4 sm:$0xff]   ;;  %v1619_v5 = vld [vmem:[%s2068_s6 + $0xac] ss:$36 sps:$4 sm:$0xff]  }
  0x12   :  { %1425 = vmatpush3.bf16.msra.mxu1 %v1550_v7  ;;  %v1290_v53 = vld [vmem:[%s2073_s5] ss:$0 sm:$0xff]  ;;  %v1605_v61 = vld [vmem:[%s2068_s6 + $0x18] ss:$36 sps:$4 sm:$0xff]   ;;  %v1617_v7 = vld [vmem:[%s2068_s6 + $0xa8] ss:$36 sps:$4 sm:$0xff]  }
  0x13   :  { %1426 = vmatprep.subr.bf16.mxu1 %v1658_v0  ;;  %v1610_v63 = vld [vmem:[%s2068_s6 + $0x5c] ss:$36 sps:$4 sm:$0xff]   ;;  %v1622_v9 = vld [vmem:[%s2068_s6 + $0xec] ss:$36 sps:$4 sm:$0xff]   ;;  %v1625_v10 = vld [vmem:[%s2068_s6 + $0xf4] ss:$36 sps:$4 sm:$0xff]  }
  0x14   :  { %669 = vmatpush1.bf16.msra.mxu0 %v1583_v23  ;;  %v1608_v2 = vld [vmem:[%s2068_s6 + $0x58] ss:$36 sps:$4 sm:$0xff]   ;;  %v1611_v3 = vld [vmem:[%s2068_s6 + $0x60] ss:$36 sps:$4 sm:$0xff]   ;;  %v1620_v11 = vld [vmem:[%s2068_s6 + $0xe8] ss:$36 sps:$4 sm:$0xff]  }
  0x15   :  { %670 = vmatprep.subr.bf16.mxu0 %v1587_v26  ;;  %v1614_v6 = vld [vmem:[%s2068_s6 + $0xa0] ss:$36 sps:$4 sm:$0xff]   ;;  %v1628_v13 = vld [vmem:[%s2068_s6 + $0x134] ss:$36 sps:$4 sm:$0xff]   ;;  %v1641_v24 = vld [vmem:[%s2068_s6 + $0x1c8] ss:$36 sps:$4 sm:$0xff]  }
  0x16   :  { %1427 = vmatpush3.bf16.msra.mxu1 %v1551_v12  ;;  %v1623_v12 = vld [vmem:[%s2068_s6 + $0xf0] ss:$36 sps:$4 sm:$0xff]   ;;  %v1631_v14 = vld [vmem:[%s2068_s6 + $0x13c] ss:$36 sps:$4 sm:$0xff]   ;;  %v1640_v21 = vld [vmem:[%s2068_s6 + $0x1c4] ss:$36 sps:$4 sm:$0xff]  }
  0x17   :  { %1428 = vmatprep.subr.bf16.mxu1 %v1658_v0  ;;  %v1626_v15 = vld [vmem:[%s2068_s6 + $0x130] ss:$36 sps:$4 sm:$0xff]   ;;  %v1629_v16 = vld [vmem:[%s2068_s6 + $0x138] ss:$36 sps:$4 sm:$0xff]   ;;  %v1635_v20 = vld [vmem:[%s2068_s6 + $0x180] ss:$36 sps:$4 sm:$0xff]  }
  0x18   :  { %671 = vmatpush1.bf16.msra.mxu0 %v1589_v28  ;;  %v1634_v17 = vld [vmem:[%s2068_s6 + $0x17c] ss:$36 sps:$4 sm:$0xff]   ;;  %v1649_v26 = vld [vmem:[%s2068_s6 + $0x214] ss:$36 sps:$4 sm:$0xff]  }
  0x19   :  { %672 = vmatprep.subr.bf16.mxu0 %v1593_v41  ;;  %v1632_v19 = vld [vmem:[%s2068_s6 + $0x178] ss:$36 sps:$4 sm:$0xff]   ;;  %v1638_v23 = vld [vmem:[%s2068_s6 + $0x1c0] ss:$36 sps:$4 sm:$0xff]   ;;  %v1647_v28 = vld [vmem:[%s2068_s6 + $0x210] ss:$36 sps:$4 sm:$0xff]  }
  0x1a   :  { %1429 = vmatpush3.bf16.msra.mxu1 %v1552_v18  ;;  %v1637_v18 = vld [vmem:[%s2068_s6 + $0x184] ss:$36 sps:$4 sm:$0xff]  }
  0x1b   :  { %1430 = vmatprep.subr.bf16.mxu1 %v1658_v0 }
  0x1c   :  { %673 = vmatpush1.bf16.msra.mxu0 %v1595_v43 }
  0x1d   :  { %674 = vmatprep.subr.bf16.mxu0 %v1599_v45 }
  0x1e   :  { %1431 = vmatpush3.bf16.msra.mxu1 %v1553_v22  ;;  %v1643_v22 = vld [vmem:[%s2068_s6 + $0x1cc] ss:$36 sps:$4 sm:$0xff]  }
  0x1f   :  { %619 = vmatprep.subr.bf16.mxu1 %v1556_v25  ;;  %v1646_v25 = vld [vmem:[%s2068_s6 + $0x20c] ss:$36 sps:$4 sm:$0xff]  }
  0x20   :  { %675 = vmatpush1.bf16.msra.mxu0 %v1601_v47 }
  0x21   :  { %1433 = vmatmul.mubr.bf16.vlgmr.msra.gmra.mrb[0].mxu1 %v48_v29  ;;  %742 = vmatprep.subr.bf16.mxu0 %v1607_v49  ;;  %v1650_v29 = vld [vmem:[%s2068_s6 + $0x20] ss:$36 sps:$4 sm:$0xff]  }
  0x22   :  { %620 = vmatpush1.bf16.msra.mxu1 %v1554_v27  ;;  %651 = vmatprep.mubr.bf16.mxu1 %v1660_v50  ;;  %v1644_v27 = vld [vmem:[%s2068_s6 + $0x208] ss:$36 sps:$4 sm:$0xff]  }
  0x23   :  { %621 = vmatprep.subr.bf16.mxu1 %v1562_v30  ;;  %v1651_v30 = vld [vmem:[%s2068_s6 + $0x68] ss:$36 sps:$4 sm:$0xff]  }
  0x26   :  { %622 = vmatpush1.bf16.msra.mxu1 %v1560_v31  ;;  %v1652_v31 = vld [vmem:[%s2068_s6 + $0xb0] ss:$36 sps:$4 sm:$0xff]  }
  0x27   :  { %623 = vmatprep.subr.bf16.mxu1 %v1568_v32  ;;  %v1653_v32 = vld [vmem:[%s2068_s6 + $0xf8] ss:$36 sps:$4 sm:$0xff]  }
  0x2a   :  { %624 = vmatpush1.bf16.msra.mxu1 %v1566_v33  ;;  %v1654_v33 = vld [vmem:[%s2068_s6 + $0x140] ss:$36 sps:$4 sm:$0xff]  }
  0x2b   :  { %625 = vmatprep.subr.bf16.mxu1 %v1574_v34  ;;  %v1655_v34 = vld [vmem:[%s2068_s6 + $0x188] ss:$36 sps:$4 sm:$0xff]  }
  0x2e   :  { %626 = vmatpush1.bf16.msra.mxu1 %v1572_v35  ;;  %v1656_v35 = vld [vmem:[%s2068_s6 + $0x1d0] ss:$36 sps:$4 sm:$0xff]  }
  0x2f   :  { %627 = vmatprep.subr.bf16.mxu1 %v1580_v36  ;;  %v1657_v36 = vld [vmem:[%s2068_s6 + $0x218] ss:$36 sps:$4 sm:$0xff]  }
  0x32   :  { %628 = vmatpush1.bf16.msra.mxu1 %v1578_v37 }
  0x33   :  { %629 = vmatprep.subr.bf16.mxu1 %v1586_v38 }
  0x36   :  { %630 = vmatpush1.bf16.msra.mxu1 %v1584_v39 }
  0x37   :  { %631 = vmatprep.subr.bf16.mxu1 %v1592_v40 }
  0x3a   :  { %632 = vmatpush1.bf16.msra.mxu1 %v1590_v42 }
  0x3b   :  { %633 = vmatprep.subr.bf16.mxu1 %v1598_v44 }
  0x3e   :  { %634 = vmatpush1.bf16.msra.mxu1 %v1596_v46 }
  0x3f   :  { %701 = vmatprep.subr.bf16.mxu1 %v1604_v48  ;;  %v824_v48 = vld [vmem:[%s2074_s7] sm:$0x1] }
  0xf4   :  { %v147_v52 = vpop.f32.mrb[0].mxu1 }
  0xf5   :  { %v160_v54 = vmul.f32 %v1289_v51, %v147_v52  ;;  %v1434_v55 = vpop.f32.mrb[1].mxu1  ;;  %v1364_v51 = vld [vmem:[%s2074_s7 + $0x1] sm:$0x1] }
  0xf6   :  { %v150_v56 = vpop.f32.mrb[2].mxu1 }
  0xf7   :  { %v168_v57 = vadd.f32 %v1290_v53, %v160_v54  ;;  %v1435_v58 = vpop.f32.mrb[3].mxu1  ;;  %v1366_v54 = vld [vmem:[%s2074_s7 + $0x2] sm:$0x1] }
  0xf9   :  { %v169_v59 = vmax.f32 %v168_v57, 0.0 }
  0xfb   :  { %v1866_v62 = vpack.c.bf16 %v169_v59, %v169_v59 }
  0xfd   :  { %652 = vmatmul.mubr.bf16.vlgmr.msra.gmra.mrb[4].mxu1 %v1866_v62  ;;  %693 = vmatmul.mubr.bf16.vlgmr.msra.gmra.mrb[0].mxu0 %v1866_v62 }
  0xfe   :  { %702 = vmatpush1.bf16.msra.mxu1 %v1602_v60  ;;  %743 = vmatpush1.bf16.msra.mxu0 %v1605_v61 }
  0xff   :  { %703 = vmatprep.subr.bf16.mxu1 %v1610_v63  ;;  %744 = vmatprep.subr.bf16.mxu0 %v1613_v1 }
 0x100   :  { %733 = vmatprep.mubr.bf16.mxu1 %v1660_v50  ;;  %774 = vmatprep.mubr.bf16.mxu0 %v1660_v50 }
 0x102   :  { %704 = vmatpush1.bf16.msra.mxu1 %v1608_v2  ;;  %745 = vmatpush1.bf16.msra.mxu0 %v1611_v3 }
 0x103   :  { %705 = vmatprep.subr.bf16.mxu1 %v1616_v4  ;;  %746 = vmatprep.subr.bf16.mxu0 %v1619_v5 }
 0x106   :  { %706 = vmatpush1.bf16.msra.mxu1 %v1614_v6  ;;  %747 = vmatpush1.bf16.msra.mxu0 %v1617_v7  ;;  %v1368_v6 = vld [vmem:[%s2074_s7 + $0x3] sm:$0x1] }
 0x107   :  { %707 = vmatprep.subr.bf16.mxu1 %v1622_v9  ;;  %748 = vmatprep.subr.bf16.mxu0 %v1625_v10  ;;  %v1370_v10 = vld [vmem:[%s2074_s7 + $0x4] sm:$0x1] }
 0x10a   :  { %708 = vmatpush1.bf16.msra.mxu1 %v1620_v11  ;;  %749 = vmatpush1.bf16.msra.mxu0 %v1623_v12 }
 0x10b   :  { %709 = vmatprep.subr.bf16.mxu1 %v1628_v13  ;;  %750 = vmatprep.subr.bf16.mxu0 %v1631_v14  ;;  %v1372_v13 = vld [vmem:[%s2074_s7 + $0x5] sm:$0x1] }
 0x10e   :  { %710 = vmatpush1.bf16.msra.mxu1 %v1626_v15  ;;  %751 = vmatpush1.bf16.msra.mxu0 %v1629_v16 }
 0x10f   :  { %711 = vmatprep.subr.bf16.mxu1 %v1634_v17  ;;  %752 = vmatprep.subr.bf16.mxu0 %v1637_v18 }
 0x112   :  { %712 = vmatpush1.bf16.msra.mxu1 %v1632_v19  ;;  %753 = vmatpush1.bf16.msra.mxu0 %v1635_v20  ;;  %v1374_v19 = vld [vmem:[%s2074_s7 + $0x6] sm:$0x1]  ;;  %v1376_v20 = vld [vmem:[%s2074_s7 + $0x7] sm:$0x1] }
 0x113   :  { %713 = vmatprep.subr.bf16.mxu1 %v1640_v21  ;;  %754 = vmatprep.subr.bf16.mxu0 %v1643_v22  ;;  %v1378_v21 = vld [vmem:[%s2074_s7 + $0x8] sm:$0x1] }
 0x116   :  { %714 = vmatpush1.bf16.msra.mxu1 %v1638_v23  ;;  %755 = vmatpush1.bf16.msra.mxu0 %v1641_v24 }
 0x117   :  { %715 = vmatprep.subr.bf16.mxu1 %v1646_v25  ;;  %756 = vmatprep.subr.bf16.mxu0 %v1649_v26 }
 0x11a   :  { %716 = vmatpush1.bf16.msra.mxu1 %v1644_v27  ;;  %757 = vmatpush1.bf16.msra.mxu0 %v1647_v28 }
 0x11b   :  { %1436 = vmatprep.subr.bf16.mxu1 %v1658_v0  ;;  %1456 = vmatprep.subr.bf16.mxu0 %v1658_v0 }
 0x11d   :  { %734 = vmatmul.mubr.bf16.vlgmr.msra.gmra.mrb[8].mxu1 %v1866_v62  ;;  %775 = vmatmul.mubr.bf16.vlgmr.msra.gmra.mrb[4].mxu0 %v1866_v62 }
 0x11e   :  { %1437 = vmatpush3.bf16.msra.mxu1 %v1650_v29  ;;  %1452 = vmatprep.mubr.msk.bf16.mxu1 %vm1659_vm0, %v1658_v0 }
 0x11f   :  { %1438 = vmatprep.subr.bf16.mxu1 %v1658_v0  ;;  %1458 = vmatprep.mubr.msk.bf16.mxu0 %vm1659_vm0, %v1658_v0 }
 0x122   :  { %1439 = vmatpush3.bf16.msra.mxu1 %v1651_v30 }
 0x123   :  { %1440 = vmatprep.subr.bf16.mxu1 %v1658_v0 }
 0x126   :  { %1441 = vmatpush3.bf16.msra.mxu1 %v1652_v31 }
 0x127   :  { %1442 = vmatprep.subr.bf16.mxu1 %v1658_v0 }
 0x12a   :  { %1443 = vmatpush3.bf16.msra.mxu1 %v1653_v32 }
 0x12b   :  { %1444 = vmatprep.subr.bf16.mxu1 %v1658_v0 }
 0x12e   :  { %1445 = vmatpush3.bf16.msra.mxu1 %v1654_v33 }
 0x12f   :  { %1446 = vmatprep.subr.bf16.mxu1 %v1658_v0 }
 0x132   :  { %1447 = vmatpush3.bf16.msra.mxu1 %v1655_v34 }
 0x133   :  { %1448 = vmatprep.subr.bf16.mxu1 %v1658_v0 }
 0x136   :  { %1449 = vmatpush3.bf16.msra.mxu1 %v1656_v35 }
 0x137   :  { %1450 = vmatprep.subr.bf16.mxu1 %v1658_v0 }
 0x13a   :  { %1451 = vmatpush3.bf16.msra.mxu1 %v1657_v36 }
 0x13d   :  { %1453 = vmatmul.mubr.bf16.vlgmr.msra.gmra.mrb[12].mxu1 %v1866_v62 }
 0x1d0   :  { %v653_v37 = vpop.f32.mrb[4].mxu1  ;;  %v694_v38 = vpop.f32.mrb[0].mxu0 }
 0x1d1   :  { %v823_v39 = vpack.c.bf16 %v653_v37, %v653_v37  ;;  %v655_v40 = vpop.f32.mrb[5].mxu1  ;;  %v696_v41 = vpop.f32.mrb[1].mxu0  ;;  %v924_v50 = vpack.c.bf16 %v694_v38, %v694_v38 }
 0x1d2   :  { %v657_v42 = vpop.f32.mrb[6].mxu1  ;;  %v698_v43 = vpop.f32.mrb[2].mxu0  ;;  %v874_v45 = vpack.c.bf16 %v655_v40, %v655_v40  ;;  %v974_v53 = vpack.c.bf16 %v696_v41, %v696_v41 }
 0x1d3   :  { %v831_v44 = vsel %vm829_vm1, %v823_v39, 0  ;;  %v658_v46 = vpop.f32.mrb[7].mxu1  ;;  %v699_v47 = vpop.f32.mrb[3].mxu0  ;;  %v931_v52 = vsel %vm829_vm1, %v924_v50, 0 }
 0x1d4   :  { %1457 = vmatpush3.bf16.msra.mxu0 %v831_v44  ;;  %v881_v49 = vsel %vm829_vm1, %v874_v45, 0  ;;  %v981_v55 = vsel %vm829_vm1, %v974_v53, 0 }
 0x1d5   :  { %1462 = vmatprep.subr.bf16.mxu0 %v1658_v0 }
 0x1d7   :  { %1459 = vmatmul.mubr.msk.bf16.vlgmr.msra.gmra.mrb[8].mxu0 %vm825_vm2, %v824_v48 }
 0x1d8   :  { %1463 = vmatpush3.bf16.msra.mxu0 %v881_v49  ;;  %1464 = vmatprep.mubr.msk.bf16.mxu0 %vm1659_vm0, %v1658_v0 }
 0x1d9   :  { %1468 = vmatprep.subr.bf16.mxu0 %v1658_v0 }
 0x1e3   :  { %1465 = vmatmul.mubr.msk.bf16.vlgmr.msra.gmra.mrb[8].mxu0 %vm825_vm2, %v1364_v51 }
 0x1e4   :  { %1469 = vmatpush3.bf16.msra.mxu0 %v931_v52  ;;  %1470 = vmatprep.mubr.msk.bf16.mxu0 %vm1659_vm0, %v1658_v0 }
 0x1e5   :  { %1474 = vmatprep.subr.bf16.mxu0 %v1658_v0 }
 0x1ef   :  { %1471 = vmatmul.mubr.msk.bf16.vlgmr.msra.gmra.mrb[8].mxu0 %vm825_vm2, %v1366_v54 }
 0x1f0   :  { %v735_v56 = vpop.f32.mrb[8].mxu1  ;;  %v776_v57 = vpop.f32.mrb[4].mxu0  ;;  %1475 = vmatpush3.bf16.msra.mxu0 %v981_v55  ;;  %1476 = vmatprep.mubr.msk.bf16.mxu0 %vm1659_vm0, %v1658_v0 }
 0x1f1   :  { %v1124_v58 = vpack.c.bf16 %v776_v57, %v776_v57  ;;  %v737_v59 = vpop.f32.mrb[9].mxu1  ;;  %v778_v60 = vpop.f32.mrb[5].mxu0  ;;  %1480 = vmatprep.subr.bf16.mxu0 %v1658_v0  ;;  %v1024_v5 = vpack.c.bf16 %v735_v56, %v735_v56 }
 0x1f2   :  { %v1174_v61 = vpack.c.bf16 %v778_v60, %v778_v60  ;;  %v739_v62 = vpop.f32.mrb[10].mxu1  ;;  %v780_v63 = vpop.f32.mrb[6].mxu0  ;;  %v1074_v9 = vpack.c.bf16 %v737_v59, %v737_v59 }
 0x1f3   :  { %v1131_v1 = vsel %vm829_vm1, %v1124_v58, 0  ;;  %v740_v2 = vpop.f32.mrb[11].mxu1  ;;  %v781_v3 = vpop.f32.mrb[7].mxu0  ;;  %v1031_v7 = vsel %vm829_vm1, %v1024_v5, 0 }
 0x1f4   :  { %v1181_v4 = vsel %vm829_vm1, %v1174_v61, 0  ;;  %v1081_v11 = vsel %vm829_vm1, %v1074_v9, 0 }
 0x1fb   :  { %1477 = vmatmul.mubr.msk.bf16.vlgmr.msra.gmra.mrb[8].mxu0 %vm825_vm2, %v1368_v6 }
 0x1fc   :  { %1481 = vmatpush3.bf16.msra.mxu0 %v1031_v7  ;;  %1482 = vmatprep.mubr.msk.bf16.mxu0 %vm1659_vm0, %v1658_v0 }
 0x1fd   :  { %1486 = vmatprep.subr.bf16.mxu0 %v1658_v0 }
 0x207   :  { %1483 = vmatmul.mubr.msk.bf16.vlgmr.msra.gmra.mrb[8].mxu0 %vm825_vm2, %v1370_v10 }
 0x208   :  { %1487 = vmatpush3.bf16.msra.mxu0 %v1081_v11  ;;  %1488 = vmatprep.mubr.msk.bf16.mxu0 %vm1659_vm0, %v1658_v0 }
 0x209   :  { %1492 = vmatprep.subr.bf16.mxu0 %v1658_v0 }
 0x210   :  { %v817_v12 = vpop.f32.mrb[12].mxu1 }
 0x211   :  { %v1224_v14 = vpack.c.bf16 %v817_v12, %v817_v12  ;;  %v1454_v15 = vpop.f32.mrb[13].mxu1 }
 0x212   :  { %v820_v16 = vpop.f32.mrb[14].mxu1 }
 0x213   :  { %v1231_v17 = vsel %vm829_vm1, %v1224_v14, 0  ;;  %v1455_v18 = vpop.f32.mrb[15].mxu1  ;;  %1489 = vmatmul.mubr.msk.bf16.vlgmr.msra.gmra.mrb[8].mxu0 %vm825_vm2, %v1372_v13 }
 0x214   :  { %1493 = vmatpush3.bf16.msra.mxu0 %v1131_v1  ;;  %1494 = vmatprep.mubr.msk.bf16.mxu0 %vm1659_vm0, %v1658_v0 }
 0x215   :  { %1498 = vmatprep.subr.bf16.mxu0 %v1658_v0 }
 0x21f   :  { %1495 = vmatmul.mubr.msk.bf16.vlgmr.msra.gmra.mrb[8].mxu0 %vm825_vm2, %v1374_v19 }
 0x220   :  { %1499 = vmatpush3.bf16.msra.mxu0 %v1181_v4  ;;  %1500 = vmatprep.mubr.msk.bf16.mxu0 %vm1659_vm0, %v1658_v0 }
 0x221   :  { %1504 = vmatprep.subr.bf16.mxu0 %v1658_v0 }
 0x22b   :  { %1501 = vmatmul.mubr.msk.bf16.vlgmr.msra.gmra.mrb[8].mxu0 %vm825_vm2, %v1376_v20 }
 0x22c   :  { %1505 = vmatpush3.bf16.msra.mxu0 %v1231_v17  ;;  %1506 = vmatprep.mubr.msk.bf16.mxu0 %vm1659_vm0, %v1658_v0 }
 0x237   :  { %1507 = vmatmul.mubr.msk.bf16.vlgmr.msra.gmra.mrb[8].mxu0 %vm825_vm2, %v1378_v21 }
 0x30a   :  { %v1267_v22 = vpop.f32.mrb[8].mxu0 }
 0x30b   :  { %v1510_v23 = vadd.f32 %v1267_v22, %v1736_v8  ;;  %v1508_v24 = vpop.f32.mrb[9].mxu0 }
 0x30c   :  { %v1270_v25 = vpop.f32.mrb[10].mxu0 }
 0x30d   :  { %1274 = vst [vmem:[%s2075_s8] sm:$0x3] %v1510_v23  ;;  %v1509_v26 = vpop.f32.mrb[11].mxu0 }

</bundles_post_ra>
